<compile_context>
chip_gen: v6e
topology: v6e:2x2x1
jax: 0.10.0
libtpu: 0.0.40
codegen_flags: <defaults>
</compile_context>

<pallas_src>
import jax
import jax.numpy as jnp
from jax.experimental import pallas as pl
from jax.experimental.pallas import tpu as pltpu


_VMEM_LIMIT = 48 * 1024 * 1024   # explicit budget: fits v7x (64 MiB) and v5e/v6e (128 MiB)
_EPS = 1e-5


# ----------------------------------------------------------------------------
# tile-selection helpers (avoid padded HBM copies unless a dim is un-tileable)
# ----------------------------------------------------------------------------
def _round_up(x, m):
    return ((x + m - 1) // m) * m


def _largest_aligned_divisor(dim, cap, align):
    t = (min(cap, dim) // align) * align
    while t >= align:
        if dim % t == 0:
            return t
        t -= align
    return None


def _pick_tile(dim, cap, align):
    """Return (tile, padded_dim); prefers tiles that divide `dim` exactly."""
    if dim <= cap:
        return dim, dim                      # full-dim block (alignment-exempt)
    t = _largest_aligned_divisor(dim, cap, align)
    if t is not None:
        return t, dim
    pd = _round_up(dim, align)               # fallback only (not hit in this script)
    return _largest_aligned_divisor(pd, cap, align), pd


# ----------------------------------------------------------------------------
# Kernel 1: tiled bf16 matmul, f32 accumulation, fused bias + per-column
#           sum / sum-of-squares (BatchNorm batch statistics) in the epilogue.
# ----------------------------------------------------------------------------
def _mm_stats_kernel(a_ref, b_ref, bias_ref, o_ref, stats_ref, acc_ref):
    @pl.when(pl.program_id(2) == 0)
    def _():
        acc_ref[...] = jnp.zeros_like(acc_ref)

    acc_ref[...] += jnp.dot(a_ref[...], b_ref[...],
                            preferred_element_type=jnp.float32)

    @pl.when(pl.program_id(2) == pl.num_programs(2) - 1)
    def _():
        y = acc_ref[...] + bias_ref[...]          # f32 epilogue (v5e-safe)
        o_ref[...] = y
        s = jnp.sum(y, axis=0, keepdims=True)
        ss = jnp.sum(y * y, axis=0, keepdims=True)
        stats_ref[...] = jnp.concatenate([s, ss], axis=0)[None]


def pallas_matmul_stats(a, b, bias=None, *, m_cap=256, n_cap=512, k_cap=4096):
    """out = a @ b + bias with bf16 operands on the MXU and f32 output.

    Also returns per-m-tile column statistics of shape (grid_m, 2, N) with
    stats[:, 0] = column sums and stats[:, 1] = column sums of squares of the
    (biased) output -- reduced by the caller into BatchNorm batch statistics.
    """
    a = a.astype(jnp.bfloat16)
    b = b.astype(jnp.bfloat16)
    M, K = a.shape
    K2, N = b.shape
    assert K == K2
    tm, Mp = _pick_tile(M, m_cap, 8)
    tk, Kp = _pick_tile(K, k_cap, 128)
    tn, Np = _pick_tile(N, n_cap, 128)

    if (Mp, Kp) != (M, K):
        a = jnp.zeros((Mp, Kp), a.dtype).at[:M, :K].set(a)
    if (Kp, Np) != (K, N):
        b = jnp.zeros((Kp, Np), b.dtype).at[:K, :N].set(b)
    if bias is None:
        bias_row = jnp.zeros((1, Np), jnp.float32)
    elif Np == N:
        bias_row = bias.astype(jnp.float32).reshape(1, N)
    else:
        bias_row = jnp.zeros((1, Np), jnp.float32).at[0, :N].set(bias.astype(jnp.float32))

    gm, gn, gk = Mp // tm, Np // tn, Kp // tk
    out, stats = pl.pallas_call(
        _mm_stats_kernel,
        out_shape=(jax.ShapeDtypeStruct((Mp, Np), jnp.float32),
                   jax.ShapeDtypeStruct((gm, 2, Np), jnp.float32)),
        grid_spec=pltpu.PrefetchScalarGridSpec(
            num_scalar_prefetch=0,
            grid=(gm, gn, gk),
            in_specs=[
                pl.BlockSpec((tm, tk), lambda i, j, k: (i, k)),
                pl.BlockSpec((tk, tn), lambda i, j, k: (k, j)),
                pl.BlockSpec((1, tn), lambda i, j, k: (0, j)),
            ],
            out_specs=[
                pl.BlockSpec((tm, tn), lambda i, j, k: (i, j)),
                pl.BlockSpec((1, 2, tn), lambda i, j, k: (i, 0, j)),
            ],
            scratch_shapes=[pltpu.VMEM((tm, tn), jnp.float32)],
        ),
        compiler_params=pltpu.CompilerParams(
            dimension_semantics=("parallel", "parallel", "arbitrary"),
            vmem_limit_bytes=_VMEM_LIMIT),
    )(a, b, bias_row)

    if (Mp, Np) != (M, N):
        out = out[:M, :N]
        stats = stats[:, :, :N]
    return out, stats


# ----------------------------------------------------------------------------
# Kernel 2: tiled per-channel scale/shift (folded BatchNorm) + ReLU, with the
#           output dtype selectable (bf16 when feeding the next matmul).
# ----------------------------------------------------------------------------
def _scale_shift_relu_kernel(x_ref, s_ref, t_ref, o_ref):
    y = x_ref[...] * s_ref[...] + t_ref[...]          # f32 math (v5e-safe)
    o_ref[...] = jnp.maximum(y, 0.0).astype(o_ref.dtype)


def pallas_scale_shift_relu(x, scale, shift, out_dtype, *, r_cap=256):
    R, C = x.shape
    tr, Rp = _pick_tile(R, r_cap, 8)
    if Rp != R:
        x = jnp.zeros((Rp, C), x.dtype).at[:R].set(x)
    out = pl.pallas_call(
        _scale_shift_relu_kernel,
        out_shape=jax.ShapeDtypeStruct((Rp, C), out_dtype),
        grid_spec=pltpu.PrefetchScalarGridSpec(
            num_scalar_prefetch=0,
            grid=(Rp // tr,),
            in_specs=[
                pl.BlockSpec((tr, C), lambda i: (i, 0)),
                pl.BlockSpec((1, C), lambda i: (0, 0)),
                pl.BlockSpec((1, C), lambda i: (0, 0)),
            ],
            out_specs=pl.BlockSpec((tr, C), lambda i: (i, 0)),
        ),
        compiler_params=pltpu.CompilerParams(
            dimension_semantics=("parallel",),
            vmem_limit_bytes=_VMEM_LIMIT),
    )(x.astype(jnp.float32), scale.reshape(1, C).astype(jnp.float32),
      shift.reshape(1, C).astype(jnp.float32))
    return out[:R] if Rp != R else out


# ----------------------------------------------------------------------------
# BatchNorm fold (train-mode batch statistics, biased variance, like torch)
# ----------------------------------------------------------------------------
def _bn_fold(sum_c, sumsq_c, count, gamma, beta):
    mean = sum_c / count
    var = jnp.maximum(sumsq_c / count - mean * mean, 0.0)
    scale = gamma * jax.lax.rsqrt(var + _EPS)
    shift = beta - mean * scale
    return scale, shift


# ----------------------------------------------------------------------------
# Parameter preparation: PyTorch layouts -> matmul-friendly bf16 layouts
# ----------------------------------------------------------------------------
def prepare_params(p):
    ci, co = p['w_deconv'].shape[0], p['w_deconv'].shape[1]
    # ConvTranspose3d weight (Ci, Co, 2, 2, 2) -> (Ci, 8*Co), columns = (dz, dy, dx, co)
    w_dc = jnp.transpose(p['w_deconv'], (0, 2, 3, 4, 1)).reshape(ci, 8 * co)
    b_dc = jnp.tile(p['b_deconv'].astype(jnp.float32), 8)
    # Conv3d weight (Co, Ci2, 3, 3, 3) -> (27*Ci2, Co), rows = (kz, ky, kx, ci)
    ci2 = p['w_conv'].shape[1]
    w_cv = jnp.transpose(p['w_conv'], (2, 3, 4, 1, 0)).reshape(27 * ci2, co)
    return dict(w_dc=w_dc.astype(jnp.bfloat16), b_dc=b_dc,
                w_conv=w_cv.astype(jnp.bfloat16),
                bn1_g=p['bn1_g'].astype(jnp.float32), bn1_b=p['bn1_b'].astype(jnp.float32),
                bn2_g=p['bn2_g'].astype(jnp.float32), bn2_b=p['bn2_b'].astype(jnp.float32))


# ----------------------------------------------------------------------------
# Dconv3DBlock forward
# ----------------------------------------------------------------------------
def dconv3d_block_forward(x, prep):
    """x: (N, Cin, D, H, W) f32 -> (N, Cout, 2D, 2H, 2W) f32."""
    n, ci, d, h, w = x.shape
    co = prep['bn1_g'].shape[0]
    d2, h2, w2 = 2 * d, 2 * h, 2 * w
    cnt = float(n * d2 * h2 * w2)          # BatchNorm3d reduces over N and all spatial dims

    # ---- ConvTranspose3d(k=2, s=2): one bf16 matmul, bias + BN stats fused ----
    x_rows = jnp.transpose(x, (0, 2, 3, 4, 1)).reshape(n * d * h * w, ci)
    y1, st1 = pallas_matmul_stats(x_rows, prep['w_dc'], prep['b_dc'])
    # y1: (N*D*H*W, 8*Co) f32, columns ordered (dz, dy, dx, co)

    # ---- BatchNorm3d #1 folded to per-channel scale/shift ----
    s1 = jnp.sum(st1, axis=0).reshape(2, 8, co).sum(axis=1)   # fold the 8 deconv taps
    scale1, shift1 = _bn_fold(s1[0], s1[1], cnt, prep['bn1_g'], prep['bn1_b'])

    # ---- fused BN1-apply + ReLU, emitted in bf16 for the next matmul ----
    z1 = pallas_scale_shift_relu(y1, jnp.tile(scale1, 8), jnp.tile(shift1, 8),
                                 out_dtype=jnp.bfloat16)
    # scatter the 2x2x2 deconv taps into the upsampled NDHWC volume
    z1 = (z1.reshape(n, d, h, w, 2, 2, 2, co)
            .transpose(0, 1, 4, 2, 5, 3, 6, 7)
            .reshape(n, d2, h2, w2, co))

    # ---- Conv3d(k=3, s=1, p=1, bias=False): bf16 im2col + bf16 matmul ----
    # TODO(synk): replace the JAX-side im2col with an in-kernel 27-tap halo-window
    # accumulation (manual DMA) once spatial volumes are large enough for the 27x
    # bf16 expansion to dominate HBM traffic.
    zp = jnp.pad(z1, ((0, 0), (1, 1), (1, 1), (1, 1), (0, 0)))
    cols = [zp[:, kz:kz + d2, ky:ky + h2, kx:kx + w2, :]
            for kz in range(3) for ky in range(3) for kx in range(3)]
    im = jnp.stack(cols, axis=4).reshape(n * d2 * h2 * w2, 27 * co)
    y2, st2 = pallas_matmul_stats(im, prep['w_conv'], None)

    # ---- BatchNorm3d #2 + ReLU ----
    s2 = jnp.sum(st2, axis=0)
    scale2, shift2 = _bn_fold(s2[0], s2[1], cnt, prep['bn2_g'], prep['bn2_b'])
    out = pallas_scale_shift_relu(y2, scale2, shift2, out_dtype=jnp.float32)

    return out.reshape(n, d2, h2, w2, co).transpose(0, 4, 1, 2, 3)   # back to NCDHW


# ----------------------------------------------------------------------------
# Main
# ----------------------------------------------------------------------------
if __name__ == "__main__":
    # Shapes consistent with the module's use in a 3D UNet decoder:
    # Dconv3DBlock(in_channels=256, out_channels=128) on a (2, 256, 2, 4, 4) volume.
    # Channel counts are 128-multiples so every matmul is lane-dense and pad-free.
    in_ch, out_ch = 256, 128
    batch, d, h, w = 2, 2, 4, 4

    root = jax.random.PRNGKey(0)
    kx, kdw, kdb, kcw = jax.random.split(root, 4)
    x = jax.random.normal(kx, (batch, in_ch, d, h, w), jnp.float32)

    torch_params = dict(
        w_deconv=0.05 * jax.random.normal(kdw, (in_ch, out_ch, 2, 2, 2), jnp.float32),
        b_deconv=0.05 * jax.random.normal(kdb, (out_ch,), jnp.float32),
        w_conv=0.05 * jax.random.normal(kcw, (out_ch, out_ch, 3, 3, 3), jnp.float32),
        bn1_g=jnp.ones((out_ch,), jnp.float32), bn1_b=jnp.zeros((out_ch,), jnp.float32),
        bn2_g=jnp.ones((out_ch,), jnp.float32), bn2_b=jnp.zeros((out_ch,), jnp.float32),
    )
    prep = prepare_params(torch_params)

    fwd = jax.jit(dconv3d_block_forward)
    out = jax.block_until_ready(fwd(x, prep))

    assert out.shape == (batch, out_ch, 2 * d, 2 * h, 2 * w), out.shape
    assert bool(jnp.all(jnp.isfinite(out)))
    print("KERNEL_OK")
</pallas_src>

<mosaic_0001>
module attributes {stable_mosaic.version = 11 : i64} {
  func.func @_mm_stats_kernel(%arg0: i32, %arg1: i32, %arg2: i32, %arg3: memref<64x256xbf16, #tpu.memory_space<vmem>>, %arg4: memref<256x512xbf16, #tpu.memory_space<vmem>>, %arg5: memref<1x512xf32, #tpu.memory_space<vmem>>, %arg6: memref<64x512xf32, #tpu.memory_space<vmem>>, %arg7: memref<1x2x512xf32, #tpu.memory_space<vmem>>, %arg8: memref<64x512xf32, #tpu.memory_space<vmem>>) attributes {dimension_semantics = [#tpu.dimension_semantics<parallel>, #tpu.dimension_semantics<parallel>, #tpu.dimension_semantics<arbitrary>], iteration_bounds = array<i64: 1, 2, 1>, scalar_prefetch = 0 : i64, scratch_operands = 1 : i64, tpu.core_type = #tpu.core_type<tc>, window_params = [{transform_indices = @transform_0, window_bounds = array<i64: 64, 256>}, {transform_indices = @transform_1, window_bounds = array<i64: 256, 512>}, {transform_indices = @transform_2, window_bounds = array<i64: 1, 512>}, {transform_indices = @transform_3, window_bounds = array<i64: 64, 512>}, {transform_indices = @transform_4, window_bounds = array<i64: 1, 2, 512>}]} {
    %c0_i32 = arith.constant 0 : i32
    %0 = arith.cmpi eq, %arg2, %c0_i32 : i32
    %1 = arith.extui %0 : i1 to i32
    %c0_i32_0 = arith.constant 0 : i32
    %2 = arith.cmpi ne, %1, %c0_i32_0 : i32
    scf.if %2 {
      %cst_10 = arith.constant 0.000000e+00 : f32
      %12 = vector.broadcast %cst_10 : f32 to vector<64x512xf32>
      %c0_11 = arith.constant 0 : index
      %c0_12 = arith.constant 0 : index
      %13 = vector.load %arg8[%c0_11, %c0_12] : memref<64x512xf32, #tpu.memory_space<vmem>>, vector<64x512xf32>
      tpu.vector_store %arg8[%c0_11, %c0_12], %12 {strides = array<i32>} : memref<64x512xf32, #tpu.memory_space<vmem>>, vector<64x512xf32>,
    } else {
    }
    %c0 = arith.constant 0 : index
    %c0_1 = arith.constant 0 : index
    %3 = vector.load %arg8[%c0, %c0_1] : memref<64x512xf32, #tpu.memory_space<vmem>>, vector<64x512xf32>
    %c0_2 = arith.constant 0 : index
    %c0_3 = arith.constant 0 : index
    %4 = vector.load %arg3[%c0_2, %c0_3] : memref<64x256xbf16, #tpu.memory_space<vmem>>, vector<64x256xbf16>
    %c0_4 = arith.constant 0 : index
    %c0_5 = arith.constant 0 : index
    %5 = vector.load %arg4[%c0_4, %c0_5] : memref<256x512xbf16, #tpu.memory_space<vmem>>, vector<256x512xbf16>
    %cst = arith.constant dense<0.000000e+00> : vector<64x512xf32>
    %6 = tpu.matmul %4, %5, %cst {dimension_numbers = #tpu.dot_dimension_numbers<[1], [0], [0], [1], [0, 0, 1, 1], [], []>} : vector<64x256xbf16>, vector<256x512xbf16>, vector<64x512xf32> -> vector<64x512xf32>
    %7 = arith.addf %3, %6 : vector<64x512xf32>
    %c0_6 = arith.constant 0 : index
    %c0_7 = arith.constant 0 : index
    %8 = vector.load %arg8[%c0_6, %c0_7] : memref<64x512xf32, #tpu.memory_space<vmem>>, vector<64x512xf32>
    tpu.vector_store %arg8[%c0_6, %c0_7], %7 {strides = array<i32>} : memref<64x512xf32, #tpu.memory_space<vmem>>, vector<64x512xf32>,
    %c0_i32_8 = arith.constant 0 : i32
    %9 = arith.cmpi eq, %arg2, %c0_i32_8 : i32
    %10 = arith.extui %9 : i1 to i32
    %c0_i32_9 = arith.constant 0 : i32
    %11 = arith.cmpi ne, %10, %c0_i32_9 : i32
    scf.if %11 {
      %c0_10 = arith.constant 0 : index
      %c0_11 = arith.constant 0 : index
      %12 = vector.load %arg8[%c0_10, %c0_11] : memref<64x512xf32, #tpu.memory_space<vmem>>, vector<64x512xf32>
      %c0_12 = arith.constant 0 : index
      %c0_13 = arith.constant 0 : index
      %13 = vector.load %arg5[%c0_12, %c0_13] : memref<1x512xf32, #tpu.memory_space<vmem>>, vector<1x512xf32>
      %14 = vector.broadcast %13 : vector<1x512xf32> to vector<64x512xf32>
      %15 = arith.addf %12, %14 : vector<64x512xf32>
      %c0_14 = arith.constant 0 : index
      %c0_15 = arith.constant 0 : index
      %16 = vector.load %arg6[%c0_14, %c0_15] : memref<64x512xf32, #tpu.memory_space<vmem>>, vector<64x512xf32>
      tpu.vector_store %arg6[%c0_14, %c0_15], %15 {strides = array<i32>} : memref<64x512xf32, #tpu.memory_space<vmem>>, vector<64x512xf32>,
      %cst_16 = arith.constant dense<0.000000e+00> : vector<512xf32>
      %17 = vector.multi_reduction <add>, %15, %cst_16 [0] : vector<64x512xf32> to vector<512xf32>
      %18 = vector.shape_cast %17 : vector<512xf32> to vector<1x512xf32>
      %19 = arith.mulf %15, %15 : vector<64x512xf32>
      %cst_17 = arith.constant dense<0.000000e+00> : vector<512xf32>
      %20 = vector.multi_reduction <add>, %19, %cst_17 [0] : vector<64x512xf32> to vector<512xf32>
      %21 = vector.shape_cast %20 : vector<512xf32> to vector<1x512xf32>
      %22 = tpu.concatenate %18, %21 in 0 : vector<1x512xf32>, vector<1x512xf32> -> vector<2x512xf32>
      %23 = vector.shape_cast %22 : vector<2x512xf32> to vector<1x2x512xf32>
      %c0_18 = arith.constant 0 : index
      %c0_19 = arith.constant 0 : index
      %c0_20 = arith.constant 0 : index
      %24 = vector.load %arg7[%c0_18, %c0_19, %c0_20] : memref<1x2x512xf32, #tpu.memory_space<vmem>>, vector<1x2x512xf32>
      tpu.vector_store %arg7[%c0_18, %c0_19, %c0_20], %23 {strides = array<i32>} : memref<1x2x512xf32, #tpu.memory_space<vmem>>, vector<1x2x512xf32>,
    } else {
    }
    return
  }
  func.func @transform_0(%arg0: i32, %arg1: i32, %arg2: i32) -> (i32, i32) {
    %c0_i32 = arith.constant 0 : i32
    return %arg0, %arg2 : i32, i32
  }
  func.func @transform_1(%arg0: i32, %arg1: i32, %arg2: i32) -> (i32, i32) {
    %c0_i32 = arith.constant 0 : i32
    return %arg2, %arg1 : i32, i32
  }
  func.func @transform_2(%arg0: i32, %arg1: i32, %arg2: i32) -> (i32, i32) {
    %c0_i32 = arith.constant 0 : i32
    %c0_i32_0 = arith.constant 0 : i32
    return %c0_i32, %arg1 : i32, i32
  }
  func.func @transform_3(%arg0: i32, %arg1: i32, %arg2: i32) -> (i32, i32) {
    %c0_i32 = arith.constant 0 : i32
    return %arg0, %arg1 : i32, i32
  }
  func.func @transform_4(%arg0: i32, %arg1: i32, %arg2: i32) -> (i32, i32, i32) {
    %c0_i32 = arith.constant 0 : i32
    %c0_i32_0 = arith.constant 0 : i32
    return %arg0, %c0_i32, %arg1 : i32, i32, i32
  }
}

module attributes {stable_mosaic.version = 11 : i64} {
  func.func @_scale_shift_relu_kernel(%arg0: i32, %arg1: memref<64x1024xf32, #tpu.memory_space<vmem>>, %arg2: memref<1x1024xf32, #tpu.memory_space<vmem>>, %arg3: memref<1x1024xf32, #tpu.memory_space<vmem>>, %arg4: memref<64x1024xbf16, #tpu.memory_space<vmem>>) attributes {dimension_semantics = [#tpu.dimension_semantics<parallel>], iteration_bounds = array<i64: 1>, scalar_prefetch = 0 : i64, scratch_operands = 0 : i64, tpu.core_type = #tpu.core_type<tc>, window_params = [{transform_indices = @transform_0, window_bounds = array<i64: 64, 1024>}, {pipeline_mode = #tpu.pipeline_mode<synchronous>, transform_indices = @transform_1, window_bounds = array<i64: 1, 1024>}, {pipeline_mode = #tpu.pipeline_mode<synchronous>, transform_indices = @transform_2, window_bounds = array<i64: 1, 1024>}, {transform_indices = @transform_3, window_bounds = array<i64: 64, 1024>}]} {
    %c0 = arith.constant 0 : index
    %c0_0 = arith.constant 0 : index
    %0 = vector.load %arg1[%c0, %c0_0] : memref<64x1024xf32, #tpu.memory_space<vmem>>, vector<64x1024xf32>
    %c0_1 = arith.constant 0 : index
    %c0_2 = arith.constant 0 : index
    %1 = vector.load %arg2[%c0_1, %c0_2] : memref<1x1024xf32, #tpu.memory_space<vmem>>, vector<1x1024xf32>
    %2 = vector.broadcast %1 : vector<1x1024xf32> to vector<64x1024xf32>
    %3 = arith.mulf %0, %2 : vector<64x1024xf32>
    %c0_3 = arith.constant 0 : index
    %c0_4 = arith.constant 0 : index
    %4 = vector.load %arg3[%c0_3, %c0_4] : memref<1x1024xf32, #tpu.memory_space<vmem>>, vector<1x1024xf32>
    %5 = vector.broadcast %4 : vector<1x1024xf32> to vector<64x1024xf32>
    %6 = arith.addf %3, %5 : vector<64x1024xf32>
    %cst = arith.constant 0.000000e+00 : f32
    %7 = vector.broadcast %cst : f32 to vector<64x1024xf32>
    %8 = arith.maximumf %6, %7 : vector<64x1024xf32>
    %9 = arith.truncf %8 : vector<64x1024xf32> to vector<64x1024xbf16>
    %c0_5 = arith.constant 0 : index
    %c0_6 = arith.constant 0 : index
    %10 = vector.load %arg4[%c0_5, %c0_6] : memref<64x1024xbf16, #tpu.memory_space<vmem>>, vector<64x1024xbf16>
    tpu.vector_store %arg4[%c0_5, %c0_6], %9 {strides = array<i32>} : memref<64x1024xbf16, #tpu.memory_space<vmem>>, vector<64x1024xbf16>,
    return
  }
  func.func @transform_0(%arg0: i32) -> (i32, i32) {
    %c0_i32 = arith.constant 0 : i32
    %c0_i32_0 = arith.constant 0 : i32
    return %arg0, %c0_i32 : i32, i32
  }
  func.func @transform_1(%arg0: i32) -> (i32, i32) {
    %c0_i32 = arith.constant 0 : i32
    %c0_i32_0 = arith.constant 0 : i32
    %c0_i32_1 = arith.constant 0 : i32
    return %c0_i32, %c0_i32_0 : i32, i32
  }
  func.func @transform_2(%arg0: i32) -> (i32, i32) {
    %c0_i32 = arith.constant 0 : i32
    %c0_i32_0 = arith.constant 0 : i32
    %c0_i32_1 = arith.constant 0 : i32
    return %c0_i32, %c0_i32_0 : i32, i32
  }
  func.func @transform_3(%arg0: i32) -> (i32, i32) {
    %c0_i32 = arith.constant 0 : i32
    %c0_i32_0 = arith.constant 0 : i32
    return %arg0, %c0_i32 : i32, i32
  }
}

module attributes {stable_mosaic.version = 11 : i64} {
  func.func @_mm_stats_kernel(%arg0: i32, %arg1: i32, %arg2: i32, %arg3: memref<256x3456xbf16, #tpu.memory_space<vmem>>, %arg4: memref<3456x128xbf16, #tpu.memory_space<vmem>>, %arg5: memref<1x128xf32, #tpu.memory_space<vmem>>, %arg6: memref<256x128xf32, #tpu.memory_space<vmem>>, %arg7: memref<1x2x128xf32, #tpu.memory_space<vmem>>, %arg8: memref<256x128xf32, #tpu.memory_space<vmem>>) attributes {dimension_semantics = [#tpu.dimension_semantics<parallel>, #tpu.dimension_semantics<parallel>, #tpu.dimension_semantics<arbitrary>], iteration_bounds = array<i64: 2, 1, 1>, scalar_prefetch = 0 : i64, scratch_operands = 1 : i64, tpu.core_type = #tpu.core_type<tc>, window_params = [{transform_indices = @transform_0, window_bounds = array<i64: 256, 3456>}, {transform_indices = @transform_1, window_bounds = array<i64: 3456, 128>}, {transform_indices = @transform_2, window_bounds = array<i64: 1, 128>}, {transform_indices = @transform_3, window_bounds = array<i64: 256, 128>}, {transform_indices = @transform_4, window_bounds = array<i64: 1, 2, 128>}]} {
    %c0_i32 = arith.constant 0 : i32
    %0 = arith.cmpi eq, %arg2, %c0_i32 : i32
    %1 = arith.extui %0 : i1 to i32
    %c0_i32_0 = arith.constant 0 : i32
    %2 = arith.cmpi ne, %1, %c0_i32_0 : i32
    scf.if %2 {
      %cst_10 = arith.constant 0.000000e+00 : f32
      %12 = vector.broadcast %cst_10 : f32 to vector<256x128xf32>
      %c0_11 = arith.constant 0 : index
      %c0_12 = arith.constant 0 : index
      %13 = vector.load %arg8[%c0_11, %c0_12] : memref<256x128xf32, #tpu.memory_space<vmem>>, vector<256x128xf32>
      tpu.vector_store %arg8[%c0_11, %c0_12], %12 {strides = array<i32>} : memref<256x128xf32, #tpu.memory_space<vmem>>, vector<256x128xf32>,
    } else {
    }
    %c0 = arith.constant 0 : index
    %c0_1 = arith.constant 0 : index
    %3 = vector.load %arg8[%c0, %c0_1] : memref<256x128xf32, #tpu.memory_space<vmem>>, vector<256x128xf32>
    %c0_2 = arith.constant 0 : index
    %c0_3 = arith.constant 0 : index
    %4 = vector.load %arg3[%c0_2, %c0_3] : memref<256x3456xbf16, #tpu.memory_space<vmem>>, vector<256x3456xbf16>
    %c0_4 = arith.constant 0 : index
    %c0_5 = arith.constant 0 : index
    %5 = vector.load %arg4[%c0_4, %c0_5] : memref<3456x128xbf16, #tpu.memory_space<vmem>>, vector<3456x128xbf16>
    %cst = arith.constant dense<0.000000e+00> : vector<256x128xf32>
    %6 = tpu.matmul %4, %5, %cst {dimension_numbers = #tpu.dot_dimension_numbers<[1], [0], [0], [1], [0, 0, 1, 1], [], []>} : vector<256x3456xbf16>, vector<3456x128xbf16>, vector<256x128xf32> -> vector<256x128xf32>
    %7 = arith.addf %3, %6 : vector<256x128xf32>
    %c0_6 = arith.constant 0 : index
    %c0_7 = arith.constant 0 : index
    %8 = vector.load %arg8[%c0_6, %c0_7] : memref<256x128xf32, #tpu.memory_space<vmem>>, vector<256x128xf32>
    tpu.vector_store %arg8[%c0_6, %c0_7], %7 {strides = array<i32>} : memref<256x128xf32, #tpu.memory_space<vmem>>, vector<256x128xf32>,
    %c0_i32_8 = arith.constant 0 : i32
    %9 = arith.cmpi eq, %arg2, %c0_i32_8 : i32
    %10 = arith.extui %9 : i1 to i32
    %c0_i32_9 = arith.constant 0 : i32
    %11 = arith.cmpi ne, %10, %c0_i32_9 : i32
    scf.if %11 {
      %c0_10 = arith.constant 0 : index
      %c0_11 = arith.constant 0 : index
      %12 = vector.load %arg8[%c0_10, %c0_11] : memref<256x128xf32, #tpu.memory_space<vmem>>, vector<256x128xf32>
      %c0_12 = arith.constant 0 : index
      %c0_13 = arith.constant 0 : index
      %13 = vector.load %arg5[%c0_12, %c0_13] : memref<1x128xf32, #tpu.memory_space<vmem>>, vector<1x128xf32>
      %14 = vector.broadcast %13 : vector<1x128xf32> to vector<256x128xf32>
      %15 = arith.addf %12, %14 : vector<256x128xf32>
      %c0_14 = arith.constant 0 : index
      %c0_15 = arith.constant 0 : index
      %16 = vector.load %arg6[%c0_14, %c0_15] : memref<256x128xf32, #tpu.memory_space<vmem>>, vector<256x128xf32>
      tpu.vector_store %arg6[%c0_14, %c0_15], %15 {strides = array<i32>} : memref<256x128xf32, #tpu.memory_space<vmem>>, vector<256x128xf32>,
      %cst_16 = arith.constant dense<0.000000e+00> : vector<128xf32>
      %17 = vector.multi_reduction <add>, %15, %cst_16 [0] : vector<256x128xf32> to vector<128xf32>
      %18 = vector.shape_cast %17 : vector<128xf32> to vector<1x128xf32>
      %19 = arith.mulf %15, %15 : vector<256x128xf32>
      %cst_17 = arith.constant dense<0.000000e+00> : vector<128xf32>
      %20 = vector.multi_reduction <add>, %19, %cst_17 [0] : vector<256x128xf32> to vector<128xf32>
      %21 = vector.shape_cast %20 : vector<128xf32> to vector<1x128xf32>
      %22 = tpu.concatenate %18, %21 in 0 : vector<1x128xf32>, vector<1x128xf32> -> vector<2x128xf32>
      %23 = vector.shape_cast %22 : vector<2x128xf32> to vector<1x2x128xf32>
      %c0_18 = arith.constant 0 : index
      %c0_19 = arith.constant 0 : index
      %c0_20 = arith.constant 0 : index
      %24 = vector.load %arg7[%c0_18, %c0_19, %c0_20] : memref<1x2x128xf32, #tpu.memory_space<vmem>>, vector<1x2x128xf32>
      tpu.vector_store %arg7[%c0_18, %c0_19, %c0_20], %23 {strides = array<i32>} : memref<1x2x128xf32, #tpu.memory_space<vmem>>, vector<1x2x128xf32>,
    } else {
    }
    return
  }
  func.func @transform_0(%arg0: i32, %arg1: i32, %arg2: i32) -> (i32, i32) {
    %c0_i32 = arith.constant 0 : i32
    return %arg0, %arg2 : i32, i32
  }
  func.func @transform_1(%arg0: i32, %arg1: i32, %arg2: i32) -> (i32, i32) {
    %c0_i32 = arith.constant 0 : i32
    return %arg2, %arg1 : i32, i32
  }
  func.func @transform_2(%arg0: i32, %arg1: i32, %arg2: i32) -> (i32, i32) {
    %c0_i32 = arith.constant 0 : i32
    %c0_i32_0 = arith.constant 0 : i32
    return %c0_i32, %arg1 : i32, i32
  }
  func.func @transform_3(%arg0: i32, %arg1: i32, %arg2: i32) -> (i32, i32) {
    %c0_i32 = arith.constant 0 : i32
    return %arg0, %arg1 : i32, i32
  }
  func.func @transform_4(%arg0: i32, %arg1: i32, %arg2: i32) -> (i32, i32, i32) {
    %c0_i32 = arith.constant 0 : i32
    %c0_i32_0 = arith.constant 0 : i32
    return %arg0, %c0_i32, %arg1 : i32, i32, i32
  }
}

module attributes {stable_mosaic.version = 11 : i64} {
  func.func @_scale_shift_relu_kernel(%arg0: i32, %arg1: memref<256x128xf32, #tpu.memory_space<vmem>>, %arg2: memref<1x128xf32, #tpu.memory_space<vmem>>, %arg3: memref<1x128xf32, #tpu.memory_space<vmem>>, %arg4: memref<256x128xf32, #tpu.memory_space<vmem>>) attributes {dimension_semantics = [#tpu.dimension_semantics<parallel>], iteration_bounds = array<i64: 2>, scalar_prefetch = 0 : i64, scratch_operands = 0 : i64, tpu.core_type = #tpu.core_type<tc>, window_params = [{transform_indices = @transform_0, window_bounds = array<i64: 256, 128>}, {pipeline_mode = #tpu.pipeline_mode<synchronous>, transform_indices = @transform_1, window_bounds = array<i64: 1, 128>}, {pipeline_mode = #tpu.pipeline_mode<synchronous>, transform_indices = @transform_2, window_bounds = array<i64: 1, 128>}, {transform_indices = @transform_3, window_bounds = array<i64: 256, 128>}]} {
    %c0 = arith.constant 0 : index
    %c0_0 = arith.constant 0 : index
    %0 = vector.load %arg1[%c0, %c0_0] : memref<256x128xf32, #tpu.memory_space<vmem>>, vector<256x128xf32>
    %c0_1 = arith.constant 0 : index
    %c0_2 = arith.constant 0 : index
    %1 = vector.load %arg2[%c0_1, %c0_2] : memref<1x128xf32, #tpu.memory_space<vmem>>, vector<1x128xf32>
    %2 = vector.broadcast %1 : vector<1x128xf32> to vector<256x128xf32>
    %3 = arith.mulf %0, %2 : vector<256x128xf32>
    %c0_3 = arith.constant 0 : index
    %c0_4 = arith.constant 0 : index
    %4 = vector.load %arg3[%c0_3, %c0_4] : memref<1x128xf32, #tpu.memory_space<vmem>>, vector<1x128xf32>
    %5 = vector.broadcast %4 : vector<1x128xf32> to vector<256x128xf32>
    %6 = arith.addf %3, %5 : vector<256x128xf32>
    %cst = arith.constant 0.000000e+00 : f32
    %7 = vector.broadcast %cst : f32 to vector<256x128xf32>
    %8 = arith.maximumf %6, %7 : vector<256x128xf32>
    %c0_5 = arith.constant 0 : index
    %c0_6 = arith.constant 0 : index
    %9 = vector.load %arg4[%c0_5, %c0_6] : memref<256x128xf32, #tpu.memory_space<vmem>>, vector<256x128xf32>
    tpu.vector_store %arg4[%c0_5, %c0_6], %8 {strides = array<i32>} : memref<256x128xf32, #tpu.memory_space<vmem>>, vector<256x128xf32>,
    return
  }
  func.func @transform_0(%arg0: i32) -> (i32, i32) {
    %c0_i32 = arith.constant 0 : i32
    %c0_i32_0 = arith.constant 0 : i32
    return %arg0, %c0_i32 : i32, i32
  }
  func.func @transform_1(%arg0: i32) -> (i32, i32) {
    %c0_i32 = arith.constant 0 : i32
    %c0_i32_0 = arith.constant 0 : i32
    %c0_i32_1 = arith.constant 0 : i32
    return %c0_i32, %c0_i32_0 : i32, i32
  }
  func.func @transform_2(%arg0: i32) -> (i32, i32) {
    %c0_i32 = arith.constant 0 : i32
    %c0_i32_0 = arith.constant 0 : i32
    %c0_i32_1 = arith.constant 0 : i32
    return %c0_i32, %c0_i32_0 : i32, i32
  }
  func.func @transform_3(%arg0: i32) -> (i32, i32) {
    %c0_i32 = arith.constant 0 : i32
    %c0_i32_0 = arith.constant 0 : i32
    return %arg0, %c0_i32 : i32, i32
  }
}

</mosaic_0001>

<bundles_post_ra>
// kernel: tile.13
= control target key start
LH: loop header
LB: loop body
LE: loop exit
PB: predicated region body
PF: predicated region fallthrough
CT: control target
= control target key end

     0   :  { %s22_s0 = inlined_call_operand.vmem [shape: f32[128], index: 0, kind: input, shape index: {}]   ;;  %s23_s1 = inlined_call_operand.vmem [shape: f32[8,128], index: 1, kind: output, shape index: {}]  }
   0x1   :  { %v4_v0 = vld [vmem:[%s22_s0] ss:$0 sm:$0xff] }
   0x2   :  { %5 = vst [vmem:[%s23_s1] sm:$0xff] %v4_v0 }

// kernel: dconv3d_block_forward.5
= control target key start
LH: loop header
LB: loop body
LE: loop exit
PB: predicated region body
PF: predicated region fallthrough
CT: control target
= control target key end

     0   :  { %v80_v0 = vlaneseq  ;;  %s1130_s1 = inlined_call_operand.vmem [shape: f32[1,1024], index: 1, kind: input, shape index: {}]   ;;  %s1131_s2 = inlined_call_operand.vmem [shape: f32[1,1024], index: 2, kind: input, shape index: {}]   ;;  %s1132_s0 = inlined_call_operand.vmem [shape: f32[64,1024], index: 0, kind: input, shape index: {}]   ;;  %s1133_s3 = inlined_call_operand.vmem [shape: bf16[64,1024], index: 3, kind: output, shape index: {}]  }
   0x1   :  { %v78_v2 = vld [vmem:[%s1130_s1] sm:$0xff]  ;;  %v15_v9 = vld [vmem:[%s1132_s0 + $0x8] sm:$0xff]  ;;  %v16_v18 = vld [vmem:[%s1132_s0 + $0x10] sm:$0xff] }
   0x2   :  { %v666_v1 = vshrl.u32 %v80_v0, 7  ;;  %v184_v3 = vld [vmem:[%s1131_s2] sm:$0xff]  ;;  %v17_v19 = vld [vmem:[%s1132_s0 + $0x18] sm:$0xff]  ;;  %v19_v25 = vld [vmem:[%s1132_s0 + $0x28] sm:$0xff] }
   0x3   :  { %v14_v8 = vld [vmem:[%s1132_s0] sm:$0xff]  ;;  %v20_v38 = vld [vmem:[%s1132_s0 + $0x30] sm:$0xff]  ;;  %v21_v39 = vld [vmem:[%s1132_s0 + $0x38] sm:$0xff] }
   0x4   :  { %v82_v4 = vsub.s32 0, %v666_v1  ;;  %v86_v5 = vsub.s32 1, %v666_v1  ;;  %v90_v6 = vsub.s32 2, %v666_v1  ;;  %v94_v7 = vsub.s32 3, %v666_v1  ;;  %v18_v24 = vld [vmem:[%s1132_s0 + $0x20] sm:$0xff]  ;;  %v23_v49 = vld [vmem:[%s1132_s0 + $0x48] sm:$0xff] }
   0x5   :  { %v98_v10 = vsub.s32 4, %v666_v1  ;;  %v102_v11 = vsub.s32 5, %v666_v1  ;;  %v106_v12 = vsub.s32 6, %v666_v1  ;;  %v110_v13 = vsub.s32 7, %v666_v1  ;;  %v22_v48 = vld [vmem:[%s1132_s0 + $0x40] sm:$0xff]  ;;  %v24_v54 = vld [vmem:[%s1132_s0 + $0x50] sm:$0xff] }
   0x6   :  { %v688_v14 = vrot.slane %v78_v2, %v82_v4  ;;  %v690_v15 = vrot.slane %v78_v2, %v86_v5  ;;  %v692_v16 = vrot.slane %v184_v3, %v82_v4  ;;  %v694_v17 = vrot.slane %v184_v3, %v86_v5  ;;  %v25_v55 = vld [vmem:[%s1132_s0 + $0x58] sm:$0xff]  ;;  %v26_v60 = vld [vmem:[%s1132_s0 + $0x60] sm:$0xff]  ;;  %v27_v1 = vld [vmem:[%s1132_s0 + $0x68] sm:$0xff] }
   0x7   :  { %v702_v20 = vrot.slane %v78_v2, %v90_v6  ;;  %v704_v21 = vrot.slane %v78_v2, %v94_v7  ;;  %v706_v22 = vrot.slane %v184_v3, %v90_v6  ;;  %v708_v23 = vrot.slane %v184_v3, %v94_v7 }
   0x8   :  { %v120_v26 = vmul.f32 %v688_v14, %v14_v8  ;;  %v121_v27 = vmul.f32 %v690_v15, %v15_v9  ;;  %v718_v28 = vrot.slane %v78_v2, %v98_v10  ;;  %v720_v29 = vrot.slane %v78_v2, %v102_v11 }
   0x9   :  { %v122_v30 = vmul.f32 %v702_v20, %v16_v18  ;;  %v123_v31 = vmul.f32 %v704_v21, %v17_v19  ;;  %v724_v32 = vrot.slane %v184_v3, %v98_v10  ;;  %v726_v33 = vrot.slane %v184_v3, %v102_v11  ;;  %v28_v10 = vld [vmem:[%s1132_s0 + $0x70] sm:$0xff]  ;;  %v29_v19 = vld [vmem:[%s1132_s0 + $0x78] sm:$0xff] }
   0xa   :  { %v226_v34 = vadd.f32 %v692_v16, %v120_v26  ;;  %v227_v35 = vadd.f32 %v694_v17, %v121_v27  ;;  %v124_v36 = vmul.f32 %v718_v28, %v18_v24  ;;  %v125_v37 = vmul.f32 %v720_v29, %v19_v25 }
   0xb   :  { %v228_v40 = vadd.f32 %v706_v22, %v122_v30  ;;  %v229_v41 = vadd.f32 %v708_v23, %v123_v31  ;;  %v740_v42 = vrot.slane %v78_v2, %v106_v12  ;;  %v742_v43 = vrot.slane %v78_v2, %v110_v13  ;;  %v30_v30 = vld [vmem:[%s1132_s0 + $0x80] sm:$0xff] }
   0xc   :  { %v290_v44 = vmax.f32 %v226_v34, 0.0  ;;  %v291_v45 = vmax.f32 %v227_v35, 0.0  ;;  %v230_v46 = vadd.f32 %v724_v32, %v124_v36  ;;  %v231_v47 = vadd.f32 %v726_v33, %v125_v37  ;;  %v31_v37 = vld [vmem:[%s1132_s0 + $0x88] sm:$0xff] }
   0xd   :  { %v292_v50 = vmax.f32 %v228_v40, 0.0  ;;  %v293_v51 = vmax.f32 %v229_v41, 0.0  ;;  %v126_v52 = vmul.f32 %v740_v42, %v20_v38  ;;  %v127_v53 = vmul.f32 %v742_v43, %v21_v39  ;;  %v32_v38 = vld [vmem:[%s1132_s0 + $0x90] sm:$0xff]  ;;  %v33_v39 = vld [vmem:[%s1132_s0 + $0x98] sm:$0xff] }
   0xe   :  { %v614_v56 = vpack.c.bf16 %v291_v45, %v290_v44  ;;  %v294_v57 = vmax.f32 %v230_v46, 0.0  ;;  %v295_v58 = vmax.f32 %v231_v47, 0.0  ;;  %v760_v59 = vrot.slane %v184_v3, %v106_v12  ;;  %v34_v46 = vld [vmem:[%s1132_s0 + $0xa0] sm:$0xff] }
   0xf   :  { %v615_v61 = vpack.c.bf16 %v293_v51, %v292_v50  ;;  %v765_v62 = vrot.slane %v184_v3, %v110_v13  ;;  %v128_v63 = vmul.f32 %v688_v14, %v22_v48  ;;  %v129_v0 = vmul.f32 %v690_v15, %v23_v49 }
  0x10   :  { %546 = vst [vmem:[%s1133_s3] sm:$0xff] %v614_v56  ;;  %v616_v2 = vpack.c.bf16 %v295_v58, %v294_v57  ;;  %v232_v4 = vadd.f32 %v760_v59, %v126_v52  ;;  %v130_v5 = vmul.f32 %v702_v20, %v24_v54  ;;  %v131_v3 = vmul.f32 %v704_v21, %v25_v55  ;;  %v35_v55 = vld [vmem:[%s1132_s0 + $0xa8] sm:$0xff]  ;;  %v36_v56 = vld [vmem:[%s1132_s0 + $0xb0] sm:$0xff] }
  0x11   :  { %547 = vst [vmem:[%s1133_s3 + $0x8] sm:$0xff] %v615_v61  ;;  %v233_v6 = vadd.f32 %v765_v62, %v127_v53  ;;  %v234_v7 = vadd.f32 %v692_v16, %v128_v63  ;;  %v235_v8 = vadd.f32 %v694_v17, %v129_v0  ;;  %v132_v9 = vmul.f32 %v718_v28, %v26_v60 }
  0x12   :  { %548 = vst [vmem:[%s1133_s3 + $0x10] sm:$0xff] %v616_v2  ;;  %v296_v11 = vmax.f32 %v232_v4, 0.0  ;;  %v236_v12 = vadd.f32 %v706_v22, %v130_v5  ;;  %v237_v13 = vadd.f32 %v708_v23, %v131_v3  ;;  %v133_v18 = vmul.f32 %v720_v29, %v27_v1  ;;  %v37_v4 = vld [vmem:[%s1132_s0 + $0xb8] sm:$0xff] }
  0x13   :  { %v297_v24 = vmax.f32 %v233_v6, 0.0  ;;  %v298_v25 = vmax.f32 %v234_v7, 0.0  ;;  %v299_v26 = vmax.f32 %v235_v8, 0.0  ;;  %v238_v27 = vadd.f32 %v724_v32, %v132_v9  ;;  %v38_v8 = vld [vmem:[%s1132_s0 + $0xc0] sm:$0xff]  ;;  %v39_v9 = vld [vmem:[%s1132_s0 + $0xc8] sm:$0xff] }
  0x14   :  { %v300_v31 = vmax.f32 %v236_v12, 0.0  ;;  %v301_v34 = vmax.f32 %v237_v13, 0.0  ;;  %v239_v35 = vadd.f32 %v726_v33, %v133_v18  ;;  %v134_v36 = vmul.f32 %v740_v42, %v28_v10  ;;  %v40_v18 = vld [vmem:[%s1132_s0 + $0xd0] sm:$0xff] }
  0x15   :  { %v617_v40 = vpack.c.bf16 %v297_v24, %v296_v11  ;;  %v618_v41 = vpack.c.bf16 %v299_v26, %v298_v25  ;;  %v302_v44 = vmax.f32 %v238_v27, 0.0  ;;  %v135_v45 = vmul.f32 %v742_v43, %v29_v19  ;;  %v41_v27 = vld [vmem:[%s1132_s0 + $0xd8] sm:$0xff] }
  0x16   :  { %v619_v47 = vpack.c.bf16 %v301_v34, %v300_v31  ;;  %v303_v48 = vmax.f32 %v239_v35, 0.0  ;;  %v240_v49 = vadd.f32 %v760_v59, %v134_v36  ;;  %v136_v50 = vmul.f32 %v688_v14, %v30_v30  ;;  %v42_v30 = vld [vmem:[%s1132_s0 + $0xe0] sm:$0xff] }
  0x17   :  { %549 = vst [vmem:[%s1133_s3 + $0x18] sm:$0xff] %v617_v40  ;;  %550 = vst [vmem:[%s1133_s3 + $0x20] sm:$0xff] %v618_v41  ;;  %v241_v51 = vadd.f32 %v765_v62, %v135_v45  ;;  %v137_v52 = vmul.f32 %v690_v15, %v31_v37  ;;  %v138_v53 = vmul.f32 %v702_v20, %v32_v38  ;;  %v43_v37 = vld [vmem:[%s1132_s0 + $0xe8] sm:$0xff] }
  0x18   :  { %v139_v54 = vmul.f32 %v704_v21, %v33_v39  ;;  %551 = vst [vmem:[%s1133_s3 + $0x28] sm:$0xff] %v619_v47  ;;  %v620_v57 = vpack.c.bf16 %v303_v48, %v302_v44  ;;  %v304_v58 = vmax.f32 %v240_v49, 0.0  ;;  %v242_v60 = vadd.f32 %v692_v16, %v136_v50  ;;  %v44_v48 = vld [vmem:[%s1132_s0 + $0xf0] sm:$0xff] }
  0x19   :  { %v140_v61 = vmul.f32 %v718_v28, %v34_v46  ;;  %v305_v63 = vmax.f32 %v241_v51, 0.0  ;;  %v243_v0 = vadd.f32 %v694_v17, %v137_v52  ;;  %v244_v1 = vadd.f32 %v706_v22, %v138_v53  ;;  %v45_v53 = vld [vmem:[%s1132_s0 + $0xf8] sm:$0xff] }
  0x1a   :  { %v245_v2 = vadd.f32 %v708_v23, %v139_v54  ;;  %552 = vst [vmem:[%s1133_s3 + $0x30] sm:$0xff] %v620_v57  ;;  %v306_v5 = vmax.f32 %v242_v60, 0.0  ;;  %v141_v3 = vmul.f32 %v720_v29, %v35_v55  ;;  %v142_v7 = vmul.f32 %v740_v42, %v36_v56  ;;  %v47_v60 = vld [vmem:[%s1132_s0 + $0x108] sm:$0xff] }
  0x1b   :  { %v246_v6 = vadd.f32 %v724_v32, %v140_v61  ;;  %v621_v10 = vpack.c.bf16 %v305_v63, %v304_v58  ;;  %v307_v11 = vmax.f32 %v243_v0, 0.0  ;;  %v308_v12 = vmax.f32 %v244_v1, 0.0  ;;  %v46_v58 = vld [vmem:[%s1132_s0 + $0x100] sm:$0xff] }
  0x1c   :  { %v309_v13 = vmax.f32 %v245_v2, 0.0  ;;  %v247_v19 = vadd.f32 %v726_v33, %v141_v3  ;;  %v143_v25 = vmul.f32 %v742_v43, %v37_v4  ;;  %v248_v26 = vadd.f32 %v760_v59, %v142_v7  ;;  %v48_v2 = vld [vmem:[%s1132_s0 + $0x110] sm:$0xff]  ;;  %v49_v4 = vld [vmem:[%s1132_s0 + $0x118] sm:$0xff] }
  0x1d   :  { %v310_v24 = vmax.f32 %v246_v6, 0.0  ;;  %553 = vst [vmem:[%s1133_s3 + $0x38] sm:$0xff] %v621_v10  ;;  %v622_v31 = vpack.c.bf16 %v307_v11, %v306_v5  ;;  %v144_v35 = vmul.f32 %v688_v14, %v38_v8  ;;  %v145_v36 = vmul.f32 %v690_v15, %v39_v9 }
  0x1e   :  { %v623_v34 = vpack.c.bf16 %v309_v13, %v308_v12  ;;  %v311_v38 = vmax.f32 %v247_v19, 0.0  ;;  %v249_v39 = vadd.f32 %v765_v62, %v143_v25  ;;  %v312_v40 = vmax.f32 %v248_v26, 0.0  ;;  %v50_v12 = vld [vmem:[%s1132_s0 + $0x120] sm:$0xff]  ;;  %v51_v25 = vld [vmem:[%s1132_s0 + $0x128] sm:$0xff]  ;;  %v52_v26 = vld [vmem:[%s1132_s0 + $0x130] sm:$0xff] }
  0x1f   :  { %v146_v41 = vmul.f32 %v702_v20, %v40_v18  ;;  %554 = vst [vmem:[%s1133_s3 + $0x40] sm:$0xff] %v622_v31  ;;  %v250_v44 = vadd.f32 %v692_v16, %v144_v35  ;;  %v251_v45 = vadd.f32 %v694_v17, %v145_v36  ;;  %v147_v46 = vmul.f32 %v704_v21, %v41_v27 }
  0x20   :  { %555 = vst [vmem:[%s1133_s3 + $0x48] sm:$0xff] %v623_v34  ;;  %v148_v47 = vmul.f32 %v718_v28, %v42_v30  ;;  %v624_v49 = vpack.c.bf16 %v311_v38, %v310_v24  ;;  %v313_v50 = vmax.f32 %v249_v39, 0.0  ;;  %v149_v52 = vmul.f32 %v720_v29, %v43_v37  ;;  %v53_v39 = vld [vmem:[%s1132_s0 + $0x138] sm:$0xff] }
  0x21   :  { %v252_v51 = vadd.f32 %v706_v22, %v146_v41  ;;  %v314_v54 = vmax.f32 %v250_v44, 0.0  ;;  %v315_v55 = vmax.f32 %v251_v45, 0.0  ;;  %v253_v56 = vadd.f32 %v708_v23, %v147_v46  ;;  %v54_v46 = vld [vmem:[%s1132_s0 + $0x140] sm:$0xff] }
  0x22   :  { %v254_v57 = vadd.f32 %v724_v32, %v148_v47  ;;  %556 = vst [vmem:[%s1133_s3 + $0x50] sm:$0xff] %v624_v49  ;;  %v625_v61 = vpack.c.bf16 %v313_v50, %v312_v40  ;;  %v255_v0 = vadd.f32 %v726_v33, %v149_v52  ;;  %v150_v1 = vmul.f32 %v740_v42, %v44_v48  ;;  %v55_v47 = vld [vmem:[%s1132_s0 + $0x148] sm:$0xff]  ;;  %v56_v52 = vld [vmem:[%s1132_s0 + $0x150] sm:$0xff] }
  0x23   :  { %v316_v63 = vmax.f32 %v252_v51, 0.0  ;;  %v626_v5 = vpack.c.bf16 %v315_v55, %v314_v54  ;;  %v317_v3 = vmax.f32 %v253_v56, 0.0  ;;  %v151_v7 = vmul.f32 %v742_v43, %v45_v53 }
  0x24   :  { %v318_v6 = vmax.f32 %v254_v57, 0.0  ;;  %557 = vst [vmem:[%s1133_s3 + $0x58] sm:$0xff] %v625_v61  ;;  %v319_v8 = vmax.f32 %v255_v0, 0.0  ;;  %v256_v9 = vadd.f32 %v760_v59, %v150_v1  ;;  %v152_v10 = vmul.f32 %v688_v14, %v46_v58  ;;  %v57_v57 = vld [vmem:[%s1132_s0 + $0x158] sm:$0xff]  ;;  %v58_v58 = vld [vmem:[%s1132_s0 + $0x160] sm:$0xff]  ;;  %v59_v1 = vld [vmem:[%s1132_s0 + $0x168] sm:$0xff] }
  0x25   :  { %v153_v11 = vmul.f32 %v690_v15, %v47_v60  ;;  %558 = vst [vmem:[%s1133_s3 + $0x60] sm:$0xff] %v626_v5  ;;  %v627_v13 = vpack.c.bf16 %v317_v3, %v316_v63  ;;  %v257_v18 = vadd.f32 %v765_v62, %v151_v7  ;;  %v154_v19 = vmul.f32 %v702_v20, %v48_v2 }
  0x26   :  { %v155_v24 = vmul.f32 %v704_v21, %v49_v4  ;;  %v628_v27 = vpack.c.bf16 %v319_v8, %v318_v6  ;;  %v320_v30 = vmax.f32 %v256_v9, 0.0  ;;  %v258_v31 = vadd.f32 %v692_v16, %v152_v10  ;;  %v60_v10 = vld [vmem:[%s1132_s0 + $0x170] sm:$0xff] }
  0x27   :  { %v259_v34 = vadd.f32 %v694_v17, %v153_v11  ;;  %559 = vst [vmem:[%s1133_s3 + $0x68] sm:$0xff] %v627_v13  ;;  %v321_v35 = vmax.f32 %v257_v18, 0.0  ;;  %v260_v36 = vadd.f32 %v706_v22, %v154_v19  ;;  %v156_v38 = vmul.f32 %v718_v28, %v50_v12  ;;  %v61_v19 = vld [vmem:[%s1132_s0 + $0x178] sm:$0xff] }
  0x28   :  { %v261_v37 = vadd.f32 %v708_v23, %v155_v24  ;;  %560 = vst [vmem:[%s1133_s3 + $0x70] sm:$0xff] %v628_v27  ;;  %v322_v40 = vmax.f32 %v258_v31, 0.0  ;;  %v157_v44 = vmul.f32 %v720_v29, %v51_v25  ;;  %v158_v45 = vmul.f32 %v740_v42, %v52_v26  ;;  %v63_v31 = vld [vmem:[%s1132_s0 + $0x188] sm:$0xff] }
  0x29   :  { %v323_v41 = vmax.f32 %v259_v34, 0.0  ;;  %v629_v48 = vpack.c.bf16 %v321_v35, %v320_v30  ;;  %v324_v49 = vmax.f32 %v260_v36, 0.0  ;;  %v262_v51 = vadd.f32 %v724_v32, %v156_v38  ;;  %v62_v30 = vld [vmem:[%s1132_s0 + $0x180] sm:$0xff]  ;;  %v64_v38 = vld [vmem:[%s1132_s0 + $0x190] sm:$0xff] }
  0x2a   :  { %v325_v50 = vmax.f32 %v261_v37, 0.0  ;;  %v263_v54 = vadd.f32 %v726_v33, %v157_v44  ;;  %v159_v55 = vmul.f32 %v742_v43, %v53_v39  ;;  %v264_v56 = vadd.f32 %v760_v59, %v158_v45  ;;  %v65_v39 = vld [vmem:[%s1132_s0 + $0x198] sm:$0xff] }
  0x2b   :  { %v630_v53 = vpack.c.bf16 %v323_v41, %v322_v40  ;;  %561 = vst [vmem:[%s1133_s3 + $0x78] sm:$0xff] %v629_v48  ;;  %v326_v61 = vmax.f32 %v262_v51, 0.0  ;;  %v160_v63 = vmul.f32 %v688_v14, %v54_v46  ;;  %v161_v0 = vmul.f32 %v690_v15, %v55_v47 }
  0x2c   :  { %v631_v60 = vpack.c.bf16 %v325_v50, %v324_v49  ;;  %v327_v2 = vmax.f32 %v263_v54, 0.0  ;;  %v265_v4 = vadd.f32 %v765_v62, %v159_v55  ;;  %v328_v5 = vmax.f32 %v264_v56, 0.0  ;;  %v66_v50 = vld [vmem:[%s1132_s0 + $0x1a0] sm:$0xff]  ;;  %v67_v55 = vld [vmem:[%s1132_s0 + $0x1a8] sm:$0xff]  ;;  %v68_v56 = vld [vmem:[%s1132_s0 + $0x1b0] sm:$0xff] }
  0x2d   :  { %562 = vst [vmem:[%s1133_s3 + $0x80] sm:$0xff] %v630_v53  ;;  %v162_v3 = vmul.f32 %v702_v20, %v56_v52  ;;  %v266_v6 = vadd.f32 %v692_v16, %v160_v63  ;;  %v267_v7 = vadd.f32 %v694_v17, %v161_v0  ;;  %v163_v8 = vmul.f32 %v704_v21, %v57_v57 }
  0x2e   :  { %563 = vst [vmem:[%s1133_s3 + $0x88] sm:$0xff] %v631_v60  ;;  %v164_v9 = vmul.f32 %v718_v28, %v58_v58  ;;  %v632_v11 = vpack.c.bf16 %v327_v2, %v326_v61  ;;  %v329_v12 = vmax.f32 %v265_v4, 0.0  ;;  %v165_v18 = vmul.f32 %v720_v29, %v59_v1  ;;  %v69_v4 = vld [vmem:[%s1132_s0 + $0x1b8] sm:$0xff] }
  0x2f   :  { %v268_v13 = vadd.f32 %v706_v22, %v162_v3  ;;  %v330_v24 = vmax.f32 %v266_v6, 0.0  ;;  %v331_v25 = vmax.f32 %v267_v7, 0.0  ;;  %v269_v26 = vadd.f32 %v708_v23, %v163_v8  ;;  %v70_v8 = vld [vmem:[%s1132_s0 + $0x1c0] sm:$0xff] }
  0x30   :  { %v270_v27 = vadd.f32 %v724_v32, %v164_v9  ;;  %564 = vst [vmem:[%s1133_s3 + $0x90] sm:$0xff] %v632_v11  ;;  %v633_v34 = vpack.c.bf16 %v329_v12, %v328_v5  ;;  %v271_v36 = vadd.f32 %v726_v33, %v165_v18  ;;  %v166_v37 = vmul.f32 %v740_v42, %v60_v10  ;;  %v71_v9 = vld [vmem:[%s1132_s0 + $0x1c8] sm:$0xff]  ;;  %v72_v18 = vld [vmem:[%s1132_s0 + $0x1d0] sm:$0xff] }
  0x31   :  { %v332_v35 = vmax.f32 %v268_v13, 0.0  ;;  %v634_v40 = vpack.c.bf16 %v331_v25, %v330_v24  ;;  %v333_v41 = vmax.f32 %v269_v26, 0.0  ;;  %v167_v45 = vmul.f32 %v742_v43, %v61_v19 }
  0x32   :  { %v334_v44 = vmax.f32 %v270_v27, 0.0  ;;  %565 = vst [vmem:[%s1133_s3 + $0x98] sm:$0xff] %v633_v34  ;;  %v335_v46 = vmax.f32 %v271_v36, 0.0  ;;  %v272_v47 = vadd.f32 %v760_v59, %v166_v37  ;;  %v168_v48 = vmul.f32 %v688_v14, %v62_v30  ;;  %v73_v27 = vld [vmem:[%s1132_s0 + $0x1d8] sm:$0xff]  ;;  %v74_v30 = vld [vmem:[%s1132_s0 + $0x1e0] sm:$0xff]  ;;  %v75_v37 = vld [vmem:[%s1132_s0 + $0x1e8] sm:$0xff] }
  0x33   :  { %v169_v49 = vmul.f32 %v690_v15, %v63_v31  ;;  %566 = vst [vmem:[%s1133_s3 + $0xa0] sm:$0xff] %v634_v40  ;;  %v635_v51 = vpack.c.bf16 %v333_v41, %v332_v35  ;;  %v273_v52 = vadd.f32 %v765_v62, %v167_v45  ;;  %v170_v53 = vmul.f32 %v702_v20, %v64_v38 }
  0x34   :  { %v171_v54 = vmul.f32 %v704_v21, %v65_v39  ;;  %v636_v57 = vpack.c.bf16 %v335_v46, %v334_v44  ;;  %v336_v58 = vmax.f32 %v272_v47, 0.0  ;;  %v274_v60 = vadd.f32 %v692_v16, %v168_v48  ;;  %v76_v46 = vld [vmem:[%s1132_s0 + $0x1f0] sm:$0xff] }
  0x35   :  { %v275_v61 = vadd.f32 %v694_v17, %v169_v49  ;;  %567 = vst [vmem:[%s1133_s3 + $0xa8] sm:$0xff] %v635_v51  ;;  %v337_v63 = vmax.f32 %v273_v52, 0.0  ;;  %v276_v0 = vadd.f32 %v706_v22, %v170_v53  ;;  %v172_v2 = vmul.f32 %v718_v28, %v66_v50 }
  0x36   :  { %v277_v1 = vadd.f32 %v708_v23, %v171_v54  ;;  %568 = vst [vmem:[%s1133_s3 + $0xb0] sm:$0xff] %v636_v57  ;;  %v338_v5 = vmax.f32 %v274_v60, 0.0  ;;  %v173_v6 = vmul.f32 %v720_v29, %v67_v55  ;;  %v174_v7 = vmul.f32 %v740_v42, %v68_v56 }
  0x37   :  { %v339_v3 = vmax.f32 %v275_v61, 0.0  ;;  %v637_v10 = vpack.c.bf16 %v337_v63, %v336_v58  ;;  %v340_v11 = vmax.f32 %v276_v0, 0.0  ;;  %v278_v13 = vadd.f32 %v724_v32, %v172_v2 }
  0x38   :  { %v341_v12 = vmax.f32 %v277_v1, 0.0  ;;  %v279_v24 = vadd.f32 %v726_v33, %v173_v6  ;;  %v175_v25 = vmul.f32 %v742_v43, %v69_v4  ;;  %v280_v26 = vadd.f32 %v760_v59, %v174_v7 }
  0x39   :  { %v638_v19 = vpack.c.bf16 %v339_v3, %v338_v5  ;;  %569 = vst [vmem:[%s1133_s3 + $0xb8] sm:$0xff] %v637_v10  ;;  %v342_v34 = vmax.f32 %v278_v13, 0.0  ;;  %v176_v35 = vmul.f32 %v688_v14, %v70_v8  ;;  %v177_v36 = vmul.f32 %v690_v15, %v71_v9 }
  0x3a   :  { %v639_v31 = vpack.c.bf16 %v341_v12, %v340_v11  ;;  %v343_v38 = vmax.f32 %v279_v24, 0.0  ;;  %v281_v39 = vadd.f32 %v765_v62, %v175_v25  ;;  %v344_v40 = vmax.f32 %v280_v26, 0.0 }
  0x3b   :  { %570 = vst [vmem:[%s1133_s3 + $0xc0] sm:$0xff] %v638_v19  ;;  %v178_v41 = vmul.f32 %v702_v20, %v72_v18  ;;  %v282_v14 = vadd.f32 %v692_v16, %v176_v35  ;;  %v283_v15 = vadd.f32 %v694_v17, %v177_v36  ;;  %v179_v44 = vmul.f32 %v704_v21, %v73_v27  ;;  %v77_v16 = vld [vmem:[%s1132_s0 + $0x1f8] sm:$0xff] }
  0x3c   :  { %571 = vst [vmem:[%s1133_s3 + $0xc8] sm:$0xff] %v639_v31  ;;  %v180_v45 = vmul.f32 %v718_v28, %v74_v30  ;;  %v640_v47 = vpack.c.bf16 %v343_v38, %v342_v34  ;;  %v345_v48 = vmax.f32 %v281_v39, 0.0  ;;  %v181_v49 = vmul.f32 %v720_v29, %v75_v37 }
  0x3d   :  { %v284_v20 = vadd.f32 %v706_v22, %v178_v41  ;;  %v346_v50 = vmax.f32 %v282_v14, 0.0  ;;  %v347_v17 = vmax.f32 %v283_v15, 0.0  ;;  %v285_v21 = vadd.f32 %v708_v23, %v179_v44 }
  0x3e   :  { %v286_v28 = vadd.f32 %v724_v32, %v180_v45  ;;  %572 = vst [vmem:[%s1133_s3 + $0xd0] sm:$0xff] %v640_v47  ;;  %v641_v51 = vpack.c.bf16 %v345_v48, %v344_v40  ;;  %v287_v22 = vadd.f32 %v726_v33, %v181_v49  ;;  %v182_v29 = vmul.f32 %v740_v42, %v76_v46 }
  0x3f   :  { %v348_v52 = vmax.f32 %v284_v20, 0.0  ;;  %v642_v53 = vpack.c.bf16 %v347_v17, %v346_v50  ;;  %v349_v54 = vmax.f32 %v285_v21, 0.0  ;;  %v183_v56 = vmul.f32 %v742_v43, %v77_v16 }
  0x40   :  { %v350_v55 = vmax.f32 %v286_v28, 0.0  ;;  %573 = vst [vmem:[%s1133_s3 + $0xd8] sm:$0xff] %v641_v51  ;;  %v351_v23 = vmax.f32 %v287_v22, 0.0  ;;  %v288_v32 = vadd.f32 %v760_v59, %v182_v29 }
  0x41   :  { %574 = vst [vmem:[%s1133_s3 + $0xe0] sm:$0xff] %v642_v53  ;;  %v643_v57 = vpack.c.bf16 %v349_v54, %v348_v52  ;;  %v289_v33 = vadd.f32 %v765_v62, %v183_v56 }
  0x42   :  { %v644_v42 = vpack.c.bf16 %v351_v23, %v350_v55  ;;  %v352_v58 = vmax.f32 %v288_v32, 0.0 }
  0x43   :  { %575 = vst [vmem:[%s1133_s3 + $0xe8] sm:$0xff] %v643_v57  ;;  %v353_v43 = vmax.f32 %v289_v33, 0.0 }
  0x44   :  { %576 = vst [vmem:[%s1133_s3 + $0xf0] sm:$0xff] %v644_v42 }
  0x45   :  { %v645_v60 = vpack.c.bf16 %v353_v43, %v352_v58 }
  0x47   :  { %577 = vst [vmem:[%s1133_s3 + $0xf8] sm:$0xff] %v645_v60 }

// kernel: dconv3d_block_forward.4
= control target key start
LH: loop header
LB: loop body
LE: loop exit
PB: predicated region body
PF: predicated region fallthrough
CT: control target
= control target key end

     0   :  { %s2400_s0 = inlined_call_operand.vmem [shape: bf16[64,256], index: 0, kind: input, shape index: {}]   ;;  %s2401_s1 = inlined_call_operand.hbm [shape: bf16[256,1024], index: 1, kind: input, shape index: {}]   ;;  %s2402_s2 = inlined_call_operand.hbm [shape: f32[1,1024], index: 2, kind: input, shape index: {}]   ;;  %s2403_s3 = inlined_call_operand.vmem [shape: f32[64,1024], index: 3, kind: output, shape index: {0}]   ;;  %s2404_s4 = inlined_call_operand.vmem [shape: f32[1,2,1024], index: 4, kind: output, shape index: {1}]  }
   0x1   :  { %2405 = sst [smem:[#allocation10_spill]] %s2401_s1 }
   0x2   :  { %10 = vsyncpa [#allocation4], 0 }
   0x3   :  { %12 = vsyncpa [#allocation4 + $0x1], 0 }
   0x4   :  { %13 = vsyncpa [#allocation6], 0 }
   0x5   :  { %15 = vsyncpa [#allocation6 + $0x1], 0  ;;  %s2018_s15 = smov 0   ;;  %s2020_s16 = smov 0  }
   0x6   :  { %s2022_s17 = smov 0   ;;  %s2024_s18 = smov 0  }
   0x7   :  { %s2026_s19 = smov 0   ;;  %s2028_s20 = smov 0  }
   0x8 LB: > { %s1606_s21 = sadd.s32 4294967295, %s1985_s20   ;;  %s36_s22 = sadd.s32 1, %s1981_s19  ;;  %s1985_s20 = sphi %s2028_s20, %s21_s20   ;;  %s1981_s19 = sphi %s2026_s19, %s2416_s19   ;;  %s1977_s18 = sphi %s2024_s18, %s2415_s18   ;;  %s1973_s17 = sphi %s2022_s17, %s2414_s17   ;;  %s1969_s16 = sphi %s2020_s16, %s2413_s16   ;;  %s1965_s15 = sphi %s2018_s15, %s2412_s15  }
   0x9   : > { %p38_p0 = scmp.ge.s32.totalorder %s36_s22, 2  ;;  %s77_s23 = sadd.s32 1, %s1973_s17 }
   0xa   : > { %p84_p1 = scmp.ne.s32.totalorder %s1973_s17, %s1969_s16  ;;  %p85_p2 = scmp.eq.s32.totalorder %s1985_s20, 0 }
   0xb   : > { %s2418_s22 = smov (%p38_p0, %s36_s22), 0  ;;  %p90_p4 = scmp.ne.s32.totalorder %s1969_s16, %s1965_s15 }
   0xc   : > { %p2054_p3 = por %p85_p2, %p84_p1  ;;  %s73_s25 = ssub.s32 %s1981_s19, %s2418_s22 }
   0xd   : > { %p91_p5 = scmp.eq.s32.totalorder %s1606_s21, 0  ;;  %p75_p6 = scmp.eq.s32.totalorder %s73_s25, 0 }
   0xe   : > { %p142_p7 = scmp.eq.s32.totalorder %s1606_s21, 1  ;;  %p1714_p10 = scmp.lt.s32.totalorder %s1985_s20, 2 }
   0xf   : > { %p2061_p8 = por %p91_p5, %p90_p4  ;;  %s2074_s29 = sand.u32 1, %s1973_s17  }
  0x10   : > { %s2066_s27 = scalar_select %p75_p6, %s1973_s17, %s77_s23  }
  0x11   : > { %p2068_p9 = por %p142_p7, %p84_p1  ;;  %s1700_s30 = sshll.u32 %s1981_s19, 8 }
  0x12   : > { %s1611_s5 = sshll.u32 %s2074_s29, 9  ;;  %s2409_s1 = sld [smem:[#allocation10_spill]] }
  0x13   : > { %s215_s9 = scalar_lea.vmem [#allocation3], %s1611_s5  ;;  %p2083_p11 = pnand %p1714_p10, %p2054_p3 }
  0x14   : > { %s225_s10 = sshll.u32 %s215_s9, 4  ;;  %p1617_p12 = scmp.ge.s32.totalorder %s1985_s20, 1  ;;  %s226_s10 = int_to_ptr.vmem [resolvable:$true] %s225_s10 }
  0x15   : > { %s212_s12 = scalar_lea.sflag [#allocation4], %s2074_s29  ;;  %p1877_p13 = pneg %p2083_p11 }
  0x16   : > { %s1888_s13 = scalar_lea.vmem %s226_s10, 8192  ;;  %s1987_s14 = smov [#allocation3]  }
  0x17   : > { %p1889_p0 = scmp.ne.s32.totalorder %s226_s10, %s1888_s13  ;;  %s1893_s15 = sshll.u32 %s1987_s14, 4  ;;  %s1894_s15 = int_to_ptr.vmem [resolvable:$false] %s1893_s15 }
  0x18   : > { %s224_s8 = scalar_lea.hbm %s2409_s1, %s1700_s30  ;;  %s1895_s21 = scalar_lea.vmem %s1894_s15, 16384 }
  0x19   : > { %p1891_p1 = pnand %p1889_p0, %p1877_p13  ;;  %p1896_p3 = scmp.lt.s32.totalorder %s226_s10, %s1894_s15 }
  0x1a   : > { %p1897_p4 = scmp.lt.s32.totalorder %s1895_s21, %s1888_s13 }
  0x1b   : > { %p1892_p2 = pneg %p1891_p1 }
  0x1c   : > { %p1898_p5 = por %p1897_p4, %p1896_p3 }
  0x1e   : > { %p1899_p6 = pnand %p1898_p5, %p1892_p2 }
  0x20   : > { %1902 = shalt.err (!%p1899_p6)
}
  0x21   : > { %s1988_s23 = smov 512   ;;  %s1989_s24 = smov 256  }
  0x22   : > { %s1990_s25 = smov 16   ;;  %p252_p7 = scmp.lt.s32.totalorder %s1985_s20, 3 }
  0x23   : > { %1710 = dma.hbm_to_vmem [thread:$0]  (!%p2083_p11), %s224_s8, 8192, %s226_s10, %s212_s12, %s1988_s23, %s1989_s24, %s1990_s25  }
  0x24   : > { %s1614_s30 = sshll.u32 %s2074_s29, 2  ;;  %s1701_s5 = sshll.u32 %s1981_s19, 6 }
  0x25   : > { %p2101_p10 = pnand %p1617_p12, %p252_p7  ;;  %s245_s13 = scalar_lea.hbm %s2402_s2, %s1701_s5 }
  0x26   : > { %s239_s14 = scalar_lea.vmem [#allocation5], %s1614_s30  ;;  %s236_s21 = scalar_lea.sflag [#allocation6], %s2074_s29 }
  0x27   : > { %s247_s15 = sshll.u32 %s239_s14, 4  ;;  %s1991_s8 = smov [#allocation5]   ;;  %s248_s15 = int_to_ptr.vmem [resolvable:$true] %s247_s15 }
  0x28   : > { %s1916_s1 = scalar_lea.vmem %s248_s15, 64  ;;  %s1921_s10 = sshll.u32 %s1991_s8, 4  ;;  %s1922_s10 = int_to_ptr.vmem [resolvable:$false] %s1921_s10 }
  0x29   : > { %p1917_p0 = scmp.ne.s32.totalorder %s248_s15, %s1916_s1  ;;  %s1923_s12 = scalar_lea.vmem %s1922_s10, 128 }
  0x2a   : > { %p1924_p12 = scmp.lt.s32.totalorder %s248_s15, %s1922_s10  ;;  %p1925_p3 = scmp.lt.s32.totalorder %s1923_s12, %s1916_s1 }
  0x2b   : > { %p1919_p1 = pnand %p1917_p0, %p1877_p13 }
  0x2c   : > { %p1926_p4 = por %p1925_p3, %p1924_p12 }
  0x2d   : > { %p1920_p2 = pneg %p1919_p1 }
  0x2f   : > { %p1927_p5 = pnand %p1926_p4, %p1920_p2 }
  0x31   : > { %1930 = shalt.err (!%p1927_p5)
}
  0x32   : > { %1713 = dma.hbm_to_vmem [thread:$0]  (!%p2083_p11), %s245_s13, 64, %s248_s15, %s236_s21  }
  0x33   : > { %256 = sbr.rel (%p2101_p10) target bundleno = 378 (0x17a), region = 32  ;;  %s2117_s29 = sand.u32 (!%p2101_p10), 1, %s1969_s16  }
  0x34   : > { %s1618_s23 = sshll.u32 (!%p2101_p10), %s2117_s29, 9  ;;  %s259_s24 = scalar_lea.sflag (!%p2101_p10), [#allocation4], %s2117_s29 }
  0x35   : > { %s2121_s25 = scalar_lea.vmem (!%p2101_p10), [#allocation3], %s1618_s23 }
  0x38   : > { %1956 = dma.done.wait (%p2061_p8), %s259_s24, 8192  }
  0x39   : > { %1958 = vsyncadd (%p2061_p8), %s259_s24, 4294959104  ;;  %s1619_s1 = sshll.u32 %s2117_s29, 2  ;;  %s268_s11 = scalar_lea.sflag [#allocation6], %s2117_s29 }
  0x3a   : > { %s2129_s30 = scalar_lea.vmem [#allocation5], %s1619_s1 }
  0x3b   : > { %1960 = dma.done.wait (%p2061_p8), %s268_s11, 64  }
  0x3c   : > { %1962 = vsyncadd (%p2061_p8), %s268_s11, 4294967232  ;;  %v1767_v0 = vld [vmem:[%s2121_s25 + $0xe4] ss:$16 sps:$4 sm:$0xff]   ;;  %v1769_v1 = vld [vmem:[%s2121_s25 + $0xec] ss:$16 sps:$4 sm:$0xff]   ;;  %s1620_s11 = sshll.u32 %s2117_s29, 8 }
  0x3d   : > { %846 = vmatprep.subr.bf16.mxu0 %v1767_v0  ;;  %v1771_v2 = vld [vmem:[%s2121_s25 + $0xe0] ss:$16 sps:$4 sm:$0xff]   ;;  %v1772_v3 = vld [vmem:[%s2121_s25 + $0xe8] ss:$16 sps:$4 sm:$0xff]   ;;  %919 = vmatprep.subr.bf16.mxu1 %v1769_v1  ;;  %v1773_v4 = vld [vmem:[%s2121_s25 + $0xc4] ss:$16 sps:$4 sm:$0xff]  }
  0x3e   : > { %847 = vmatpush1.bf16.msra.mxu0 %v1771_v2  ;;  %920 = vmatpush1.bf16.msra.mxu1 %v1772_v3  ;;  %v1775_v5 = vld [vmem:[%s2121_s25 + $0xcc] ss:$16 sps:$4 sm:$0xff]   ;;  %v1777_v6 = vld [vmem:[%s2121_s25 + $0xc0] ss:$16 sps:$4 sm:$0xff]   ;;  %v1778_v7 = vld [vmem:[%s2121_s25 + $0xc8] ss:$16 sps:$4 sm:$0xff]  }
  0x3f   : > { %848 = vmatprep.subr.bf16.mxu0 %v1773_v4  ;;  %921 = vmatprep.subr.bf16.mxu1 %v1775_v5  ;;  %v1779_v8 = vld [vmem:[%s2121_s25 + $0xa4] ss:$16 sps:$4 sm:$0xff]   ;;  %v1781_v9 = vld [vmem:[%s2121_s25 + $0xac] ss:$16 sps:$4 sm:$0xff]   ;;  %v1783_v10 = vld [vmem:[%s2121_s25 + $0xa0] ss:$16 sps:$4 sm:$0xff]  }
  0x40   : > { %v1784_v11 = vld [vmem:[%s2121_s25 + $0xa8] ss:$16 sps:$4 sm:$0xff]   ;;  %v1785_v12 = vld [vmem:[%s2121_s25 + $0x84] ss:$16 sps:$4 sm:$0xff]   ;;  %v1787_v13 = vld [vmem:[%s2121_s25 + $0x8c] ss:$16 sps:$4 sm:$0xff]  }
  0x41   : > { %v1789_v14 = vld [vmem:[%s2121_s25 + $0x80] ss:$16 sps:$4 sm:$0xff]   ;;  %v1790_v15 = vld [vmem:[%s2121_s25 + $0x88] ss:$16 sps:$4 sm:$0xff]   ;;  %v1791_v16 = vld [vmem:[%s2121_s25 + $0x64] ss:$16 sps:$4 sm:$0xff]  }
  0x42   : > { %849 = vmatpush1.bf16.msra.mxu0 %v1777_v6  ;;  %922 = vmatpush1.bf16.msra.mxu1 %v1778_v7  ;;  %v1793_v17 = vld [vmem:[%s2121_s25 + $0x6c] ss:$16 sps:$4 sm:$0xff]   ;;  %v1795_v18 = vld [vmem:[%s2121_s25 + $0x60] ss:$16 sps:$4 sm:$0xff]   ;;  %v1796_v19 = vld [vmem:[%s2121_s25 + $0x68] ss:$16 sps:$4 sm:$0xff]  }
  0x43   : > { %850 = vmatprep.subr.bf16.mxu0 %v1779_v8  ;;  %923 = vmatprep.subr.bf16.mxu1 %v1781_v9  ;;  %v1797_v20 = vld [vmem:[%s2121_s25 + $0x44] ss:$16 sps:$4 sm:$0xff]   ;;  %v1799_v21 = vld [vmem:[%s2121_s25 + $0x4c] ss:$16 sps:$4 sm:$0xff]   ;;  %v1801_v22 = vld [vmem:[%s2121_s25 + $0x40] ss:$16 sps:$4 sm:$0xff]   ;;  %v1093_v8 = vlaneseq }
  0x44   : > { %v1802_v23 = vld [vmem:[%s2121_s25 + $0x48] ss:$16 sps:$4 sm:$0xff]   ;;  %v1803_v24 = vld [vmem:[%s2121_s25 + $0x24] ss:$16 sps:$4 sm:$0xff]   ;;  %v1805_v25 = vld [vmem:[%s2121_s25 + $0x2c] ss:$16 sps:$4 sm:$0xff]  }
  0x45   : > { %v1807_v26 = vld [vmem:[%s2121_s25 + $0x20] ss:$16 sps:$4 sm:$0xff]   ;;  %v1808_v27 = vld [vmem:[%s2121_s25 + $0x28] ss:$16 sps:$4 sm:$0xff]   ;;  %v1809_v28 = vld [vmem:[%s2121_s25 + $0x4] ss:$16 sps:$4 sm:$0xff]  }
  0x46   : > { %851 = vmatpush1.bf16.msra.mxu0 %v1783_v10  ;;  %924 = vmatpush1.bf16.msra.mxu1 %v1784_v11  ;;  %v1811_v29 = vld [vmem:[%s2121_s25 + $0xc] ss:$16 sps:$4 sm:$0xff]   ;;  %v1813_v30 = vld [vmem:[%s2121_s25] ss:$16 sps:$4 sm:$0xff]   ;;  %v1814_v31 = vld [vmem:[%s2121_s25 + $0x8] ss:$16 sps:$4 sm:$0xff]  }
  0x47   : > { %852 = vmatprep.subr.bf16.mxu0 %v1785_v12  ;;  %925 = vmatprep.subr.bf16.mxu1 %v1787_v13  ;;  %v1815_v32 = vld [vmem:[%s2121_s25 + $0x1e4] ss:$16 sps:$4 sm:$0xff]   ;;  %v1817_v33 = vld [vmem:[%s2121_s25 + $0x1ec] ss:$16 sps:$4 sm:$0xff]   ;;  %v1819_v34 = vld [vmem:[%s2121_s25 + $0x1e0] ss:$16 sps:$4 sm:$0xff]  }
  0x48   : > { %v1820_v35 = vld [vmem:[%s2121_s25 + $0x1e8] ss:$16 sps:$4 sm:$0xff]   ;;  %v1821_v36 = vld [vmem:[%s2121_s25 + $0x1c4] ss:$16 sps:$4 sm:$0xff]   ;;  %v1823_v37 = vld [vmem:[%s2121_s25 + $0x1cc] ss:$16 sps:$4 sm:$0xff]  }
  0x49   : > { %v1825_v38 = vld [vmem:[%s2121_s25 + $0x1c0] ss:$16 sps:$4 sm:$0xff]   ;;  %v1826_v39 = vld [vmem:[%s2121_s25 + $0x1c8] ss:$16 sps:$4 sm:$0xff]   ;;  %v1827_v40 = vld [vmem:[%s2121_s25 + $0x1a4] ss:$16 sps:$4 sm:$0xff]  }
  0x4a   : > { %853 = vmatpush1.bf16.msra.mxu0 %v1789_v14  ;;  %926 = vmatpush1.bf16.msra.mxu1 %v1790_v15  ;;  %v1829_v41 = vld [vmem:[%s2121_s25 + $0x1ac] ss:$16 sps:$4 sm:$0xff]   ;;  %v1831_v42 = vld [vmem:[%s2121_s25 + $0x1a0] ss:$16 sps:$4 sm:$0xff]   ;;  %v1832_v43 = vld [vmem:[%s2121_s25 + $0x1a8] ss:$16 sps:$4 sm:$0xff]  }
  0x4b   : > { %854 = vmatprep.subr.bf16.mxu0 %v1791_v16  ;;  %927 = vmatprep.subr.bf16.mxu1 %v1793_v17  ;;  %v1833_v44 = vld [vmem:[%s2121_s25 + $0x184] ss:$16 sps:$4 sm:$0xff]   ;;  %v1835_v45 = vld [vmem:[%s2121_s25 + $0x18c] ss:$16 sps:$4 sm:$0xff]   ;;  %v1837_v46 = vld [vmem:[%s2121_s25 + $0x180] ss:$16 sps:$4 sm:$0xff]  }
  0x4c   : > { %v1838_v47 = vld [vmem:[%s2121_s25 + $0x188] ss:$16 sps:$4 sm:$0xff]   ;;  %v1865_v48 = vld [vmem:[%s2400_s0 + $0x4] ss:$8 sps:$4 sm:$0xff]   ;;  %v1843_v51 = vld [vmem:[%s2121_s25 + $0x160] ss:$16 sps:$4 sm:$0xff]  }
  0x4d   : > { %v1839_v49 = vld [vmem:[%s2121_s25 + $0x164] ss:$16 sps:$4 sm:$0xff]   ;;  %v1841_v50 = vld [vmem:[%s2121_s25 + $0x16c] ss:$16 sps:$4 sm:$0xff]   ;;  %878 = vmatprep.mubr.bf16.mxu0 %v1865_v48  ;;  %951 = vmatprep.mubr.bf16.mxu1 %v1865_v48  ;;  %v1844_v52 = vld [vmem:[%s2121_s25 + $0x168] ss:$16 sps:$4 sm:$0xff]  }
  0x4e   : > { %855 = vmatpush1.bf16.msra.mxu0 %v1795_v18  ;;  %928 = vmatpush1.bf16.msra.mxu1 %v1796_v19  ;;  %v1845_v53 = vld [vmem:[%s2121_s25 + $0x144] ss:$16 sps:$4 sm:$0xff]   ;;  %v1847_v54 = vld [vmem:[%s2121_s25 + $0x14c] ss:$16 sps:$4 sm:$0xff]   ;;  %v1849_v55 = vld [vmem:[%s2121_s25 + $0x140] ss:$16 sps:$4 sm:$0xff]  }
  0x4f   : > { %856 = vmatprep.subr.bf16.mxu0 %v1797_v20  ;;  %929 = vmatprep.subr.bf16.mxu1 %v1799_v21  ;;  %v1850_v56 = vld [vmem:[%s2121_s25 + $0x148] ss:$16 sps:$4 sm:$0xff]   ;;  %v1851_v57 = vld [vmem:[%s2121_s25 + $0x124] ss:$16 sps:$4 sm:$0xff]   ;;  %v1853_v58 = vld [vmem:[%s2121_s25 + $0x12c] ss:$16 sps:$4 sm:$0xff]  }
  0x50   : > { %v1855_v59 = vld [vmem:[%s2121_s25 + $0x120] ss:$16 sps:$4 sm:$0xff]   ;;  %v1856_v60 = vld [vmem:[%s2121_s25 + $0x128] ss:$16 sps:$4 sm:$0xff]   ;;  %v1857_v61 = vld [vmem:[%s2121_s25 + $0x104] ss:$16 sps:$4 sm:$0xff]  }
  0x51   : > { %v1859_v62 = vld [vmem:[%s2121_s25 + $0x10c] ss:$16 sps:$4 sm:$0xff]   ;;  %v1861_v63 = vld [vmem:[%s2121_s25 + $0x100] ss:$16 sps:$4 sm:$0xff]   ;;  %v1862_v0 = vld [vmem:[%s2121_s25 + $0x108] ss:$16 sps:$4 sm:$0xff]  }
  0x52   : > { %857 = vmatpush1.bf16.msra.mxu0 %v1801_v22  ;;  %930 = vmatpush1.bf16.msra.mxu1 %v1802_v23  ;;  %v1863_v1 = vld [vmem:[%s2400_s0] ss:$8 sps:$4 sm:$0xff]   ;;  %v1866_v2 = vld [vmem:[%s2400_s0 + $0x14] ss:$8 sps:$4 sm:$0xff]   ;;  %v1868_v3 = vld [vmem:[%s2400_s0 + $0x10] ss:$8 sps:$4 sm:$0xff]  }
  0x53   : > { %858 = vmatprep.subr.bf16.mxu0 %v1803_v24  ;;  %931 = vmatprep.subr.bf16.mxu1 %v1805_v25  ;;  %v1869_v4 = vld [vmem:[%s2400_s0 + $0x24] ss:$8 sps:$4 sm:$0xff]   ;;  %v1871_v5 = vld [vmem:[%s2400_s0 + $0x20] ss:$8 sps:$4 sm:$0xff]   ;;  %v1872_v6 = vld [vmem:[%s2400_s0 + $0x34] ss:$8 sps:$4 sm:$0xff]  }
  0x54   : > { %v1874_v7 = vld [vmem:[%s2400_s0 + $0x30] ss:$8 sps:$4 sm:$0xff]   ;;  %v2223_v9 = vshrl.u32 %v1093_v8, 7  ;;  %v1091_v12 = vld [vmem:[%s2129_s30] sm:$0xf]  ;;  %s2241_s30 = scalar_lea.vmem [#allocation7], %s1620_s11 }
  0x55   : > { %s1621_s29 = sshll.u32 %s1977_s18, 2  ;;  %vm1313_vm0 = vcmask 1040384   ;;  %s1702_s9 = sshll.u32 (%p2068_p9), %s1977_s18, 5 }
  0x56   : > { %859 = vmatpush1.bf16.msra.mxu0 %v1807_v26  ;;  %932 = vmatpush1.bf16.msra.mxu1 %v1808_v27  ;;  %v1095_v10 = vsub.s32 0, %v2223_v9  ;;  %v1103_v11 = vsub.s32 2, %v2223_v9  ;;  %v1099_v13 = vsub.s32 1, %v2223_v9  ;;  %v1107_v14 = vsub.s32 3, %v2223_v9  ;;  %p339_p8 = scmp.lt.s32.totalorder %s1621_s29, 7  ;;  %s2319_s15 = scalar_lea.vmem (%p2068_p9), %s2403_s3, %s1702_s9 }
  0x57   : > { %860 = vmatprep.subr.bf16.mxu0 %v1809_v28  ;;  %933 = vmatprep.subr.bf16.mxu1 %v1811_v29 }
  0x58   : > { %v2231_v15 = vrot.slane %v1091_v12, %v1095_v10  ;;  %v2233_v16 = vrot.slane %v1091_v12, %v1103_v11  ;;  %v2235_v17 = vrot.slane %v1091_v12, %v1099_v13  ;;  %v2237_v18 = vrot.slane %v1091_v12, %v1107_v14  ;;  %s2420_s29 = smov (!%p339_p8, %s1621_s29), 7 }
  0x59   : > { %s1622_s26 = sshll.u32 %s2420_s29, 1 }
  0x5a   : > { %861 = vmatpush1.bf16.msra.mxu0 %v1813_v30  ;;  %934 = vmatpush1.bf16.msra.mxu1 %v1814_v31  ;;  %s344_s7 = scalar_lea.vmem %s2404_s4, %s1622_s26 }
  0x5b   : > { %862 = vmatprep.subr.bf16.mxu0 %v1815_v32  ;;  %935 = vmatprep.subr.bf16.mxu1 %v1817_v33 }
  0x5e   : > { %863 = vmatpush2.bf16.msra.mxu0 %v1819_v34  ;;  %936 = vmatpush2.bf16.msra.mxu1 %v1820_v35 }
  0x5f   : > { %864 = vmatprep.subr.bf16.mxu0 %v1821_v36  ;;  %937 = vmatprep.subr.bf16.mxu1 %v1823_v37 }
  0x62   : > { %865 = vmatpush2.bf16.msra.mxu0 %v1825_v38  ;;  %938 = vmatpush2.bf16.msra.mxu1 %v1826_v39 }
  0x63   : > { %866 = vmatprep.subr.bf16.mxu0 %v1827_v40  ;;  %939 = vmatprep.subr.bf16.mxu1 %v1829_v41 }
  0x66   : > { %867 = vmatpush2.bf16.msra.mxu0 %v1831_v42  ;;  %940 = vmatpush2.bf16.msra.mxu1 %v1832_v43 }
  0x67   : > { %868 = vmatprep.subr.bf16.mxu0 %v1833_v44  ;;  %941 = vmatprep.subr.bf16.mxu1 %v1835_v45 }
  0x6a   : > { %869 = vmatpush2.bf16.msra.mxu0 %v1837_v46  ;;  %942 = vmatpush2.bf16.msra.mxu1 %v1838_v47 }
  0x6b   : > { %870 = vmatprep.subr.bf16.mxu0 %v1839_v49  ;;  %943 = vmatprep.subr.bf16.mxu1 %v1841_v50 }
  0x6e   : > { %871 = vmatpush2.bf16.msra.mxu0 %v1843_v51  ;;  %944 = vmatpush2.bf16.msra.mxu1 %v1844_v52 }
  0x6f   : > { %872 = vmatprep.subr.bf16.mxu0 %v1845_v53  ;;  %945 = vmatprep.subr.bf16.mxu1 %v1847_v54 }
  0x72   : > { %873 = vmatpush2.bf16.msra.mxu0 %v1849_v55  ;;  %946 = vmatpush2.bf16.msra.mxu1 %v1850_v56 }
  0x73   : > { %874 = vmatprep.subr.bf16.mxu0 %v1851_v57  ;;  %947 = vmatprep.subr.bf16.mxu1 %v1853_v58 }
  0x76   : > { %875 = vmatpush2.bf16.msra.mxu0 %v1855_v59  ;;  %948 = vmatpush2.bf16.msra.mxu1 %v1856_v60 }
  0x77   : > { %876 = vmatprep.subr.bf16.mxu0 %v1857_v61  ;;  %949 = vmatprep.subr.bf16.mxu1 %v1859_v62 }
  0x7a   : > { %877 = vmatpush2.bf16.msra.mxu0 %v1861_v63  ;;  %950 = vmatpush2.bf16.msra.mxu1 %v1862_v0 }
  0x7d   : > { %879 = vmatmul.mubr.bf16.vlgmr.msra.gmra.mxu0 %v1863_v1  ;;  %952 = vmatmul.mubr.bf16.vlgmr.msra.gmra.mxu1 %v1863_v1 }
  0x7e   : > { %888 = vmatprep.mubr.bf16.mxu0 %v1866_v2  ;;  %961 = vmatprep.mubr.bf16.mxu1 %v1866_v2 }
  0x85   : > { %889 = vmatmul.mubr.bf16.gmra.mxu0 %v1868_v3  ;;  %962 = vmatmul.mubr.bf16.gmra.mxu1 %v1868_v3 }
  0x86   : > { %898 = vmatprep.mubr.bf16.mxu0 %v1869_v4  ;;  %971 = vmatprep.mubr.bf16.mxu1 %v1869_v4 }
  0x8d   : > { %899 = vmatmul.mubr.bf16.gmra.mxu0 %v1871_v5  ;;  %972 = vmatmul.mubr.bf16.gmra.mxu1 %v1871_v5 }
  0x8e   : > { %908 = vmatprep.mubr.bf16.mxu0 %v1872_v6  ;;  %981 = vmatprep.mubr.bf16.mxu1 %v1872_v6 }
  0x95   : > { %909 = vmatmul.mubr.bf16.gmra.mxu0 %v1874_v7  ;;  %982 = vmatmul.mubr.bf16.gmra.mxu1 %v1874_v7 }
 0x13d   : > { %v880_v19 = vpop.f32.mrf.mxu0  ;;  %v953_v20 = vpop.f32.mrf.mxu1 }
 0x13e   : > { %v1113_v21 = vadd.f32 %v2231_v15, %v880_v19  ;;  %v1115_v22 = vadd.f32 %v2233_v16, %v953_v20 }
 0x13f   : > { %v882_v23 = vpop.f32.mrf.mxu0  ;;  %v955_v24 = vpop.f32.mrf.mxu1 }
 0x140   : > { %1145 = vst [vmem:[%s2241_s30] sm:$0xff] %v1113_v21  ;;  %1147 = vst [vmem:[%s2241_s30 + $0x10] sm:$0xff] %v1115_v22  ;;  %v1114_v25 = vadd.f32 %v2235_v17, %v882_v23  ;;  %v1116_v26 = vadd.f32 %v2237_v18, %v955_v24  ;;  %v1229_v31 = vmul.f32 %v1113_v21, %v1113_v21 }
 0x141   : > { %v884_v27 = vpop.f32.mrf.mxu0  ;;  %v957_v28 = vpop.f32.mrf.mxu1  ;;  %v1231_v32 = vmul.f32 %v1115_v22, %v1115_v22 }
 0x142   : > { %1146 = vst [vmem:[%s2241_s30 + $0x8] sm:$0xff] %v1114_v25  ;;  %1148 = vst [vmem:[%s2241_s30 + $0x18] sm:$0xff] %v1116_v26  ;;  %v1117_v29 = vadd.f32 %v2231_v15, %v884_v27  ;;  %v1119_v30 = vadd.f32 %v2233_v16, %v957_v28  ;;  %v1230_v35 = vmul.f32 %v1114_v25, %v1114_v25 }
 0x143   : > { %v886_v33 = vpop.f32.mrf.mxu0  ;;  %v959_v34 = vpop.f32.mrf.mxu1  ;;  %v1232_v36 = vmul.f32 %v1116_v26, %v1116_v26 }
 0x144   : > { %1149 = vst [vmem:[%s2241_s30 + $0x20] sm:$0xff] %v1117_v29  ;;  %v1233_v37 = vmul.f32 %v1117_v29, %v1117_v29  ;;  %1151 = vst [vmem:[%s2241_s30 + $0x30] sm:$0xff] %v1119_v30  ;;  %v1235_v38 = vmul.f32 %v1119_v30, %v1119_v30  ;;  %v1177_v39 = vadd.f32 %v1117_v29, %v1113_v21 }
 0x145   : > { %v1203_v40 = vadd.f32 %v1119_v30, %v1115_v22  ;;  %v1118_v41 = vadd.f32 %v2235_v17, %v886_v33  ;;  %v1120_v42 = vadd.f32 %v2237_v18, %v959_v34  ;;  %v890_v43 = vpop.f32.mrf.mxu0  ;;  %v963_v44 = vpop.f32.mrf.mxu1 }
 0x146   : > { %v1261_v45 = vadd.f32 %v1233_v37, %v1229_v31  ;;  %v1287_v46 = vadd.f32 %v1235_v38, %v1231_v32  ;;  %v1121_v47 = vadd.f32 %v2231_v15, %v890_v43  ;;  %v1123_v48 = vadd.f32 %v2233_v16, %v963_v44 }
 0x147   : > { %1150 = vst [vmem:[%s2241_s30 + $0x28] sm:$0xff] %v1118_v41  ;;  %v1190_v49 = vadd.f32 %v1118_v41, %v1114_v25  ;;  %v1234_v50 = vmul.f32 %v1118_v41, %v1118_v41  ;;  %1152 = vst [vmem:[%s2241_s30 + $0x38] sm:$0xff] %v1120_v42  ;;  %v1216_v51 = vadd.f32 %v1120_v42, %v1116_v26  ;;  %v892_v53 = vpop.f32.mrf.mxu0  ;;  %v965_v54 = vpop.f32.mrf.mxu1 }
 0x148   : > { %v1236_v52 = vmul.f32 %v1120_v42, %v1120_v42  ;;  %1153 = vst [vmem:[%s2241_s30 + $0x40] sm:$0xff] %v1121_v47  ;;  %v1178_v55 = vadd.f32 %v1177_v39, %v1121_v47  ;;  %v1237_v56 = vmul.f32 %v1121_v47, %v1121_v47  ;;  %1155 = vst [vmem:[%s2241_s30 + $0x50] sm:$0xff] %v1123_v48 }
 0x149   : > { %v1204_v57 = vadd.f32 %v1203_v40, %v1123_v48  ;;  %v1239_v58 = vmul.f32 %v1123_v48, %v1123_v48  ;;  %v1274_v59 = vadd.f32 %v1234_v50, %v1230_v35  ;;  %v1122_v61 = vadd.f32 %v2235_v17, %v892_v53  ;;  %v894_v63 = vpop.f32.mrf.mxu0  ;;  %v967_v0 = vpop.f32.mrf.mxu1 }
 0x14a   : > { %v1300_v60 = vadd.f32 %v1236_v52, %v1232_v36  ;;  %v1124_v62 = vadd.f32 %v2237_v18, %v965_v54  ;;  %v1262_v1 = vadd.f32 %v1261_v45, %v1237_v56  ;;  %v1125_v3 = vadd.f32 %v2231_v15, %v894_v63 }
 0x14b   : > { %v1288_v2 = vadd.f32 %v1287_v46, %v1239_v58  ;;  %v1127_v4 = vadd.f32 %v2233_v16, %v967_v0  ;;  %1154 = vst [vmem:[%s2241_s30 + $0x48] sm:$0xff] %v1122_v61  ;;  %v1191_v5 = vadd.f32 %v1190_v49, %v1122_v61  ;;  %v1238_v6 = vmul.f32 %v1122_v61, %v1122_v61  ;;  %v896_v10 = vpop.f32.mrf.mxu0  ;;  %v969_v11 = vpop.f32.mrf.mxu1 }
 0x14c   : > { %1156 = vst [vmem:[%s2241_s30 + $0x58] sm:$0xff] %v1124_v62  ;;  %v1217_v7 = vadd.f32 %v1216_v51, %v1124_v62  ;;  %v1240_v8 = vmul.f32 %v1124_v62, %v1124_v62  ;;  %1157 = vst [vmem:[%s2241_s30 + $0x60] sm:$0xff] %v1125_v3  ;;  %v1179_v12 = vadd.f32 %v1178_v55, %v1125_v3 }
 0x14d   : > { %v1241_v13 = vmul.f32 %v1125_v3, %v1125_v3  ;;  %1159 = vst [vmem:[%s2241_s30 + $0x70] sm:$0xff] %v1127_v4  ;;  %v1205_v14 = vadd.f32 %v1204_v57, %v1127_v4  ;;  %v1243_v19 = vmul.f32 %v1127_v4, %v1127_v4  ;;  %v1275_v20 = vadd.f32 %v1274_v59, %v1238_v6  ;;  %v900_v24 = vpop.f32.mrf.mxu0  ;;  %v973_v25 = vpop.f32.mrf.mxu1 }
 0x14e   : > { %v1301_v21 = vadd.f32 %v1300_v60, %v1240_v8  ;;  %v1126_v22 = vadd.f32 %v2235_v17, %v896_v10  ;;  %v1128_v23 = vadd.f32 %v2237_v18, %v969_v11  ;;  %v1129_v28 = vadd.f32 %v2231_v15, %v900_v24 }
 0x14f   : > { %v1263_v26 = vadd.f32 %v1262_v1, %v1241_v13  ;;  %v1289_v27 = vadd.f32 %v1288_v2, %v1243_v19  ;;  %v1131_v29 = vadd.f32 %v2233_v16, %v973_v25  ;;  %v902_v34 = vpop.f32.mrf.mxu0  ;;  %v975_v35 = vpop.f32.mrf.mxu1 }
 0x150   : > { %1158 = vst [vmem:[%s2241_s30 + $0x68] sm:$0xff] %v1126_v22  ;;  %v1192_v30 = vadd.f32 %v1191_v5, %v1126_v22  ;;  %v1242_v31 = vmul.f32 %v1126_v22, %v1126_v22  ;;  %1160 = vst [vmem:[%s2241_s30 + $0x78] sm:$0xff] %v1128_v23  ;;  %v1218_v32 = vadd.f32 %v1217_v7, %v1128_v23 }
 0x151   : > { %v1244_v33 = vmul.f32 %v1128_v23, %v1128_v23  ;;  %1161 = vst [vmem:[%s2241_s30 + $0x80] sm:$0xff] %v1129_v28  ;;  %v1180_v36 = vadd.f32 %v1179_v12, %v1129_v28  ;;  %v1245_v37 = vmul.f32 %v1129_v28, %v1129_v28  ;;  %1163 = vst [vmem:[%s2241_s30 + $0x90] sm:$0xff] %v1131_v29  ;;  %v904_v44 = vpop.f32.mrf.mxu0  ;;  %v977_v45 = vpop.f32.mrf.mxu1 }
 0x152   : > { %v1206_v38 = vadd.f32 %v1205_v14, %v1131_v29  ;;  %v1247_v39 = vmul.f32 %v1131_v29, %v1131_v29  ;;  %v1276_v40 = vadd.f32 %v1275_v20, %v1242_v31  ;;  %v1130_v42 = vadd.f32 %v2235_v17, %v902_v34 }
 0x153   : > { %v1302_v41 = vadd.f32 %v1301_v21, %v1244_v33  ;;  %v1132_v43 = vadd.f32 %v2237_v18, %v975_v35  ;;  %v1264_v46 = vadd.f32 %v1263_v26, %v1245_v37  ;;  %v1133_v48 = vadd.f32 %v2231_v15, %v904_v44  ;;  %v906_v54 = vpop.f32.mrf.mxu0  ;;  %v979_v55 = vpop.f32.mrf.mxu1 }
 0x154   : > { %v1290_v47 = vadd.f32 %v1289_v27, %v1247_v39  ;;  %v1135_v49 = vadd.f32 %v2233_v16, %v977_v45  ;;  %1162 = vst [vmem:[%s2241_s30 + $0x88] sm:$0xff] %v1130_v42  ;;  %v1193_v50 = vadd.f32 %v1192_v30, %v1130_v42  ;;  %v1246_v51 = vmul.f32 %v1130_v42, %v1130_v42 }
 0x155   : > { %1164 = vst [vmem:[%s2241_s30 + $0x98] sm:$0xff] %v1132_v43  ;;  %v1219_v52 = vadd.f32 %v1218_v32, %v1132_v43  ;;  %v1248_v53 = vmul.f32 %v1132_v43, %v1132_v43  ;;  %1165 = vst [vmem:[%s2241_s30 + $0xa0] sm:$0xff] %v1133_v48  ;;  %v1181_v56 = vadd.f32 %v1180_v36, %v1133_v48  ;;  %v910_v0 = vpop.f32.mrf.mxu0  ;;  %v983_v1 = vpop.f32.mrf.mxu1 }
 0x156   : > { %v1249_v57 = vmul.f32 %v1133_v48, %v1133_v48  ;;  %1167 = vst [vmem:[%s2241_s30 + $0xb0] sm:$0xff] %v1135_v49  ;;  %v1207_v58 = vadd.f32 %v1206_v38, %v1135_v49  ;;  %v1251_v59 = vmul.f32 %v1135_v49, %v1135_v49  ;;  %v1277_v60 = vadd.f32 %v1276_v40, %v1246_v51 }
 0x157   : > { %v1303_v61 = vadd.f32 %v1302_v41, %v1248_v53  ;;  %v1134_v62 = vadd.f32 %v2235_v17, %v906_v54  ;;  %v1136_v63 = vadd.f32 %v2237_v18, %v979_v55  ;;  %v1137_v4 = vadd.f32 %v2231_v15, %v910_v0  ;;  %v912_v11 = vpop.f32.mrf.mxu0  ;;  %v985_v12 = vpop.f32.mrf.mxu1 }
 0x158   : > { %v1265_v2 = vadd.f32 %v1264_v46, %v1249_v57  ;;  %v1291_v3 = vadd.f32 %v1290_v47, %v1251_v59  ;;  %v1139_v5 = vadd.f32 %v2233_v16, %v983_v1  ;;  %v1138_v23 = vadd.f32 %v2235_v17, %v912_v11 }
 0x159   : > { %1166 = vst [vmem:[%s2241_s30 + $0xa8] sm:$0xff] %v1134_v62  ;;  %v1194_v6 = vadd.f32 %v1193_v50, %v1134_v62  ;;  %v1250_v7 = vmul.f32 %v1134_v62, %v1134_v62  ;;  %1168 = vst [vmem:[%s2241_s30 + $0xb8] sm:$0xff] %v1136_v63  ;;  %v1220_v8 = vadd.f32 %v1219_v52, %v1136_v63  ;;  %v914_v25 = vpop.f32.mrf.mxu0  ;;  %v987_v26 = vpop.f32.mrf.mxu1 }
 0x15a   : > { %v1252_v10 = vmul.f32 %v1136_v63, %v1136_v63  ;;  %1169 = vst [vmem:[%s2241_s30 + $0xc0] sm:$0xff] %v1137_v4  ;;  %v1182_v13 = vadd.f32 %v1181_v56, %v1137_v4  ;;  %v1253_v14 = vmul.f32 %v1137_v4, %v1137_v4  ;;  %1171 = vst [vmem:[%s2241_s30 + $0xd0] sm:$0xff] %v1139_v5 }
 0x15b   : > { %v1208_v19 = vadd.f32 %v1207_v58, %v1139_v5  ;;  %v1255_v20 = vmul.f32 %v1139_v5, %v1139_v5  ;;  %v1278_v21 = vadd.f32 %v1277_v60, %v1250_v7  ;;  %v1140_v24 = vadd.f32 %v2237_v18, %v985_v12  ;;  %1170 = vst [vmem:[%s2241_s30 + $0xc8] sm:$0xff] %v1138_v23  ;;  %v916_v35 = vpop.f32.mrf.mxu0  ;;  %v989_v36 = vpop.f32.mrf.mxu1 }
 0x15c   : > { %v1304_v22 = vadd.f32 %v1303_v61, %v1252_v10  ;;  %v1266_v27 = vadd.f32 %v1265_v2, %v1253_v14  ;;  %v1141_v29 = vadd.f32 %v2231_v15, %v914_v25  ;;  %v1143_v30 = vadd.f32 %v2233_v16, %v987_v26 }
 0x15d   : > { %v1292_v28 = vadd.f32 %v1291_v3, %v1255_v20  ;;  %v1195_v31 = vadd.f32 %v1194_v6, %v1138_v23  ;;  %v1254_v32 = vmul.f32 %v1138_v23, %v1138_v23  ;;  %1172 = vst [vmem:[%s2241_s30 + $0xd8] sm:$0xff] %v1140_v24  ;;  %v1221_v33 = vadd.f32 %v1220_v8, %v1140_v24 }
 0x15e   : > { %v1256_v34 = vmul.f32 %v1140_v24, %v1140_v24  ;;  %1173 = vst [vmem:[%s2241_s30 + $0xe0] sm:$0xff] %v1141_v29  ;;  %v1183_v37 = vadd.f32 %v1182_v13, %v1141_v29  ;;  %v1257_v38 = vmul.f32 %v1141_v29, %v1141_v29  ;;  %1175 = vst [vmem:[%s2241_s30 + $0xf0] sm:$0xff] %v1143_v30  ;;  %v1992_v12 = vmov 1983009808  }
 0x15f   : > { %v1209_v39 = vadd.f32 %v1208_v19, %v1143_v30  ;;  %v1259_v40 = vmul.f32 %v1143_v30, %v1143_v30  ;;  %v1279_v41 = vadd.f32 %v1278_v21, %v1254_v32  ;;  %v1142_v16 = vadd.f32 %v2235_v17, %v916_v35 }
 0x160   : > { %v1305_v15 = vadd.f32 %v1304_v22, %v1256_v34  ;;  %v1144_v42 = vadd.f32 %v2237_v18, %v989_v36  ;;  %v1184_v43 = vrot.slane %v1183_v37, 4  ;;  %v1267_v44 = vadd.f32 %v1266_v27, %v1257_v38 }
 0x161   : > { %v1210_v45 = vrot.slane %v1209_v39, 4  ;;  %v1293_v46 = vadd.f32 %v1292_v28, %v1259_v40  ;;  %1174 = vst [vmem:[%s2241_s30 + $0xe8] sm:$0xff] %v1142_v16  ;;  %v1196_v47 = vadd.f32 %v1195_v31, %v1142_v16  ;;  %v1258_v48 = vmul.f32 %v1142_v16, %v1142_v16 }
 0x162   : > { %1176 = vst [vmem:[%s2241_s30 + $0xf8] sm:$0xff] %v1144_v42  ;;  %v1222_v49 = vadd.f32 %v1221_v33, %v1144_v42  ;;  %v1260_v50 = vmul.f32 %v1144_v42, %v1144_v42  ;;  %v1185_v51 = vadd.f32 %v1184_v43, %v1183_v37  ;;  %v1268_v52 = vrot.slane %v1267_v44, 4 }
 0x163   : > { %v1211_v53 = vadd.f32 %v1210_v45, %v1209_v39  ;;  %v1294_v54 = vrot.slane %v1293_v46, 4  ;;  %v1197_v55 = vrot.slane %v1196_v47, 4  ;;  %v1280_v56 = vadd.f32 %v1279_v41, %v1258_v48 }
 0x164   : > { %v1223_v57 = vrot.slane %v1222_v49, 4  ;;  %v1306_v17 = vadd.f32 %v1305_v15, %v1260_v50  ;;  %v1186_v18 = vrot.slane %v1185_v51, 2  ;;  %v1269_v58 = vadd.f32 %v1268_v52, %v1267_v44  ;;  %v1379_v50 = vld [vmem:[%s2241_s30 + $0x10] sm:$0xff] (%p2068_p9)  ;;  %v1383_v52 = vld [vmem:[%s2241_s30 + $0x20] sm:$0xff] (%p2068_p9) }
 0x165   : > { %v1212_v59 = vrot.slane %v1211_v53, 2  ;;  %v1295_v60 = vadd.f32 %v1294_v54, %v1293_v46  ;;  %v1198_v61 = vadd.f32 %v1197_v55, %v1196_v47  ;;  %v1281_v62 = vrot.slane %v1280_v56, 4  ;;  %1380 = vst [vmem:[%s2319_s15 + $0x10] sm:$0xff] (%p2068_p9), %v1379_v50  ;;  %1384 = vst [vmem:[%s2319_s15 + $0x40] sm:$0xff] (%p2068_p9), %v1383_v52  ;;  %v1387_v54 = vld [vmem:[%s2241_s30 + $0x30] sm:$0xff] (%p2068_p9)  ;;  %v1389_v55 = vld [vmem:[%s2241_s30 + $0x38] sm:$0xff] (%p2068_p9) }
 0x166   : > { %v1224_v63 = vadd.f32 %v1223_v57, %v1222_v49  ;;  %v1307_v0 = vrot.slane %v1306_v17, 4  ;;  %v1187_v1 = vadd.f32 %v1186_v18, %v1185_v51  ;;  %v1270_v2 = vrot.slane %v1269_v58, 2  ;;  %v1377_v49 = vld [vmem:[%s2241_s30 + $0x8] sm:$0xff] (%p2068_p9)  ;;  %v1381_v51 = vld [vmem:[%s2241_s30 + $0x18] sm:$0xff] (%p2068_p9)  ;;  %1388 = vst [vmem:[%s2319_s15 + $0x50] sm:$0xff] (%p2068_p9), %v1387_v54  ;;  %1390 = vst [vmem:[%s2319_s15 + $0x58] sm:$0xff] (%p2068_p9), %v1389_v55 }
 0x167   : > { %v1213_v3 = vadd.f32 %v1212_v59, %v1211_v53  ;;  %v1296_v4 = vrot.slane %v1295_v60, 2  ;;  %v1199_v5 = vrot.slane %v1198_v61, 2  ;;  %v1282_v6 = vadd.f32 %v1281_v62, %v1280_v56  ;;  %v1385_v53 = vld [vmem:[%s2241_s30 + $0x28] sm:$0xff] (%p2068_p9)  ;;  %1378 = vst [vmem:[%s2319_s15 + $0x8] sm:$0xff] (%p2068_p9), %v1377_v49  ;;  %1382 = vst [vmem:[%s2319_s15 + $0x18] sm:$0xff] (%p2068_p9), %v1381_v51  ;;  %v1391_v56 = vld [vmem:[%s2241_s30 + $0x40] sm:$0xff] (%p2068_p9) }
 0x168   : > { %v1225_v7 = vrot.slane %v1224_v63, 2  ;;  %v1308_v8 = vadd.f32 %v1307_v0, %v1306_v17  ;;  %v1271_v10 = vadd.f32 %v1270_v2, %v1269_v58  ;;  %v1325_v13 = vunpack.c.l.s4 %v1992_v12  ;;  %1386 = vst [vmem:[%s2319_s15 + $0x48] sm:$0xff] (%p2068_p9), %v1385_v53  ;;  %1392 = vst [vmem:[%s2319_s15 + $0x80] sm:$0xff] (%p2068_p9), %v1391_v56  ;;  %v1393_v57 = vld [vmem:[%s2241_s30 + $0x48] sm:$0xff] (%p2068_p9)  ;;  %v1395_v17 = vld [vmem:[%s2241_s30 + $0x50] sm:$0xff] (%p2068_p9) }
 0x169   : > { %v1297_v11 = vadd.f32 %v1296_v4, %v1295_v60  ;;  %v1200_v14 = vadd.f32 %v1199_v5, %v1198_v61  ;;  %v1283_v19 = vrot.slane %v1282_v6, 2  ;;  %v1188_v22 = vrot.slane %v1187_v1, 1  ;;  %v1397_v18 = vld [vmem:[%s2241_s30 + $0x58] sm:$0xff] (%p2068_p9)  ;;  %1394 = vst [vmem:[%s2319_s15 + $0x88] sm:$0xff] (%p2068_p9), %v1393_v57  ;;  %1396 = vst [vmem:[%s2319_s15 + $0x90] sm:$0xff] (%p2068_p9), %v1395_v17  ;;  %v1399_v58 = vld [vmem:[%s2241_s30 + $0x60] sm:$0xff] (%p2068_p9) }
 0x16a   : > { %v1226_v20 = vadd.f32 %v1225_v7, %v1224_v63  ;;  %v1309_v21 = vrot.slane %v1308_v8, 2  ;;  %v1272_v23 = vrot.slane %v1271_v10, 1  ;;  %v1214_v24 = vrot.slane %v1213_v3, 1  ;;  %1398 = vst [vmem:[%s2319_s15 + $0x98] sm:$0xff] (%p2068_p9), %v1397_v18  ;;  %v1401_v59 = vld [vmem:[%s2241_s30 + $0x68] sm:$0xff] (%p2068_p9)  ;;  %v1403_v60 = vld [vmem:[%s2241_s30 + $0x70] sm:$0xff] (%p2068_p9) }
 0x16b   : > { %v1298_v25 = vrot.slane %v1297_v11, 1  ;;  %v1201_v26 = vrot.slane %v1200_v14, 1  ;;  %v1284_v27 = vadd.f32 %v1283_v19, %v1282_v6  ;;  %v1326_v30 = vunpack.c.0.s8 %v1325_v13  ;;  %1400 = vst [vmem:[%s2319_s15 + $0xc0] sm:$0xff] (%p2068_p9), %v1399_v58  ;;  %1402 = vst [vmem:[%s2319_s15 + $0xc8] sm:$0xff] (%p2068_p9), %v1401_v59  ;;  %v1405_v61 = vld [vmem:[%s2241_s30 + $0x78] sm:$0xff] (%p2068_p9)  ;;  %v1407_v62 = vld [vmem:[%s2241_s30 + $0x80] sm:$0xff] (%p2068_p9) }
 0x16c   : > { %v1227_v28 = vrot.slane %v1226_v20, 1  ;;  %v1310_v29 = vadd.f32 %v1309_v21, %v1308_v8  ;;  %v1273_v31 = vadd.f32 %v1272_v23, %v1271_v10  ;;  %v1189_v35 = vadd.f32 %v1188_v22, %v1187_v1  ;;  %1404 = vst [vmem:[%s2319_s15 + $0xd0] sm:$0xff] (%p2068_p9), %v1403_v60  ;;  %v1409_v63 = vld [vmem:[%s2241_s30 + $0x88] sm:$0xff] (%p2068_p9)  ;;  %1406 = vst [vmem:[%s2319_s15 + $0xd8] sm:$0xff] (%p2068_p9), %v1405_v61  ;;  %v1411_v0 = vld [vmem:[%s2241_s30 + $0x90] sm:$0xff] (%p2068_p9) }
 0x16d   : > { %v1299_v32 = vadd.f32 %v1298_v25, %v1297_v11  ;;  %v1285_v33 = vrot.slane %v1284_v27, 1  ;;  %v1215_v36 = vadd.f32 %v1214_v24, %v1213_v3  ;;  %v1202_v37 = vadd.f32 %v1201_v26, %v1200_v14  ;;  %1408 = vst [vmem:[%s2319_s15 + $0x100] sm:$0xff] (%p2068_p9), %v1407_v62  ;;  %1410 = vst [vmem:[%s2319_s15 + $0x108] sm:$0xff] (%p2068_p9), %v1409_v63  ;;  %v1413_v1 = vld [vmem:[%s2241_s30 + $0x98] sm:$0xff] (%p2068_p9)  ;;  %v1415_v2 = vld [vmem:[%s2241_s30 + $0xa0] sm:$0xff] (%p2068_p9) }
 0x16e   : > { %v1311_v34 = vrot.slane %v1310_v29, 1  ;;  %v1228_v39 = vadd.f32 %v1227_v28, %v1226_v20  ;;  %v1329_v41 = vsub.s32 %v1326_v30, %v2223_v9  ;;  %v1314_v15 = vsel %vm1313_vm0, %v1189_v35, %v1273_v31  ;;  %v1375_v9 = vld [vmem:[%s2241_s30] sm:$0xff] (%p2068_p9)  ;;  %1412 = vst [vmem:[%s2319_s15 + $0x110] sm:$0xff] (%p2068_p9), %v1411_v0  ;;  %1414 = vst [vmem:[%s2319_s15 + $0x118] sm:$0xff] (%p2068_p9), %v1413_v1  ;;  %v1417_v3 = vld [vmem:[%s2241_s30 + $0xa8] sm:$0xff] (%p2068_p9) }
 0x16f   : > { %v1286_v38 = vadd.f32 %v1285_v33, %v1284_v27  ;;  %v1316_v16 = vsel %vm1313_vm0, %v1215_v36, %v1299_v32  ;;  %1376 = vst [vmem:[%s2319_s15] sm:$0xff] (%p2068_p9), %v1375_v9  ;;  %1416 = vst [vmem:[%s2319_s15 + $0x140] sm:$0xff] (%p2068_p9), %v1415_v2  ;;  %v1419_v4 = vld [vmem:[%s2241_s30 + $0xb0] sm:$0xff] (%p2068_p9)  ;;  %v1421_v5 = vld [vmem:[%s2241_s30 + $0xb8] sm:$0xff] (%p2068_p9) }
 0x170   : > { %v1312_v40 = vadd.f32 %v1311_v34, %v1310_v29  ;;  %1418 = vst [vmem:[%s2319_s15 + $0x148] sm:$0xff] (%p2068_p9), %v1417_v3  ;;  %1420 = vst [vmem:[%s2319_s15 + $0x150] sm:$0xff] (%p2068_p9), %v1419_v4  ;;  %v1423_v6 = vld [vmem:[%s2241_s30 + $0xc0] sm:$0xff] (%p2068_p9)  ;;  %v1425_v7 = vld [vmem:[%s2241_s30 + $0xc8] sm:$0xff] (%p2068_p9) }
 0x171   : > { %v1315_v42 = vsel %vm1313_vm0, %v1202_v37, %v1286_v38  ;;  %1422 = vst [vmem:[%s2319_s15 + $0x158] sm:$0xff] (%p2068_p9), %v1421_v5  ;;  %v1427_v8 = vld [vmem:[%s2241_s30 + $0xd0] sm:$0xff] (%p2068_p9)  ;;  %1424 = vst [vmem:[%s2319_s15 + $0x180] sm:$0xff] (%p2068_p9), %v1423_v6  ;;  %v1429_v10 = vld [vmem:[%s2241_s30 + $0xd8] sm:$0xff] (%p2068_p9) }
 0x172   : > { %v1317_v43 = vsel %vm1313_vm0, %v1228_v39, %v1312_v40  ;;  %v1322_v44 = vcombine.low %v1314_v15, %v1315_v42  ;;  %1426 = vst [vmem:[%s2319_s15 + $0x188] sm:$0xff] (%p2068_p9), %v1425_v7  ;;  %1428 = vst [vmem:[%s2319_s15 + $0x190] sm:$0xff] (%p2068_p9), %v1427_v8  ;;  %v1431_v11 = vld [vmem:[%s2241_s30 + $0xe0] sm:$0xff] (%p2068_p9)  ;;  %v1433_v12 = vld [vmem:[%s2241_s30 + $0xe8] sm:$0xff] (%p2068_p9) }
 0x173   : > { %v1323_v45 = vcombine.low %v1316_v16, %v1317_v43  ;;  %1430 = vst [vmem:[%s2319_s15 + $0x198] sm:$0xff] (%p2068_p9), %v1429_v10  ;;  %1432 = vst [vmem:[%s2319_s15 + $0x1c0] sm:$0xff] (%p2068_p9), %v1431_v11  ;;  %v1435_v13 = vld [vmem:[%s2241_s30 + $0xf0] sm:$0xff] (%p2068_p9)  ;;  %v1437_v14 = vld [vmem:[%s2241_s30 + $0xf8] sm:$0xff] (%p2068_p9) }
 0x174   : > { %v1330_v46 = vrot.slane %v1322_v44, %v1329_v41  ;;  %1434 = vst [vmem:[%s2319_s15 + $0x1c8] sm:$0xff] (%p2068_p9), %v1433_v12  ;;  %1436 = vst [vmem:[%s2319_s15 + $0x1d0] sm:$0xff] (%p2068_p9), %v1435_v13 }
 0x175   : > { %v1337_v47 = vrot.slane %v1323_v45, %v1329_v41  ;;  %1356 = sbr.rel (!%p2068_p9) target bundleno = 378 (0x17a), region = 52  ;;  %1438 = vst [vmem:[%s2319_s15 + $0x1d8] sm:$0xff] (%p2068_p9), %v1437_v14 }
 0x177   : > { %v1338_v48 = vcombine.low %v1330_v46, %v1337_v47 }
 0x179   : > { %1340 = vst [vmem:[%s344_s7] sm:$0xff] %v1338_v48 }
 0x17a PF: > { %s21_s20 = sadd.s32 1, %s1985_s20   ;;  %s2412_s15 = smov %s1969_s16 }
 0x17b   : > { %p18_p9 = scmp.ge.s32.totalorder %s21_s20, 4   ;;  %s2413_s16 = smov %s1973_s17 }
 0x17c   : > { %s2414_s17 = smov %s2066_s27  ;;  %s2415_s18 = smov %s1981_s19 }
 0x17d   : > { %s2416_s19 = smov %s2418_s22  ;;  %20 = sbr.rel (!%p18_p9) target bundleno = 8 (0x8), region = 131 }
 0x182   :  { %1470 = vsyncpa [#allocation4], 1 }
 0x183   :  { %1472 = vsyncpa [#allocation4 + $0x1], 1 }
 0x184   :  { %1473 = vsyncpa [#allocation6], 1 }
 0x185   :  { %1475 = vsyncpa [#allocation6 + $0x1], 1 }

// kernel: dconv3d_block_forward.7
= control target key start
LH: loop header
LB: loop body
LE: loop exit
PB: predicated region body
PF: predicated region fallthrough
CT: control target
= control target key end

     0   :  { %8 = vsyncpa [#allocation3], 0  ;;  %s814_s0 = inlined_call_operand.vmem [shape: f32[512,128], index: 0, kind: input, shape index: {}]   ;;  %s815_s1 = inlined_call_operand.vmem [shape: f32[1,128], index: 1, kind: input, shape index: {}]   ;;  %s816_s2 = inlined_call_operand.vmem [shape: f32[1,128], index: 2, kind: input, shape index: {}]   ;;  %s817_s3 = inlined_call_operand.hbm [shape: f32[512,128], index: 3, kind: output, shape index: {}]  }
   0x1   :  { %10 = vsyncpa [#allocation3 + $0x1], 0  ;;  %s563_s12 = smov 0   ;;  %s565_s13 = smov 0  }
   0x2   :  { %s567_s14 = smov 0   ;;  %s569_s15 = smov 0  }
   0x3 LB: > { %s584_s16 = sadd.s32 4294967295, %s538_s15   ;;  %s422_s17 = sadd.s32 4294967294, %s538_s15   ;;  %s538_s15 = sphi %s569_s15, %s823_s15   ;;  %s534_s14 = sphi %s567_s14, %s822_s14   ;;  %s530_s13 = sphi %s565_s13, %s821_s13   ;;  %s526_s12 = sphi %s563_s12, %s820_s12  }
   0x4   : > { %s588_s18 = sadd.s32 1, %s538_s15   ;;  %s91_s19 = sadd.s32 1, %s534_s14 }
   0x5   : > { %s88_s20 = ssub.s32 %s538_s15, %s588_s18  ;;  %p101_p0 = scmp.ne.s32.totalorder %s534_s14, %s530_s13 }
   0x6   : > { %p89_p1 = scmp.eq.s32.totalorder %s88_s20, 0  ;;  %p102_p2 = scmp.eq.s32.totalorder %s584_s16, 1 }
   0x7   : > { %p107_p3 = scmp.ne.s32.totalorder %s530_s13, %s526_s12  ;;  %p108_p4 = scmp.eq.s32.totalorder %s422_s17, 1 }
   0x8   : > { %s599_s21 = scalar_select %p89_p1, %s534_s14, %s91_s19  }
   0x9   : > { %p601_p5 = por %p102_p2, %p101_p0  ;;  %p605_p6 = por %p108_p4, %p107_p3 }
   0xa   : > { %p425_p7 = scmp.ge.s32.totalorder %s538_s15, 1  ;;  %p141_p8 = scmp.lt.s32.totalorder %s538_s15, 3 }
   0xc   : > { %p142_p9 = pnand %p425_p7, %p141_p8 }
   0xd   : > { %s427_s24 = sshll.u32 (!%p142_p9), %s584_s16, 5  ;;  %s162_s25 = sand.u32 (!%p142_p9), 1, %s530_s13  }
   0xe   : > { %145 = sbr.rel (%p142_p9) target bundleno = 65 (0x41), region = 32  ;;  %p166_p10 = scmp.lt.s32.totalorder (!%p142_p9), %s427_s24, 63 }
   0xf   : > { %s633_s7 = sshll.u32 (!%p142_p9), %s162_s25, 8  ;;  %s436_s9 = sshll.u32 (!%p142_p9), %s584_s16, 12 }
  0x10   : > { %s664_s8 = scalar_lea.vmem (!%p142_p9), [#allocation2], %s633_s7  ;;  %s763_s17 = scalar_lea.hbm (!%p142_p9), %s817_s3, %s436_s9 }
  0x11   : > { %s360_s10 = sshll.u32 (!%p142_p9), %s664_s8, 4  ;;  %s774_s19 = scalar_lea.sflag (!%p142_p9), [#allocation3], %s162_s25  ;;  %s765_s10 = int_to_ptr.vmem [resolvable:$true] %s360_s10 }
  0x12   : > { %s478_s20 = scalar_lea.vmem (!%p142_p9), %s765_s10, 4096 }
  0x13   : > { %s825_s24 = smov (!%p166_p10, %s427_s24), 63  ;;  %v616_v0 = vld [vmem:[%s815_s1] ss:$0 sm:$0xff]  ;;  %p479_p11 = scmp.ne.s32.totalorder %s765_s10, %s478_s20 }
  0x14   : > { %s428_s26 = sshll.u32 %s825_s24, 3  ;;  %v626_v1 = vld [vmem:[%s816_s2] ss:$0 sm:$0xff]  ;;  %s540_s24 = smov [#allocation2]  }
  0x15   : > { %s621_s4 = scalar_lea.vmem %s814_s0, %s428_s26  ;;  %p480_p12 = pnand %p479_p11, %p601_p5 }
  0x16   : > { %v172_v2 = vld [vmem:[%s621_s4] sm:$0xff]  ;;  %v173_v3 = vld [vmem:[%s621_s4 + $0x8] sm:$0xff]  ;;  %v174_v4 = vld [vmem:[%s621_s4 + $0x10] sm:$0xff]  ;;  %s482_s26 = sshll.u32 %s540_s24, 4  ;;  %s483_s26 = int_to_ptr.vmem [resolvable:$false] %s482_s26 }
  0x17   : > { %v211_v5 = vmul.f32 %v616_v0, %v172_v2  ;;  %v212_v6 = vmul.f32 %v616_v0, %v173_v3  ;;  %v213_v7 = vmul.f32 %v616_v0, %v174_v4  ;;  %v175_v8 = vld [vmem:[%s621_s4 + $0x18] sm:$0xff]  ;;  %v176_v9 = vld [vmem:[%s621_s4 + $0x20] sm:$0xff]  ;;  %v177_v10 = vld [vmem:[%s621_s4 + $0x28] sm:$0xff]  ;;  %p481_p13 = pneg %p480_p12  ;;  %s484_s27 = scalar_lea.vmem %s483_s26, 8192 }
  0x18   : > { %v214_v11 = vmul.f32 %v616_v0, %v175_v8  ;;  %v215_v12 = vmul.f32 %v616_v0, %v176_v9  ;;  %v216_v13 = vmul.f32 %v616_v0, %v177_v10  ;;  %v178_v14 = vld [vmem:[%s621_s4 + $0x30] sm:$0xff]  ;;  %v179_v15 = vld [vmem:[%s621_s4 + $0x38] sm:$0xff]  ;;  %v180_v24 = vld [vmem:[%s621_s4 + $0x40] sm:$0xff]  ;;  %p485_p0 = scmp.lt.s32.totalorder %s765_s10, %s483_s26  ;;  %p486_p1 = scmp.lt.s32.totalorder %s484_s27, %s478_s20 }
  0x19   : > { %v250_v16 = vadd.f32 %v626_v1, %v211_v5  ;;  %v251_v17 = vadd.f32 %v626_v1, %v212_v6  ;;  %v252_v18 = vadd.f32 %v626_v1, %v213_v7  ;;  %v217_v19 = vmul.f32 %v616_v0, %v178_v14  ;;  %v181_v25 = vld [vmem:[%s621_s4 + $0x48] sm:$0xff]  ;;  %v182_v26 = vld [vmem:[%s621_s4 + $0x50] sm:$0xff]  ;;  %v183_v31 = vld [vmem:[%s621_s4 + $0x58] sm:$0xff] }
  0x1a   : > { %v253_v20 = vadd.f32 %v626_v1, %v214_v11  ;;  %v254_v21 = vadd.f32 %v626_v1, %v215_v12  ;;  %v255_v22 = vadd.f32 %v626_v1, %v216_v13  ;;  %v218_v23 = vmul.f32 %v616_v0, %v179_v15  ;;  %v184_v32 = vld [vmem:[%s621_s4 + $0x60] sm:$0xff]  ;;  %v185_v33 = vld [vmem:[%s621_s4 + $0x68] sm:$0xff]  ;;  %v186_v38 = vld [vmem:[%s621_s4 + $0x70] sm:$0xff]  ;;  %p487_p2 = por %p486_p1, %p485_p0 }
  0x1b   : > { %v282_v27 = vmax.f32 %v250_v16, 0.0  ;;  %v283_v28 = vmax.f32 %v251_v17, 0.0  ;;  %v284_v29 = vmax.f32 %v252_v18, 0.0  ;;  %v256_v30 = vadd.f32 %v626_v1, %v217_v19  ;;  %v187_v43 = vld [vmem:[%s621_s4 + $0x78] sm:$0xff]  ;;  %v188_v56 = vld [vmem:[%s621_s4 + $0x80] sm:$0xff]  ;;  %v189_v57 = vld [vmem:[%s621_s4 + $0x88] sm:$0xff] }
  0x1c   : > { %v285_v34 = vmax.f32 %v253_v20, 0.0  ;;  %v286_v35 = vmax.f32 %v254_v21, 0.0  ;;  %v287_v36 = vmax.f32 %v255_v22, 0.0  ;;  %v257_v37 = vadd.f32 %v626_v1, %v218_v23  ;;  %v190_v58 = vld [vmem:[%s621_s4 + $0x90] sm:$0xff]  ;;  %v191_v63 = vld [vmem:[%s621_s4 + $0x98] sm:$0xff]  ;;  %v192_v2 = vld [vmem:[%s621_s4 + $0xa0] sm:$0xff]  ;;  %p488_p3 = pnand %p487_p2, %p481_p13 }
  0x1d   : > { %314 = vst [vmem:[%s664_s8] sm:$0xff] %v282_v27  ;;  %315 = vst [vmem:[%s664_s8 + $0x8] sm:$0xff] %v283_v28  ;;  %v288_v39 = vmax.f32 %v256_v30, 0.0  ;;  %v219_v40 = vmul.f32 %v616_v0, %v180_v24  ;;  %v220_v41 = vmul.f32 %v616_v0, %v181_v25  ;;  %v221_v42 = vmul.f32 %v616_v0, %v182_v26  ;;  %v193_v3 = vld [vmem:[%s621_s4 + $0xa8] sm:$0xff]  ;;  %v194_v8 = vld [vmem:[%s621_s4 + $0xb0] sm:$0xff] }
  0x1e   : > { %316 = vst [vmem:[%s664_s8 + $0x10] sm:$0xff] %v284_v29  ;;  %317 = vst [vmem:[%s664_s8 + $0x18] sm:$0xff] %v285_v34  ;;  %v289_v44 = vmax.f32 %v257_v37, 0.0  ;;  %v222_v45 = vmul.f32 %v616_v0, %v183_v31  ;;  %v223_v46 = vmul.f32 %v616_v0, %v184_v32  ;;  %v224_v47 = vmul.f32 %v616_v0, %v185_v33  ;;  %v195_v13 = vld [vmem:[%s621_s4 + $0xb8] sm:$0xff]  ;;  %v196_v26 = vld [vmem:[%s621_s4 + $0xc0] sm:$0xff] }
  0x1f   : > { %318 = vst [vmem:[%s664_s8 + $0x20] sm:$0xff] %v286_v35  ;;  %319 = vst [vmem:[%s664_s8 + $0x28] sm:$0xff] %v287_v36  ;;  %v258_v48 = vadd.f32 %v626_v1, %v219_v40  ;;  %v259_v49 = vadd.f32 %v626_v1, %v220_v41  ;;  %v260_v50 = vadd.f32 %v626_v1, %v221_v42  ;;  %v197_v27 = vld [vmem:[%s621_s4 + $0xc8] sm:$0xff]  ;;  %v198_v28 = vld [vmem:[%s621_s4 + $0xd0] sm:$0xff] }
  0x20   : > { %320 = vst [vmem:[%s664_s8 + $0x30] sm:$0xff] %v288_v39  ;;  %v225_v51 = vmul.f32 %v616_v0, %v186_v38  ;;  %321 = vst [vmem:[%s664_s8 + $0x38] sm:$0xff] %v289_v44  ;;  %v261_v52 = vadd.f32 %v626_v1, %v222_v45  ;;  %v262_v53 = vadd.f32 %v626_v1, %v223_v46  ;;  %v199_v33 = vld [vmem:[%s621_s4 + $0xd8] sm:$0xff]  ;;  %v200_v34 = vld [vmem:[%s621_s4 + $0xe0] sm:$0xff] }
  0x21   : > { %v263_v54 = vadd.f32 %v626_v1, %v224_v47  ;;  %v226_v55 = vmul.f32 %v616_v0, %v187_v43  ;;  %v290_v59 = vmax.f32 %v258_v48, 0.0  ;;  %v291_v60 = vmax.f32 %v259_v49, 0.0  ;;  %v201_v35 = vld [vmem:[%s621_s4 + $0xe8] sm:$0xff]  ;;  %v202_v40 = vld [vmem:[%s621_s4 + $0xf0] sm:$0xff]  ;;  %v203_v45 = vld [vmem:[%s621_s4 + $0xf8] sm:$0xff] }
  0x22   : > { %v292_v61 = vmax.f32 %v260_v50, 0.0  ;;  %v264_v62 = vadd.f32 %v626_v1, %v225_v51  ;;  %v293_v4 = vmax.f32 %v261_v52, 0.0  ;;  %v294_v5 = vmax.f32 %v262_v53, 0.0 }
  0x23   : > { %v295_v6 = vmax.f32 %v263_v54, 0.0  ;;  %v265_v7 = vadd.f32 %v626_v1, %v226_v55  ;;  %322 = vst [vmem:[%s664_s8 + $0x40] sm:$0xff] %v290_v59  ;;  %323 = vst [vmem:[%s664_s8 + $0x48] sm:$0xff] %v291_v60  ;;  %v227_v10 = vmul.f32 %v616_v0, %v188_v56  ;;  %v228_v11 = vmul.f32 %v616_v0, %v189_v57 }
  0x24   : > { %324 = vst [vmem:[%s664_s8 + $0x50] sm:$0xff] %v292_v61  ;;  %v296_v9 = vmax.f32 %v264_v62, 0.0  ;;  %v229_v12 = vmul.f32 %v616_v0, %v190_v58  ;;  %325 = vst [vmem:[%s664_s8 + $0x58] sm:$0xff] %v293_v4  ;;  %v230_v15 = vmul.f32 %v616_v0, %v191_v63  ;;  %v231_v16 = vmul.f32 %v616_v0, %v192_v2 }
  0x25   : > { %326 = vst [vmem:[%s664_s8 + $0x60] sm:$0xff] %v294_v5  ;;  %327 = vst [vmem:[%s664_s8 + $0x68] sm:$0xff] %v295_v6  ;;  %v297_v14 = vmax.f32 %v265_v7, 0.0  ;;  %v232_v17 = vmul.f32 %v616_v0, %v193_v3  ;;  %v266_v18 = vadd.f32 %v626_v1, %v227_v10  ;;  %v267_v19 = vadd.f32 %v626_v1, %v228_v11 }
  0x26   : > { %328 = vst [vmem:[%s664_s8 + $0x70] sm:$0xff] %v296_v9  ;;  %v268_v20 = vadd.f32 %v626_v1, %v229_v12  ;;  %v233_v21 = vmul.f32 %v616_v0, %v194_v8  ;;  %v269_v22 = vadd.f32 %v626_v1, %v230_v15  ;;  %v270_v23 = vadd.f32 %v626_v1, %v231_v16 }
  0x27   : > { %329 = vst [vmem:[%s664_s8 + $0x78] sm:$0xff] %v297_v14  ;;  %v271_v24 = vadd.f32 %v626_v1, %v232_v17  ;;  %v234_v25 = vmul.f32 %v616_v0, %v195_v13  ;;  %v298_v29 = vmax.f32 %v266_v18, 0.0  ;;  %v299_v30 = vmax.f32 %v267_v19, 0.0 }
  0x28   : > { %v300_v31 = vmax.f32 %v268_v20, 0.0  ;;  %v272_v32 = vadd.f32 %v626_v1, %v233_v21  ;;  %v301_v36 = vmax.f32 %v269_v22, 0.0  ;;  %v302_v37 = vmax.f32 %v270_v23, 0.0 }
  0x29   : > { %v303_v38 = vmax.f32 %v271_v24, 0.0  ;;  %v273_v39 = vadd.f32 %v626_v1, %v234_v25  ;;  %330 = vst [vmem:[%s664_s8 + $0x80] sm:$0xff] %v298_v29  ;;  %331 = vst [vmem:[%s664_s8 + $0x88] sm:$0xff] %v299_v30  ;;  %v235_v42 = vmul.f32 %v616_v0, %v196_v26  ;;  %v236_v43 = vmul.f32 %v616_v0, %v197_v27 }
  0x2a   : > { %332 = vst [vmem:[%s664_s8 + $0x90] sm:$0xff] %v300_v31  ;;  %v304_v41 = vmax.f32 %v272_v32, 0.0  ;;  %v237_v44 = vmul.f32 %v616_v0, %v198_v28  ;;  %333 = vst [vmem:[%s664_s8 + $0x98] sm:$0xff] %v301_v36  ;;  %v238_v47 = vmul.f32 %v616_v0, %v199_v33  ;;  %v239_v48 = vmul.f32 %v616_v0, %v200_v34 }
  0x2b   : > { %334 = vst [vmem:[%s664_s8 + $0xa0] sm:$0xff] %v302_v37  ;;  %335 = vst [vmem:[%s664_s8 + $0xa8] sm:$0xff] %v303_v38  ;;  %v305_v46 = vmax.f32 %v273_v39, 0.0  ;;  %v240_v49 = vmul.f32 %v616_v0, %v201_v35  ;;  %v274_v50 = vadd.f32 %v626_v1, %v235_v42  ;;  %v275_v51 = vadd.f32 %v626_v1, %v236_v43 }
  0x2c   : > { %336 = vst [vmem:[%s664_s8 + $0xb0] sm:$0xff] %v304_v41  ;;  %v276_v52 = vadd.f32 %v626_v1, %v237_v44  ;;  %v241_v53 = vmul.f32 %v616_v0, %v202_v40  ;;  %v277_v54 = vadd.f32 %v626_v1, %v238_v47  ;;  %v278_v55 = vadd.f32 %v626_v1, %v239_v48 }
  0x2d   : > { %337 = vst [vmem:[%s664_s8 + $0xb8] sm:$0xff] %v305_v46  ;;  %v279_v56 = vadd.f32 %v626_v1, %v240_v49  ;;  %v242_v57 = vmul.f32 %v616_v0, %v203_v45  ;;  %v306_v58 = vmax.f32 %v274_v50, 0.0  ;;  %v307_v59 = vmax.f32 %v275_v51, 0.0 }
  0x2e   : > { %v308_v60 = vmax.f32 %v276_v52, 0.0  ;;  %v280_v61 = vadd.f32 %v626_v1, %v241_v53  ;;  %v309_v62 = vmax.f32 %v277_v54, 0.0  ;;  %v310_v63 = vmax.f32 %v278_v55, 0.0 }
  0x2f   : > { %v311_v2 = vmax.f32 %v279_v56, 0.0  ;;  %v281_v3 = vadd.f32 %v626_v1, %v242_v57  ;;  %338 = vst [vmem:[%s664_s8 + $0xc0] sm:$0xff] %v306_v58  ;;  %339 = vst [vmem:[%s664_s8 + $0xc8] sm:$0xff] %v307_v59 }
  0x30   : > { %340 = vst [vmem:[%s664_s8 + $0xd0] sm:$0xff] %v308_v60  ;;  %v312_v0 = vmax.f32 %v280_v61, 0.0  ;;  %341 = vst [vmem:[%s664_s8 + $0xd8] sm:$0xff] %v309_v62 }
  0x31   : > { %342 = vst [vmem:[%s664_s8 + $0xe0] sm:$0xff] %v310_v63  ;;  %343 = vst [vmem:[%s664_s8 + $0xe8] sm:$0xff] %v311_v2  ;;  %v313_v4 = vmax.f32 %v281_v3, 0.0 }
  0x32   : > { %344 = vst [vmem:[%s664_s8 + $0xf0] sm:$0xff] %v312_v0 }
  0x33   : > { %345 = vst [vmem:[%s664_s8 + $0xf8] sm:$0xff] %v313_v4 }
  0x34   : > { %491 = shalt.err (!%p488_p3)
}
  0x35   : > { %s492_s25 = scalar_lea.hbm %s763_s17, 4096  ;;  %s496_s30 = scalar_lea.hbm %s817_s3, 8192 }
  0x36   : > { %p493_p4 = scmp.ne.s32.totalorder %s763_s17, %s492_s25  ;;  %p497_p9 = scmp.lt.s32.totalorder %s763_s17, %s817_s3 }
  0x37   : > { %p498_p10 = scmp.lt.s32.totalorder %s496_s30, %s492_s25 }
  0x38   : > { %p494_p7 = pnand %p493_p4, %p601_p5 }
  0x39   : > { %p499_p11 = por %p498_p10, %p497_p9 }
  0x3a   : > { %p495_p8 = pneg %p494_p7 }
  0x3c   : > { %p500_p12 = pnand %p499_p11, %p495_p8 }
  0x3e   : > { %503 = shalt.err (!%p500_p12)
}
  0x3f   : > { %s541_s6 = smov 128   ;;  %s542_s7 = smov 8  }
  0x40   : > { %437 = dma.vmem_to_hbm [thread:$0]  (%p601_p5), %s765_s10, 4096, %s763_s17, %s774_s19, %s541_s6, %s541_s6, %s542_s7  }
  0x41 PF: > { %p443_p13 = scmp.ge.s32.totalorder %s538_s15, 2  ;;  %s375_s8 = sand.u32 1, %s526_s12  }
  0x42   : > { %s376_s9 = scalar_lea.sflag [#allocation3], %s375_s8 }
  0x43   : > { %p440_p0 = pnand %p443_p13, %p605_p6 }
  0x45   : > { %p441_p1 = pneg %p440_p0 }
  0x47   : > { %521 = dma.done.wait (%p441_p1), %s376_s9, 4096  }
  0x48   : > { %523 = vsyncadd (%p441_p1), %s376_s9, 4294963200  ;;  %p13_p2 = scmp.ge.s32.totalorder %s588_s18, 4   ;;  %s820_s12 = smov %s530_s13 }
  0x49   : > { %s821_s13 = smov %s534_s14  ;;  %s822_s14 = smov %s599_s21 }
  0x4a   : > { %s823_s15 = smov %s588_s18  ;;  %15 = sbr.rel (!%p13_p2) target bundleno = 3 (0x3), region = 67 }
  0x4f   :  { %381 = vsyncpa [#allocation3], 1 }
  0x50   :  { %383 = vsyncpa [#allocation3 + $0x1], 1 }

// kernel: dconv3d_block_forward.6
= control target key start
LH: loop header
LB: loop body
LE: loop exit
PB: predicated region body
PF: predicated region fallthrough
CT: control target
= control target key end

     0   :  { %s10559_s15 = smov 0   ;;  %s10561_s16 = smov 0   ;;  %s13045_s0 = inlined_call_operand.vmem [shape: bf16[512,3456], index: 0, kind: input, shape index: {}]   ;;  %s13046_s1 = inlined_call_operand.vmem [shape: bf16[3456,128], index: 1, kind: input, shape index: {}]   ;;  %s13047_s2 = inlined_call_operand.vmem [shape: f32[1,128], index: 2, kind: input, shape index: {}]   ;;  %s13048_s3 = inlined_call_operand.vmem [shape: f32[512,128], index: 3, kind: output, shape index: {0}]   ;;  %s13049_s4 = inlined_call_operand.vmem [shape: f32[2,2,128], index: 4, kind: output, shape index: {1}]  }
   0x1   :  { %s10563_s17 = smov 0  }
   0x2 LB: > { %s34_s18 = sadd.s32 1, %s10528_s16  ;;  %p7428_p0 = scmp.ge.s32.totalorder %s10532_s17, 1  ;;  %s10532_s17 = sphi %s10563_s17, %s15_s17   ;;  %s10528_s16 = sphi %s10561_s16, %s13071_s16   ;;  %s10524_s15 = sphi %s10559_s15, %s13070_s15  }
   0x3   : > { %p36_p1 = scmp.ge.s32.totalorder %s34_s18, 2  ;;  %p221_p2 = scmp.lt.s32.totalorder %s10532_s17, 3 }
   0x5   : > { %s13073_s18 = smov (%p36_p1, %s34_s18), 0  ;;  %p222_p3 = pnand %p7428_p0, %p221_p2 }
   0x7   : > { %225 = sbr.rel (%p222_p3) target bundleno = 1127 (0x467), region = 32 }
   0xc   : > { %v9654_v0 = vld [vmem:[%s13046_s1 + $0x78] sm:$0xff]   ;;  %s7429_s21 = sshll.u32 %s10524_s15, 5  ;;  %v9656_v2 = vld [vmem:[%s13046_s1 + $0x70] sm:$0xff]   ;;  %v9658_v4 = vld [vmem:[%s13046_s1 + $0x68] sm:$0xff]   ;;  %p306_p5 = scmp.lt.s32.totalorder %s10524_s15, 1  ;;  %vm7264_vm0 = vcmask 1040384  }
   0xd   : > { %v9655_v1 = vld [vmem:[%s13046_s1 + $0x38] sm:$0xff]   ;;  %8085 = vmatprep.subr.bf16.mxu0 %v9654_v0  ;;  %9613 = vmatprep.subr.bf16.mxu1 %v9654_v0  ;;  %p275_p4 = scmp.lt.s32.totalorder %s7429_s21, 63  ;;  %v9657_v3 = vld [vmem:[%s13046_s1 + $0x30] sm:$0xff]   ;;  %v9659_v5 = vld [vmem:[%s13046_s1 + $0x28] sm:$0xff]  }
   0xe   : > { %8086 = vmatpush3.bf16.msra.mxu0 %v9655_v1  ;;  %9621 = vmatpush3.bf16.msra.mxu1 %v9655_v1  ;;  %v9660_v6 = vld [vmem:[%s13046_s1 + $0x60] sm:$0xff]   ;;  %v9662_v8 = vld [vmem:[%s13046_s1 + $0x58] sm:$0xff]   ;;  %v9664_v10 = vld [vmem:[%s13046_s1 + $0x50] sm:$0xff]   ;;  %s13077_s15 = smov (!%p306_p5, %s10524_s15), 1 }
   0xf   : > { %8087 = vmatprep.subr.bf16.mxu0 %v9656_v2  ;;  %9614 = vmatprep.subr.bf16.mxu1 %v9656_v2  ;;  %s13075_s21 = smov (!%p275_p4, %s7429_s21), 63  ;;  %v9661_v7 = vld [vmem:[%s13046_s1 + $0x20] sm:$0xff]   ;;  %v9663_v9 = vld [vmem:[%s13046_s1 + $0x18] sm:$0xff]   ;;  %v9665_v13 = vld [vmem:[%s13046_s1 + $0x10] sm:$0xff]   ;;  %s7433_s13 = sshll.u32 %s13077_s15, 1 }
  0x10   : > { %s9629_s8 = smul.u32 108, %s13075_s21  ;;  %v9666_v14 = vld [vmem:[%s13046_s1 + $0x48] sm:$0xff]   ;;  %v9668_v16 = vld [vmem:[%s13046_s1 + $0x40] sm:$0xff]   ;;  %v9676_v18 = vld [vmem:[%s13046_s1 + $0xf8] sm:$0xff]   ;;  %s312_s22 = scalar_lea.vmem %s13049_s4, %s7433_s13 }
  0x11   : > { %v9667_v15 = vld [vmem:[%s13046_s1 + $0x8] sm:$0xff]   ;;  %v9669_v17 = vld [vmem:[%s13046_s1] sm:$0xff]   ;;  %v9677_v21 = vld [vmem:[%s13046_s1 + $0x178] sm:$0xff]  }
  0x12   : > { %8088 = vmatpush3.bf16.msra.mxu0 %v9657_v3  ;;  %9622 = vmatpush3.bf16.msra.mxu1 %v9657_v3  ;;  %s10613_s19 = scalar_lea.vmem %s13045_s0, %s9629_s8  ;;  %v9678_v22 = vld [vmem:[%s13046_s1 + $0xb8] sm:$0xff]   ;;  %v9680_v24 = vld [vmem:[%s13046_s1 + $0xf0] sm:$0xff]   ;;  %v9688_v32 = vld [vmem:[%s13046_s1 + $0xe8] sm:$0xff]  }
  0x13   : > { %8089 = vmatprep.subr.bf16.mxu0 %v9658_v4  ;;  %9615 = vmatprep.subr.bf16.mxu1 %v9658_v4  ;;  %v9672_v11 = vld [vmem:[%s10613_s19 + $0x4] ss:$108 sps:$4 sm:$0xff]   ;;  %v9670_v19 = vld [vmem:[%s10613_s19] ss:$108 sps:$4 sm:$0xff]   ;;  %v9679_v23 = vld [vmem:[%s13046_s1 + $0x138] sm:$0xff]  }
  0x14   : > { %v9675_v12 = vld [vmem:[%s10613_s19 + $0xa24] ss:$108 sps:$4 sm:$0xff]   ;;  %4766 = vmatprep.mubr.bf16.mxu0 %v9672_v11  ;;  %v9673_v20 = vld [vmem:[%s10613_s19 + $0xa20] ss:$108 sps:$4 sm:$0xff]   ;;  %v9682_v25 = vld [vmem:[%s10613_s19 + $0xdc] ss:$108 sps:$4 sm:$0xff]  }
  0x15   : > { %4862 = vmatprep.mubr.bf16.mxu1 %v9675_v12  ;;  %v9684_v26 = vld [vmem:[%s10613_s19 + $0xafc] ss:$108 sps:$4 sm:$0xff]   ;;  %v9691_v27 = vld [vmem:[%s13046_s1 + $0x170] sm:$0xff]   ;;  %v9686_v30 = vld [vmem:[%s10613_s19 + $0xd8] ss:$108 sps:$4 sm:$0xff]  }
  0x16   : > { %8090 = vmatpush3.bf16.msra.mxu0 %v9659_v5  ;;  %9623 = vmatpush3.bf16.msra.mxu1 %v9659_v5  ;;  %v9681_v28 = vld [vmem:[%s13046_s1 + $0xb0] sm:$0xff]   ;;  %v9687_v31 = vld [vmem:[%s10613_s19 + $0xaf8] ss:$108 sps:$4 sm:$0xff]   ;;  %v9689_v33 = vld [vmem:[%s13046_s1 + $0xa8] sm:$0xff]  }
  0x17   : > { %8091 = vmatprep.subr.bf16.mxu0 %v9660_v6  ;;  %9616 = vmatprep.subr.bf16.mxu1 %v9660_v6  ;;  %v9693_v29 = vld [vmem:[%s13046_s1 + $0x130] sm:$0xff]   ;;  %v9690_v34 = vld [vmem:[%s13046_s1 + $0xe0] sm:$0xff]   ;;  %v9700_v38 = vld [vmem:[%s13046_s1 + $0xd8] sm:$0xff]  }
  0x18   : > { %v9694_v35 = vld [vmem:[%s10613_s19 + $0x1b4] ss:$108 sps:$4 sm:$0xff]   ;;  %v9698_v39 = vld [vmem:[%s10613_s19 + $0x1b0] ss:$108 sps:$4 sm:$0xff]   ;;  %v9711_v41 = vld [vmem:[%s13046_s1 + $0x168] sm:$0xff]  }
  0x19   : > { %v9696_v36 = vld [vmem:[%s10613_s19 + $0xbd4] ss:$108 sps:$4 sm:$0xff]   ;;  %v9699_v40 = vld [vmem:[%s10613_s19 + $0xbd0] ss:$108 sps:$4 sm:$0xff]   ;;  %v9713_v44 = vld [vmem:[%s13046_s1 + $0x128] sm:$0xff]  }
  0x1a   : > { %8092 = vmatpush3.bf16.msra.mxu0 %v9661_v7  ;;  %9624 = vmatpush3.bf16.msra.mxu1 %v9661_v7  ;;  %v9692_v37 = vld [vmem:[%s13046_s1 + $0xa0] sm:$0xff]   ;;  %v9701_v42 = vld [vmem:[%s13046_s1 + $0x98] sm:$0xff]   ;;  %v9702_v43 = vld [vmem:[%s13046_s1 + $0xd0] sm:$0xff]  }
  0x1b   : > { %8093 = vmatprep.subr.bf16.mxu0 %v9662_v8  ;;  %9617 = vmatprep.subr.bf16.mxu1 %v9662_v8  ;;  %v9704_v45 = vld [vmem:[%s10613_s19 + $0x28c] ss:$108 sps:$4 sm:$0xff]   ;;  %v9703_v47 = vld [vmem:[%s13046_s1 + $0x90] sm:$0xff]   ;;  %v9714_v53 = vld [vmem:[%s13046_s1 + $0xc0] sm:$0xff]  }
  0x1c   : > { %v9706_v46 = vld [vmem:[%s10613_s19 + $0xcac] ss:$108 sps:$4 sm:$0xff]   ;;  %v9708_v48 = vld [vmem:[%s10613_s19 + $0x288] ss:$108 sps:$4 sm:$0xff]   ;;  %v9716_v52 = vld [vmem:[%s10613_s19 + $0x364] ss:$108 sps:$4 sm:$0xff]  }
  0x1d   : > { %v9709_v49 = vld [vmem:[%s10613_s19 + $0xca8] ss:$108 sps:$4 sm:$0xff]   ;;  %v9724_v54 = vld [vmem:[%s13046_s1 + $0x160] sm:$0xff]   ;;  %v9720_v56 = vld [vmem:[%s10613_s19 + $0xc] ss:$108 sps:$4 sm:$0xff]  }
  0x1e   : > { %8094 = vmatpush3.bf16.msra.mxu0 %v9663_v9  ;;  %9625 = vmatpush3.bf16.msra.mxu1 %v9663_v9  ;;  %v9710_v50 = vld [vmem:[%s13046_s1 + $0xc8] sm:$0xff]   ;;  %v9725_v55 = vld [vmem:[%s13046_s1 + $0x120] sm:$0xff]   ;;  %v9722_v60 = vld [vmem:[%s13046_s1 + $0x1f8] sm:$0xff]  }
  0x1f   : > { %8095 = vmatprep.subr.bf16.mxu0 %v9664_v10  ;;  %9618 = vmatprep.subr.bf16.mxu1 %v9664_v10  ;;  %v9712_v51 = vld [vmem:[%s13046_s1 + $0x88] sm:$0xff]   ;;  %v9715_v57 = vld [vmem:[%s13046_s1 + $0x80] sm:$0xff]   ;;  %v9723_v61 = vld [vmem:[%s13046_s1 + $0x1b8] sm:$0xff]  }
  0x20   : > { %v9718_v58 = vld [vmem:[%s10613_s19 + $0x8] ss:$108 sps:$4 sm:$0xff]   ;;  %v9721_v59 = vld [vmem:[%s10613_s19 + $0x360] ss:$108 sps:$4 sm:$0xff]   ;;  %v9738_v63 = vld [vmem:[%s13046_s1 + $0x158] sm:$0xff]  }
  0x21   : > { %v9726_v62 = vld [vmem:[%s10613_s19 + $0x43c] ss:$108 sps:$4 sm:$0xff]   ;;  %v9728_v0 = vld [vmem:[%s10613_s19 + $0xe4] ss:$108 sps:$4 sm:$0xff]   ;;  %v9731_v7 = vld [vmem:[%s10613_s19 + $0xe0] ss:$108 sps:$4 sm:$0xff]  }
  0x22   : > { %8096 = vmatpush3.bf16.msra.mxu0 %v9665_v13  ;;  %9626 = vmatpush3.bf16.msra.mxu1 %v9665_v13  ;;  %v9740_v1 = vld [vmem:[%s13046_s1 + $0x118] sm:$0xff]   ;;  %v9739_v2 = vld [vmem:[%s13046_s1 + $0x1f0] sm:$0xff]   ;;  %v9756_v10 = vld [vmem:[%s13046_s1 + $0x1e8] sm:$0xff]  }
  0x23   : > { %8097 = vmatprep.subr.bf16.mxu0 %v9666_v14  ;;  %9619 = vmatprep.subr.bf16.mxu1 %v9666_v14  ;;  %v9741_v3 = vld [vmem:[%s13046_s1 + $0x1b0] sm:$0xff]   ;;  %v9730_v4 = vld [vmem:[%s10613_s19 + $0x438] ss:$108 sps:$4 sm:$0xff]   ;;  %v9734_v9 = vld [vmem:[%s10613_s19 + $0x1bc] ss:$108 sps:$4 sm:$0xff]  }
  0x24   : > { %v9748_v5 = vld [vmem:[%s13046_s1 + $0x150] sm:$0xff]   ;;  %v9757_v11 = vld [vmem:[%s13046_s1 + $0x1a8] sm:$0xff]   ;;  %v9737_v13 = vld [vmem:[%s10613_s19 + $0x1b8] ss:$108 sps:$4 sm:$0xff]  }
  0x25   : > { %v9749_v6 = vld [vmem:[%s13046_s1 + $0x110] sm:$0xff]   ;;  %v9742_v14 = vld [vmem:[%s10613_s19 + $0x5ec] ss:$108 sps:$4 sm:$0xff]  }
  0x26   : > { %8098 = vmatpush3.bf16.msra.mxu0 %v9667_v15  ;;  %9627 = vmatpush3.bf16.msra.mxu1 %v9667_v15  ;;  %v9732_v8 = vld [vmem:[%s10613_s19 + $0x514] ss:$108 sps:$4 sm:$0xff]   ;;  %v9736_v12 = vld [vmem:[%s10613_s19 + $0x510] ss:$108 sps:$4 sm:$0xff]   ;;  %v9764_v15 = vld [vmem:[%s13046_s1 + $0x148] sm:$0xff]  }
  0x27   : > { %8099 = vmatprep.subr.bf16.mxu0 %v9668_v16  ;;  %9620 = vmatprep.subr.bf16.mxu1 %v9668_v16  ;;  %v9765_v16 = vld [vmem:[%s13046_s1 + $0x108] sm:$0xff]  }
  0x2a   : > { %8100 = vmatpush3.bf16.msra.mxu0 %v9669_v17  ;;  %9628 = vmatpush3.bf16.msra.mxu1 %v9669_v17  ;;  %v9744_v17 = vld [vmem:[%s10613_s19 + $0x294] ss:$108 sps:$4 sm:$0xff]  }
  0x2b   : > { %8197 = vmatprep.subr.bf16.mxu1 %v9676_v18  ;;  %8309 = vmatprep.subr.bf16.mxu0 %v9677_v21  ;;  %v9772_v18 = vld [vmem:[%s13046_s1 + $0x1e0] sm:$0xff]  }
  0x2c   : > { %v9774_v21 = vld [vmem:[%s13046_s1 + $0x140] sm:$0xff]  }
  0x2d   : > { %4767 = vmatmul.mubr.bf16.vlgmr.msra.gmra.mxu0 %v9670_v19  ;;  %4863 = vmatmul.mubr.bf16.vlgmr.msra.gmra.mxu1 %v9673_v20  ;;  %v9773_v19 = vld [vmem:[%s13046_s1 + $0x1a0] sm:$0xff]   ;;  %v9746_v20 = vld [vmem:[%s10613_s19 + $0x5e8] ss:$108 sps:$4 sm:$0xff]  }
  0x2e   : > { %8198 = vmatpush3.bf16.msra.mxu1 %v9678_v22  ;;  %8310 = vmatpush3.bf16.msra.mxu0 %v9679_v23  ;;  %v9775_v22 = vld [vmem:[%s13046_s1 + $0x100] sm:$0xff]   ;;  %v9747_v23 = vld [vmem:[%s10613_s19 + $0x290] ss:$108 sps:$4 sm:$0xff]  }
  0x2f   : > { %8199 = vmatprep.subr.bf16.mxu1 %v9680_v24  ;;  %4774 = vmatprep.mubr.bf16.mxu0 %v9682_v25  ;;  %v9750_v24 = vld [vmem:[%s10613_s19 + $0x6c4] ss:$108 sps:$4 sm:$0xff]   ;;  %v9752_v25 = vld [vmem:[%s10613_s19 + $0x36c] ss:$108 sps:$4 sm:$0xff]  }
  0x30   : > { %4870 = vmatprep.mubr.bf16.mxu1 %v9684_v26  ;;  %8311 = vmatprep.subr.bf16.mxu0 %v9691_v27  ;;  %v9788_v26 = vld [vmem:[%s13046_s1 + $0x1d8] sm:$0xff]   ;;  %v9754_v27 = vld [vmem:[%s10613_s19 + $0x6c0] ss:$108 sps:$4 sm:$0xff]  }
  0x32   : > { %8200 = vmatpush3.bf16.msra.mxu1 %v9681_v28  ;;  %8312 = vmatpush3.bf16.msra.mxu0 %v9693_v29  ;;  %v9755_v28 = vld [vmem:[%s10613_s19 + $0x368] ss:$108 sps:$4 sm:$0xff]   ;;  %v9789_v29 = vld [vmem:[%s13046_s1 + $0x278] sm:$0xff]  }
  0x33   : > { %8201 = vmatprep.subr.bf16.mxu1 %v9688_v32  ;;  %8313 = vmatprep.subr.bf16.mxu0 %v9711_v41  ;;  %v9760_v32 = vld [vmem:[%s10613_s19 + $0x444] ss:$108 sps:$4 sm:$0xff]   ;;  %v9776_v41 = vld [vmem:[%s10613_s19 + $0x94c] ss:$108 sps:$4 sm:$0xff]  }
  0x35   : > { %4775 = vmatmul.mubr.bf16.gmra.mxu0 %v9686_v30  ;;  %4871 = vmatmul.mubr.bf16.gmra.mxu1 %v9687_v31  ;;  %v9790_v30 = vld [vmem:[%s13046_s1 + $0x198] sm:$0xff]  }
  0x36   : > { %8202 = vmatpush3.bf16.msra.mxu1 %v9689_v33  ;;  %4782 = vmatprep.mubr.bf16.mxu0 %v9694_v35  ;;  %v9758_v31 = vld [vmem:[%s10613_s19 + $0x79c] ss:$108 sps:$4 sm:$0xff]   ;;  %v9762_v33 = vld [vmem:[%s10613_s19 + $0x798] ss:$108 sps:$4 sm:$0xff]   ;;  %v9804_v35 = vld [vmem:[%s13046_s1 + $0x1d0] sm:$0xff]  }
  0x37   : > { %8203 = vmatprep.subr.bf16.mxu1 %v9690_v34  ;;  %4878 = vmatprep.mubr.bf16.mxu1 %v9696_v36  ;;  %v9763_v34 = vld [vmem:[%s10613_s19 + $0x440] ss:$108 sps:$4 sm:$0xff]  }
  0x38   : > { %8314 = vmatpush3.bf16.msra.mxu0 %v9713_v44  ;;  %v9766_v36 = vld [vmem:[%s10613_s19 + $0x874] ss:$108 sps:$4 sm:$0xff]   ;;  %v9822_v44 = vld [vmem:[%s13046_s1 + $0x188] sm:$0xff]  }
  0x39   : > { %8315 = vmatprep.subr.bf16.mxu0 %v9724_v54  ;;  %v9792_v54 = vld [vmem:[%s10613_s19 + $0x7a4] ss:$108 sps:$4 sm:$0xff]  }
  0x3a   : > { %8204 = vmatpush3.bf16.msra.mxu1 %v9692_v37  ;;  %v9806_v37 = vld [vmem:[%s13046_s1 + $0x190] sm:$0xff]  }
  0x3b   : > { %8205 = vmatprep.subr.bf16.mxu1 %v9700_v38  ;;  %v9768_v38 = vld [vmem:[%s10613_s19 + $0x51c] ss:$108 sps:$4 sm:$0xff]  }
  0x3c   : > { %8316 = vmatpush3.bf16.msra.mxu0 %v9725_v55  ;;  %v9794_v55 = vld [vmem:[%s10613_s19 + $0xec] ss:$108 sps:$4 sm:$0xff]  }
  0x3d   : > { %4783 = vmatmul.mubr.bf16.gmra.mxu0 %v9698_v39  ;;  %4879 = vmatmul.mubr.bf16.gmra.mxu1 %v9699_v40  ;;  %v9770_v39 = vld [vmem:[%s10613_s19 + $0x870] ss:$108 sps:$4 sm:$0xff]   ;;  %v9771_v40 = vld [vmem:[%s10613_s19 + $0x518] ss:$108 sps:$4 sm:$0xff]  }
  0x3e   : > { %8206 = vmatpush3.bf16.msra.mxu1 %v9701_v42  ;;  %4790 = vmatprep.mubr.bf16.mxu0 %v9704_v45  ;;  %v9820_v42 = vld [vmem:[%s13046_s1 + $0x1c8] sm:$0xff]  }
  0x3f   : > { %8207 = vmatprep.subr.bf16.mxu1 %v9702_v43  ;;  %4886 = vmatprep.mubr.bf16.mxu1 %v9706_v46  ;;  %v9778_v43 = vld [vmem:[%s10613_s19 + $0x5f4] ss:$108 sps:$4 sm:$0xff]   ;;  %v9781_v46 = vld [vmem:[%s10613_s19 + $0x5f0] ss:$108 sps:$4 sm:$0xff]  }
  0x40   : > { %8317 = vmatprep.subr.bf16.mxu0 %v9738_v63  ;;  %v9780_v45 = vld [vmem:[%s10613_s19 + $0x948] ss:$108 sps:$4 sm:$0xff]   ;;  %v9800_v63 = vld [vmem:[%s10613_s19 + $0x1c4] ss:$108 sps:$4 sm:$0xff]  }
  0x41   : > { %8318 = vmatpush3.bf16.msra.mxu0 %v9740_v1  ;;  %v9837_v1 = vld [vmem:[%s13046_s1 + $0x260] sm:$0xff]  }
  0x42   : > { %8208 = vmatpush3.bf16.msra.mxu1 %v9703_v47  ;;  %8319 = vmatprep.subr.bf16.mxu0 %v9748_v5  ;;  %v9782_v47 = vld [vmem:[%s10613_s19 + $0x6cc] ss:$108 sps:$4 sm:$0xff]  }
  0x43   : > { %8209 = vmatprep.subr.bf16.mxu1 %v9710_v50  ;;  %v9838_v50 = vld [vmem:[%s13046_s1 + $0x180] sm:$0xff]  }
  0x44   : > { %v9803_v5 = vld [vmem:[%s10613_s19 + $0x1c0] ss:$108 sps:$4 sm:$0xff]  }
  0x45   : > { %4791 = vmatmul.mubr.bf16.gmra.mxu0 %v9708_v48  ;;  %4887 = vmatmul.mubr.bf16.gmra.mxu1 %v9709_v49  ;;  %v9786_v48 = vld [vmem:[%s10613_s19 + $0x14] ss:$108 sps:$4 sm:$0xff]  }
  0x46   : > { %8210 = vmatpush3.bf16.msra.mxu1 %v9712_v51  ;;  %4798 = vmatprep.mubr.bf16.mxu0 %v9716_v52  ;;  %v9836_v49 = vld [vmem:[%s13046_s1 + $0x1c0] sm:$0xff]   ;;  %v9784_v51 = vld [vmem:[%s10613_s19 + $0x10] ss:$108 sps:$4 sm:$0xff]   ;;  %v9787_v52 = vld [vmem:[%s10613_s19 + $0x6c8] ss:$108 sps:$4 sm:$0xff]  }
  0x47   : > { %8211 = vmatprep.subr.bf16.mxu1 %v9714_v53  ;;  %4927 = vmatprep.mubr.bf16.mxu1 %v9720_v56  ;;  %v9791_v53 = vld [vmem:[%s13046_s1 + $0x238] sm:$0xff]   ;;  %v9805_v56 = vld [vmem:[%s13046_s1 + $0x270] sm:$0xff]  }
  0x48   : > { %8320 = vmatpush3.bf16.msra.mxu0 %v9749_v6  ;;  %v9808_v6 = vld [vmem:[%s10613_s19 + $0x954] ss:$108 sps:$4 sm:$0xff]  }
  0x49   : > { %8321 = vmatprep.subr.bf16.mxu0 %v9764_v15  ;;  %v9816_v15 = vld [vmem:[%s10613_s19 + $0x374] ss:$108 sps:$4 sm:$0xff]  }
  0x4a   : > { %8212 = vmatpush3.bf16.msra.mxu1 %v9715_v57  ;;  %v9853_v57 = vld [vmem:[%s13046_s1 + $0x2f8] sm:$0xff]  }
  0x4b   : > { %8421 = vmatprep.subr.bf16.mxu1 %v9722_v60  ;;  %v9796_v60 = vld [vmem:[%s10613_s19 + $0x7a0] ss:$108 sps:$4 sm:$0xff]  }
  0x4c   : > { %8322 = vmatpush3.bf16.msra.mxu0 %v9765_v16  ;;  %v9886_v16 = vld [vmem:[%s13046_s1 + $0x208] sm:$0xff]  }
  0x4d   : > { %4799 = vmatmul.mubr.bf16.gmra.mxu0 %v9721_v59  ;;  %4928 = vmatmul.mubr.bf16.vlgmr.msra.gmra.mxu1 %v9718_v58  ;;  %v9807_v58 = vld [vmem:[%s13046_s1 + $0x230] sm:$0xff]   ;;  %v9821_v59 = vld [vmem:[%s13046_s1 + $0x268] sm:$0xff]  }
  0x4e   : > { %8422 = vmatpush3.bf16.msra.mxu1 %v9723_v61  ;;  %4806 = vmatprep.mubr.bf16.mxu0 %v9726_v62  ;;  %v9797_v61 = vld [vmem:[%s10613_s19 + $0xe8] ss:$108 sps:$4 sm:$0xff]  }
  0x4f   : > { %4935 = vmatprep.mubr.bf16.mxu1 %v9728_v0  ;;  %8423 = vmatprep.subr.bf16.mxu1 %v9739_v2  ;;  %v9798_v62 = vld [vmem:[%s10613_s19 + $0x87c] ss:$108 sps:$4 sm:$0xff]   ;;  %v9802_v2 = vld [vmem:[%s10613_s19 + $0x878] ss:$108 sps:$4 sm:$0xff]  }
  0x50   : > { %8323 = vmatprep.subr.bf16.mxu0 %v9774_v21  ;;  %v9823_v0 = vld [vmem:[%s13046_s1 + $0x228] sm:$0xff]   ;;  %v9902_v21 = vld [vmem:[%s13046_s1 + $0x200] sm:$0xff]  }
  0x51   : > { %8324 = vmatpush3.bf16.msra.mxu0 %v9775_v22  ;;  %v9826_v22 = vld [vmem:[%s10613_s19 + $0x44c] ss:$108 sps:$4 sm:$0xff]  }
  0x52   : > { %8424 = vmatpush3.bf16.msra.mxu1 %v9741_v3  ;;  %8533 = vmatprep.subr.bf16.mxu0 %v9789_v29  ;;  %v9839_v3 = vld [vmem:[%s13046_s1 + $0x220] sm:$0xff]  }
  0x53   : > { %8425 = vmatprep.subr.bf16.mxu1 %v9756_v10  ;;  %v9812_v10 = vld [vmem:[%s10613_s19 + $0x950] ss:$108 sps:$4 sm:$0xff]   ;;  %v9835_v29 = vld [vmem:[%s10613_s19 + $0x520] ss:$108 sps:$4 sm:$0xff]  }
  0x55   : > { %4807 = vmatmul.mubr.bf16.gmra.mxu0 %v9730_v4  ;;  %4936 = vmatmul.mubr.bf16.gmra.mxu1 %v9731_v7  ;;  %v9852_v4 = vld [vmem:[%s13046_s1 + $0x258] sm:$0xff]  }
  0x56   : > { %4814 = vmatprep.mubr.bf16.mxu0 %v9732_v8  ;;  %4943 = vmatprep.mubr.bf16.mxu1 %v9734_v9  ;;  %v9810_v7 = vld [vmem:[%s10613_s19 + $0x29c] ss:$108 sps:$4 sm:$0xff]   ;;  %v9868_v9 = vld [vmem:[%s13046_s1 + $0x250] sm:$0xff]  }
  0x57   : > { %8426 = vmatpush3.bf16.msra.mxu1 %v9757_v11  ;;  %v9854_v8 = vld [vmem:[%s13046_s1 + $0x218] sm:$0xff]  }
  0x58   : > { %8427 = vmatprep.subr.bf16.mxu1 %v9772_v18  ;;  %v9813_v11 = vld [vmem:[%s10613_s19 + $0x298] ss:$108 sps:$4 sm:$0xff]   ;;  %v9819_v18 = vld [vmem:[%s10613_s19 + $0x370] ss:$108 sps:$4 sm:$0xff]  }
  0x5b   : > { %8428 = vmatpush3.bf16.msra.mxu1 %v9773_v19  ;;  %v9900_v19 = vld [vmem:[%s13046_s1 + $0x240] sm:$0xff]  }
  0x5c   : > { %8429 = vmatprep.subr.bf16.mxu1 %v9788_v26  ;;  %v9832_v26 = vld [vmem:[%s10613_s19 + $0x524] ss:$108 sps:$4 sm:$0xff]  }
  0x5d   : > { %4815 = vmatmul.mubr.bf16.gmra.mxu0 %v9736_v12  ;;  %4944 = vmatmul.mubr.bf16.gmra.mxu1 %v9737_v13  ;;  %v9870_v12 = vld [vmem:[%s13046_s1 + $0x210] sm:$0xff]   ;;  %v9884_v13 = vld [vmem:[%s13046_s1 + $0x248] sm:$0xff]  }
  0x5e   : > { %4822 = vmatprep.mubr.bf16.mxu0 %v9742_v14  ;;  %4951 = vmatprep.mubr.bf16.mxu1 %v9744_v17  ;;  %v9814_v14 = vld [vmem:[%s10613_s19 + $0xa2c] ss:$108 sps:$4 sm:$0xff]   ;;  %v9818_v17 = vld [vmem:[%s10613_s19 + $0xa28] ss:$108 sps:$4 sm:$0xff]  }
  0x5f   : > { %8430 = vmatpush3.bf16.msra.mxu1 %v9790_v30  ;;  %v9840_v30 = vld [vmem:[%s10613_s19 + $0xcb4] ss:$108 sps:$4 sm:$0xff]  }
  0x60   : > { %8431 = vmatprep.subr.bf16.mxu1 %v9804_v35  ;;  %v9850_v35 = vld [vmem:[%s10613_s19 + $0x1c] ss:$108 sps:$4 sm:$0xff]  }
  0x63   : > { %8432 = vmatpush3.bf16.msra.mxu1 %v9806_v37  ;;  %v9851_v37 = vld [vmem:[%s10613_s19 + $0x6d0] ss:$108 sps:$4 sm:$0xff]  }
  0x64   : > { %8433 = vmatprep.subr.bf16.mxu1 %v9820_v42  ;;  %v9871_v42 = vld [vmem:[%s13046_s1 + $0x2b0] sm:$0xff]  }
  0x65   : > { %4823 = vmatmul.mubr.bf16.gmra.mxu0 %v9746_v20  ;;  %4952 = vmatmul.mubr.bf16.gmra.mxu1 %v9747_v23  ;;  %v9824_v20 = vld [vmem:[%s10613_s19 + $0xb04] ss:$108 sps:$4 sm:$0xff]   ;;  %v9828_v23 = vld [vmem:[%s10613_s19 + $0xb00] ss:$108 sps:$4 sm:$0xff]  }
  0x66   : > { %4830 = vmatprep.mubr.bf16.mxu0 %v9750_v24  ;;  %4959 = vmatprep.mubr.bf16.mxu1 %v9752_v25  ;;  %v9829_v24 = vld [vmem:[%s10613_s19 + $0x448] ss:$108 sps:$4 sm:$0xff]  }
  0x67   : > { %8434 = vmatpush3.bf16.msra.mxu1 %v9822_v44  ;;  %v9830_v25 = vld [vmem:[%s10613_s19 + $0xbdc] ss:$108 sps:$4 sm:$0xff]  }
  0x68   : > { %8435 = vmatprep.subr.bf16.mxu1 %v9836_v49  ;;  %v9860_v44 = vld [vmem:[%s10613_s19 + $0x7a8] ss:$108 sps:$4 sm:$0xff]   ;;  %v9901_v49 = vld [vmem:[%s13046_s1 + $0x2e0] sm:$0xff]  }
  0x6b   : > { %8436 = vmatpush3.bf16.msra.mxu1 %v9838_v50  ;;  %v9866_v50 = vld [vmem:[%s10613_s19 + $0x880] ss:$108 sps:$4 sm:$0xff]  }
  0x6c   : > { %8645 = vmatprep.subr.bf16.mxu1 %v9853_v57  ;;  %v9932_v57 = vld [vmem:[%s13046_s1 + $0x2d0] sm:$0xff]  }
  0x6d   : > { %4831 = vmatmul.mubr.bf16.gmra.mxu0 %v9754_v27  ;;  %4960 = vmatmul.mubr.bf16.gmra.mxu1 %v9755_v28  ;;  %v9917_v27 = vld [vmem:[%s13046_s1 + $0x378] sm:$0xff]  }
  0x6e   : > { %4838 = vmatprep.mubr.bf16.mxu0 %v9758_v31  ;;  %4967 = vmatprep.mubr.bf16.mxu1 %v9760_v32  ;;  %v9834_v28 = vld [vmem:[%s10613_s19 + $0xbd8] ss:$108 sps:$4 sm:$0xff]   ;;  %v9842_v31 = vld [vmem:[%s10613_s19 + $0x5fc] ss:$108 sps:$4 sm:$0xff]  }
  0x6f   : > { %v9844_v32 = vld [vmem:[%s10613_s19 + $0xcb0] ss:$108 sps:$4 sm:$0xff]  }
  0x75   : > { %4839 = vmatmul.mubr.bf16.gmra.mxu0 %v9762_v33  ;;  %4968 = vmatmul.mubr.bf16.gmra.mxu1 %v9763_v34  ;;  %v9845_v33 = vld [vmem:[%s10613_s19 + $0x5f8] ss:$108 sps:$4 sm:$0xff]   ;;  %v9846_v34 = vld [vmem:[%s10613_s19 + $0x6d4] ss:$108 sps:$4 sm:$0xff]  }
  0x76   : > { %4846 = vmatprep.mubr.bf16.mxu0 %v9766_v36  ;;  %4975 = vmatprep.mubr.bf16.mxu1 %v9768_v38  ;;  %v9848_v36 = vld [vmem:[%s10613_s19 + $0x18] ss:$108 sps:$4 sm:$0xff]  }
  0x77   : > { %v9855_v38 = vld [vmem:[%s13046_s1 + $0x2b8] sm:$0xff]  }
  0x7d   : > { %4847 = vmatmul.mubr.bf16.gmra.mxu0 %v9770_v39  ;;  %4976 = vmatmul.mubr.bf16.gmra.mxu1 %v9771_v40  ;;  %v9856_v39 = vld [vmem:[%s10613_s19 + $0x7ac] ss:$108 sps:$4 sm:$0xff]   ;;  %v9858_v40 = vld [vmem:[%s10613_s19 + $0xf4] ss:$108 sps:$4 sm:$0xff]  }
  0x7e   : > { %4854 = vmatprep.mubr.bf16.mxu0 %v9776_v41  ;;  %4983 = vmatprep.mubr.bf16.mxu1 %v9778_v43  ;;  %v9869_v41 = vld [vmem:[%s13046_s1 + $0x2f0] sm:$0xff]   ;;  %v9885_v43 = vld [vmem:[%s13046_s1 + $0x2e8] sm:$0xff]  }
  0x85   : > { %4855 = vmatmul.mubr.bf16.gmra.mxu0 %v9780_v45  ;;  %4984 = vmatmul.mubr.bf16.gmra.mxu1 %v9781_v46  ;;  %v9861_v45 = vld [vmem:[%s10613_s19 + $0xf0] ss:$108 sps:$4 sm:$0xff]  }
  0x86   : > { %4991 = vmatprep.mubr.bf16.mxu1 %v9782_v47  ;;  %5088 = vmatprep.mubr.bf16.mxu0 %v9786_v48  ;;  %v9862_v46 = vld [vmem:[%s10613_s19 + $0x884] ss:$108 sps:$4 sm:$0xff]   ;;  %v9864_v47 = vld [vmem:[%s10613_s19 + $0x1cc] ss:$108 sps:$4 sm:$0xff]  }
  0x87   : > { %v9887_v48 = vld [vmem:[%s13046_s1 + $0x2a8] sm:$0xff]  }
  0x8d   : > { %4992 = vmatmul.mubr.bf16.gmra.mxu1 %v9787_v52  ;;  %5089 = vmatmul.mubr.bf16.vlgmr.msra.gmra.mxu0 %v9784_v51  ;;  %v9903_v51 = vld [vmem:[%s13046_s1 + $0x2a0] sm:$0xff]   ;;  %v9916_v52 = vld [vmem:[%s13046_s1 + $0x2d8] sm:$0xff]  }
  0x8e   : > { %8534 = vmatpush3.bf16.msra.mxu0 %v9791_v53  ;;  %4999 = vmatprep.mubr.bf16.mxu1 %v9792_v54  ;;  %v9867_v53 = vld [vmem:[%s10613_s19 + $0x1c8] ss:$108 sps:$4 sm:$0xff]  }
  0x8f   : > { %5096 = vmatprep.mubr.bf16.mxu0 %v9794_v55  ;;  %8535 = vmatprep.subr.bf16.mxu0 %v9805_v56  ;;  %v9872_v54 = vld [vmem:[%s10613_s19 + $0x95c] ss:$108 sps:$4 sm:$0xff]   ;;  %v9874_v55 = vld [vmem:[%s10613_s19 + $0x2a4] ss:$108 sps:$4 sm:$0xff]  }
  0x90   : > { %v9918_v56 = vld [vmem:[%s13046_s1 + $0x298] sm:$0xff]  }
  0x92   : > { %8536 = vmatpush3.bf16.msra.mxu0 %v9807_v58  ;;  %v9876_v58 = vld [vmem:[%s10613_s19 + $0x958] ss:$108 sps:$4 sm:$0xff]  }
  0x93   : > { %8537 = vmatprep.subr.bf16.mxu0 %v9821_v59  ;;  %v9877_v59 = vld [vmem:[%s10613_s19 + $0x2a0] ss:$108 sps:$4 sm:$0xff]  }
  0x95   : > { %5000 = vmatmul.mubr.bf16.gmra.mxu1 %v9796_v60  ;;  %5097 = vmatmul.mubr.bf16.gmra.mxu0 %v9797_v61  ;;  %v9934_v60 = vld [vmem:[%s13046_s1 + $0x290] sm:$0xff]   ;;  %v9948_v61 = vld [vmem:[%s13046_s1 + $0x2c8] sm:$0xff]  }
  0x96   : > { %5007 = vmatprep.mubr.bf16.mxu1 %v9798_v62  ;;  %5104 = vmatprep.mubr.bf16.mxu0 %v9800_v63  ;;  %v9878_v62 = vld [vmem:[%s10613_s19 + $0xa34] ss:$108 sps:$4 sm:$0xff]   ;;  %v9880_v63 = vld [vmem:[%s10613_s19 + $0x37c] ss:$108 sps:$4 sm:$0xff]  }
  0x97   : > { %8538 = vmatpush3.bf16.msra.mxu0 %v9823_v0  ;;  %v9950_v0 = vld [vmem:[%s13046_s1 + $0x288] sm:$0xff]  }
  0x98   : > { %8539 = vmatprep.subr.bf16.mxu0 %v9837_v1  ;;  %v9964_v1 = vld [vmem:[%s13046_s1 + $0x2c0] sm:$0xff]  }
  0x9b   : > { %8540 = vmatpush3.bf16.msra.mxu0 %v9839_v3  ;;  %v9981_v3 = vld [vmem:[%s13046_s1 + $0x3f8] sm:$0xff]  }
  0x9c   : > { %8541 = vmatprep.subr.bf16.mxu0 %v9852_v4  ;;  %v9882_v4 = vld [vmem:[%s10613_s19 + $0xa30] ss:$108 sps:$4 sm:$0xff]  }
  0x9d   : > { %5008 = vmatmul.mubr.bf16.gmra.mxu1 %v9802_v2  ;;  %5105 = vmatmul.mubr.bf16.gmra.mxu0 %v9803_v5  ;;  %v9966_v2 = vld [vmem:[%s13046_s1 + $0x280] sm:$0xff]  }
  0x9e   : > { %5015 = vmatprep.mubr.bf16.mxu1 %v9808_v6  ;;  %5112 = vmatprep.mubr.bf16.mxu0 %v9810_v7  ;;  %v9883_v5 = vld [vmem:[%s10613_s19 + $0x378] ss:$108 sps:$4 sm:$0xff]   ;;  %v9890_v7 = vld [vmem:[%s10613_s19 + $0x454] ss:$108 sps:$4 sm:$0xff]  }
  0x9f   : > { %8542 = vmatpush3.bf16.msra.mxu0 %v9854_v8  ;;  %v9888_v6 = vld [vmem:[%s10613_s19 + $0xb0c] ss:$108 sps:$4 sm:$0xff]  }
  0xa0   : > { %8543 = vmatprep.subr.bf16.mxu0 %v9868_v9 }
  0xa3   : > { %8544 = vmatpush3.bf16.msra.mxu0 %v9870_v12  ;;  %v9892_v12 = vld [vmem:[%s10613_s19 + $0xb08] ss:$108 sps:$4 sm:$0xff]  }
  0xa4   : > { %8545 = vmatprep.subr.bf16.mxu0 %v9884_v13  ;;  %v9893_v13 = vld [vmem:[%s10613_s19 + $0x450] ss:$108 sps:$4 sm:$0xff]  }
  0xa5   : > { %5016 = vmatmul.mubr.bf16.gmra.mxu1 %v9812_v10  ;;  %5113 = vmatmul.mubr.bf16.gmra.mxu0 %v9813_v11 }
  0xa6   : > { %5023 = vmatprep.mubr.bf16.mxu1 %v9814_v14  ;;  %5120 = vmatprep.mubr.bf16.mxu0 %v9816_v15 }
  0xa7   : > { %8546 = vmatpush3.bf16.msra.mxu0 %v9886_v16 }
  0xa8   : > { %8547 = vmatprep.subr.bf16.mxu0 %v9900_v19  ;;  %v9896_v19 = vld [vmem:[%s10613_s19 + $0x52c] ss:$108 sps:$4 sm:$0xff]  }
  0xab   : > { %8548 = vmatpush3.bf16.msra.mxu0 %v9902_v21 }
  0xac   : > { %8757 = vmatprep.subr.bf16.mxu0 %v9917_v27 }
  0xad   : > { %5024 = vmatmul.mubr.bf16.gmra.mxu1 %v9818_v17  ;;  %5121 = vmatmul.mubr.bf16.gmra.mxu0 %v9819_v18  ;;  %v9894_v18 = vld [vmem:[%s10613_s19 + $0xbe4] ss:$108 sps:$4 sm:$0xff]  }
  0xae   : > { %5031 = vmatprep.mubr.bf16.mxu1 %v9824_v20  ;;  %5128 = vmatprep.mubr.bf16.mxu0 %v9826_v22 }
  0xb5   : > { %5032 = vmatmul.mubr.bf16.gmra.mxu1 %v9828_v23  ;;  %5129 = vmatmul.mubr.bf16.gmra.mxu0 %v9829_v24 }
  0xb6   : > { %5039 = vmatprep.mubr.bf16.mxu1 %v9830_v25  ;;  %5136 = vmatprep.mubr.bf16.mxu0 %v9832_v26 }
  0xbd   : > { %5040 = vmatmul.mubr.bf16.gmra.mxu1 %v9834_v28  ;;  %5137 = vmatmul.mubr.bf16.gmra.mxu0 %v9835_v29  ;;  %v9898_v28 = vld [vmem:[%s10613_s19 + $0xbe0] ss:$108 sps:$4 sm:$0xff]   ;;  %v9899_v29 = vld [vmem:[%s10613_s19 + $0x528] ss:$108 sps:$4 sm:$0xff]  }
  0xbe   : > { %5047 = vmatprep.mubr.bf16.mxu1 %v9840_v30  ;;  %5144 = vmatprep.mubr.bf16.mxu0 %v9842_v31 }
  0xc5   : > { %5048 = vmatmul.mubr.bf16.gmra.mxu1 %v9844_v32  ;;  %5145 = vmatmul.mubr.bf16.gmra.mxu0 %v9845_v33 }
  0xc6   : > { %5152 = vmatprep.mubr.bf16.mxu0 %v9846_v34  ;;  %5249 = vmatprep.mubr.bf16.mxu1 %v9850_v35  ;;  %v9904_v34 = vld [vmem:[%s10613_s19 + $0xcbc] ss:$108 sps:$4 sm:$0xff]   ;;  %v9906_v35 = vld [vmem:[%s10613_s19 + $0x604] ss:$108 sps:$4 sm:$0xff]  }
  0xcd   : > { %5153 = vmatmul.mubr.bf16.gmra.mxu0 %v9851_v37  ;;  %5250 = vmatmul.mubr.bf16.vlgmr.msra.gmra.mxu1 %v9848_v36 }
  0xce   : > { %8646 = vmatpush3.bf16.msra.mxu1 %v9855_v38  ;;  %5160 = vmatprep.mubr.bf16.mxu0 %v9856_v39 }
  0xcf   : > { %5257 = vmatprep.mubr.bf16.mxu1 %v9858_v40  ;;  %8647 = vmatprep.subr.bf16.mxu1 %v9869_v41 }
  0xd2   : > { %8648 = vmatpush3.bf16.msra.mxu1 %v9871_v42 }
  0xd3   : > { %8649 = vmatprep.subr.bf16.mxu1 %v9885_v43 }
  0xd5   : > { %5161 = vmatmul.mubr.bf16.gmra.mxu0 %v9860_v44  ;;  %5258 = vmatmul.mubr.bf16.gmra.mxu1 %v9861_v45  ;;  %v9908_v44 = vld [vmem:[%s10613_s19 + $0xcb8] ss:$108 sps:$4 sm:$0xff]   ;;  %v9909_v45 = vld [vmem:[%s10613_s19 + $0x600] ss:$108 sps:$4 sm:$0xff]  }
  0xd6   : > { %5168 = vmatprep.mubr.bf16.mxu0 %v9862_v46  ;;  %5265 = vmatprep.mubr.bf16.mxu1 %v9864_v47 }
  0xd7   : > { %8650 = vmatpush3.bf16.msra.mxu1 %v9887_v48 }
  0xd8   : > { %8651 = vmatprep.subr.bf16.mxu1 %v9901_v49 }
  0xdb   : > { %8652 = vmatpush3.bf16.msra.mxu1 %v9903_v51  ;;  %v9915_v51 = vld [vmem:[%s10613_s19 + $0x24] ss:$108 sps:$4 sm:$0xff]  }
  0xdc   : > { %8653 = vmatprep.subr.bf16.mxu1 %v9916_v52 }
  0xdd   : > { %5169 = vmatmul.mubr.bf16.gmra.mxu0 %v9866_v50  ;;  %5266 = vmatmul.mubr.bf16.gmra.mxu1 %v9867_v53  ;;  %v9912_v50 = vld [vmem:[%s10613_s19 + $0x6dc] ss:$108 sps:$4 sm:$0xff]  }
  0xde   : > { %5176 = vmatprep.mubr.bf16.mxu0 %v9872_v54  ;;  %5273 = vmatprep.mubr.bf16.mxu1 %v9874_v55 }
  0xdf   : > { %8654 = vmatpush3.bf16.msra.mxu1 %v9918_v56 }
  0xe0   : > { %8655 = vmatprep.subr.bf16.mxu1 %v9932_v57 }
  0xe3   : > { %8656 = vmatpush3.bf16.msra.mxu1 %v9934_v60  ;;  %v9910_v60 = vld [vmem:[%s10613_s19 + $0x6d8] ss:$108 sps:$4 sm:$0xff]  }
  0xe4   : > { %8657 = vmatprep.subr.bf16.mxu1 %v9948_v61  ;;  %v9913_v61 = vld [vmem:[%s10613_s19 + $0x20] ss:$108 sps:$4 sm:$0xff]  }
  0xe5   : > { %5177 = vmatmul.mubr.bf16.gmra.mxu0 %v9876_v58  ;;  %5274 = vmatmul.mubr.bf16.gmra.mxu1 %v9877_v59 }
  0xe6   : > { %5184 = vmatprep.mubr.bf16.mxu0 %v9878_v62  ;;  %5281 = vmatprep.mubr.bf16.mxu1 %v9880_v63 }
  0xe7   : > { %8658 = vmatpush3.bf16.msra.mxu1 %v9950_v0 }
  0xe8   : > { %8659 = vmatprep.subr.bf16.mxu1 %v9964_v1 }
  0xeb   : > { %8660 = vmatpush3.bf16.msra.mxu1 %v9966_v2  ;;  %v9919_v2 = vld [vmem:[%s13046_s1 + $0x338] sm:$0xff]  }
  0xec   : > { %8869 = vmatprep.subr.bf16.mxu1 %v9981_v3  ;;  %v9922_v3 = vld [vmem:[%s10613_s19 + $0x7b4] ss:$108 sps:$4 sm:$0xff]  }
  0xed   : > { %v8101_v8 = vpop.f32.mrf.mxu0  ;;  %v8173_v9 = vpop.f32.mrf.mxu1  ;;  %5185 = vmatmul.mubr.bf16.gmra.mxu0 %v9882_v4  ;;  %5282 = vmatmul.mubr.bf16.gmra.mxu1 %v9883_v5 }
  0xee   : > { %5192 = vmatprep.mubr.bf16.mxu0 %v9888_v6  ;;  %5289 = vmatprep.mubr.bf16.mxu1 %v9890_v7  ;;  %v9925_v6 = vld [vmem:[%s10613_s19 + $0xfc] ss:$108 sps:$4 sm:$0xff]   ;;  %v9933_v7 = vld [vmem:[%s13046_s1 + $0x370] sm:$0xff]  }
  0xef   : > { %v8102_v10 = vpop.f32.mrf.mxu0  ;;  %v8174_v11 = vpop.f32.mrf.mxu1 }
  0xf0   : > { %v10986_v14 = vadd.f32 %v8102_v10, %v8101_v8  ;;  %v10988_v15 = vadd.f32 %v8174_v11, %v8173_v9 }
  0xf1   : > { %v8104_v16 = vpop.f32.mrf.mxu0  ;;  %v8176_v17 = vpop.f32.mrf.mxu1 }
  0xf3   : > { %v8105_v20 = vpop.f32.mrf.mxu0  ;;  %v8177_v21 = vpop.f32.mrf.mxu1 }
  0xf4   : > { %v10992_v22 = vadd.f32 %v8105_v20, %v8104_v16  ;;  %v10994_v23 = vadd.f32 %v8177_v21, %v8176_v17  ;;  %v9920_v17 = vld [vmem:[%s10613_s19 + $0x7b0] ss:$108 sps:$4 sm:$0xff]  }
  0xf5   : > { %v8107_v24 = vpop.f32.mrf.mxu0  ;;  %v8179_v25 = vpop.f32.mrf.mxu1  ;;  %5193 = vmatmul.mubr.bf16.gmra.mxu0 %v9892_v12  ;;  %5290 = vmatmul.mubr.bf16.gmra.mxu1 %v9893_v13  ;;  %v9935_v12 = vld [vmem:[%s13046_s1 + $0x330] sm:$0xff]  }
  0xf6   : > { %5200 = vmatprep.mubr.bf16.mxu0 %v9894_v18  ;;  %5297 = vmatprep.mubr.bf16.mxu1 %v9896_v19  ;;  %v9923_v18 = vld [vmem:[%s10613_s19 + $0xf8] ss:$108 sps:$4 sm:$0xff]   ;;  %v9949_v19 = vld [vmem:[%s13046_s1 + $0x368] sm:$0xff]  }
  0xf7   : > { %v8108_v26 = vpop.f32.mrf.mxu0  ;;  %v8180_v27 = vpop.f32.mrf.mxu1 }
  0xf8   : > { %v10998_v30 = vadd.f32 %v8108_v26, %v8107_v24  ;;  %v11000_v31 = vadd.f32 %v8180_v27, %v8179_v25  ;;  %v9928_v27 = vld [vmem:[%s10613_s19 + $0x88c] ss:$108 sps:$4 sm:$0xff]  }
  0xf9   : > { %v8110_v32 = vpop.f32.mrf.mxu0  ;;  %v8182_v33 = vpop.f32.mrf.mxu1 }
  0xfb   : > { %v8111_v36 = vpop.f32.mrf.mxu0  ;;  %v8183_v37 = vpop.f32.mrf.mxu1 }
  0xfc   : > { %v11004_v38 = vadd.f32 %v8111_v36, %v8110_v32  ;;  %v11006_v39 = vadd.f32 %v8183_v37, %v8182_v33  ;;  %v9951_v33 = vld [vmem:[%s13046_s1 + $0x328] sm:$0xff]  }
  0xfd   : > { %v8113_v40 = vpop.f32.mrf.mxu0  ;;  %v8185_v41 = vpop.f32.mrf.mxu1  ;;  %5201 = vmatmul.mubr.bf16.gmra.mxu0 %v9898_v28  ;;  %5298 = vmatmul.mubr.bf16.gmra.mxu1 %v9899_v29  ;;  %v9931_v28 = vld [vmem:[%s10613_s19 + $0x1d4] ss:$108 sps:$4 sm:$0xff]  }
  0xfe   : > { %5208 = vmatprep.mubr.bf16.mxu0 %v9904_v34  ;;  %5305 = vmatprep.mubr.bf16.mxu1 %v9906_v35  ;;  %v9965_v34 = vld [vmem:[%s13046_s1 + $0x360] sm:$0xff]  }
  0xff   : > { %v8114_v42 = vpop.f32.mrf.mxu0  ;;  %v8186_v43 = vpop.f32.mrf.mxu1 }
 0x100   : > { %v11010_v46 = vadd.f32 %v8114_v42, %v8113_v40  ;;  %v11012_v47 = vadd.f32 %v8186_v43, %v8185_v41  ;;  %v9967_v40 = vld [vmem:[%s13046_s1 + $0x320] sm:$0xff]   ;;  %v9980_v42 = vld [vmem:[%s13046_s1 + $0x358] sm:$0xff]  }
 0x101   : > { %v8116_v48 = vpop.f32.mrf.mxu0  ;;  %v8188_v49 = vpop.f32.mrf.mxu1 }
 0x103   : > { %v8117_v52 = vpop.f32.mrf.mxu0  ;;  %v8189_v53 = vpop.f32.mrf.mxu1 }
 0x104   : > { %v11016_v54 = vadd.f32 %v8117_v52, %v8116_v48  ;;  %v11018_v55 = vadd.f32 %v8189_v53, %v8188_v49  ;;  %v9929_v48 = vld [vmem:[%s10613_s19 + $0x1d0] ss:$108 sps:$4 sm:$0xff]  }
 0x105   : > { %v8119_v56 = vpop.f32.mrf.mxu0  ;;  %v8191_v57 = vpop.f32.mrf.mxu1  ;;  %5209 = vmatmul.mubr.bf16.gmra.mxu0 %v9908_v44  ;;  %5306 = vmatmul.mubr.bf16.gmra.mxu1 %v9909_v45  ;;  %v9926_v45 = vld [vmem:[%s10613_s19 + $0x888] ss:$108 sps:$4 sm:$0xff]   ;;  %v9938_v53 = vld [vmem:[%s10613_s19 + $0x964] ss:$108 sps:$4 sm:$0xff]  }
 0x106   : > { %5313 = vmatprep.mubr.bf16.mxu1 %v9912_v50  ;;  %5410 = vmatprep.mubr.bf16.mxu0 %v9915_v51 }
 0x107   : > { %v8120_v58 = vpop.f32.mrf.mxu0  ;;  %v8192_v59 = vpop.f32.mrf.mxu1 }
 0x108   : > { %v11022_v62 = vadd.f32 %v8120_v58, %v8119_v56  ;;  %v11024_v63 = vadd.f32 %v8192_v59, %v8191_v57  ;;  %v9941_v56 = vld [vmem:[%s10613_s19 + $0x2ac] ss:$108 sps:$4 sm:$0xff]  }
 0x109   : > { %v8122_v0 = vpop.f32.mrf.mxu0  ;;  %v8194_v1 = vpop.f32.mrf.mxu1  ;;  %v9982_v59 = vld [vmem:[%s13046_s1 + $0x318] sm:$0xff]  }
 0x10b   : > { %v8123_v4 = vpop.f32.mrf.mxu0  ;;  %v8195_v5 = vpop.f32.mrf.mxu1 }
 0x10c   : > { %v11034_v8 = vadd.f32 %v8123_v4, %v8122_v0  ;;  %v11036_v9 = vadd.f32 %v8195_v5, %v8194_v1 }
 0x10d   : > { %v8125_v10 = vpop.f32.mrf.mxu0  ;;  %v8213_v11 = vpop.f32.mrf.mxu1  ;;  %5314 = vmatmul.mubr.bf16.gmra.mxu1 %v9910_v60  ;;  %5411 = vmatmul.mubr.bf16.vlgmr.msra.gmra.mxu0 %v9913_v61  ;;  %v9996_v60 = vld [vmem:[%s13046_s1 + $0x350] sm:$0xff]  }
 0x10e   : > { %8758 = vmatpush3.bf16.msra.mxu0 %v9919_v2  ;;  %5321 = vmatprep.mubr.bf16.mxu1 %v9922_v3  ;;  %v9998_v3 = vld [vmem:[%s13046_s1 + $0x310] sm:$0xff]  }
 0x10f   : > { %v8126_v13 = vpop.f32.mrf.mxu0  ;;  %v8214_v16 = vpop.f32.mrf.mxu1  ;;  %5418 = vmatprep.mubr.bf16.mxu0 %v9925_v6  ;;  %8759 = vmatprep.subr.bf16.mxu0 %v9933_v7  ;;  %v9936_v6 = vld [vmem:[%s10613_s19 + $0x960] ss:$108 sps:$4 sm:$0xff]   ;;  %v9939_v7 = vld [vmem:[%s10613_s19 + $0x2a8] ss:$108 sps:$4 sm:$0xff]  }
 0x110   : > { %v11046_v20 = vadd.f32 %v8126_v13, %v8125_v10  ;;  %v8215_v21 = vadd.f32 %v8214_v16, %v8213_v11  ;;  %v10012_v10 = vld [vmem:[%s13046_s1 + $0x348] sm:$0xff]  }
 0x111   : > { %v8128_v24 = vpop.f32.mrf.mxu0  ;;  %v8216_v25 = vpop.f32.mrf.mxu1 }
 0x112   : > { %v11049_v26 = vadd.f32 %v8215_v21, %v10986_v14  ;;  %8760 = vmatpush3.bf16.msra.mxu0 %v9935_v12 }
 0x113   : > { %v8129_v29 = vpop.f32.mrf.mxu0  ;;  %v8217_v32 = vpop.f32.mrf.mxu1  ;;  %8761 = vmatprep.subr.bf16.mxu0 %v9949_v19 }
 0x114   : > { %v11059_v35 = vadd.f32 %v8129_v29, %v8128_v24  ;;  %v8218_v14 = vadd.f32 %v8217_v32, %v8216_v25  ;;  %v10014_v24 = vld [vmem:[%s13046_s1 + $0x308] sm:$0xff]   ;;  %v10028_v25 = vld [vmem:[%s13046_s1 + $0x340] sm:$0xff]  }
 0x115   : > { %v8131_v36 = vpop.f32.mrf.mxu0  ;;  %v8219_v37 = vpop.f32.mrf.mxu1  ;;  %5322 = vmatmul.mubr.bf16.gmra.mxu1 %v9920_v17  ;;  %5419 = vmatmul.mubr.bf16.gmra.mxu0 %v9923_v18  ;;  %v9944_v17 = vld [vmem:[%s10613_s19 + $0xa3c] ss:$108 sps:$4 sm:$0xff]   ;;  %v9947_v18 = vld [vmem:[%s10613_s19 + $0x384] ss:$108 sps:$4 sm:$0xff]  }
 0x116   : > { %v11065_v41 = vadd.f32 %v8218_v14, %v10992_v22  ;;  %5329 = vmatprep.mubr.bf16.mxu1 %v9928_v27  ;;  %5426 = vmatprep.mubr.bf16.mxu0 %v9931_v28  ;;  %v10030_v32 = vld [vmem:[%s13046_s1 + $0x300] sm:$0xff]  }
 0x117   : > { %v8132_v43 = vpop.f32.mrf.mxu0  ;;  %v8220_v44 = vpop.f32.mrf.mxu1  ;;  %8762 = vmatpush3.bf16.msra.mxu0 %v9951_v33 }
 0x118   : > { %v11072_v49 = vadd.f32 %v8132_v43, %v8131_v36  ;;  %v8221_v50 = vadd.f32 %v8220_v44, %v8219_v37  ;;  %8763 = vmatprep.subr.bf16.mxu0 %v9965_v34  ;;  %v10045_v34 = vld [vmem:[%s13046_s1 + $0x478] sm:$0xff]  }
 0x119   : > { %v8134_v51 = vpop.f32.mrf.mxu0  ;;  %v8222_v52 = vpop.f32.mrf.mxu1  ;;  %v9942_v37 = vld [vmem:[%s10613_s19 + $0xa38] ss:$108 sps:$4 sm:$0xff]  }
 0x11a   : > { %v11075_v22 = vadd.f32 %v8221_v50, %v10998_v30  ;;  %v9957_v50 = vld [vmem:[%s10613_s19 + $0x45c] ss:$108 sps:$4 sm:$0xff]  }
 0x11b   : > { %v8135_v57 = vpop.f32.mrf.mxu0  ;;  %v8223_v58 = vpop.f32.mrf.mxu1  ;;  %8764 = vmatpush3.bf16.msra.mxu0 %v9967_v40  ;;  %v9945_v40 = vld [vmem:[%s10613_s19 + $0x380] ss:$108 sps:$4 sm:$0xff]  }
 0x11c   : > { %v11085_v61 = vadd.f32 %v8135_v57, %v8134_v51  ;;  %v8224_v0 = vadd.f32 %v8223_v58, %v8222_v52  ;;  %8765 = vmatprep.subr.bf16.mxu0 %v9980_v42 }
 0x11d   : > { %v8137_v30 = vpop.f32.mrf.mxu0  ;;  %v8225_v1 = vpop.f32.mrf.mxu1  ;;  %5330 = vmatmul.mubr.bf16.gmra.mxu1 %v9926_v45  ;;  %5427 = vmatmul.mubr.bf16.gmra.mxu0 %v9929_v48  ;;  %v9954_v48 = vld [vmem:[%s10613_s19 + $0xb14] ss:$108 sps:$4 sm:$0xff]  }
 0x11e   : > { %v11088_v2 = vadd.f32 %v8224_v0, %v11004_v38  ;;  %5337 = vmatprep.mubr.bf16.mxu1 %v9938_v53  ;;  %5434 = vmatprep.mubr.bf16.mxu0 %v9941_v56  ;;  %v9952_v0 = vld [vmem:[%s10613_s19 + $0xb10] ss:$108 sps:$4 sm:$0xff]  }
 0x11f   : > { %v8138_v4 = vpop.f32.mrf.mxu0  ;;  %v8226_v5 = vpop.f32.mrf.mxu1  ;;  %8766 = vmatpush3.bf16.msra.mxu0 %v9982_v59 }
 0x120   : > { %v11098_v11 = vadd.f32 %v8138_v4, %v8137_v30  ;;  %v8227_v38 = vadd.f32 %v8226_v5, %v8225_v1  ;;  %8767 = vmatprep.subr.bf16.mxu0 %v9996_v60  ;;  %v9955_v30 = vld [vmem:[%s10613_s19 + $0x458] ss:$108 sps:$4 sm:$0xff]  }
 0x121   : > { %v8140_v12 = vpop.f32.mrf.mxu0  ;;  %v8228_v13 = vpop.f32.mrf.mxu1 }
 0x122   : > { %v11101_v16 = vadd.f32 %v8227_v38, %v11010_v46 }
 0x123   : > { %v8141_v19 = vpop.f32.mrf.mxu0  ;;  %v8229_v21 = vpop.f32.mrf.mxu1  ;;  %8768 = vmatpush3.bf16.msra.mxu0 %v9998_v3 }
 0x124   : > { %v11111_v27 = vadd.f32 %v8141_v19, %v8140_v12  ;;  %v8230_v28 = vadd.f32 %v8229_v21, %v8228_v13  ;;  %8769 = vmatprep.subr.bf16.mxu0 %v10012_v10  ;;  %v9963_v10 = vld [vmem:[%s10613_s19 + $0x534] ss:$108 sps:$4 sm:$0xff]  }
 0x125   : > { %v8143_v46 = vpop.f32.mrf.mxu0  ;;  %v8231_v29 = vpop.f32.mrf.mxu1  ;;  %5338 = vmatmul.mubr.bf16.gmra.mxu1 %v9936_v6  ;;  %5435 = vmatmul.mubr.bf16.gmra.mxu0 %v9939_v7  ;;  %v9960_v7 = vld [vmem:[%s10613_s19 + $0xbec] ss:$108 sps:$4 sm:$0xff]  }
 0x126   : > { %v11117_v33 = vadd.f32 %v8230_v28, %v11016_v54  ;;  %5345 = vmatprep.mubr.bf16.mxu1 %v9944_v17  ;;  %5442 = vmatprep.mubr.bf16.mxu0 %v9947_v18 }
 0x127   : > { %v8144_v14 = vpop.f32.mrf.mxu0  ;;  %v8232_v36 = vpop.f32.mrf.mxu1  ;;  %8770 = vmatpush3.bf16.msra.mxu0 %v10014_v24  ;;  %v9958_v24 = vld [vmem:[%s10613_s19 + $0xbe8] ss:$108 sps:$4 sm:$0xff]  }
 0x128   : > { %v11124_v42 = vadd.f32 %v8144_v14, %v8143_v46  ;;  %v8233_v43 = vadd.f32 %v8232_v36, %v8231_v29  ;;  %8771 = vmatprep.subr.bf16.mxu0 %v10028_v25  ;;  %v9961_v25 = vld [vmem:[%s10613_s19 + $0x530] ss:$108 sps:$4 sm:$0xff]   ;;  %v9973_v36 = vld [vmem:[%s10613_s19 + $0x60c] ss:$108 sps:$4 sm:$0xff]  }
 0x129   : > { %v8146_v44 = vpop.f32.mrf.mxu0  ;;  %v8234_v45 = vpop.f32.mrf.mxu1  ;;  %v9970_v14 = vld [vmem:[%s10613_s19 + $0xcc4] ss:$108 sps:$4 sm:$0xff]  }
 0x12a   : > { %v11127_v54 = vadd.f32 %v8233_v43, %v11022_v62 }
 0x12b   : > { %v8147_v51 = vpop.f32.mrf.mxu0  ;;  %v8235_v52 = vpop.f32.mrf.mxu1  ;;  %8772 = vmatpush3.bf16.msra.mxu0 %v10030_v32 }
 0x12c   : > { %v11131_v53 = vadd.f32 %v8147_v51, %v8146_v44  ;;  %v8236_v56 = vadd.f32 %v8235_v52, %v8234_v45  ;;  %8981 = vmatprep.subr.bf16.mxu0 %v10045_v34  ;;  %v9968_v51 = vld [vmem:[%s10613_s19 + $0xcc0] ss:$108 sps:$4 sm:$0xff]   ;;  %v9971_v52 = vld [vmem:[%s10613_s19 + $0x608] ss:$108 sps:$4 sm:$0xff]  }
 0x12d   : > { %v8149_v57 = vpop.f32.mrf.mxu0  ;;  %v8237_v58 = vpop.f32.mrf.mxu1  ;;  %5346 = vmatmul.mubr.bf16.gmra.mxu1 %v9942_v37  ;;  %5443 = vmatmul.mubr.bf16.gmra.mxu0 %v9945_v40 }
 0x12e   : > { %v11134_v62 = vadd.f32 %v8236_v56, %v11034_v8  ;;  %5353 = vmatprep.mubr.bf16.mxu1 %v9954_v48  ;;  %5450 = vmatprep.mubr.bf16.mxu0 %v9957_v50 }
 0x12f   : > { %v8150_v59 = vpop.f32.mrf.mxu0  ;;  %v8238_v60 = vpop.f32.mrf.mxu1 }
 0x130   : > { %v11138_v1 = vadd.f32 %v8150_v59, %v8149_v57  ;;  %v8239_v3 = vadd.f32 %v8238_v60, %v8237_v58 }
 0x131   : > { %v8152_v4 = vpop.f32.mrf.mxu0  ;;  %v8240_v5 = vpop.f32.mrf.mxu1 }
 0x132   : > { %v11141_v6 = vadd.f32 %v8239_v3, %v11046_v20 }
 0x133   : > { %v8153_v8 = vpop.f32.mrf.mxu0  ;;  %v8241_v38 = vpop.f32.mrf.mxu1 }
 0x134   : > { %v11145_v12 = vadd.f32 %v8153_v8, %v8152_v4  ;;  %v8242_v13 = vadd.f32 %v8241_v38, %v8240_v5 }
 0x135   : > { %v8155_v17 = vpop.f32.mrf.mxu0  ;;  %v8243_v18 = vpop.f32.mrf.mxu1  ;;  %5354 = vmatmul.mubr.bf16.gmra.mxu1 %v9952_v0  ;;  %5451 = vmatmul.mubr.bf16.gmra.mxu0 %v9955_v30  ;;  %v9976_v0 = vld [vmem:[%s10613_s19 + $0x6e4] ss:$108 sps:$4 sm:$0xff]   ;;  %v9979_v30 = vld [vmem:[%s10613_s19 + $0x2c] ss:$108 sps:$4 sm:$0xff]  }
 0x136   : > { %v11148_v19 = vadd.f32 %v8242_v13, %v11059_v35  ;;  %5361 = vmatprep.mubr.bf16.mxu1 %v9960_v7  ;;  %5458 = vmatprep.mubr.bf16.mxu0 %v9963_v10  ;;  %v9974_v13 = vld [vmem:[%s10613_s19 + $0x6e0] ss:$108 sps:$4 sm:$0xff]  }
 0x137   : > { %v8156_v20 = vpop.f32.mrf.mxu0  ;;  %v8244_v21 = vpop.f32.mrf.mxu1 }
 0x138   : > { %v11152_v28 = vadd.f32 %v8156_v20, %v8155_v17  ;;  %v8245_v46 = vadd.f32 %v8244_v21, %v8243_v18  ;;  %v9977_v17 = vld [vmem:[%s10613_s19 + $0x28] ss:$108 sps:$4 sm:$0xff]  }
 0x139   : > { %v8158_v29 = vpop.f32.mrf.mxu0  ;;  %v8246_v32 = vpop.f32.mrf.mxu1 }
 0x13a   : > { %v11155_v34 = vadd.f32 %v8245_v46, %v11072_v49  ;;  %v9986_v46 = vld [vmem:[%s10613_s19 + $0x7bc] ss:$108 sps:$4 sm:$0xff]  }
 0x13b   : > { %v8159_v35 = vpop.f32.mrf.mxu0  ;;  %v8247_v37 = vpop.f32.mrf.mxu1 }
 0x13c   : > { %v11159_v40 = vadd.f32 %v8159_v35, %v8158_v29  ;;  %v8248_v43 = vadd.f32 %v8247_v37, %v8246_v32 }
 0x13d   : > { %v8161_v44 = vpop.f32.mrf.mxu0  ;;  %v8249_v45 = vpop.f32.mrf.mxu1  ;;  %5362 = vmatmul.mubr.bf16.gmra.mxu1 %v9958_v24  ;;  %5459 = vmatmul.mubr.bf16.gmra.mxu0 %v9961_v25 }
 0x13e   : > { %v11162_v48 = vadd.f32 %v8248_v43, %v11085_v61  ;;  %5369 = vmatprep.mubr.bf16.mxu1 %v9970_v14  ;;  %5466 = vmatprep.mubr.bf16.mxu0 %v9973_v36  ;;  %v9989_v14 = vld [vmem:[%s10613_s19 + $0x104] ss:$108 sps:$4 sm:$0xff]  }
 0x13f   : > { %v8162_v49 = vpop.f32.mrf.mxu0  ;;  %v8250_v50 = vpop.f32.mrf.mxu1  ;;  %v9997_v36 = vld [vmem:[%s13046_s1 + $0x3f0] sm:$0xff]  }
 0x140   : > { %v11166_v56 = vadd.f32 %v8162_v49, %v8161_v44  ;;  %v8251_v57 = vadd.f32 %v8250_v50, %v8249_v45  ;;  %v9999_v45 = vld [vmem:[%s13046_s1 + $0x3b0] sm:$0xff]  }
 0x141   : > { %v8164_v58 = vpop.f32.mrf.mxu0  ;;  %v8252_v59 = vpop.f32.mrf.mxu1 }
 0x142   : > { %v11169_v60 = vadd.f32 %v8251_v57, %v11098_v11  ;;  %v10013_v57 = vld [vmem:[%s13046_s1 + $0x3e8] sm:$0xff]  }
 0x143   : > { %v8165_v61 = vpop.f32.mrf.mxu0  ;;  %v8253_v3 = vpop.f32.mrf.mxu1 }
 0x144   : > { %v11173_v4 = vadd.f32 %v8165_v61, %v8164_v58  ;;  %v8254_v5 = vadd.f32 %v8253_v3, %v8252_v59  ;;  %v9992_v3 = vld [vmem:[%s10613_s19 + $0x894] ss:$108 sps:$4 sm:$0xff]  }
 0x145   : > { %v8167_v7 = vpop.f32.mrf.mxu0  ;;  %v8255_v10 = vpop.f32.mrf.mxu1  ;;  %5370 = vmatmul.mubr.bf16.gmra.mxu1 %v9968_v51  ;;  %5467 = vmatmul.mubr.bf16.gmra.mxu0 %v9971_v52  ;;  %v9984_v51 = vld [vmem:[%s10613_s19 + $0x7b8] ss:$108 sps:$4 sm:$0xff]   ;;  %v9987_v52 = vld [vmem:[%s10613_s19 + $0x100] ss:$108 sps:$4 sm:$0xff]  }
 0x146   : > { %v11176_v8 = vadd.f32 %v8254_v5, %v11111_v27  ;;  %5474 = vmatprep.mubr.bf16.mxu0 %v9976_v0  ;;  %5571 = vmatprep.mubr.bf16.mxu1 %v9979_v30  ;;  %v9983_v27 = vld [vmem:[%s13046_s1 + $0x3b8] sm:$0xff]  }
 0x147   : > { %v8168_v11 = vpop.f32.mrf.mxu0  ;;  %v8256_v38 = vpop.f32.mrf.mxu1  ;;  %v9995_v5 = vld [vmem:[%s10613_s19 + $0x1dc] ss:$108 sps:$4 sm:$0xff]  }
 0x148   : > { %v11180_v18 = vadd.f32 %v8168_v11, %v8167_v7  ;;  %v8257_v20 = vadd.f32 %v8256_v38, %v8255_v10  ;;  %v10015_v11 = vld [vmem:[%s13046_s1 + $0x3a8] sm:$0xff]   ;;  %v10029_v38 = vld [vmem:[%s13046_s1 + $0x3e0] sm:$0xff]  }
 0x149   : > { %v8170_v21 = vpop.f32.mrf.mxu0  ;;  %v8258_v24 = vpop.f32.mrf.mxu1 }
 0x14a   : > { %v11183_v25 = vadd.f32 %v8257_v20, %v11124_v42  ;;  %v10031_v20 = vld [vmem:[%s13046_s1 + $0x3a0] sm:$0xff]  }
 0x14b   : > { %v8171_v29 = vpop.f32.mrf.mxu0  ;;  %v8259_v32 = vpop.f32.mrf.mxu1 }
 0x14c   : > { %v11193_v35 = vadd.f32 %v8171_v29, %v8170_v21  ;;  %v8260_v37 = vadd.f32 %v8259_v32, %v8258_v24  ;;  %v9990_v32 = vld [vmem:[%s10613_s19 + $0x890] ss:$108 sps:$4 sm:$0xff]  }
 0x14d   : > { %v8261_v43 = vpop.f32.mrf.mxu1  ;;  %v8325_v42 = vpop.f32.mrf.mxu0  ;;  %5475 = vmatmul.mubr.bf16.gmra.mxu0 %v9974_v13  ;;  %5572 = vmatmul.mubr.bf16.vlgmr.msra.gmra.mxu1 %v9977_v17 }
 0x14e   : > { %v11196_v44 = vadd.f32 %v8260_v37, %v11131_v53  ;;  %8870 = vmatpush3.bf16.msra.mxu1 %v9983_v27  ;;  %5482 = vmatprep.mubr.bf16.mxu0 %v9986_v46  ;;  %v10044_v27 = vld [vmem:[%s13046_s1 + $0x3d8] sm:$0xff]  }
 0x14f   : > { %v8262_v49 = vpop.f32.mrf.mxu1  ;;  %v8326_v50 = vpop.f32.mrf.mxu0  ;;  %5579 = vmatprep.mubr.bf16.mxu1 %v9989_v14  ;;  %8871 = vmatprep.subr.bf16.mxu1 %v9997_v36  ;;  %v9993_v14 = vld [vmem:[%s10613_s19 + $0x1d8] ss:$108 sps:$4 sm:$0xff]  }
 0x150   : > { %v8263_v53 = vadd.f32 %v8262_v49, %v8261_v43  ;;  %v8327_v58 = vadd.f32 %v8326_v50, %v8325_v42  ;;  %v10005_v49 = vld [vmem:[%s10613_s19 + $0x2b4] ss:$108 sps:$4 sm:$0xff]  }
 0x151   : > { %v8264_v59 = vpop.f32.mrf.mxu1  ;;  %v8328_v0 = vpop.f32.mrf.mxu0 }
 0x152   : > { %v11207_v30 = vadd.f32 %v8263_v53, %v11138_v1  ;;  %v11210_v61 = vadd.f32 %v8327_v58, %v11049_v26  ;;  %8872 = vmatpush3.bf16.msra.mxu1 %v9999_v45  ;;  %v10002_v45 = vld [vmem:[%s10613_s19 + $0x96c] ss:$108 sps:$4 sm:$0xff]  }
 0x153   : > { %v8265_v7 = vpop.f32.mrf.mxu1  ;;  %v8329_v10 = vpop.f32.mrf.mxu0  ;;  %8873 = vmatprep.subr.bf16.mxu1 %v10013_v57  ;;  %v10060_v57 = vld [vmem:[%s13046_s1 + $0x3d0] sm:$0xff]  }
 0x154   : > { %v8266_v1 = vadd.f32 %v8265_v7, %v8264_v59  ;;  %v8330_v13 = vadd.f32 %v8329_v10, %v8328_v0  ;;  %v10000_v10 = vld [vmem:[%s10613_s19 + $0x968] ss:$108 sps:$4 sm:$0xff]  }
 0x155   : > { %v8267_v26 = vpop.f32.mrf.mxu1  ;;  %v8331_v17 = vpop.f32.mrf.mxu0  ;;  %5483 = vmatmul.mubr.bf16.gmra.mxu0 %v9984_v51  ;;  %5580 = vmatmul.mubr.bf16.gmra.mxu1 %v9987_v52  ;;  %v10046_v52 = vld [vmem:[%s13046_s1 + $0x398] sm:$0xff]  }
 0x156   : > { %v11224_v21 = vadd.f32 %v8266_v1, %v11145_v12  ;;  %v11227_v24 = vadd.f32 %v8330_v13, %v11065_v41  ;;  %5490 = vmatprep.mubr.bf16.mxu0 %v9992_v3  ;;  %5587 = vmatprep.mubr.bf16.mxu1 %v9995_v5  ;;  %v10062_v3 = vld [vmem:[%s13046_s1 + $0x390] sm:$0xff]  }
 0x157   : > { %v8268_v46 = vpop.f32.mrf.mxu1  ;;  %v8332_v29 = vpop.f32.mrf.mxu0  ;;  %8874 = vmatpush3.bf16.msra.mxu1 %v10015_v11  ;;  %v10003_v11 = vld [vmem:[%s10613_s19 + $0x2b0] ss:$108 sps:$4 sm:$0xff]  }
 0x158   : > { %v8269_v36 = vadd.f32 %v8268_v46, %v8267_v26  ;;  %v8333_v37 = vadd.f32 %v8332_v29, %v8331_v17  ;;  %8875 = vmatprep.subr.bf16.mxu1 %v10029_v38 }
 0x159   : > { %v8270_v12 = vpop.f32.mrf.mxu1  ;;  %v8334_v43 = vpop.f32.mrf.mxu0 }
 0x15a   : > { %v11235_v41 = vadd.f32 %v8269_v36, %v11152_v28  ;;  %v11238_v42 = vadd.f32 %v8333_v37, %v11075_v22 }
 0x15b   : > { %v8271_v50 = vpop.f32.mrf.mxu1  ;;  %v8335_v51 = vpop.f32.mrf.mxu0  ;;  %8876 = vmatpush3.bf16.msra.mxu1 %v10031_v20  ;;  %v10008_v20 = vld [vmem:[%s10613_s19 + $0xa44] ss:$108 sps:$4 sm:$0xff]  }
 0x15c   : > { %v8272_v28 = vadd.f32 %v8271_v50, %v8270_v12  ;;  %v8336_v53 = vadd.f32 %v8335_v51, %v8334_v43  ;;  %8877 = vmatprep.subr.bf16.mxu1 %v10044_v27  ;;  %v10011_v27 = vld [vmem:[%s10613_s19 + $0x38c] ss:$108 sps:$4 sm:$0xff]   ;;  %v10094_v12 = vld [vmem:[%s13046_s1 + $0x380] sm:$0xff]  }
 0x15d   : > { %v8273_v22 = vpop.f32.mrf.mxu1  ;;  %v8337_v58 = vpop.f32.mrf.mxu0  ;;  %5491 = vmatmul.mubr.bf16.gmra.mxu0 %v9990_v32  ;;  %5588 = vmatmul.mubr.bf16.gmra.mxu1 %v9993_v14  ;;  %v10078_v32 = vld [vmem:[%s13046_s1 + $0x388] sm:$0xff]   ;;  %v10092_v14 = vld [vmem:[%s13046_s1 + $0x3c0] sm:$0xff]  }
 0x15e   : > { %v11249_v59 = vadd.f32 %v8272_v28, %v11159_v40  ;;  %v11252_v0 = vadd.f32 %v8336_v53, %v11088_v2  ;;  %5498 = vmatprep.mubr.bf16.mxu0 %v10002_v45  ;;  %5595 = vmatprep.mubr.bf16.mxu1 %v10005_v49  ;;  %v10076_v40 = vld [vmem:[%s13046_s1 + $0x3c8] sm:$0xff]   ;;  %v10109_v49 = vld [vmem:[%s13046_s1 + $0x4f8] sm:$0xff]  }
 0x15f   : > { %v8274_v5 = vpop.f32.mrf.mxu1  ;;  %v8338_v7 = vpop.f32.mrf.mxu0  ;;  %8878 = vmatpush3.bf16.msra.mxu1 %v10046_v52  ;;  %v10006_v52 = vld [vmem:[%s10613_s19 + $0xa40] ss:$108 sps:$4 sm:$0xff]  }
 0x160   : > { %v8275_v38 = vadd.f32 %v8274_v5, %v8273_v22  ;;  %v8339_v2 = vadd.f32 %v8338_v7, %v8337_v58  ;;  %8879 = vmatprep.subr.bf16.mxu1 %v10060_v57  ;;  %v10009_v57 = vld [vmem:[%s10613_s19 + $0x388] ss:$108 sps:$4 sm:$0xff]   ;;  %v10021_v5 = vld [vmem:[%s10613_s19 + $0x464] ss:$108 sps:$4 sm:$0xff]  }
 0x161   : > { %v8276_v1 = vpop.f32.mrf.mxu1  ;;  %v8340_v13 = vpop.f32.mrf.mxu0 }
 0x162   : > { %v11263_v26 = vadd.f32 %v8275_v38, %v11166_v56  ;;  %v11266_v17 = vadd.f32 %v8339_v2, %v11101_v16 }
 0x163   : > { %v8277_v46 = vpop.f32.mrf.mxu1  ;;  %v8341_v29 = vpop.f32.mrf.mxu0  ;;  %8880 = vmatpush3.bf16.msra.mxu1 %v10062_v3  ;;  %v10018_v3 = vld [vmem:[%s10613_s19 + $0xb1c] ss:$108 sps:$4 sm:$0xff]  }
 0x164   : > { %v8278_v36 = vadd.f32 %v8277_v46, %v8276_v1  ;;  %v8342_v56 = vadd.f32 %v8341_v29, %v8340_v13  ;;  %8881 = vmatprep.subr.bf16.mxu1 %v10076_v40 }
 0x165   : > { %v8279_v16 = vpop.f32.mrf.mxu1  ;;  %v8343_v37 = vpop.f32.mrf.mxu0  ;;  %5499 = vmatmul.mubr.bf16.gmra.mxu0 %v10000_v10  ;;  %5596 = vmatmul.mubr.bf16.gmra.mxu1 %v10003_v11 }
 0x166   : > { %v11280_v43 = vadd.f32 %v8278_v36, %v11173_v4  ;;  %v11283_v45 = vadd.f32 %v8342_v56, %v11117_v33  ;;  %5506 = vmatprep.mubr.bf16.mxu0 %v10008_v20  ;;  %5603 = vmatprep.mubr.bf16.mxu1 %v10011_v27  ;;  %v10016_v20 = vld [vmem:[%s10613_s19 + $0xb18] ss:$108 sps:$4 sm:$0xff]   ;;  %v10019_v27 = vld [vmem:[%s10613_s19 + $0x460] ss:$108 sps:$4 sm:$0xff]  }
 0x167   : > { %v8280_v50 = vpop.f32.mrf.mxu1  ;;  %v8344_v51 = vpop.f32.mrf.mxu0  ;;  %8882 = vmatpush3.bf16.msra.mxu1 %v10078_v32 }
 0x168   : > { %v8281_v28 = vadd.f32 %v8280_v50, %v8279_v16  ;;  %v8345_v53 = vadd.f32 %v8344_v51, %v8343_v37  ;;  %8883 = vmatprep.subr.bf16.mxu1 %v10092_v14 }
 0x169   : > { %v8282_v4 = vpop.f32.mrf.mxu1  ;;  %v8346_v22 = vpop.f32.mrf.mxu0 }
 0x16a   : > { %v11291_v33 = vadd.f32 %v8281_v28, %v11180_v18  ;;  %v11294_v58 = vadd.f32 %v8345_v53, %v11127_v54  ;;  %v10022_v28 = vld [vmem:[%s10613_s19 + $0xbf0] ss:$108 sps:$4 sm:$0xff]   ;;  %v10025_v53 = vld [vmem:[%s10613_s19 + $0x538] ss:$108 sps:$4 sm:$0xff]  }
 0x16b   : > { %v8283_v7 = vpop.f32.mrf.mxu1  ;;  %v8347_v10 = vpop.f32.mrf.mxu0  ;;  %8884 = vmatpush3.bf16.msra.mxu1 %v10094_v12 }
 0x16c   : > { %v8284_v11 = vadd.f32 %v8283_v7, %v8282_v4  ;;  %v8348_v40 = vadd.f32 %v8347_v10, %v8346_v22  ;;  %9093 = vmatprep.subr.bf16.mxu1 %v10109_v49 }
 0x16d   : > { %v8285_v38 = vpop.f32.mrf.mxu1  ;;  %v8349_v2 = vpop.f32.mrf.mxu0  ;;  %5507 = vmatmul.mubr.bf16.gmra.mxu0 %v10006_v52  ;;  %5604 = vmatmul.mubr.bf16.gmra.mxu1 %v10009_v57 }
 0x16e   : > { %v11299_v18 = vadd.f32 %v8284_v11, %v11193_v35  ;;  %v11302_v54 = vadd.f32 %v8348_v40, %v11134_v62  ;;  %5514 = vmatprep.mubr.bf16.mxu0 %v10018_v3  ;;  %5611 = vmatprep.mubr.bf16.mxu1 %v10021_v5  ;;  %v10024_v35 = vld [vmem:[%s10613_s19 + $0xbf4] ss:$108 sps:$4 sm:$0xff]   ;;  %v10027_v62 = vld [vmem:[%s10613_s19 + $0x53c] ss:$108 sps:$4 sm:$0xff]  }
 0x16f   : > { %v8286_v1 = vpop.f32.mrf.mxu1  ;;  %v8350_v13 = vpop.f32.mrf.mxu0 }
 0x170   : > { %v8287_v46 = vadd.f32 %v8286_v1, %v8285_v38  ;;  %v8351_v29 = vadd.f32 %v8350_v13, %v8349_v2 }
 0x171   : > { %v8288_v32 = vpop.f32.mrf.mxu1  ;;  %v8352_v14 = vpop.f32.mrf.mxu0 }
 0x172   : > { %v11307_v36 = vadd.f32 %v8287_v46, %v10988_v15  ;;  %v11310_v56 = vadd.f32 %v8351_v29, %v11141_v6  ;;  %v10032_v46 = vld [vmem:[%s10613_s19 + $0xcc8] ss:$108 sps:$4 sm:$0xff]   ;;  %v10035_v29 = vld [vmem:[%s10613_s19 + $0x610] ss:$108 sps:$4 sm:$0xff]  }
 0x173   : > { %v8289_v16 = vpop.f32.mrf.mxu1  ;;  %v8353_v37 = vpop.f32.mrf.mxu0 }
 0x174   : > { %v8290_v12 = vadd.f32 %v8289_v16, %v8288_v32  ;;  %v8354_v49 = vadd.f32 %v8353_v37, %v8352_v14 }
 0x175   : > { %v8291_v50 = vpop.f32.mrf.mxu1  ;;  %v8355_v51 = vpop.f32.mrf.mxu0  ;;  %5515 = vmatmul.mubr.bf16.gmra.mxu0 %v10016_v20  ;;  %5612 = vmatmul.mubr.bf16.gmra.mxu1 %v10019_v27 }
 0x176   : > { %v11315_v15 = vadd.f32 %v8290_v12, %v10994_v23  ;;  %v11318_v6 = vadd.f32 %v8354_v49, %v11148_v19  ;;  %5522 = vmatprep.mubr.bf16.mxu0 %v10024_v35  ;;  %5619 = vmatprep.mubr.bf16.mxu1 %v10027_v62  ;;  %v10034_v23 = vld [vmem:[%s10613_s19 + $0xccc] ss:$108 sps:$4 sm:$0xff]   ;;  %v10037_v19 = vld [vmem:[%s10613_s19 + $0x614] ss:$108 sps:$4 sm:$0xff]  }
 0x177   : > { %v8292_v52 = vpop.f32.mrf.mxu1  ;;  %v8356_v57 = vpop.f32.mrf.mxu0 }
 0x178   : > { %v8293_v4 = vadd.f32 %v8292_v52, %v8291_v50  ;;  %v8357_v22 = vadd.f32 %v8356_v57, %v8355_v51 }
 0x179   : > { %v8294_v3 = vpop.f32.mrf.mxu1  ;;  %v8358_v5 = vpop.f32.mrf.mxu0 }
 0x17a   : > { %v11323_v7 = vadd.f32 %v8293_v4, %v11000_v31  ;;  %v11326_v10 = vadd.f32 %v8357_v22, %v11155_v34  ;;  %v10038_v4 = vld [vmem:[%s10613_s19 + $0x6e8] ss:$108 sps:$4 sm:$0xff]   ;;  %v10041_v22 = vld [vmem:[%s10613_s19 + $0x30] ss:$108 sps:$4 sm:$0xff]  }
 0x17b   : > { %v8295_v11 = vpop.f32.mrf.mxu1  ;;  %v8359_v40 = vpop.f32.mrf.mxu0 }
 0x17c   : > { %v8296_v38 = vadd.f32 %v8295_v11, %v8294_v3  ;;  %v8360_v2 = vadd.f32 %v8359_v40, %v8358_v5  ;;  %v10050_v40 = vld [vmem:[%s10613_s19 + $0x7c4] ss:$108 sps:$4 sm:$0xff]  }
 0x17d   : > { %v8297_v1 = vpop.f32.mrf.mxu1  ;;  %v8361_v13 = vpop.f32.mrf.mxu0  ;;  %5523 = vmatmul.mubr.bf16.gmra.mxu0 %v10022_v28  ;;  %5620 = vmatmul.mubr.bf16.gmra.mxu1 %v10025_v53 }
 0x17e   : > { %v11331_v31 = vadd.f32 %v8296_v38, %v11006_v39  ;;  %v11334_v34 = vadd.f32 %v8360_v2, %v11162_v48  ;;  %5530 = vmatprep.mubr.bf16.mxu0 %v10034_v23  ;;  %5627 = vmatprep.mubr.bf16.mxu1 %v10037_v19  ;;  %v10040_v39 = vld [vmem:[%s10613_s19 + $0x6ec] ss:$108 sps:$4 sm:$0xff]   ;;  %v10043_v48 = vld [vmem:[%s10613_s19 + $0x34] ss:$108 sps:$4 sm:$0xff]  }
 0x17f   : > { %v8298_v20 = vpop.f32.mrf.mxu1  ;;  %v8362_v27 = vpop.f32.mrf.mxu0 }
 0x180   : > { %v8299_v32 = vadd.f32 %v8298_v20, %v8297_v1  ;;  %v8363_v14 = vadd.f32 %v8362_v27, %v8361_v13  ;;  %v10053_v1 = vld [vmem:[%s10613_s19 + $0x10c] ss:$108 sps:$4 sm:$0xff]   ;;  %v10061_v13 = vld [vmem:[%s13046_s1 + $0x470] sm:$0xff]  }
 0x181   : > { %v8300_v35 = vpop.f32.mrf.mxu1  ;;  %v8364_v62 = vpop.f32.mrf.mxu0 }
 0x182   : > { %v11339_v16 = vadd.f32 %v8299_v32, %v11012_v47  ;;  %v11342_v37 = vadd.f32 %v8363_v14, %v11169_v60  ;;  %v10063_v32 = vld [vmem:[%s13046_s1 + $0x430] sm:$0xff]  }
 0x183   : > { %v8301_v12 = vpop.f32.mrf.mxu1  ;;  %v8365_v49 = vpop.f32.mrf.mxu0 }
 0x184   : > { %v8302_v50 = vadd.f32 %v8301_v12, %v8300_v35  ;;  %v8366_v51 = vadd.f32 %v8365_v49, %v8364_v62  ;;  %v10048_v62 = vld [vmem:[%s10613_s19 + $0x7c0] ss:$108 sps:$4 sm:$0xff]  }
 0x185   : > { %v8303_v52 = vpop.f32.mrf.mxu1  ;;  %v8367_v57 = vpop.f32.mrf.mxu0  ;;  %5531 = vmatmul.mubr.bf16.gmra.mxu0 %v10032_v46  ;;  %5628 = vmatmul.mubr.bf16.gmra.mxu1 %v10035_v29 }
 0x186   : > { %v11347_v28 = vadd.f32 %v8302_v50, %v11018_v55  ;;  %v11350_v47 = vadd.f32 %v8366_v51, %v11176_v8  ;;  %5635 = vmatprep.mubr.bf16.mxu1 %v10040_v39  ;;  %5732 = vmatprep.mubr.bf16.mxu0 %v10043_v48  ;;  %v10047_v8 = vld [vmem:[%s13046_s1 + $0x438] sm:$0xff]   ;;  %v10051_v39 = vld [vmem:[%s10613_s19 + $0x108] ss:$108 sps:$4 sm:$0xff]  }
 0x187   : > { %v8304_v60 = vpop.f32.mrf.mxu1  ;;  %v8368_v53 = vpop.f32.mrf.mxu0 }
 0x188   : > { %v8305_v3 = vadd.f32 %v8304_v60, %v8303_v52  ;;  %v8369_v5 = vadd.f32 %v8368_v53, %v8367_v57  ;;  %v10056_v52 = vld [vmem:[%s10613_s19 + $0x89c] ss:$108 sps:$4 sm:$0xff]   ;;  %v10059_v57 = vld [vmem:[%s10613_s19 + $0x1e4] ss:$108 sps:$4 sm:$0xff]  }
 0x189   : > { %v8306_v23 = vpop.f32.mrf.mxu1  ;;  %v8370_v19 = vpop.f32.mrf.mxu0 }
 0x18a   : > { %v11355_v11 = vadd.f32 %v8305_v3, %v11024_v63  ;;  %v11358_v55 = vadd.f32 %v8369_v5, %v11183_v25 }
 0x18b   : > { %v8307_v38 = vpop.f32.mrf.mxu1  ;;  %v8371_v2 = vpop.f32.mrf.mxu0 }
 0x18c   : > { %v8308_v20 = vadd.f32 %v8307_v38, %v8306_v23  ;;  %v8372_v63 = vadd.f32 %v8371_v2, %v8370_v19  ;;  %v10095_v23 = vld [vmem:[%s13046_s1 + $0x420] sm:$0xff]  }
 0x18d   : > { %v8373_v27 = vpop.f32.mrf.mxu0  ;;  %v8437_v46 = vpop.f32.mrf.mxu1  ;;  %5636 = vmatmul.mubr.bf16.gmra.mxu1 %v10038_v4  ;;  %5733 = vmatmul.mubr.bf16.vlgmr.msra.gmra.mxu0 %v10041_v22  ;;  %v10079_v4 = vld [vmem:[%s13046_s1 + $0x428] sm:$0xff]   ;;  %v10093_v22 = vld [vmem:[%s13046_s1 + $0x460] sm:$0xff]  }
 0x18e   : > { %v11369_v25 = vadd.f32 %v8308_v20, %v11036_v9  ;;  %v11372_v29 = vadd.f32 %v8372_v63, %v11196_v44  ;;  %8982 = vmatpush3.bf16.msra.mxu0 %v10047_v8  ;;  %5643 = vmatprep.mubr.bf16.mxu1 %v10050_v40  ;;  %v10077_v9 = vld [vmem:[%s13046_s1 + $0x468] sm:$0xff]   ;;  %v10108_v40 = vld [vmem:[%s13046_s1 + $0x458] sm:$0xff]  }
 0x18f   : > { %v8374_v14 = vpop.f32.mrf.mxu0  ;;  %v8438_v35 = vpop.f32.mrf.mxu1  ;;  %5740 = vmatprep.mubr.bf16.mxu0 %v10053_v1  ;;  %8983 = vmatprep.subr.bf16.mxu0 %v10061_v13  ;;  %v10054_v1 = vld [vmem:[%s10613_s19 + $0x898] ss:$108 sps:$4 sm:$0xff]   ;;  %v10057_v13 = vld [vmem:[%s10613_s19 + $0x1e0] ss:$108 sps:$4 sm:$0xff]  }
 0x190   : > { %v8375_v44 = vadd.f32 %v8374_v14, %v8373_v27  ;;  %v8439_v48 = vadd.f32 %v8438_v35, %v8437_v46  ;;  %v10069_v14 = vld [vmem:[%s10613_s19 + $0x2bc] ss:$108 sps:$4 sm:$0xff]  }
 0x191   : > { %v8376_v12 = vpop.f32.mrf.mxu0  ;;  %v8440_v49 = vpop.f32.mrf.mxu1 }
 0x192   : > { %v11383_v50 = vadd.f32 %v8375_v44, %v11207_v30  ;;  %v11386_v51 = vadd.f32 %v8439_v48, %v11210_v61  ;;  %8984 = vmatpush3.bf16.msra.mxu0 %v10063_v32  ;;  %v10066_v32 = vld [vmem:[%s10613_s19 + $0x974] ss:$108 sps:$4 sm:$0xff]  }
 0x193   : > { %v8377_v60 = vpop.f32.mrf.mxu0  ;;  %v8441_v53 = vpop.f32.mrf.mxu1  ;;  %8985 = vmatprep.subr.bf16.mxu0 %v10077_v9  ;;  %v10124_v9 = vld [vmem:[%s13046_s1 + $0x450] sm:$0xff]  }
 0x194   : > { %v8378_v30 = vadd.f32 %v8377_v60, %v8376_v12  ;;  %v8442_v3 = vadd.f32 %v8441_v53, %v8440_v49  ;;  %v10064_v53 = vld [vmem:[%s10613_s19 + $0x970] ss:$108 sps:$4 sm:$0xff]  }
 0x195   : > { %v8379_v61 = vpop.f32.mrf.mxu0  ;;  %v8443_v5 = vpop.f32.mrf.mxu1  ;;  %5644 = vmatmul.mubr.bf16.gmra.mxu1 %v10048_v62  ;;  %5741 = vmatmul.mubr.bf16.gmra.mxu0 %v10051_v39  ;;  %v10110_v39 = vld [vmem:[%s13046_s1 + $0x418] sm:$0xff]  }
 0x196   : > { %v11400_v19 = vadd.f32 %v8378_v30, %v11224_v21  ;;  %v11403_v8 = vadd.f32 %v8442_v3, %v11227_v24  ;;  %5651 = vmatprep.mubr.bf16.mxu1 %v10056_v52  ;;  %5748 = vmatprep.mubr.bf16.mxu0 %v10059_v57  ;;  %v10126_v52 = vld [vmem:[%s13046_s1 + $0x410] sm:$0xff]  }
 0x197   : > { %v8380_v38 = vpop.f32.mrf.mxu0  ;;  %v8444_v2 = vpop.f32.mrf.mxu1  ;;  %8986 = vmatpush3.bf16.msra.mxu0 %v10079_v4  ;;  %v10067_v4 = vld [vmem:[%s10613_s19 + $0x2b8] ss:$108 sps:$4 sm:$0xff]  }
 0x198   : > { %v8381_v20 = vadd.f32 %v8380_v38, %v8379_v61  ;;  %v8445_v63 = vadd.f32 %v8444_v2, %v8443_v5  ;;  %8987 = vmatprep.subr.bf16.mxu0 %v10093_v22 }
 0x199   : > { %v8382_v21 = vpop.f32.mrf.mxu0  ;;  %v8446_v27 = vpop.f32.mrf.mxu1 }
 0x19a   : > { %v11411_v24 = vadd.f32 %v8381_v20, %v11235_v41  ;;  %v11414_v46 = vadd.f32 %v8445_v63, %v11238_v42 }
 0x19b   : > { %v8383_v35 = vpop.f32.mrf.mxu0  ;;  %v8447_v62 = vpop.f32.mrf.mxu1  ;;  %8988 = vmatpush3.bf16.msra.mxu0 %v10095_v23  ;;  %v10072_v23 = vld [vmem:[%s10613_s19 + $0xa4c] ss:$108 sps:$4 sm:$0xff]  }
 0x19c   : > { %v8384_v41 = vadd.f32 %v8383_v35, %v8382_v21  ;;  %v8448_v44 = vadd.f32 %v8447_v62, %v8446_v27  ;;  %8989 = vmatprep.subr.bf16.mxu0 %v10108_v40  ;;  %v10075_v40 = vld [vmem:[%s10613_s19 + $0x394] ss:$108 sps:$4 sm:$0xff]  }
 0x19d   : > { %v8385_v42 = vpop.f32.mrf.mxu0  ;;  %v8449_v48 = vpop.f32.mrf.mxu1  ;;  %5652 = vmatmul.mubr.bf16.gmra.mxu1 %v10054_v1  ;;  %5749 = vmatmul.mubr.bf16.gmra.mxu0 %v10057_v13  ;;  %v10142_v1 = vld [vmem:[%s13046_s1 + $0x408] sm:$0xff]   ;;  %v10156_v13 = vld [vmem:[%s13046_s1 + $0x440] sm:$0xff]  }
 0x19e   : > { %v11425_v12 = vadd.f32 %v8384_v41, %v11249_v59  ;;  %v11428_v49 = vadd.f32 %v8448_v44, %v11252_v0  ;;  %5659 = vmatprep.mubr.bf16.mxu1 %v10066_v32  ;;  %5756 = vmatprep.mubr.bf16.mxu0 %v10069_v14  ;;  %v10140_v59 = vld [vmem:[%s13046_s1 + $0x448] sm:$0xff]   ;;  %v10158_v21 = vld [vmem:[%s13046_s1 + $0x400] sm:$0xff]   ;;  %v10173_v14 = vld [vmem:[%s13046_s1 + $0x578] sm:$0xff]  }
 0x19f   : > { %v8386_v57 = vpop.f32.mrf.mxu0  ;;  %v8450_v60 = vpop.f32.mrf.mxu1  ;;  %8990 = vmatpush3.bf16.msra.mxu0 %v10110_v39  ;;  %v10070_v39 = vld [vmem:[%s10613_s19 + $0xa48] ss:$108 sps:$4 sm:$0xff]  }
 0x1a0   : > { %v8387_v22 = vadd.f32 %v8386_v57, %v8385_v42  ;;  %v8451_v0 = vadd.f32 %v8450_v60, %v8449_v48  ;;  %8991 = vmatprep.subr.bf16.mxu0 %v10124_v9  ;;  %v10073_v9 = vld [vmem:[%s10613_s19 + $0x390] ss:$108 sps:$4 sm:$0xff]   ;;  %v10085_v57 = vld [vmem:[%s10613_s19 + $0x46c] ss:$108 sps:$4 sm:$0xff]  }
 0x1a1   : > { %v8388_v30 = vpop.f32.mrf.mxu0  ;;  %v8452_v3 = vpop.f32.mrf.mxu1 }
 0x1a2   : > { %v11439_v61 = vadd.f32 %v8387_v22, %v11263_v26  ;;  %v11442_v5 = vadd.f32 %v8451_v0, %v11266_v17 }
 0x1a3   : > { %v8389_v38 = vpop.f32.mrf.mxu0  ;;  %v8453_v2 = vpop.f32.mrf.mxu1  ;;  %8992 = vmatpush3.bf16.msra.mxu0 %v10126_v52  ;;  %v10082_v52 = vld [vmem:[%s10613_s19 + $0xb24] ss:$108 sps:$4 sm:$0xff]  }
 0x1a4   : > { %v8390_v20 = vadd.f32 %v8389_v38, %v8388_v30  ;;  %v8454_v26 = vadd.f32 %v8453_v2, %v8452_v3  ;;  %8993 = vmatprep.subr.bf16.mxu0 %v10140_v59 }
 0x1a5   : > { %v8391_v17 = vpop.f32.mrf.mxu0  ;;  %v8455_v63 = vpop.f32.mrf.mxu1  ;;  %5660 = vmatmul.mubr.bf16.gmra.mxu1 %v10064_v53  ;;  %5757 = vmatmul.mubr.bf16.gmra.mxu0 %v10067_v4 }
 0x1a6   : > { %v11456_v27 = vadd.f32 %v8390_v20, %v11280_v43  ;;  %v11459_v32 = vadd.f32 %v8454_v26, %v11283_v45  ;;  %5667 = vmatprep.mubr.bf16.mxu1 %v10072_v23  ;;  %5764 = vmatprep.mubr.bf16.mxu0 %v10075_v40  ;;  %v10080_v23 = vld [vmem:[%s10613_s19 + $0xb20] ss:$108 sps:$4 sm:$0xff]   ;;  %v10083_v40 = vld [vmem:[%s10613_s19 + $0x468] ss:$108 sps:$4 sm:$0xff]  }
 0x1a7   : > { %v8392_v35 = vpop.f32.mrf.mxu0  ;;  %v8456_v62 = vpop.f32.mrf.mxu1  ;;  %8994 = vmatpush3.bf16.msra.mxu0 %v10142_v1 }
 0x1a8   : > { %v8393_v41 = vadd.f32 %v8392_v35, %v8391_v17  ;;  %v8457_v44 = vadd.f32 %v8456_v62, %v8455_v63  ;;  %8995 = vmatprep.subr.bf16.mxu0 %v10156_v13 }
 0x1a9   : > { %v8394_v43 = vpop.f32.mrf.mxu0  ;;  %v8458_v42 = vpop.f32.mrf.mxu1 }
 0x1aa   : > { %v11467_v45 = vadd.f32 %v8393_v41, %v11291_v33  ;;  %v11470_v48 = vadd.f32 %v8457_v44, %v11294_v58  ;;  %v10086_v41 = vld [vmem:[%s10613_s19 + $0xbf8] ss:$108 sps:$4 sm:$0xff]   ;;  %v10089_v44 = vld [vmem:[%s10613_s19 + $0x540] ss:$108 sps:$4 sm:$0xff]  }
 0x1ab   : > { %v8395_v60 = vpop.f32.mrf.mxu0  ;;  %v8459_v53 = vpop.f32.mrf.mxu1  ;;  %8996 = vmatpush3.bf16.msra.mxu0 %v10158_v21 }
 0x1ac   : > { %v8396_v4 = vadd.f32 %v8395_v60, %v8394_v43  ;;  %v8460_v59 = vadd.f32 %v8459_v53, %v8458_v42  ;;  %9205 = vmatprep.subr.bf16.mxu0 %v10173_v14 }
 0x1ad   : > { %v8397_v22 = vpop.f32.mrf.mxu0  ;;  %v8461_v0 = vpop.f32.mrf.mxu1  ;;  %5668 = vmatmul.mubr.bf16.gmra.mxu1 %v10070_v39  ;;  %5765 = vmatmul.mubr.bf16.gmra.mxu0 %v10073_v9 }
 0x1ae   : > { %v11475_v33 = vadd.f32 %v8396_v4, %v11299_v18  ;;  %v11478_v58 = vadd.f32 %v8460_v59, %v11302_v54  ;;  %5675 = vmatprep.mubr.bf16.mxu1 %v10082_v52  ;;  %5772 = vmatprep.mubr.bf16.mxu0 %v10085_v57  ;;  %v10088_v18 = vld [vmem:[%s10613_s19 + $0xbfc] ss:$108 sps:$4 sm:$0xff]   ;;  %v10091_v54 = vld [vmem:[%s10613_s19 + $0x544] ss:$108 sps:$4 sm:$0xff]  }
 0x1af   : > { %v8398_v30 = vpop.f32.mrf.mxu0  ;;  %v8462_v3 = vpop.f32.mrf.mxu1 }
 0x1b0   : > { %v8399_v38 = vadd.f32 %v8398_v30, %v8397_v22  ;;  %v8463_v2 = vadd.f32 %v8462_v3, %v8461_v0 }
 0x1b1   : > { %v8400_v1 = vpop.f32.mrf.mxu0  ;;  %v8464_v13 = vpop.f32.mrf.mxu1 }
 0x1b2   : > { %v11483_v20 = vadd.f32 %v8399_v38, %v11307_v36  ;;  %v11486_v26 = vadd.f32 %v8463_v2, %v11310_v56  ;;  %v10096_v38 = vld [vmem:[%s10613_s19 + $0xcd0] ss:$108 sps:$4 sm:$0xff]  }
 0x1b3   : > { %v8401_v17 = vpop.f32.mrf.mxu0  ;;  %v8465_v63 = vpop.f32.mrf.mxu1 }
 0x1b4   : > { %v8402_v21 = vadd.f32 %v8401_v17, %v8400_v1  ;;  %v8466_v14 = vadd.f32 %v8465_v63, %v8464_v13 }
 0x1b5   : > { %v8403_v35 = vpop.f32.mrf.mxu0  ;;  %v8467_v62 = vpop.f32.mrf.mxu1  ;;  %5676 = vmatmul.mubr.bf16.gmra.mxu1 %v10080_v23  ;;  %5773 = vmatmul.mubr.bf16.gmra.mxu0 %v10083_v40 }
 0x1b6   : > { %v11491_v36 = vadd.f32 %v8402_v21, %v11315_v15  ;;  %v11494_v56 = vadd.f32 %v8466_v14, %v11318_v6  ;;  %5683 = vmatprep.mubr.bf16.mxu1 %v10088_v18  ;;  %5780 = vmatprep.mubr.bf16.mxu0 %v10091_v54  ;;  %v10098_v15 = vld [vmem:[%s10613_s19 + $0xcd4] ss:$108 sps:$4 sm:$0xff]   ;;  %v10101_v6 = vld [vmem:[%s10613_s19 + $0x61c] ss:$108 sps:$4 sm:$0xff]   ;;  %v10099_v54 = vld [vmem:[%s10613_s19 + $0x618] ss:$108 sps:$4 sm:$0xff]  }
 0x1b7   : > { %v8404_v39 = vpop.f32.mrf.mxu0  ;;  %v8468_v9 = vpop.f32.mrf.mxu1  ;;  %v10107_v21 = vld [vmem:[%s10613_s19 + $0x3c] ss:$108 sps:$4 sm:$0xff]  }
 0x1b8   : > { %v8405_v43 = vadd.f32 %v8404_v39, %v8403_v35  ;;  %v8469_v42 = vadd.f32 %v8468_v9, %v8467_v62 }
 0x1b9   : > { %v8406_v52 = vpop.f32.mrf.mxu0  ;;  %v8470_v57 = vpop.f32.mrf.mxu1 }
 0x1ba   : > { %v11499_v60 = vadd.f32 %v8405_v43, %v11323_v7  ;;  %v11502_v53 = vadd.f32 %v8469_v42, %v11326_v10 }
 0x1bb   : > { %v8407_v4 = vpop.f32.mrf.mxu0  ;;  %v8471_v59 = vpop.f32.mrf.mxu1 }
 0x1bc   : > { %v8408_v22 = vadd.f32 %v8407_v4, %v8406_v52  ;;  %v8472_v0 = vadd.f32 %v8471_v59, %v8470_v57  ;;  %v10114_v59 = vld [vmem:[%s10613_s19 + $0x7cc] ss:$108 sps:$4 sm:$0xff]  }
 0x1bd   : > { %v8409_v30 = vpop.f32.mrf.mxu0  ;;  %v8473_v3 = vpop.f32.mrf.mxu1  ;;  %5684 = vmatmul.mubr.bf16.gmra.mxu1 %v10086_v41  ;;  %5781 = vmatmul.mubr.bf16.gmra.mxu0 %v10089_v44 }
 0x1be   : > { %v11507_v7 = vadd.f32 %v8408_v22, %v11331_v31  ;;  %v11510_v10 = vadd.f32 %v8472_v0, %v11334_v34  ;;  %5691 = vmatprep.mubr.bf16.mxu1 %v10098_v15  ;;  %5788 = vmatprep.mubr.bf16.mxu0 %v10101_v6  ;;  %v10104_v31 = vld [vmem:[%s10613_s19 + $0x6f4] ss:$108 sps:$4 sm:$0xff]   ;;  %v10102_v15 = vld [vmem:[%s10613_s19 + $0x6f0] ss:$108 sps:$4 sm:$0xff]   ;;  %v10105_v6 = vld [vmem:[%s10613_s19 + $0x38] ss:$108 sps:$4 sm:$0xff]  }
 0x1bf   : > { %v8410_v23 = vpop.f32.mrf.mxu0  ;;  %v8474_v40 = vpop.f32.mrf.mxu1 }
 0x1c0   : > { %v8411_v2 = vadd.f32 %v8410_v23, %v8409_v30  ;;  %v8475_v1 = vadd.f32 %v8474_v40, %v8473_v3  ;;  %v10117_v30 = vld [vmem:[%s10613_s19 + $0x114] ss:$108 sps:$4 sm:$0xff]  }
 0x1c1   : > { %v8412_v13 = vpop.f32.mrf.mxu0  ;;  %v8476_v18 = vpop.f32.mrf.mxu1  ;;  %v10125_v3 = vld [vmem:[%s13046_s1 + $0x4f0] sm:$0xff]  }
 0x1c2   : > { %v11515_v17 = vadd.f32 %v8411_v2, %v11339_v16  ;;  %v11518_v63 = vadd.f32 %v8475_v1, %v11342_v37  ;;  %v10127_v1 = vld [vmem:[%s13046_s1 + $0x4b0] sm:$0xff]  }
 0x1c3   : > { %v8413_v34 = vpop.f32.mrf.mxu0  ;;  %v8477_v14 = vpop.f32.mrf.mxu1 }
 0x1c4   : > { %v8414_v35 = vadd.f32 %v8413_v34, %v8412_v13  ;;  %v8478_v62 = vadd.f32 %v8477_v14, %v8476_v18  ;;  %v10112_v34 = vld [vmem:[%s10613_s19 + $0x7c8] ss:$108 sps:$4 sm:$0xff]   ;;  %v10115_v14 = vld [vmem:[%s10613_s19 + $0x110] ss:$108 sps:$4 sm:$0xff]  }
 0x1c5   : > { %v8415_v39 = vpop.f32.mrf.mxu0  ;;  %v8479_v9 = vpop.f32.mrf.mxu1  ;;  %5692 = vmatmul.mubr.bf16.gmra.mxu1 %v10096_v38  ;;  %5789 = vmatmul.mubr.bf16.gmra.mxu0 %v10099_v54 }
 0x1c6   : > { %v11523_v41 = vadd.f32 %v8414_v35, %v11347_v28  ;;  %v11526_v16 = vadd.f32 %v8478_v62, %v11350_v47  ;;  %5796 = vmatprep.mubr.bf16.mxu0 %v10104_v31  ;;  %5893 = vmatprep.mubr.bf16.mxu1 %v10107_v21  ;;  %v10111_v47 = vld [vmem:[%s13046_s1 + $0x4b8] sm:$0xff]  }
 0x1c7   : > { %v8416_v37 = vpop.f32.mrf.mxu0  ;;  %v8480_v44 = vpop.f32.mrf.mxu1 }
 0x1c8   : > { %v8417_v43 = vadd.f32 %v8416_v37, %v8415_v39  ;;  %v8481_v42 = vadd.f32 %v8480_v44, %v8479_v9  ;;  %v10120_v39 = vld [vmem:[%s10613_s19 + $0x8a4] ss:$108 sps:$4 sm:$0xff]   ;;  %v10123_v9 = vld [vmem:[%s10613_s19 + $0x1ec] ss:$108 sps:$4 sm:$0xff]  }
 0x1c9   : > { %v8418_v52 = vpop.f32.mrf.mxu0  ;;  %v8482_v57 = vpop.f32.mrf.mxu1 }
 0x1ca   : > { %v11531_v4 = vadd.f32 %v8417_v43, %v11355_v11  ;;  %v11534_v28 = vadd.f32 %v8481_v42, %v11358_v55  ;;  %v10143_v43 = vld [vmem:[%s13046_s1 + $0x4a8] sm:$0xff]  }
 0x1cb   : > { %v8419_v22 = vpop.f32.mrf.mxu0  ;;  %v8483_v0 = vpop.f32.mrf.mxu1 }
 0x1cc   : > { %v8420_v23 = vadd.f32 %v8419_v22, %v8418_v52  ;;  %v8484_v40 = vadd.f32 %v8483_v0, %v8482_v57  ;;  %v10159_v22 = vld [vmem:[%s13046_s1 + $0x4a0] sm:$0xff]  }
 0x1cd   : > { %v8485_v38 = vpop.f32.mrf.mxu1  ;;  %v8549_v11 = vpop.f32.mrf.mxu0  ;;  %5797 = vmatmul.mubr.bf16.gmra.mxu0 %v10102_v15  ;;  %5894 = vmatmul.mubr.bf16.vlgmr.msra.gmra.mxu1 %v10105_v6 }
 0x1ce   : > { %v11545_v55 = vadd.f32 %v8420_v23, %v11369_v25  ;;  %v11548_v2 = vadd.f32 %v8484_v40, %v11372_v29  ;;  %9094 = vmatpush3.bf16.msra.mxu1 %v10111_v47  ;;  %5804 = vmatprep.mubr.bf16.mxu0 %v10114_v59  ;;  %v10141_v25 = vld [vmem:[%s13046_s1 + $0x4e8] sm:$0xff]  }
 0x1cf   : > { %v8486_v13 = vpop.f32.mrf.mxu1  ;;  %v8550_v18 = vpop.f32.mrf.mxu0  ;;  %5901 = vmatprep.mubr.bf16.mxu1 %v10117_v30  ;;  %9095 = vmatprep.subr.bf16.mxu1 %v10125_v3  ;;  %v10118_v23 = vld [vmem:[%s10613_s19 + $0x8a0] ss:$108 sps:$4 sm:$0xff]   ;;  %v10121_v40 = vld [vmem:[%s10613_s19 + $0x1e8] ss:$108 sps:$4 sm:$0xff]  }
 0x1d0   : > { %v8487_v54 = vadd.f32 %v8486_v13, %v8485_v38  ;;  %v8551_v31 = vadd.f32 %v8550_v18, %v8549_v11  ;;  %v10133_v13 = vld [vmem:[%s10613_s19 + $0x2c4] ss:$108 sps:$4 sm:$0xff]  }
 0x1d1   : > { %v8488_v29 = vpop.f32.mrf.mxu1  ;;  %v8552_v21 = vpop.f32.mrf.mxu0 }
 0x1d2   : > { %v11559_v35 = vadd.f32 %v8487_v54, %v11383_v50  ;;  %v11562_v62 = vadd.f32 %v8551_v31, %v11386_v51  ;;  %9096 = vmatpush3.bf16.msra.mxu1 %v10127_v1  ;;  %v10157_v50 = vld [vmem:[%s13046_s1 + $0x4e0] sm:$0xff]   ;;  %v10130_v1 = vld [vmem:[%s10613_s19 + $0x97c] ss:$108 sps:$4 sm:$0xff]  }
 0x1d3   : > { %v8489_v37 = vpop.f32.mrf.mxu1  ;;  %v8553_v44 = vpop.f32.mrf.mxu0  ;;  %9097 = vmatprep.subr.bf16.mxu1 %v10141_v25  ;;  %v10174_v54 = vld [vmem:[%s13046_s1 + $0x498] sm:$0xff]  }
 0x1d4   : > { %v8490_v42 = vadd.f32 %v8489_v37, %v8488_v29  ;;  %v8554_v52 = vadd.f32 %v8553_v44, %v8552_v21  ;;  %v10190_v37 = vld [vmem:[%s13046_s1 + $0x490] sm:$0xff]  }
 0x1d5   : > { %v8491_v57 = vpop.f32.mrf.mxu1  ;;  %v8555_v15 = vpop.f32.mrf.mxu0  ;;  %5805 = vmatmul.mubr.bf16.gmra.mxu0 %v10112_v34  ;;  %5902 = vmatmul.mubr.bf16.gmra.mxu1 %v10115_v14 }
 0x1d6   : > { %v11573_v51 = vadd.f32 %v8490_v42, %v11400_v19  ;;  %v11576_v6 = vadd.f32 %v8554_v52, %v11403_v8  ;;  %5812 = vmatprep.mubr.bf16.mxu0 %v10120_v39  ;;  %5909 = vmatprep.mubr.bf16.mxu1 %v10123_v9  ;;  %v10172_v19 = vld [vmem:[%s13046_s1 + $0x4d8] sm:$0xff]  }
 0x1d7   : > { %v8492_v47 = vpop.f32.mrf.mxu1  ;;  %v8556_v59 = vpop.f32.mrf.mxu0  ;;  %9098 = vmatpush3.bf16.msra.mxu1 %v10143_v43  ;;  %v10128_v52 = vld [vmem:[%s10613_s19 + $0x978] ss:$108 sps:$4 sm:$0xff]  }
 0x1d8   : > { %v8493_v0 = vadd.f32 %v8492_v47, %v8491_v57  ;;  %v8557_v30 = vadd.f32 %v8556_v59, %v8555_v15  ;;  %9099 = vmatprep.subr.bf16.mxu1 %v10157_v50  ;;  %v10131_v50 = vld [vmem:[%s10613_s19 + $0x2c0] ss:$108 sps:$4 sm:$0xff]   ;;  %v10139_v59 = vld [vmem:[%s10613_s19 + $0x39c] ss:$108 sps:$4 sm:$0xff]  }
 0x1d9   : > { %v8494_v8 = vpop.f32.mrf.mxu1  ;;  %v8558_v3 = vpop.f32.mrf.mxu0  ;;  %v10136_v47 = vld [vmem:[%s10613_s19 + $0xa54] ss:$108 sps:$4 sm:$0xff]  }
 0x1da   : > { %v11587_v38 = vadd.f32 %v8493_v0, %v11411_v24  ;;  %v11590_v11 = vadd.f32 %v8557_v30, %v11414_v46  ;;  %v10188_v24 = vld [vmem:[%s13046_s1 + $0x4d0] sm:$0xff]   ;;  %v10206_v30 = vld [vmem:[%s13046_s1 + $0x488] sm:$0xff]  }
 0x1db   : > { %v8495_v18 = vpop.f32.mrf.mxu1  ;;  %v8559_v25 = vpop.f32.mrf.mxu0  ;;  %9100 = vmatpush3.bf16.msra.mxu1 %v10159_v22 }
 0x1dc   : > { %v8496_v31 = vadd.f32 %v8495_v18, %v8494_v8  ;;  %v8560_v29 = vadd.f32 %v8559_v25, %v8558_v3  ;;  %9101 = vmatprep.subr.bf16.mxu1 %v10172_v19  ;;  %v10222_v18 = vld [vmem:[%s13046_s1 + $0x480] sm:$0xff]  }
 0x1dd   : > { %v8497_v21 = vpop.f32.mrf.mxu1  ;;  %v8561_v34 = vpop.f32.mrf.mxu0  ;;  %5813 = vmatmul.mubr.bf16.gmra.mxu0 %v10118_v23  ;;  %5910 = vmatmul.mubr.bf16.gmra.mxu1 %v10121_v40 }
 0x1de   : > { %v11601_v46 = vadd.f32 %v8496_v31, %v11425_v12  ;;  %v11604_v14 = vadd.f32 %v8560_v29, %v11428_v49  ;;  %5820 = vmatprep.mubr.bf16.mxu0 %v10130_v1  ;;  %5917 = vmatprep.mubr.bf16.mxu1 %v10133_v13  ;;  %v10204_v12 = vld [vmem:[%s13046_s1 + $0x4c8] sm:$0xff]   ;;  %v10134_v29 = vld [vmem:[%s10613_s19 + $0xa50] ss:$108 sps:$4 sm:$0xff]  }
 0x1df   : > { %v8498_v39 = vpop.f32.mrf.mxu1  ;;  %v8562_v9 = vpop.f32.mrf.mxu0  ;;  %9102 = vmatpush3.bf16.msra.mxu1 %v10174_v54 }
 0x1e0   : > { %v8499_v44 = vadd.f32 %v8498_v39, %v8497_v21  ;;  %v8563_v43 = vadd.f32 %v8562_v9, %v8561_v34  ;;  %9103 = vmatprep.subr.bf16.mxu1 %v10188_v24  ;;  %v10137_v24 = vld [vmem:[%s10613_s19 + $0x398] ss:$108 sps:$4 sm:$0xff]   ;;  %v10149_v9 = vld [vmem:[%s10613_s19 + $0x474] ss:$108 sps:$4 sm:$0xff]  }
 0x1e1   : > { %v8500_v49 = vpop.f32.mrf.mxu1  ;;  %v8564_v42 = vpop.f32.mrf.mxu0  ;;  %v10146_v39 = vld [vmem:[%s10613_s19 + $0xb2c] ss:$108 sps:$4 sm:$0xff]  }
 0x1e2   : > { %v11615_v57 = vadd.f32 %v8499_v44, %v11439_v61  ;;  %v11618_v15 = vadd.f32 %v8563_v43, %v11442_v5  ;;  %v10220_v61 = vld [vmem:[%s13046_s1 + $0x4c0] sm:$0xff]  }
 0x1e3   : > { %v8501_v22 = vpop.f32.mrf.mxu1  ;;  %v8565_v0 = vpop.f32.mrf.mxu0  ;;  %9104 = vmatpush3.bf16.msra.mxu1 %v10190_v37 }
 0x1e4   : > { %v8502_v19 = vadd.f32 %v8501_v22, %v8500_v49  ;;  %v8566_v8 = vadd.f32 %v8565_v0, %v8564_v42  ;;  %9105 = vmatprep.subr.bf16.mxu1 %v10204_v12 }
 0x1e5   : > { %v8503_v3 = vpop.f32.mrf.mxu1  ;;  %v8567_v23 = vpop.f32.mrf.mxu0  ;;  %5821 = vmatmul.mubr.bf16.gmra.mxu0 %v10128_v52  ;;  %5918 = vmatmul.mubr.bf16.gmra.mxu1 %v10131_v50 }
 0x1e6   : > { %v11629_v5 = vadd.f32 %v8502_v19, %v11456_v27  ;;  %v11632_v40 = vadd.f32 %v8566_v8, %v11459_v32  ;;  %5828 = vmatprep.mubr.bf16.mxu0 %v10136_v47  ;;  %5925 = vmatprep.mubr.bf16.mxu1 %v10139_v59  ;;  %v10237_v27 = vld [vmem:[%s13046_s1 + $0x5f8] sm:$0xff]  }
 0x1e7   : > { %v8504_v1 = vpop.f32.mrf.mxu1  ;;  %v8568_v13 = vpop.f32.mrf.mxu0  ;;  %9106 = vmatpush3.bf16.msra.mxu1 %v10206_v30  ;;  %v10144_v30 = vld [vmem:[%s10613_s19 + $0xb28] ss:$108 sps:$4 sm:$0xff]   ;;  %v10147_v19 = vld [vmem:[%s10613_s19 + $0x470] ss:$108 sps:$4 sm:$0xff]  }
 0x1e8   : > { %v8505_v25 = vadd.f32 %v8504_v1, %v8503_v3  ;;  %v8569_v54 = vadd.f32 %v8568_v13, %v8567_v23  ;;  %9107 = vmatprep.subr.bf16.mxu1 %v10220_v61  ;;  %v10155_v3 = vld [vmem:[%s10613_s19 + $0x54c] ss:$108 sps:$4 sm:$0xff]  }
 0x1e9   : > { %v8506_v32 = vpop.f32.mrf.mxu1  ;;  %v8570_v31 = vpop.f32.mrf.mxu0 }
 0x1ea   : > { %v11643_v21 = vadd.f32 %v8505_v25, %v11467_v45  ;;  %v11646_v34 = vadd.f32 %v8569_v54, %v11470_v48 }
 0x1eb   : > { %v8507_v37 = vpop.f32.mrf.mxu1  ;;  %v8571_v44 = vpop.f32.mrf.mxu0  ;;  %9108 = vmatpush3.bf16.msra.mxu1 %v10222_v18 }
 0x1ec   : > { %v8508_v43 = vadd.f32 %v8507_v37, %v8506_v32  ;;  %v8572_v12 = vadd.f32 %v8571_v44, %v8570_v31  ;;  %9317 = vmatprep.subr.bf16.mxu1 %v10237_v27 }
 0x1ed   : > { %v8509_v49 = vpop.f32.mrf.mxu1  ;;  %v8573_v42 = vpop.f32.mrf.mxu0  ;;  %5829 = vmatmul.mubr.bf16.gmra.mxu0 %v10134_v29  ;;  %5926 = vmatmul.mubr.bf16.gmra.mxu1 %v10137_v24 }
 0x1ee   : > { %v11651_v45 = vadd.f32 %v8508_v43, %v11475_v33  ;;  %v11654_v48 = vadd.f32 %v8572_v12, %v11478_v58  ;;  %5836 = vmatprep.mubr.bf16.mxu0 %v10146_v39  ;;  %5933 = vmatprep.mubr.bf16.mxu1 %v10149_v9  ;;  %v10152_v33 = vld [vmem:[%s10613_s19 + $0xc04] ss:$108 sps:$4 sm:$0xff]   ;;  %v10150_v39 = vld [vmem:[%s10613_s19 + $0xc00] ss:$108 sps:$4 sm:$0xff]   ;;  %v10153_v9 = vld [vmem:[%s10613_s19 + $0x548] ss:$108 sps:$4 sm:$0xff]  }
 0x1ef   : > { %v8510_v52 = vpop.f32.mrf.mxu1  ;;  %v8574_v50 = vpop.f32.mrf.mxu0  ;;  %v10165_v43 = vld [vmem:[%s10613_s19 + $0x624] ss:$108 sps:$4 sm:$0xff]  }
 0x1f0   : > { %v8511_v47 = vadd.f32 %v8510_v52, %v8509_v49  ;;  %v8575_v59 = vadd.f32 %v8574_v50, %v8573_v42 }
 0x1f1   : > { %v8512_v22 = vpop.f32.mrf.mxu1  ;;  %v8576_v0 = vpop.f32.mrf.mxu0 }
 0x1f2   : > { %v11659_v8 = vadd.f32 %v8511_v47, %v11483_v20  ;;  %v11662_v61 = vadd.f32 %v8575_v59, %v11486_v26 }
 0x1f3   : > { %v8513_v58 = vpop.f32.mrf.mxu1  ;;  %v8577_v23 = vpop.f32.mrf.mxu0 }
 0x1f4   : > { %v8514_v1 = vadd.f32 %v8513_v58, %v8512_v22  ;;  %v8578_v13 = vadd.f32 %v8577_v23, %v8576_v0 }
 0x1f5   : > { %v8515_v18 = vpop.f32.mrf.mxu1  ;;  %v8579_v25 = vpop.f32.mrf.mxu0  ;;  %5837 = vmatmul.mubr.bf16.gmra.mxu0 %v10144_v30  ;;  %5934 = vmatmul.mubr.bf16.gmra.mxu1 %v10147_v19 }
 0x1f6   : > { %v11667_v20 = vadd.f32 %v8514_v1, %v11491_v36  ;;  %v11670_v26 = vadd.f32 %v8578_v13, %v11494_v56  ;;  %5844 = vmatprep.mubr.bf16.mxu0 %v10152_v33  ;;  %5941 = vmatprep.mubr.bf16.mxu1 %v10155_v3  ;;  %v10162_v36 = vld [vmem:[%s10613_s19 + $0xcdc] ss:$108 sps:$4 sm:$0xff]   ;;  %v10160_v33 = vld [vmem:[%s10613_s19 + $0xcd8] ss:$108 sps:$4 sm:$0xff]   ;;  %v10163_v3 = vld [vmem:[%s10613_s19 + $0x620] ss:$108 sps:$4 sm:$0xff]  }
 0x1f7   : > { %v8516_v54 = vpop.f32.mrf.mxu1  ;;  %v8580_v27 = vpop.f32.mrf.mxu0  ;;  %v10171_v1 = vld [vmem:[%s10613_s19 + $0x44] ss:$108 sps:$4 sm:$0xff]  }
 0x1f8   : > { %v8517_v32 = vadd.f32 %v8516_v54, %v8515_v18  ;;  %v8581_v31 = vadd.f32 %v8580_v27, %v8579_v25 }
 0x1f9   : > { %v8518_v29 = vpop.f32.mrf.mxu1  ;;  %v8582_v24 = vpop.f32.mrf.mxu0 }
 0x1fa   : > { %v11675_v37 = vadd.f32 %v8517_v32, %v11499_v60  ;;  %v11678_v44 = vadd.f32 %v8581_v31, %v11502_v53 }
 0x1fb   : > { %v8519_v56 = vpop.f32.mrf.mxu1  ;;  %v8583_v12 = vpop.f32.mrf.mxu0 }
 0x1fc   : > { %v8520_v49 = vadd.f32 %v8519_v56, %v8518_v29  ;;  %v8584_v42 = vadd.f32 %v8583_v12, %v8582_v24  ;;  %v10178_v12 = vld [vmem:[%s10613_s19 + $0x7d4] ss:$108 sps:$4 sm:$0xff]  }
 0x1fd   : > { %v8521_v52 = vpop.f32.mrf.mxu1  ;;  %v8585_v50 = vpop.f32.mrf.mxu0  ;;  %5845 = vmatmul.mubr.bf16.gmra.mxu0 %v10150_v39  ;;  %5942 = vmatmul.mubr.bf16.gmra.mxu1 %v10153_v9 }
 0x1fe   : > { %v11683_v60 = vadd.f32 %v8520_v49, %v11507_v7  ;;  %v11686_v53 = vadd.f32 %v8584_v42, %v11510_v10  ;;  %5852 = vmatprep.mubr.bf16.mxu0 %v10162_v36  ;;  %5949 = vmatprep.mubr.bf16.mxu1 %v10165_v43  ;;  %v10168_v7 = vld [vmem:[%s10613_s19 + $0x6fc] ss:$108 sps:$4 sm:$0xff]   ;;  %v10166_v36 = vld [vmem:[%s10613_s19 + $0x6f8] ss:$108 sps:$4 sm:$0xff]   ;;  %v10169_v43 = vld [vmem:[%s10613_s19 + $0x40] ss:$108 sps:$4 sm:$0xff]  }
 0x1ff   : > { %v8522_v47 = vpop.f32.mrf.mxu1  ;;  %v8586_v59 = vpop.f32.mrf.mxu0 }
 0x200   : > { %v8523_v22 = vadd.f32 %v8522_v47, %v8521_v52  ;;  %v8587_v0 = vadd.f32 %v8586_v59, %v8585_v50  ;;  %v10181_v52 = vld [vmem:[%s10613_s19 + $0x11c] ss:$108 sps:$4 sm:$0xff]   ;;  %v10189_v50 = vld [vmem:[%s13046_s1 + $0x570] sm:$0xff]  }
 0x201   : > { %v8524_v30 = vpop.f32.mrf.mxu1  ;;  %v8588_v19 = vpop.f32.mrf.mxu0 }
 0x202   : > { %v11691_v58 = vadd.f32 %v8523_v22, %v11515_v17  ;;  %v11694_v23 = vadd.f32 %v8587_v0, %v11518_v63 }
 0x203   : > { %v8525_v10 = vpop.f32.mrf.mxu1  ;;  %v8589_v13 = vpop.f32.mrf.mxu0 }
 0x204   : > { %v8526_v18 = vadd.f32 %v8525_v10, %v8524_v30  ;;  %v8590_v25 = vadd.f32 %v8589_v13, %v8588_v19  ;;  %v10191_v30 = vld [vmem:[%s13046_s1 + $0x530] sm:$0xff]   ;;  %v10179_v13 = vld [vmem:[%s10613_s19 + $0x118] ss:$108 sps:$4 sm:$0xff]  }
 0x205   : > { %v8527_v54 = vpop.f32.mrf.mxu1  ;;  %v8591_v27 = vpop.f32.mrf.mxu0  ;;  %5853 = vmatmul.mubr.bf16.gmra.mxu0 %v10160_v33  ;;  %5950 = vmatmul.mubr.bf16.gmra.mxu1 %v10163_v3  ;;  %v10176_v10 = vld [vmem:[%s10613_s19 + $0x7d0] ss:$108 sps:$4 sm:$0xff]  }
 0x206   : > { %v11699_v32 = vadd.f32 %v8526_v18, %v11523_v41  ;;  %v11702_v17 = vadd.f32 %v8590_v25, %v11526_v16  ;;  %5957 = vmatprep.mubr.bf16.mxu1 %v10168_v7  ;;  %6054 = vmatprep.mubr.bf16.mxu0 %v10171_v1  ;;  %v10175_v16 = vld [vmem:[%s13046_s1 + $0x538] sm:$0xff]  }
 0x207   : > { %v8528_v63 = vpop.f32.mrf.mxu1  ;;  %v8592_v31 = vpop.f32.mrf.mxu0 }
 0x208   : > { %v8529_v29 = vadd.f32 %v8528_v63, %v8527_v54  ;;  %v8593_v24 = vadd.f32 %v8592_v31, %v8591_v27  ;;  %v10184_v54 = vld [vmem:[%s10613_s19 + $0x8ac] ss:$108 sps:$4 sm:$0xff]   ;;  %v10187_v27 = vld [vmem:[%s10613_s19 + $0x1f4] ss:$108 sps:$4 sm:$0xff]  }
 0x209   : > { %v8530_v39 = vpop.f32.mrf.mxu1  ;;  %v8594_v9 = vpop.f32.mrf.mxu0 }
 0x20a   : > { %v11707_v56 = vadd.f32 %v8529_v29, %v11531_v4  ;;  %v11710_v41 = vadd.f32 %v8593_v24, %v11534_v28  ;;  %v10207_v29 = vld [vmem:[%s13046_s1 + $0x528] sm:$0xff]  }
 0x20b   : > { %v8531_v49 = vpop.f32.mrf.mxu1  ;;  %v8595_v42 = vpop.f32.mrf.mxu0 }
 0x20c   : > { %v8532_v47 = vadd.f32 %v8531_v49, %v8530_v39  ;;  %v8596_v59 = vadd.f32 %v8595_v42, %v8594_v9  ;;  %v10223_v49 = vld [vmem:[%s13046_s1 + $0x520] sm:$0xff]  }
 0x20d   : > { %v8597_v22 = vpop.f32.mrf.mxu0  ;;  %v8661_v4 = vpop.f32.mrf.mxu1  ;;  %5958 = vmatmul.mubr.bf16.gmra.mxu1 %v10166_v36  ;;  %6055 = vmatmul.mubr.bf16.vlgmr.msra.gmra.mxu0 %v10169_v43 }
 0x20e   : > { %v11721_v28 = vadd.f32 %v8532_v47, %v11545_v55  ;;  %v11724_v0 = vadd.f32 %v8596_v59, %v11548_v2  ;;  %9206 = vmatpush3.bf16.msra.mxu0 %v10175_v16  ;;  %5965 = vmatprep.mubr.bf16.mxu1 %v10178_v12  ;;  %v10205_v55 = vld [vmem:[%s13046_s1 + $0x568] sm:$0xff]   ;;  %v10185_v59 = vld [vmem:[%s10613_s19 + $0x1f0] ss:$108 sps:$4 sm:$0xff]  }
 0x20f   : > { %v8598_v19 = vpop.f32.mrf.mxu0  ;;  %v8662_v33 = vpop.f32.mrf.mxu1  ;;  %6062 = vmatprep.mubr.bf16.mxu0 %v10181_v52  ;;  %9207 = vmatprep.subr.bf16.mxu0 %v10189_v50  ;;  %v10182_v47 = vld [vmem:[%s10613_s19 + $0x8a8] ss:$108 sps:$4 sm:$0xff]  }
 0x210   : > { %v8599_v3 = vadd.f32 %v8598_v19, %v8597_v22  ;;  %v8663_v7 = vadd.f32 %v8662_v33, %v8661_v4  ;;  %v10197_v19 = vld [vmem:[%s10613_s19 + $0x2cc] ss:$108 sps:$4 sm:$0xff]  }
 0x211   : > { %v8600_v2 = vpop.f32.mrf.mxu0  ;;  %v8664_v1 = vpop.f32.mrf.mxu1 }
 0x212   : > { %v11735_v18 = vadd.f32 %v8599_v3, %v11559_v35  ;;  %v11738_v25 = vadd.f32 %v8663_v7, %v11562_v62  ;;  %9208 = vmatpush3.bf16.msra.mxu0 %v10191_v30  ;;  %v10221_v35 = vld [vmem:[%s13046_s1 + $0x560] sm:$0xff]   ;;  %v10238_v3 = vld [vmem:[%s13046_s1 + $0x518] sm:$0xff]  }
 0x213   : > { %v8601_v63 = vpop.f32.mrf.mxu0  ;;  %v8665_v31 = vpop.f32.mrf.mxu1  ;;  %9209 = vmatprep.subr.bf16.mxu0 %v10205_v55  ;;  %v10194_v30 = vld [vmem:[%s10613_s19 + $0x984] ss:$108 sps:$4 sm:$0xff]  }
 0x214   : > { %v8602_v24 = vadd.f32 %v8601_v63, %v8600_v2  ;;  %v8666_v39 = vadd.f32 %v8665_v31, %v8664_v1  ;;  %v10254_v63 = vld [vmem:[%s13046_s1 + $0x510] sm:$0xff]  }
 0x215   : > { %v8603_v9 = vpop.f32.mrf.mxu0  ;;  %v8667_v36 = vpop.f32.mrf.mxu1  ;;  %5966 = vmatmul.mubr.bf16.gmra.mxu1 %v10176_v10  ;;  %6063 = vmatmul.mubr.bf16.gmra.mxu0 %v10179_v13 }
 0x216   : > { %v11749_v62 = vadd.f32 %v8602_v24, %v11573_v51  ;;  %v11752_v43 = vadd.f32 %v8666_v39, %v11576_v6  ;;  %5973 = vmatprep.mubr.bf16.mxu1 %v10184_v54  ;;  %6070 = vmatprep.mubr.bf16.mxu0 %v10187_v27  ;;  %v10236_v51 = vld [vmem:[%s13046_s1 + $0x558] sm:$0xff]   ;;  %v10192_v39 = vld [vmem:[%s10613_s19 + $0x980] ss:$108 sps:$4 sm:$0xff]  }
 0x217   : > { %v8604_v16 = vpop.f32.mrf.mxu0  ;;  %v8668_v12 = vpop.f32.mrf.mxu1  ;;  %9210 = vmatpush3.bf16.msra.mxu0 %v10207_v29 }
 0x218   : > { %v8605_v42 = vadd.f32 %v8604_v16, %v8603_v9  ;;  %v8669_v52 = vadd.f32 %v8668_v12, %v8667_v36  ;;  %9211 = vmatprep.subr.bf16.mxu0 %v10221_v35  ;;  %v10195_v35 = vld [vmem:[%s10613_s19 + $0x2c8] ss:$108 sps:$4 sm:$0xff]   ;;  %v10203_v12 = vld [vmem:[%s10613_s19 + $0x3a4] ss:$108 sps:$4 sm:$0xff]  }
 0x219   : > { %v8606_v6 = vpop.f32.mrf.mxu0  ;;  %v8670_v50 = vpop.f32.mrf.mxu1  ;;  %v10200_v16 = vld [vmem:[%s10613_s19 + $0xa5c] ss:$108 sps:$4 sm:$0xff]  }
 0x21a   : > { %v11763_v22 = vadd.f32 %v8605_v42, %v11587_v38  ;;  %v11766_v4 = vadd.f32 %v8669_v52, %v11590_v11  ;;  %v10252_v38 = vld [vmem:[%s13046_s1 + $0x550] sm:$0xff]   ;;  %v10270_v52 = vld [vmem:[%s13046_s1 + $0x508] sm:$0xff]  }
 0x21b   : > { %v8607_v33 = vpop.f32.mrf.mxu0  ;;  %v8671_v55 = vpop.f32.mrf.mxu1  ;;  %9212 = vmatpush3.bf16.msra.mxu0 %v10223_v49 }
 0x21c   : > { %v8608_v7 = vadd.f32 %v8607_v33, %v8606_v6  ;;  %v8672_v2 = vadd.f32 %v8671_v55, %v8670_v50  ;;  %9213 = vmatprep.subr.bf16.mxu0 %v10236_v51  ;;  %v10286_v33 = vld [vmem:[%s13046_s1 + $0x500] sm:$0xff]  }
 0x21d   : > { %v8609_v1 = vpop.f32.mrf.mxu0  ;;  %v8673_v10 = vpop.f32.mrf.mxu1  ;;  %5974 = vmatmul.mubr.bf16.gmra.mxu1 %v10182_v47  ;;  %6071 = vmatmul.mubr.bf16.gmra.mxu0 %v10185_v59 }
 0x21e   : > { %v11777_v11 = vadd.f32 %v8608_v7, %v11601_v46  ;;  %v11780_v13 = vadd.f32 %v8672_v2, %v11604_v14  ;;  %5981 = vmatprep.mubr.bf16.mxu1 %v10194_v30  ;;  %6078 = vmatprep.mubr.bf16.mxu0 %v10197_v19  ;;  %v10268_v46 = vld [vmem:[%s13046_s1 + $0x548] sm:$0xff]   ;;  %v10198_v2 = vld [vmem:[%s10613_s19 + $0xa58] ss:$108 sps:$4 sm:$0xff]  }
 0x21f   : > { %v8610_v54 = vpop.f32.mrf.mxu0  ;;  %v8674_v27 = vpop.f32.mrf.mxu1  ;;  %9214 = vmatpush3.bf16.msra.mxu0 %v10238_v3 }
 0x220   : > { %v8611_v31 = vadd.f32 %v8610_v54, %v8609_v1  ;;  %v8675_v29 = vadd.f32 %v8674_v27, %v8673_v10  ;;  %9215 = vmatprep.subr.bf16.mxu0 %v10252_v38  ;;  %v10201_v38 = vld [vmem:[%s10613_s19 + $0x3a0] ss:$108 sps:$4 sm:$0xff]   ;;  %v10213_v27 = vld [vmem:[%s10613_s19 + $0x47c] ss:$108 sps:$4 sm:$0xff]  }
 0x221   : > { %v8612_v14 = vpop.f32.mrf.mxu0  ;;  %v8676_v24 = vpop.f32.mrf.mxu1  ;;  %v10210_v54 = vld [vmem:[%s10613_s19 + $0xb34] ss:$108 sps:$4 sm:$0xff]  }
 0x222   : > { %v11791_v9 = vadd.f32 %v8611_v31, %v11615_v57  ;;  %v11794_v36 = vadd.f32 %v8675_v29, %v11618_v15  ;;  %v10284_v57 = vld [vmem:[%s13046_s1 + $0x540] sm:$0xff]  }
 0x223   : > { %v8613_v49 = vpop.f32.mrf.mxu0  ;;  %v8677_v42 = vpop.f32.mrf.mxu1  ;;  %9216 = vmatpush3.bf16.msra.mxu0 %v10254_v63 }
 0x224   : > { %v8614_v51 = vadd.f32 %v8613_v49, %v8612_v14  ;;  %v8678_v6 = vadd.f32 %v8677_v42, %v8676_v24  ;;  %9217 = vmatprep.subr.bf16.mxu0 %v10268_v46 }
 0x225   : > { %v8615_v50 = vpop.f32.mrf.mxu0  ;;  %v8679_v47 = vpop.f32.mrf.mxu1  ;;  %5982 = vmatmul.mubr.bf16.gmra.mxu1 %v10192_v39  ;;  %6079 = vmatmul.mubr.bf16.gmra.mxu0 %v10195_v35 }
 0x226   : > { %v11805_v15 = vadd.f32 %v8614_v51, %v11629_v5  ;;  %v11808_v59 = vadd.f32 %v8678_v6, %v11632_v40  ;;  %5989 = vmatprep.mubr.bf16.mxu1 %v10200_v16  ;;  %6086 = vmatprep.mubr.bf16.mxu0 %v10203_v12  ;;  %v10301_v5 = vld [vmem:[%s13046_s1 + $0x678] sm:$0xff]  }
 0x227   : > { %v8616_v30 = vpop.f32.mrf.mxu0  ;;  %v8680_v19 = vpop.f32.mrf.mxu1  ;;  %9218 = vmatpush3.bf16.msra.mxu0 %v10270_v52  ;;  %v10208_v52 = vld [vmem:[%s10613_s19 + $0xb30] ss:$108 sps:$4 sm:$0xff]   ;;  %v10211_v51 = vld [vmem:[%s10613_s19 + $0x478] ss:$108 sps:$4 sm:$0xff]  }
 0x228   : > { %v8617_v55 = vadd.f32 %v8616_v30, %v8615_v50  ;;  %v8681_v3 = vadd.f32 %v8680_v19, %v8679_v47  ;;  %9219 = vmatprep.subr.bf16.mxu0 %v10284_v57  ;;  %v10219_v50 = vld [vmem:[%s10613_s19 + $0x554] ss:$108 sps:$4 sm:$0xff]  }
 0x229   : > { %v8618_v40 = vpop.f32.mrf.mxu0  ;;  %v8682_v7 = vpop.f32.mrf.mxu1 }
 0x22a   : > { %v11819_v1 = vadd.f32 %v8617_v55, %v11643_v21  ;;  %v11822_v10 = vadd.f32 %v8681_v3, %v11646_v34 }
 0x22b   : > { %v8619_v63 = vpop.f32.mrf.mxu0  ;;  %v8683_v31 = vpop.f32.mrf.mxu1  ;;  %9220 = vmatpush3.bf16.msra.mxu0 %v10286_v33 }
 0x22c   : > { %v8620_v29 = vadd.f32 %v8619_v63, %v8618_v40  ;;  %v8684_v46 = vadd.f32 %v8683_v31, %v8682_v7  ;;  %9429 = vmatprep.subr.bf16.mxu0 %v10301_v5 }
 0x22d   : > { %v8621_v14 = vpop.f32.mrf.mxu0  ;;  %v8685_v24 = vpop.f32.mrf.mxu1  ;;  %5990 = vmatmul.mubr.bf16.gmra.mxu1 %v10198_v2  ;;  %6087 = vmatmul.mubr.bf16.gmra.mxu0 %v10201_v38 }
 0x22e   : > { %v11827_v21 = vadd.f32 %v8620_v29, %v11651_v45  ;;  %v11830_v34 = vadd.f32 %v8684_v46, %v11654_v48  ;;  %5997 = vmatprep.mubr.bf16.mxu1 %v10210_v54  ;;  %6094 = vmatprep.mubr.bf16.mxu0 %v10213_v27  ;;  %v10216_v45 = vld [vmem:[%s10613_s19 + $0xc0c] ss:$108 sps:$4 sm:$0xff]   ;;  %v10214_v54 = vld [vmem:[%s10613_s19 + $0xc08] ss:$108 sps:$4 sm:$0xff]   ;;  %v10217_v27 = vld [vmem:[%s10613_s19 + $0x550] ss:$108 sps:$4 sm:$0xff]  }
 0x22f   : > { %v8622_v39 = vpop.f32.mrf.mxu0  ;;  %v8686_v35 = vpop.f32.mrf.mxu1  ;;  %v10229_v29 = vld [vmem:[%s10613_s19 + $0x62c] ss:$108 sps:$4 sm:$0xff]  }
 0x230   : > { %v8623_v16 = vadd.f32 %v8622_v39, %v8621_v14  ;;  %v8687_v12 = vadd.f32 %v8686_v35, %v8685_v24 }
 0x231   : > { %v8624_v49 = vpop.f32.mrf.mxu0  ;;  %v8688_v42 = vpop.f32.mrf.mxu1 }
 0x232   : > { %v11835_v6 = vadd.f32 %v8623_v16, %v11659_v8  ;;  %v11838_v57 = vadd.f32 %v8687_v12, %v11662_v61 }
 0x233   : > { %v8625_v48 = vpop.f32.mrf.mxu0  ;;  %v8689_v47 = vpop.f32.mrf.mxu1 }
 0x234   : > { %v8626_v30 = vadd.f32 %v8625_v48, %v8624_v49  ;;  %v8690_v19 = vadd.f32 %v8689_v47, %v8688_v42 }
 0x235   : > { %v8627_v33 = vpop.f32.mrf.mxu0  ;;  %v8691_v55 = vpop.f32.mrf.mxu1  ;;  %5998 = vmatmul.mubr.bf16.gmra.mxu1 %v10208_v52  ;;  %6095 = vmatmul.mubr.bf16.gmra.mxu0 %v10211_v51 }
 0x236   : > { %v11843_v8 = vadd.f32 %v8626_v30, %v11667_v20  ;;  %v11846_v61 = vadd.f32 %v8690_v19, %v11670_v26  ;;  %6005 = vmatprep.mubr.bf16.mxu1 %v10216_v45  ;;  %6102 = vmatprep.mubr.bf16.mxu0 %v10219_v50  ;;  %v10226_v20 = vld [vmem:[%s10613_s19 + $0xce4] ss:$108 sps:$4 sm:$0xff]   ;;  %v10224_v45 = vld [vmem:[%s10613_s19 + $0xce0] ss:$108 sps:$4 sm:$0xff]   ;;  %v10227_v50 = vld [vmem:[%s10613_s19 + $0x628] ss:$108 sps:$4 sm:$0xff]  }
 0x237   : > { %v8628_v3 = vpop.f32.mrf.mxu0  ;;  %v8692_v5 = vpop.f32.mrf.mxu1  ;;  %v10235_v30 = vld [vmem:[%s10613_s19 + $0x4c] ss:$108 sps:$4 sm:$0xff]  }
 0x238   : > { %v8629_v40 = vadd.f32 %v8628_v3, %v8627_v33  ;;  %v8693_v7 = vadd.f32 %v8692_v5, %v8691_v55 }
 0x239   : > { %v8630_v2 = vpop.f32.mrf.mxu0  ;;  %v8694_v38 = vpop.f32.mrf.mxu1 }
 0x23a   : > { %v11851_v63 = vadd.f32 %v8629_v40, %v11675_v37  ;;  %v11854_v31 = vadd.f32 %v8693_v7, %v11678_v44 }
 0x23b   : > { %v8631_v26 = vpop.f32.mrf.mxu0  ;;  %v8695_v46 = vpop.f32.mrf.mxu1 }
 0x23c   : > { %v8632_v14 = vadd.f32 %v8631_v26, %v8630_v2  ;;  %v8696_v24 = vadd.f32 %v8695_v46, %v8694_v38  ;;  %v10242_v46 = vld [vmem:[%s10613_s19 + $0x7dc] ss:$108 sps:$4 sm:$0xff]  }
 0x23d   : > { %v8633_v39 = vpop.f32.mrf.mxu0  ;;  %v8697_v35 = vpop.f32.mrf.mxu1  ;;  %6006 = vmatmul.mubr.bf16.gmra.mxu1 %v10214_v54  ;;  %6103 = vmatmul.mubr.bf16.gmra.mxu0 %v10217_v27 }
 0x23e   : > { %v11859_v37 = vadd.f32 %v8632_v14, %v11683_v60  ;;  %v11862_v44 = vadd.f32 %v8696_v24, %v11686_v53  ;;  %6013 = vmatprep.mubr.bf16.mxu1 %v10226_v20  ;;  %6110 = vmatprep.mubr.bf16.mxu0 %v10229_v29  ;;  %v10232_v60 = vld [vmem:[%s10613_s19 + $0x704] ss:$108 sps:$4 sm:$0xff]   ;;  %v10230_v20 = vld [vmem:[%s10613_s19 + $0x700] ss:$108 sps:$4 sm:$0xff]   ;;  %v10233_v29 = vld [vmem:[%s10613_s19 + $0x48] ss:$108 sps:$4 sm:$0xff]  }
 0x23f   : > { %v8634_v16 = vpop.f32.mrf.mxu0  ;;  %v8698_v12 = vpop.f32.mrf.mxu1 }
 0x240   : > { %v8635_v49 = vadd.f32 %v8634_v16, %v8633_v39  ;;  %v8699_v42 = vadd.f32 %v8698_v12, %v8697_v35  ;;  %v10245_v39 = vld [vmem:[%s10613_s19 + $0x124] ss:$108 sps:$4 sm:$0xff]  }
 0x241   : > { %v8636_v52 = vpop.f32.mrf.mxu0  ;;  %v8700_v51 = vpop.f32.mrf.mxu1  ;;  %v10253_v35 = vld [vmem:[%s13046_s1 + $0x5f0] sm:$0xff]  }
 0x242   : > { %v11867_v48 = vadd.f32 %v8635_v49, %v11691_v58  ;;  %v11870_v47 = vadd.f32 %v8699_v42, %v11694_v23 }
 0x243   : > { %v8637_v53 = vpop.f32.mrf.mxu0  ;;  %v8701_v19 = vpop.f32.mrf.mxu1 }
 0x244   : > { %v8638_v33 = vadd.f32 %v8637_v53, %v8636_v52  ;;  %v8702_v55 = vadd.f32 %v8701_v19, %v8700_v51  ;;  %v10255_v52 = vld [vmem:[%s13046_s1 + $0x5b0] sm:$0xff]   ;;  %v10240_v53 = vld [vmem:[%s10613_s19 + $0x7d8] ss:$108 sps:$4 sm:$0xff]   ;;  %v10243_v19 = vld [vmem:[%s10613_s19 + $0x120] ss:$108 sps:$4 sm:$0xff]  }
 0x245   : > { %v8639_v3 = vpop.f32.mrf.mxu0  ;;  %v8703_v5 = vpop.f32.mrf.mxu1  ;;  %6014 = vmatmul.mubr.bf16.gmra.mxu1 %v10224_v45  ;;  %6111 = vmatmul.mubr.bf16.gmra.mxu0 %v10227_v50 }
 0x246   : > { %v11875_v40 = vadd.f32 %v8638_v33, %v11699_v32  ;;  %v11878_v58 = vadd.f32 %v8702_v55, %v11702_v17  ;;  %6118 = vmatprep.mubr.bf16.mxu0 %v10232_v60  ;;  %6215 = vmatprep.mubr.bf16.mxu1 %v10235_v30  ;;  %v10239_v17 = vld [vmem:[%s13046_s1 + $0x5b8] sm:$0xff]  }
 0x247   : > { %v8640_v23 = vpop.f32.mrf.mxu0  ;;  %v8704_v7 = vpop.f32.mrf.mxu1 }
 0x248   : > { %v8641_v2 = vadd.f32 %v8640_v23, %v8639_v3  ;;  %v8705_v38 = vadd.f32 %v8704_v7, %v8703_v5  ;;  %v10248_v3 = vld [vmem:[%s10613_s19 + $0x8b4] ss:$108 sps:$4 sm:$0xff]   ;;  %v10251_v5 = vld [vmem:[%s10613_s19 + $0x1fc] ss:$108 sps:$4 sm:$0xff]  }
 0x249   : > { %v8642_v54 = vpop.f32.mrf.mxu0  ;;  %v8706_v27 = vpop.f32.mrf.mxu1 }
 0x24a   : > { %v11883_v26 = vadd.f32 %v8641_v2, %v11707_v56  ;;  %v11886_v32 = vadd.f32 %v8705_v38, %v11710_v41  ;;  %v10271_v2 = vld [vmem:[%s13046_s1 + $0x5a8] sm:$0xff]  }
 0x24b   : > { %v8643_v14 = vpop.f32.mrf.mxu0  ;;  %v8707_v24 = vpop.f32.mrf.mxu1 }
 0x24c   : > { %v8644_v16 = vadd.f32 %v8643_v14, %v8642_v54  ;;  %v8708_v12 = vadd.f32 %v8707_v24, %v8706_v27  ;;  %v10287_v14 = vld [vmem:[%s13046_s1 + $0x5a0] sm:$0xff]  }
 0x24d   : > { %v8709_v49 = vpop.f32.mrf.mxu1  ;;  %v8773_v56 = vpop.f32.mrf.mxu0  ;;  %6119 = vmatmul.mubr.bf16.gmra.mxu0 %v10230_v20  ;;  %6216 = vmatmul.mubr.bf16.vlgmr.msra.gmra.mxu1 %v10233_v29 }
 0x24e   : > { %v11897_v41 = vadd.f32 %v8644_v16, %v11721_v28  ;;  %v11900_v42 = vadd.f32 %v8708_v12, %v11724_v0  ;;  %9318 = vmatpush3.bf16.msra.mxu1 %v10239_v17  ;;  %6126 = vmatprep.mubr.bf16.mxu0 %v10242_v46  ;;  %v10269_v28 = vld [vmem:[%s13046_s1 + $0x5e8] sm:$0xff]   ;;  %v10246_v16 = vld [vmem:[%s10613_s19 + $0x8b0] ss:$108 sps:$4 sm:$0xff]   ;;  %v10249_v12 = vld [vmem:[%s10613_s19 + $0x1f8] ss:$108 sps:$4 sm:$0xff]  }
 0x24f   : > { %v8710_v51 = vpop.f32.mrf.mxu1  ;;  %v8774_v45 = vpop.f32.mrf.mxu0  ;;  %6223 = vmatprep.mubr.bf16.mxu1 %v10245_v39  ;;  %9319 = vmatprep.subr.bf16.mxu1 %v10253_v35 }
 0x250   : > { %v8711_v50 = vadd.f32 %v8710_v51, %v8709_v49  ;;  %v8775_v60 = vadd.f32 %v8774_v45, %v8773_v56  ;;  %v10261_v51 = vld [vmem:[%s10613_s19 + $0x2d4] ss:$108 sps:$4 sm:$0xff]  }
 0x251   : > { %v8712_v0 = vpop.f32.mrf.mxu1  ;;  %v8776_v30 = vpop.f32.mrf.mxu0 }
 0x252   : > { %v11911_v33 = vadd.f32 %v8711_v50, %v11735_v18  ;;  %v11914_v55 = vadd.f32 %v8775_v60, %v11738_v25  ;;  %9320 = vmatpush3.bf16.msra.mxu1 %v10255_v52  ;;  %v10285_v18 = vld [vmem:[%s13046_s1 + $0x5e0] sm:$0xff]   ;;  %v10258_v52 = vld [vmem:[%s10613_s19 + $0x98c] ss:$108 sps:$4 sm:$0xff]  }
 0x253   : > { %v8713_v23 = vpop.f32.mrf.mxu1  ;;  %v8777_v7 = vpop.f32.mrf.mxu0  ;;  %9321 = vmatprep.subr.bf16.mxu1 %v10269_v28  ;;  %v10302_v50 = vld [vmem:[%s13046_s1 + $0x598] sm:$0xff]  }
 0x254   : > { %v8714_v38 = vadd.f32 %v8713_v23, %v8712_v0  ;;  %v8778_v54 = vadd.f32 %v8777_v7, %v8776_v30  ;;  %v10318_v23 = vld [vmem:[%s13046_s1 + $0x590] sm:$0xff]  }
 0x255   : > { %v8715_v27 = vpop.f32.mrf.mxu1  ;;  %v8779_v20 = vpop.f32.mrf.mxu0  ;;  %6127 = vmatmul.mubr.bf16.gmra.mxu0 %v10240_v53  ;;  %6224 = vmatmul.mubr.bf16.gmra.mxu1 %v10243_v19 }
 0x256   : > { %v11925_v25 = vadd.f32 %v8714_v38, %v11749_v62  ;;  %v11928_v29 = vadd.f32 %v8778_v54, %v11752_v43  ;;  %6134 = vmatprep.mubr.bf16.mxu0 %v10248_v3  ;;  %6231 = vmatprep.mubr.bf16.mxu1 %v10251_v5  ;;  %v10300_v62 = vld [vmem:[%s13046_s1 + $0x5d8] sm:$0xff]   ;;  %v10256_v54 = vld [vmem:[%s10613_s19 + $0x988] ss:$108 sps:$4 sm:$0xff]  }
 0x257   : > { %v8716_v17 = vpop.f32.mrf.mxu1  ;;  %v8780_v46 = vpop.f32.mrf.mxu0  ;;  %9322 = vmatpush3.bf16.msra.mxu1 %v10271_v2 }
 0x258   : > { %v8717_v24 = vadd.f32 %v8716_v17, %v8715_v27  ;;  %v8781_v39 = vadd.f32 %v8780_v46, %v8779_v20  ;;  %9323 = vmatprep.subr.bf16.mxu1 %v10285_v18  ;;  %v10259_v18 = vld [vmem:[%s10613_s19 + $0x2d0] ss:$108 sps:$4 sm:$0xff]   ;;  %v10267_v46 = vld [vmem:[%s10613_s19 + $0x3ac] ss:$108 sps:$4 sm:$0xff]  }
 0x259   : > { %v8718_v43 = vpop.f32.mrf.mxu1  ;;  %v8782_v35 = vpop.f32.mrf.mxu0  ;;  %v10264_v17 = vld [vmem:[%s10613_s19 + $0xa64] ss:$108 sps:$4 sm:$0xff]  }
 0x25a   : > { %v11939_v49 = vadd.f32 %v8717_v24, %v11763_v22  ;;  %v11942_v56 = vadd.f32 %v8781_v39, %v11766_v4  ;;  %v10316_v22 = vld [vmem:[%s13046_s1 + $0x5d0] sm:$0xff]   ;;  %v10334_v39 = vld [vmem:[%s13046_s1 + $0x588] sm:$0xff]  }
 0x25b   : > { %v8719_v45 = vpop.f32.mrf.mxu1  ;;  %v8783_v28 = vpop.f32.mrf.mxu0  ;;  %9324 = vmatpush3.bf16.msra.mxu1 %v10287_v14 }
 0x25c   : > { %v8720_v60 = vadd.f32 %v8719_v45, %v8718_v43  ;;  %v8784_v0 = vadd.f32 %v8783_v28, %v8782_v35  ;;  %9325 = vmatprep.subr.bf16.mxu1 %v10300_v62  ;;  %v10350_v45 = vld [vmem:[%s13046_s1 + $0x580] sm:$0xff]  }
 0x25d   : > { %v8721_v30 = vpop.f32.mrf.mxu1  ;;  %v8785_v53 = vpop.f32.mrf.mxu0  ;;  %6135 = vmatmul.mubr.bf16.gmra.mxu0 %v10246_v16  ;;  %6232 = vmatmul.mubr.bf16.gmra.mxu1 %v10249_v12 }
 0x25e   : > { %v11953_v4 = vadd.f32 %v8720_v60, %v11777_v11  ;;  %v11956_v19 = vadd.f32 %v8784_v0, %v11780_v13  ;;  %6142 = vmatprep.mubr.bf16.mxu0 %v10258_v52  ;;  %6239 = vmatprep.mubr.bf16.mxu1 %v10261_v51  ;;  %v10332_v11 = vld [vmem:[%s13046_s1 + $0x5c8] sm:$0xff]  }
 0x25f   : > { %v8722_v3 = vpop.f32.mrf.mxu1  ;;  %v8786_v5 = vpop.f32.mrf.mxu0  ;;  %9326 = vmatpush3.bf16.msra.mxu1 %v10302_v50  ;;  %v10262_v0 = vld [vmem:[%s10613_s19 + $0xa60] ss:$108 sps:$4 sm:$0xff]  }
 0x260   : > { %v8723_v7 = vadd.f32 %v8722_v3, %v8721_v30  ;;  %v8787_v2 = vadd.f32 %v8786_v5, %v8785_v53  ;;  %9327 = vmatprep.subr.bf16.mxu1 %v10316_v22  ;;  %v10265_v22 = vld [vmem:[%s10613_s19 + $0x3a8] ss:$108 sps:$4 sm:$0xff]   ;;  %v10277_v5 = vld [vmem:[%s10613_s19 + $0x484] ss:$108 sps:$4 sm:$0xff]  }
 0x261   : > { %v8724_v13 = vpop.f32.mrf.mxu1  ;;  %v8788_v38 = vpop.f32.mrf.mxu0  ;;  %v10274_v3 = vld [vmem:[%s10613_s19 + $0xb3c] ss:$108 sps:$4 sm:$0xff]  }
 0x262   : > { %v11967_v27 = vadd.f32 %v8723_v7, %v11791_v9  ;;  %v11970_v20 = vadd.f32 %v8787_v2, %v11794_v36  ;;  %v10348_v9 = vld [vmem:[%s13046_s1 + $0x5c0] sm:$0xff]  }
 0x263   : > { %v8725_v14 = vpop.f32.mrf.mxu1  ;;  %v8789_v24 = vpop.f32.mrf.mxu0  ;;  %9328 = vmatpush3.bf16.msra.mxu1 %v10318_v23 }
 0x264   : > { %v8726_v62 = vadd.f32 %v8725_v14, %v8724_v13  ;;  %v8790_v43 = vadd.f32 %v8789_v24, %v8788_v38  ;;  %9329 = vmatprep.subr.bf16.mxu1 %v10332_v11 }
 0x265   : > { %v8727_v35 = vpop.f32.mrf.mxu1  ;;  %v8791_v16 = vpop.f32.mrf.mxu0  ;;  %6143 = vmatmul.mubr.bf16.gmra.mxu0 %v10256_v54  ;;  %6240 = vmatmul.mubr.bf16.gmra.mxu1 %v10259_v18 }
 0x266   : > { %v11981_v36 = vadd.f32 %v8726_v62, %v11805_v15  ;;  %v11984_v12 = vadd.f32 %v8790_v43, %v11808_v59  ;;  %6150 = vmatprep.mubr.bf16.mxu0 %v10264_v17  ;;  %6247 = vmatprep.mubr.bf16.mxu1 %v10267_v46  ;;  %v11992_v15 = vld [vmem:[%s13046_s1 + $0x6b8] sm:$0xff]   ;;  %v10275_v62 = vld [vmem:[%s10613_s19 + $0x480] ss:$108 sps:$4 sm:$0xff]  }
 0x267   : > { %v8728_v52 = vpop.f32.mrf.mxu1  ;;  %v8792_v51 = vpop.f32.mrf.mxu0  ;;  %9330 = vmatpush3.bf16.msra.mxu1 %v10334_v39  ;;  %v10272_v39 = vld [vmem:[%s10613_s19 + $0xb38] ss:$108 sps:$4 sm:$0xff]  }
 0x268   : > { %v8729_v28 = vadd.f32 %v8728_v52, %v8727_v35  ;;  %v8793_v50 = vadd.f32 %v8792_v51, %v8791_v16  ;;  %9331 = vmatprep.subr.bf16.mxu1 %v10348_v9  ;;  %v10283_v35 = vld [vmem:[%s10613_s19 + $0x55c] ss:$108 sps:$4 sm:$0xff]  }
 0x269   : > { %v8730_v59 = vpop.f32.mrf.mxu1  ;;  %v8794_v60 = vpop.f32.mrf.mxu0 }
 0x26a   : > { %v11997_v30 = vadd.f32 %v8729_v28, %v11819_v1  ;;  %v12000_v53 = vadd.f32 %v8793_v50, %v11822_v10 }
 0x26b   : > { %v8731_v23 = vpop.f32.mrf.mxu1  ;;  %v8795_v7 = vpop.f32.mrf.mxu0  ;;  %9332 = vmatpush3.bf16.msra.mxu1 %v10350_v45 }
 0x26c   : > { %v8732_v2 = vadd.f32 %v8731_v23, %v8730_v59  ;;  %v8796_v11 = vadd.f32 %v8795_v7, %v8794_v60  ;;  %9565 = vmatprep.subr.bf16.mxu1 %v11992_v15  ;;  %v10281_v23 = vld [vmem:[%s10613_s19 + $0x558] ss:$108 sps:$4 sm:$0xff]  }
 0x26d   : > { %v8733_v13 = vpop.f32.mrf.mxu1  ;;  %v8797_v38 = vpop.f32.mrf.mxu0  ;;  %6151 = vmatmul.mubr.bf16.gmra.mxu0 %v10262_v0  ;;  %6248 = vmatmul.mubr.bf16.gmra.mxu1 %v10265_v22 }
 0x26e   : > { %v12006_v1 = vadd.f32 %v8732_v2, %v11827_v21  ;;  %v12009_v10 = vadd.f32 %v8796_v11, %v11830_v34  ;;  %6158 = vmatprep.mubr.bf16.mxu0 %v10274_v3  ;;  %6255 = vmatprep.mubr.bf16.mxu1 %v10277_v5  ;;  %v10280_v21 = vld [vmem:[%s10613_s19 + $0xc14] ss:$108 sps:$4 sm:$0xff]   ;;  %v10278_v5 = vld [vmem:[%s10613_s19 + $0xc10] ss:$108 sps:$4 sm:$0xff]  }
 0x26f   : > { %v8734_v54 = vpop.f32.mrf.mxu1  ;;  %v8798_v18 = vpop.f32.mrf.mxu0  ;;  %v10293_v11 = vld [vmem:[%s10613_s19 + $0x634] ss:$108 sps:$4 sm:$0xff]  }
 0x270   : > { %v8735_v17 = vadd.f32 %v8734_v54, %v8733_v13  ;;  %v8799_v46 = vadd.f32 %v8798_v18, %v8797_v38 }
 0x271   : > { %v8736_v14 = vpop.f32.mrf.mxu1  ;;  %v8800_v24 = vpop.f32.mrf.mxu0 }
 0x272   : > { %v12014_v43 = vadd.f32 %v8735_v17, %v11835_v6  ;;  %v12017_v9 = vadd.f32 %v8799_v46, %v11838_v57 }
 0x273   : > { %v8737_v34 = vpop.f32.mrf.mxu1  ;;  %v8801_v16 = vpop.f32.mrf.mxu0 }
 0x274   : > { %v8738_v52 = vadd.f32 %v8737_v34, %v8736_v14  ;;  %v8802_v51 = vadd.f32 %v8801_v16, %v8800_v24  ;;  %v10291_v34 = vld [vmem:[%s10613_s19 + $0x630] ss:$108 sps:$4 sm:$0xff]  }
 0x275   : > { %v8739_v45 = vpop.f32.mrf.mxu1  ;;  %v8803_v28 = vpop.f32.mrf.mxu0  ;;  %6159 = vmatmul.mubr.bf16.gmra.mxu0 %v10272_v39  ;;  %6256 = vmatmul.mubr.bf16.gmra.mxu1 %v10275_v62 }
 0x276   : > { %v12022_v6 = vadd.f32 %v8738_v52, %v11843_v8  ;;  %v12025_v57 = vadd.f32 %v8802_v51, %v11846_v61  ;;  %6166 = vmatprep.mubr.bf16.mxu0 %v10280_v21  ;;  %6263 = vmatprep.mubr.bf16.mxu1 %v10283_v35  ;;  %v10290_v8 = vld [vmem:[%s10613_s19 + $0xcec] ss:$108 sps:$4 sm:$0xff]   ;;  %v10288_v35 = vld [vmem:[%s10613_s19 + $0xce8] ss:$108 sps:$4 sm:$0xff]  }
 0x277   : > { %v8740_v50 = vpop.f32.mrf.mxu1  ;;  %v8804_v59 = vpop.f32.mrf.mxu0  ;;  %v10299_v51 = vld [vmem:[%s10613_s19 + $0x54] ss:$108 sps:$4 sm:$0xff]  }
 0x278   : > { %v8741_v60 = vadd.f32 %v8740_v50, %v8739_v45  ;;  %v8805_v0 = vadd.f32 %v8804_v59, %v8803_v28 }
 0x279   : > { %v8742_v22 = vpop.f32.mrf.mxu1  ;;  %v8806_v3 = vpop.f32.mrf.mxu0 }
 0x27a   : > { %v12030_v7 = vadd.f32 %v8741_v60, %v11851_v63  ;;  %v12033_v2 = vadd.f32 %v8805_v0, %v11854_v31 }
 0x27b   : > { %v8743_v61 = vpop.f32.mrf.mxu1  ;;  %v8807_v13 = vpop.f32.mrf.mxu0 }
 0x27c   : > { %v8744_v38 = vadd.f32 %v8743_v61, %v8742_v22  ;;  %v8808_v54 = vadd.f32 %v8807_v13, %v8806_v3  ;;  %v10297_v61 = vld [vmem:[%s10613_s19 + $0x50] ss:$108 sps:$4 sm:$0xff]  }
 0x27d   : > { %v8745_v18 = vpop.f32.mrf.mxu1  ;;  %v8809_v17 = vpop.f32.mrf.mxu0  ;;  %6167 = vmatmul.mubr.bf16.gmra.mxu0 %v10278_v5  ;;  %6264 = vmatmul.mubr.bf16.gmra.mxu1 %v10281_v23 }
 0x27e   : > { %v12038_v63 = vadd.f32 %v8744_v38, %v11859_v37  ;;  %v12041_v31 = vadd.f32 %v8808_v54, %v11862_v44  ;;  %6174 = vmatprep.mubr.bf16.mxu0 %v10290_v8  ;;  %6271 = vmatprep.mubr.bf16.mxu1 %v10293_v11  ;;  %v10296_v37 = vld [vmem:[%s10613_s19 + $0x70c] ss:$108 sps:$4 sm:$0xff]   ;;  %v10294_v11 = vld [vmem:[%s10613_s19 + $0x708] ss:$108 sps:$4 sm:$0xff]   ;;  %v10306_v38 = vld [vmem:[%s10613_s19 + $0x7e4] ss:$108 sps:$4 sm:$0xff]  }
 0x27f   : > { %v8746_v46 = vpop.f32.mrf.mxu1  ;;  %v8810_v14 = vpop.f32.mrf.mxu0 }
 0x280   : > { %v8747_v24 = vadd.f32 %v8746_v46, %v8745_v18  ;;  %v8811_v39 = vadd.f32 %v8810_v14, %v8809_v17  ;;  %v10309_v17 = vld [vmem:[%s10613_s19 + $0x12c] ss:$108 sps:$4 sm:$0xff]   ;;  %v10317_v46 = vld [vmem:[%s13046_s1 + $0x670] sm:$0xff]  }
 0x281   : > { %v8748_v62 = vpop.f32.mrf.mxu1  ;;  %v8812_v21 = vpop.f32.mrf.mxu0 }
 0x282   : > { %v12046_v16 = vadd.f32 %v8747_v24, %v11867_v48  ;;  %v12049_v52 = vadd.f32 %v8811_v39, %v11870_v47 }
 0x283   : > { %v8749_v44 = vpop.f32.mrf.mxu1  ;;  %v8813_v45 = vpop.f32.mrf.mxu0 }
 0x284   : > { %v8750_v28 = vadd.f32 %v8749_v44, %v8748_v62  ;;  %v8814_v50 = vadd.f32 %v8813_v45, %v8812_v21  ;;  %v10319_v21 = vld [vmem:[%s13046_s1 + $0x630] sm:$0xff]   ;;  %v10304_v45 = vld [vmem:[%s10613_s19 + $0x7e0] ss:$108 sps:$4 sm:$0xff]  }
 0x285   : > { %v8751_v59 = vpop.f32.mrf.mxu1  ;;  %v8815_v60 = vpop.f32.mrf.mxu0  ;;  %6175 = vmatmul.mubr.bf16.gmra.mxu0 %v10288_v35  ;;  %6272 = vmatmul.mubr.bf16.gmra.mxu1 %v10291_v34 }
 0x286   : > { %v12054_v0 = vadd.f32 %v8750_v28, %v11875_v40  ;;  %v12057_v48 = vadd.f32 %v8814_v50, %v11878_v58  ;;  %6279 = vmatprep.mubr.bf16.mxu1 %v10296_v37  ;;  %6376 = vmatprep.mubr.bf16.mxu0 %v10299_v51  ;;  %v10303_v58 = vld [vmem:[%s13046_s1 + $0x638] sm:$0xff]   ;;  %v10307_v28 = vld [vmem:[%s10613_s19 + $0x128] ss:$108 sps:$4 sm:$0xff]  }
 0x287   : > { %v8752_v47 = vpop.f32.mrf.mxu1  ;;  %v8816_v22 = vpop.f32.mrf.mxu0 }
 0x288   : > { %v8753_v3 = vadd.f32 %v8752_v47, %v8751_v59  ;;  %v8817_v5 = vadd.f32 %v8816_v22, %v8815_v60  ;;  %v10312_v60 = vld [vmem:[%s10613_s19 + $0x8bc] ss:$108 sps:$4 sm:$0xff]   ;;  %v10315_v47 = vld [vmem:[%s10613_s19 + $0x204] ss:$108 sps:$4 sm:$0xff]  }
 0x289   : > { %v8754_v23 = vpop.f32.mrf.mxu1  ;;  %v8818_v8 = vpop.f32.mrf.mxu0 }
 0x28a   : > { %v12062_v13 = vadd.f32 %v8753_v3, %v11883_v26  ;;  %v12065_v40 = vadd.f32 %v8817_v5, %v11886_v32  ;;  %v10335_v5 = vld [vmem:[%s13046_s1 + $0x628] sm:$0xff]  }
 0x28b   : > { %v8755_v54 = vpop.f32.mrf.mxu1  ;;  %v8819_v18 = vpop.f32.mrf.mxu0 }
 0x28c   : > { %v8756_v14 = vadd.f32 %v8755_v54, %v8754_v23  ;;  %v8820_v24 = vadd.f32 %v8819_v18, %v8818_v8  ;;  %v10351_v18 = vld [vmem:[%s13046_s1 + $0x620] sm:$0xff]  }
 0x28d   : > { %v8821_v39 = vpop.f32.mrf.mxu0  ;;  %v8885_v26 = vpop.f32.mrf.mxu1  ;;  %6280 = vmatmul.mubr.bf16.gmra.mxu1 %v10294_v11  ;;  %6377 = vmatmul.mubr.bf16.vlgmr.msra.gmra.mxu0 %v10297_v61 }
 0x28e   : > { %v12076_v32 = vadd.f32 %v8756_v14, %v11897_v41  ;;  %v12079_v62 = vadd.f32 %v8820_v24, %v11900_v42  ;;  %9430 = vmatpush3.bf16.msra.mxu0 %v10303_v58  ;;  %6287 = vmatprep.mubr.bf16.mxu1 %v10306_v38  ;;  %v10333_v41 = vld [vmem:[%s13046_s1 + $0x668] sm:$0xff]   ;;  %v10310_v24 = vld [vmem:[%s10613_s19 + $0x8b8] ss:$108 sps:$4 sm:$0xff]  }
 0x28f   : > { %v8822_v35 = vpop.f32.mrf.mxu0  ;;  %v8886_v34 = vpop.f32.mrf.mxu1  ;;  %6384 = vmatprep.mubr.bf16.mxu0 %v10309_v17  ;;  %9431 = vmatprep.subr.bf16.mxu0 %v10317_v46 }
 0x290   : > { %v8823_v37 = vadd.f32 %v8822_v35, %v8821_v39  ;;  %v8887_v51 = vadd.f32 %v8886_v34, %v8885_v26  ;;  %v10313_v39 = vld [vmem:[%s10613_s19 + $0x200] ss:$108 sps:$4 sm:$0xff]   ;;  %v10325_v34 = vld [vmem:[%s10613_s19 + $0x2dc] ss:$108 sps:$4 sm:$0xff]  }
 0x291   : > { %v8824_v42 = vpop.f32.mrf.mxu0  ;;  %v8888_v44 = vpop.f32.mrf.mxu1  ;;  %v10322_v35 = vld [vmem:[%s10613_s19 + $0x994] ss:$108 sps:$4 sm:$0xff]  }
 0x292   : > { %v12090_v50 = vadd.f32 %v8823_v37, %v11911_v33  ;;  %v12093_v59 = vadd.f32 %v8887_v51, %v11914_v55  ;;  %9432 = vmatpush3.bf16.msra.mxu0 %v10319_v21  ;;  %v10349_v33 = vld [vmem:[%s13046_s1 + $0x660] sm:$0xff]   ;;  %v10366_v51 = vld [vmem:[%s13046_s1 + $0x618] sm:$0xff]  }
 0x293   : > { %v8825_v22 = vpop.f32.mrf.mxu0  ;;  %v8889_v3 = vpop.f32.mrf.mxu1  ;;  %9433 = vmatprep.subr.bf16.mxu0 %v10333_v41 }
 0x294   : > { %v8826_v23 = vadd.f32 %v8825_v22, %v8824_v42  ;;  %v8890_v8 = vadd.f32 %v8889_v3, %v8888_v44  ;;  %v10381_v3 = vld [vmem:[%s13046_s1 + $0x610] sm:$0xff]  }
 0x295   : > { %v8827_v11 = vpop.f32.mrf.mxu0  ;;  %v8891_v61 = vpop.f32.mrf.mxu1  ;;  %6288 = vmatmul.mubr.bf16.gmra.mxu1 %v10304_v45  ;;  %6385 = vmatmul.mubr.bf16.gmra.mxu0 %v10307_v28 }
 0x296   : > { %v12104_v55 = vadd.f32 %v8826_v23, %v11925_v25  ;;  %v12107_v58 = vadd.f32 %v8890_v8, %v11928_v29  ;;  %6295 = vmatprep.mubr.bf16.mxu1 %v10312_v60  ;;  %6392 = vmatprep.mubr.bf16.mxu0 %v10315_v47  ;;  %v10364_v25 = vld [vmem:[%s13046_s1 + $0x658] sm:$0xff]  }
 0x297   : > { %v8828_v38 = vpop.f32.mrf.mxu0  ;;  %v8892_v54 = vpop.f32.mrf.mxu1  ;;  %9434 = vmatpush3.bf16.msra.mxu0 %v10335_v5 }
 0x298   : > { %v8829_v17 = vadd.f32 %v8828_v38, %v8827_v11  ;;  %v8893_v46 = vadd.f32 %v8892_v54, %v8891_v61  ;;  %9435 = vmatprep.subr.bf16.mxu0 %v10349_v33  ;;  %v10320_v33 = vld [vmem:[%s10613_s19 + $0x990] ss:$108 sps:$4 sm:$0xff]   ;;  %v10323_v11 = vld [vmem:[%s10613_s19 + $0x2d8] ss:$108 sps:$4 sm:$0xff]  }
 0x299   : > { %v8830_v29 = vpop.f32.mrf.mxu0  ;;  %v8894_v14 = vpop.f32.mrf.mxu1  ;;  %v10328_v54 = vld [vmem:[%s10613_s19 + $0xa6c] ss:$108 sps:$4 sm:$0xff]  }
 0x29a   : > { %v12118_v26 = vadd.f32 %v8829_v17, %v11939_v49  ;;  %v12121_v21 = vadd.f32 %v8893_v46, %v11942_v56  ;;  %v10379_v49 = vld [vmem:[%s13046_s1 + $0x650] sm:$0xff]  }
 0x29b   : > { %v8831_v41 = vpop.f32.mrf.mxu0  ;;  %v8895_v37 = vpop.f32.mrf.mxu1  ;;  %9436 = vmatpush3.bf16.msra.mxu0 %v10351_v18  ;;  %v10331_v18 = vld [vmem:[%s10613_s19 + $0x3b4] ss:$108 sps:$4 sm:$0xff]  }
 0x29c   : > { %v8832_v42 = vadd.f32 %v8831_v41, %v8830_v29  ;;  %v8896_v44 = vadd.f32 %v8895_v37, %v8894_v14  ;;  %9437 = vmatprep.subr.bf16.mxu0 %v10364_v25  ;;  %v10396_v25 = vld [vmem:[%s13046_s1 + $0x608] sm:$0xff]   ;;  %v10411_v37 = vld [vmem:[%s13046_s1 + $0x600] sm:$0xff]  }
 0x29d   : > { %v8833_v45 = vpop.f32.mrf.mxu0  ;;  %v8897_v28 = vpop.f32.mrf.mxu1  ;;  %6296 = vmatmul.mubr.bf16.gmra.mxu1 %v10310_v24  ;;  %6393 = vmatmul.mubr.bf16.gmra.mxu0 %v10313_v39 }
 0x29e   : > { %v12132_v56 = vadd.f32 %v8832_v42, %v11953_v4  ;;  %v12135_v60 = vadd.f32 %v8896_v44, %v11956_v19  ;;  %6303 = vmatprep.mubr.bf16.mxu1 %v10322_v35  ;;  %6400 = vmatprep.mubr.bf16.mxu0 %v10325_v34  ;;  %v10394_v4 = vld [vmem:[%s13046_s1 + $0x648] sm:$0xff]  }
 0x29f   : > { %v8834_v47 = vpop.f32.mrf.mxu0  ;;  %v8898_v22 = vpop.f32.mrf.mxu1  ;;  %9438 = vmatpush3.bf16.msra.mxu0 %v10366_v51 }
 0x2a0   : > { %v8835_v5 = vadd.f32 %v8834_v47, %v8833_v45  ;;  %v8899_v23 = vadd.f32 %v8898_v22, %v8897_v28  ;;  %9439 = vmatprep.subr.bf16.mxu0 %v10379_v49  ;;  %v10326_v49 = vld [vmem:[%s10613_s19 + $0xa68] ss:$108 sps:$4 sm:$0xff]   ;;  %v10329_v45 = vld [vmem:[%s10613_s19 + $0x3b0] ss:$108 sps:$4 sm:$0xff]   ;;  %v10341_v22 = vld [vmem:[%s10613_s19 + $0x48c] ss:$108 sps:$4 sm:$0xff]  }
 0x2a1   : > { %v8836_v19 = vpop.f32.mrf.mxu0  ;;  %v8900_v8 = vpop.f32.mrf.mxu1  ;;  %v10338_v47 = vld [vmem:[%s10613_s19 + $0xb44] ss:$108 sps:$4 sm:$0xff]  }
 0x2a2   : > { %v12146_v61 = vadd.f32 %v8835_v5, %v11967_v27  ;;  %v12149_v38 = vadd.f32 %v8899_v23, %v11970_v20  ;;  %v10409_v27 = vld [vmem:[%s13046_s1 + $0x640] sm:$0xff]  }
 0x2a3   : > { %v8837_v17 = vpop.f32.mrf.mxu0  ;;  %v8901_v46 = vpop.f32.mrf.mxu1  ;;  %9440 = vmatpush3.bf16.msra.mxu0 %v10381_v3 }
 0x2a4   : > { %v8838_v29 = vadd.f32 %v8837_v17, %v8836_v19  ;;  %v8902_v14 = vadd.f32 %v8901_v46, %v8900_v8  ;;  %9441 = vmatprep.subr.bf16.mxu0 %v10394_v4 }
 0x2a5   : > { %v8839_v24 = vpop.f32.mrf.mxu0  ;;  %v8903_v39 = vpop.f32.mrf.mxu1  ;;  %6304 = vmatmul.mubr.bf16.gmra.mxu1 %v10320_v33  ;;  %6401 = vmatmul.mubr.bf16.gmra.mxu0 %v10323_v11 }
 0x2a6   : > { %v12160_v20 = vadd.f32 %v8838_v29, %v11981_v36  ;;  %v12163_v35 = vadd.f32 %v8902_v14, %v11984_v12  ;;  %6311 = vmatprep.mubr.bf16.mxu1 %v10328_v54  ;;  %6408 = vmatprep.mubr.bf16.mxu0 %v10331_v18  ;;  %v10339_v29 = vld [vmem:[%s10613_s19 + $0x488] ss:$108 sps:$4 sm:$0xff]  }
 0x2a7   : > { %v8840_v34 = vpop.f32.mrf.mxu0  ;;  %v8904_v41 = vpop.f32.mrf.mxu1  ;;  %9442 = vmatpush3.bf16.msra.mxu0 %v10396_v25  ;;  %v10336_v25 = vld [vmem:[%s10613_s19 + $0xb40] ss:$108 sps:$4 sm:$0xff]  }
 0x2a8   : > { %v8841_v51 = vadd.f32 %v8840_v34, %v8839_v24  ;;  %v8905_v42 = vadd.f32 %v8904_v41, %v8903_v39  ;;  %9443 = vmatprep.subr.bf16.mxu0 %v10409_v27  ;;  %v10347_v24 = vld [vmem:[%s10613_s19 + $0x564] ss:$108 sps:$4 sm:$0xff]  }
 0x2a9   : > { %v8842_v44 = vpop.f32.mrf.mxu0  ;;  %v8906_v36 = vpop.f32.mrf.mxu1 }
 0x2aa   : > { %v12171_v12 = vadd.f32 %v8841_v51, %v11997_v30  ;;  %v12174_v28 = vadd.f32 %v8905_v42, %v12000_v53 }
 0x2ab   : > { %v8843_v3 = vpop.f32.mrf.mxu0  ;;  %v8907_v5 = vpop.f32.mrf.mxu1  ;;  %9444 = vmatpush3.bf16.msra.mxu0 %v10411_v37 }
 0x2ac   : > { %v8844_v23 = vadd.f32 %v8843_v3, %v8842_v44  ;;  %v8908_v4 = vadd.f32 %v8907_v5, %v8906_v36  ;;  %v10345_v3 = vld [vmem:[%s10613_s19 + $0x560] ss:$108 sps:$4 sm:$0xff]  }
 0x2ad   : > { %v8845_v19 = vpop.f32.mrf.mxu0  ;;  %v8909_v8 = vpop.f32.mrf.mxu1  ;;  %6312 = vmatmul.mubr.bf16.gmra.mxu1 %v10326_v49  ;;  %6409 = vmatmul.mubr.bf16.gmra.mxu0 %v10329_v45 }
 0x2ae   : > { %v12179_v30 = vadd.f32 %v8844_v23, %v12006_v1  ;;  %v12182_v53 = vadd.f32 %v8908_v4, %v12009_v10  ;;  %6319 = vmatprep.mubr.bf16.mxu1 %v10338_v47  ;;  %6416 = vmatprep.mubr.bf16.mxu0 %v10341_v22  ;;  %v10344_v1 = vld [vmem:[%s10613_s19 + $0xc1c] ss:$108 sps:$4 sm:$0xff]   ;;  %v10342_v22 = vld [vmem:[%s10613_s19 + $0xc18] ss:$108 sps:$4 sm:$0xff]  }
 0x2af   : > { %v8846_v33 = vpop.f32.mrf.mxu0  ;;  %v8910_v11 = vpop.f32.mrf.mxu1  ;;  %v10357_v4 = vld [vmem:[%s10613_s19 + $0x63c] ss:$108 sps:$4 sm:$0xff]  }
 0x2b0   : > { %v8847_v54 = vadd.f32 %v8846_v33, %v8845_v19  ;;  %v8911_v18 = vadd.f32 %v8910_v11, %v8909_v8 }
 0x2b1   : > { %v8848_v17 = vpop.f32.mrf.mxu0  ;;  %v8912_v46 = vpop.f32.mrf.mxu1 }
 0x2b2   : > { %v12187_v14 = vadd.f32 %v8847_v54, %v12014_v43  ;;  %v12190_v27 = vadd.f32 %v8911_v18, %v12017_v9 }
 0x2b3   : > { %v8849_v10 = vpop.f32.mrf.mxu0  ;;  %v8913_v39 = vpop.f32.mrf.mxu1 }
 0x2b4   : > { %v8850_v34 = vadd.f32 %v8849_v10, %v8848_v17  ;;  %v8914_v41 = vadd.f32 %v8913_v39, %v8912_v46  ;;  %v10355_v10 = vld [vmem:[%s10613_s19 + $0x638] ss:$108 sps:$4 sm:$0xff]  }
 0x2b5   : > { %v8851_v37 = vpop.f32.mrf.mxu0  ;;  %v8915_v51 = vpop.f32.mrf.mxu1  ;;  %6320 = vmatmul.mubr.bf16.gmra.mxu1 %v10336_v25  ;;  %6417 = vmatmul.mubr.bf16.gmra.mxu0 %v10339_v29 }
 0x2b6   : > { %v12195_v43 = vadd.f32 %v8850_v34, %v12022_v6  ;;  %v12198_v9 = vadd.f32 %v8914_v41, %v12025_v57  ;;  %6327 = vmatprep.mubr.bf16.mxu1 %v10344_v1  ;;  %6424 = vmatprep.mubr.bf16.mxu0 %v10347_v24  ;;  %v10354_v6 = vld [vmem:[%s10613_s19 + $0xcf4] ss:$108 sps:$4 sm:$0xff]   ;;  %v10352_v24 = vld [vmem:[%s10613_s19 + $0xcf0] ss:$108 sps:$4 sm:$0xff]  }
 0x2b7   : > { %v8852_v42 = vpop.f32.mrf.mxu0  ;;  %v8916_v44 = vpop.f32.mrf.mxu1  ;;  %v10363_v41 = vld [vmem:[%s10613_s19 + $0x5c] ss:$108 sps:$4 sm:$0xff]  }
 0x2b8   : > { %v8853_v36 = vadd.f32 %v8852_v42, %v8851_v37  ;;  %v8917_v49 = vadd.f32 %v8916_v44, %v8915_v51 }
 0x2b9   : > { %v8854_v45 = vpop.f32.mrf.mxu0  ;;  %v8918_v47 = vpop.f32.mrf.mxu1 }
 0x2ba   : > { %v12203_v5 = vadd.f32 %v8853_v36, %v12030_v7  ;;  %v12206_v23 = vadd.f32 %v8917_v49, %v12033_v2 }
 0x2bb   : > { %v8855_v57 = vpop.f32.mrf.mxu0  ;;  %v8919_v19 = vpop.f32.mrf.mxu1 }
 0x2bc   : > { %v8856_v8 = vadd.f32 %v8855_v57, %v8854_v45  ;;  %v8920_v33 = vadd.f32 %v8919_v19, %v8918_v47  ;;  %v10361_v57 = vld [vmem:[%s10613_s19 + $0x58] ss:$108 sps:$4 sm:$0xff]  }
 0x2bd   : > { %v8857_v11 = vpop.f32.mrf.mxu0  ;;  %v8921_v54 = vpop.f32.mrf.mxu1  ;;  %6328 = vmatmul.mubr.bf16.gmra.mxu1 %v10342_v22  ;;  %6425 = vmatmul.mubr.bf16.gmra.mxu0 %v10345_v3 }
 0x2be   : > { %v12211_v7 = vadd.f32 %v8856_v8, %v12038_v63  ;;  %v12214_v2 = vadd.f32 %v8920_v33, %v12041_v31  ;;  %6335 = vmatprep.mubr.bf16.mxu1 %v10354_v6  ;;  %6432 = vmatprep.mubr.bf16.mxu0 %v10357_v4  ;;  %v10360_v63 = vld [vmem:[%s10613_s19 + $0x714] ss:$108 sps:$4 sm:$0xff]   ;;  %v10358_v4 = vld [vmem:[%s10613_s19 + $0x710] ss:$108 sps:$4 sm:$0xff]   ;;  %v10369_v8 = vld [vmem:[%s10613_s19 + $0x7ec] ss:$108 sps:$4 sm:$0xff]  }
 0x2bf   : > { %v8858_v18 = vpop.f32.mrf.mxu0  ;;  %v8922_v17 = vpop.f32.mrf.mxu1 }
 0x2c0   : > { %v8859_v46 = vadd.f32 %v8858_v18, %v8857_v11  ;;  %v8923_v25 = vadd.f32 %v8922_v17, %v8921_v54  ;;  %v10372_v11 = vld [vmem:[%s10613_s19 + $0x134] ss:$108 sps:$4 sm:$0xff]  }
 0x2c1   : > { %v8860_v29 = vpop.f32.mrf.mxu0  ;;  %v8924_v1 = vpop.f32.mrf.mxu1  ;;  %v10380_v54 = vld [vmem:[%s13046_s1 + $0x6b0] sm:$0xff]  }
 0x2c2   : > { %v12219_v39 = vadd.f32 %v8859_v46, %v12046_v16  ;;  %v12222_v34 = vadd.f32 %v8923_v25, %v12049_v52 }
 0x2c3   : > { %v8861_v31 = vpop.f32.mrf.mxu0  ;;  %v8925_v37 = vpop.f32.mrf.mxu1 }
 0x2c4   : > { %v8862_v51 = vadd.f32 %v8861_v31, %v8860_v29  ;;  %v8926_v42 = vadd.f32 %v8925_v37, %v8924_v1  ;;  %v10367_v31 = vld [vmem:[%s10613_s19 + $0x7e8] ss:$108 sps:$4 sm:$0xff]  }
 0x2c5   : > { %v8863_v44 = vpop.f32.mrf.mxu0  ;;  %v8927_v36 = vpop.f32.mrf.mxu1  ;;  %6336 = vmatmul.mubr.bf16.gmra.mxu1 %v10352_v24  ;;  %6433 = vmatmul.mubr.bf16.gmra.mxu0 %v10355_v10  ;;  %v10395_v24 = vld [vmem:[%s13046_s1 + $0x6a8] sm:$0xff]  }
 0x2c6   : > { %v12227_v49 = vadd.f32 %v8862_v51, %v12054_v0  ;;  %v12230_v16 = vadd.f32 %v8926_v42, %v12057_v48  ;;  %6440 = vmatprep.mubr.bf16.mxu0 %v10360_v63  ;;  %6537 = vmatprep.mubr.bf16.mxu1 %v10363_v41  ;;  %v10375_v51 = vld [vmem:[%s10613_s19 + $0x8c4] ss:$108 sps:$4 sm:$0xff]   ;;  %v10378_v42 = vld [vmem:[%s10613_s19 + $0x20c] ss:$108 sps:$4 sm:$0xff]  }
 0x2c7   : > { %v8864_v52 = vpop.f32.mrf.mxu0  ;;  %v8928_v45 = vpop.f32.mrf.mxu1 }
 0x2c8   : > { %v8865_v47 = vadd.f32 %v8864_v52, %v8863_v44  ;;  %v8929_v22 = vadd.f32 %v8928_v45, %v8927_v36 }
 0x2c9   : > { %v8866_v3 = vpop.f32.mrf.mxu0  ;;  %v8930_v6 = vpop.f32.mrf.mxu1 }
 0x2ca   : > { %v12235_v19 = vadd.f32 %v8865_v47, %v12062_v13  ;;  %v12238_v0 = vadd.f32 %v8929_v22, %v12065_v40  ;;  %v10410_v47 = vld [vmem:[%s13046_s1 + $0x6a0] sm:$0xff]  }
 0x2cb   : > { %v8867_v48 = vpop.f32.mrf.mxu0  ;;  %v8931_v33 = vpop.f32.mrf.mxu1 }
 0x2cc   : > { %v8868_v18 = vadd.f32 %v8867_v48, %v8866_v3  ;;  %v8932_v17 = vadd.f32 %v8931_v33, %v8930_v6  ;;  %v10424_v48 = vld [vmem:[%s13046_s1 + $0x698] sm:$0xff]  }
 0x2cd   : > { %v8933_v46 = vpop.f32.mrf.mxu1  ;;  %v8997_v25 = vpop.f32.mrf.mxu0  ;;  %6441 = vmatmul.mubr.bf16.gmra.mxu0 %v10358_v4  ;;  %6538 = vmatmul.mubr.bf16.vlgmr.msra.gmra.mxu1 %v10361_v57 }
 0x2ce   : > { %v12246_v13 = vadd.f32 %v8868_v18, %v12076_v32  ;;  %v12249_v40 = vadd.f32 %v8932_v17, %v12079_v62  ;;  %9566 = vmatpush3.bf16.msra.mxu1 %v11992_v15  ;;  %6448 = vmatprep.mubr.bf16.mxu0 %v10369_v8  ;;  %v10370_v62 = vld [vmem:[%s10613_s19 + $0x130] ss:$108 sps:$4 sm:$0xff]  }
 0x2cf   : > { %v8934_v29 = vpop.f32.mrf.mxu1  ;;  %v8998_v1 = vpop.f32.mrf.mxu0  ;;  %6545 = vmatprep.mubr.bf16.mxu1 %v10372_v11  ;;  %9567 = vmatprep.subr.bf16.mxu1 %v10380_v54  ;;  %v10373_v11 = vld [vmem:[%s10613_s19 + $0x8c0] ss:$108 sps:$4 sm:$0xff]   ;;  %v10384_v17 = vld [vmem:[%s10613_s19 + $0x99c] ss:$108 sps:$4 sm:$0xff]  }
 0x2d0   : > { %v8935_v10 = vadd.f32 %v8934_v29, %v8933_v46  ;;  %v8999_v63 = vadd.f32 %v8998_v1, %v8997_v25  ;;  %v10387_v46 = vld [vmem:[%s10613_s19 + $0x2e4] ss:$108 sps:$4 sm:$0xff]  }
 0x2d1   : > { %v8936_v32 = vpop.f32.mrf.mxu1  ;;  %v9000_v41 = vpop.f32.mrf.mxu0 }
 0x2d2   : > { %v12258_v37 = vadd.f32 %v8935_v10, %v12090_v50  ;;  %v12261_v15 = vadd.f32 %v8999_v63, %v12093_v59  ;;  %9568 = vmatpush3.bf16.msra.mxu1 %v10380_v54  ;;  %v10376_v54 = vld [vmem:[%s10613_s19 + $0x208] ss:$108 sps:$4 sm:$0xff]  }
 0x2d3   : > { %v8937_v44 = vpop.f32.mrf.mxu1  ;;  %v9001_v36 = vpop.f32.mrf.mxu0  ;;  %9569 = vmatprep.subr.bf16.mxu1 %v10395_v24  ;;  %v10437_v10 = vld [vmem:[%s13046_s1 + $0x690] sm:$0xff]  }
 0x2d4   : > { %v8938_v52 = vadd.f32 %v8937_v44, %v8936_v32  ;;  %v9002_v45 = vadd.f32 %v9001_v36, %v9000_v41  ;;  %v10382_v36 = vld [vmem:[%s10613_s19 + $0x998] ss:$108 sps:$4 sm:$0xff]  }
 0x2d5   : > { %v8939_v22 = vpop.f32.mrf.mxu1  ;;  %v9003_v3 = vpop.f32.mrf.mxu0  ;;  %6449 = vmatmul.mubr.bf16.gmra.mxu0 %v10367_v31  ;;  %6546 = vmatmul.mubr.bf16.gmra.mxu1 %v10370_v62 }
 0x2d6   : > { %v12269_v50 = vadd.f32 %v8938_v52, %v12104_v55  ;;  %v12272_v59 = vadd.f32 %v9002_v45, %v12107_v58  ;;  %6456 = vmatprep.mubr.bf16.mxu0 %v10375_v51  ;;  %6553 = vmatprep.mubr.bf16.mxu1 %v10378_v42  ;;  %v10450_v42 = vld [vmem:[%s13046_s1 + $0x688] sm:$0xff]  }
 0x2d7   : > { %v8940_v6 = vpop.f32.mrf.mxu1  ;;  %v9004_v4 = vpop.f32.mrf.mxu0  ;;  %9570 = vmatpush3.bf16.msra.mxu1 %v10395_v24  ;;  %v10385_v52 = vld [vmem:[%s10613_s19 + $0x2e0] ss:$108 sps:$4 sm:$0xff]  }
 0x2d8   : > { %v8941_v57 = vadd.f32 %v8940_v6, %v8939_v22  ;;  %v9005_v8 = vadd.f32 %v9004_v4, %v9003_v3  ;;  %9571 = vmatprep.subr.bf16.mxu1 %v10410_v47  ;;  %v10393_v22 = vld [vmem:[%s10613_s19 + $0x3bc] ss:$108 sps:$4 sm:$0xff]  }
 0x2d9   : > { %v8942_v33 = vpop.f32.mrf.mxu1  ;;  %v9006_v55 = vpop.f32.mrf.mxu0 }
 0x2da   : > { %v12280_v58 = vadd.f32 %v8941_v57, %v12118_v26  ;;  %v12283_v18 = vadd.f32 %v9005_v8, %v12121_v21  ;;  %v10463_v8 = vld [vmem:[%s13046_s1 + $0x680] sm:$0xff]  }
 0x2db   : > { %v8943_v25 = vpop.f32.mrf.mxu1  ;;  %v9007_v29 = vpop.f32.mrf.mxu0  ;;  %9572 = vmatpush3.bf16.msra.mxu1 %v10410_v47  ;;  %v10390_v47 = vld [vmem:[%s10613_s19 + $0xa74] ss:$108 sps:$4 sm:$0xff]  }
 0x2dc   : > { %v8944_v1 = vadd.f32 %v8943_v25, %v8942_v33  ;;  %v9008_v24 = vadd.f32 %v9007_v29, %v9006_v55  ;;  %9573 = vmatprep.subr.bf16.mxu1 %v10424_v48  ;;  %v10388_v29 = vld [vmem:[%s10613_s19 + $0xa70] ss:$108 sps:$4 sm:$0xff]  }
 0x2dd   : > { %v8945_v63 = vpop.f32.mrf.mxu1  ;;  %v9009_v32 = vpop.f32.mrf.mxu0  ;;  %6457 = vmatmul.mubr.bf16.gmra.mxu0 %v10373_v11  ;;  %6554 = vmatmul.mubr.bf16.gmra.mxu1 %v10376_v54 }
 0x2de   : > { %v12291_v26 = vadd.f32 %v8944_v1, %v12132_v56  ;;  %v12294_v21 = vadd.f32 %v9008_v24, %v12135_v60  ;;  %6464 = vmatprep.mubr.bf16.mxu0 %v10384_v17  ;;  %6561 = vmatprep.mubr.bf16.mxu1 %v10387_v46  ;;  %v10391_v1 = vld [vmem:[%s10613_s19 + $0x3b8] ss:$108 sps:$4 sm:$0xff]  }
 0x2df   : > { %v8946_v41 = vpop.f32.mrf.mxu1  ;;  %v9010_v31 = vpop.f32.mrf.mxu0  ;;  %9574 = vmatpush3.bf16.msra.mxu1 %v10424_v48 }
 0x2e0   : > { %v8947_v62 = vadd.f32 %v8946_v41, %v8945_v63  ;;  %v9011_v51 = vadd.f32 %v9010_v31, %v9009_v32  ;;  %9575 = vmatprep.subr.bf16.mxu1 %v10437_v10 }
 0x2e1   : > { %v8948_v44 = vpop.f32.mrf.mxu1  ;;  %v9012_v56 = vpop.f32.mrf.mxu0 }
 0x2e2   : > { %v12302_v60 = vadd.f32 %v8947_v62, %v12146_v61  ;;  %v12305_v45 = vadd.f32 %v9011_v51, %v12149_v38 }
 0x2e3   : > { %v8949_v3 = vpop.f32.mrf.mxu1  ;;  %v9013_v6 = vpop.f32.mrf.mxu0  ;;  %9576 = vmatpush3.bf16.msra.mxu1 %v10437_v10  ;;  %v10402_v10 = vld [vmem:[%s10613_s19 + $0x494] ss:$108 sps:$4 sm:$0xff]  }
 0x2e4   : > { %v8950_v4 = vadd.f32 %v8949_v3, %v8948_v44  ;;  %v9014_v57 = vadd.f32 %v9013_v6, %v9012_v56  ;;  %9577 = vmatprep.subr.bf16.mxu1 %v10450_v42  ;;  %v10400_v3 = vld [vmem:[%s10613_s19 + $0x490] ss:$108 sps:$4 sm:$0xff]  }
 0x2e5   : > { %v8951_v48 = vpop.f32.mrf.mxu1  ;;  %v9015_v33 = vpop.f32.mrf.mxu0  ;;  %6465 = vmatmul.mubr.bf16.gmra.mxu0 %v10382_v36  ;;  %6562 = vmatmul.mubr.bf16.gmra.mxu1 %v10385_v52 }
 0x2e6   : > { %v12313_v61 = vadd.f32 %v8950_v4, %v12160_v20  ;;  %v12316_v38 = vadd.f32 %v9014_v57, %v12163_v35  ;;  %6472 = vmatprep.mubr.bf16.mxu0 %v10390_v47  ;;  %6569 = vmatprep.mubr.bf16.mxu1 %v10393_v22  ;;  %v10399_v35 = vld [vmem:[%s10613_s19 + $0xb4c] ss:$108 sps:$4 sm:$0xff]   ;;  %v10397_v22 = vld [vmem:[%s10613_s19 + $0xb48] ss:$108 sps:$4 sm:$0xff]  }
 0x2e7   : > { %v8952_v55 = vpop.f32.mrf.mxu1  ;;  %v9016_v11 = vpop.f32.mrf.mxu0  ;;  %9578 = vmatpush3.bf16.msra.mxu1 %v10450_v42  ;;  %v10408_v57 = vld [vmem:[%s10613_s19 + $0x56c] ss:$108 sps:$4 sm:$0xff]  }
 0x2e8   : > { %v8953_v54 = vadd.f32 %v8952_v55, %v8951_v48  ;;  %v9017_v17 = vadd.f32 %v9016_v11, %v9015_v33  ;;  %9579 = vmatprep.subr.bf16.mxu1 %v10463_v8 }
 0x2e9   : > { %v8954_v46 = vpop.f32.mrf.mxu1  ;;  %v9018_v25 = vpop.f32.mrf.mxu0 }
 0x2ea   : > { %v12321_v20 = vadd.f32 %v8953_v54, %v12171_v12  ;;  %v12324_v24 = vadd.f32 %v9017_v17, %v12174_v28 }
 0x2eb   : > { %v8955_v63 = vpop.f32.mrf.mxu1  ;;  %v9019_v32 = vpop.f32.mrf.mxu0  ;;  %9580 = vmatpush3.bf16.msra.mxu1 %v10463_v8 }
 0x2ec   : > { %v8956_v41 = vadd.f32 %v8955_v63, %v8954_v46  ;;  %v9020_v31 = vadd.f32 %v9019_v32, %v9018_v25 }
 0x2ed   : > { %v8957_v62 = vpop.f32.mrf.mxu1  ;;  %v9021_v51 = vpop.f32.mrf.mxu0  ;;  %6473 = vmatmul.mubr.bf16.gmra.mxu0 %v10388_v29  ;;  %6570 = vmatmul.mubr.bf16.gmra.mxu1 %v10391_v1 }
 0x2ee   : > { %v12329_v12 = vadd.f32 %v8956_v41, %v12179_v30  ;;  %v12332_v28 = vadd.f32 %v9020_v31, %v12182_v53  ;;  %6480 = vmatprep.mubr.bf16.mxu0 %v10399_v35  ;;  %6577 = vmatprep.mubr.bf16.mxu1 %v10402_v10  ;;  %v10405_v30 = vld [vmem:[%s10613_s19 + $0xc24] ss:$108 sps:$4 sm:$0xff]   ;;  %v10403_v35 = vld [vmem:[%s10613_s19 + $0xc20] ss:$108 sps:$4 sm:$0xff]   ;;  %v10406_v10 = vld [vmem:[%s10613_s19 + $0x568] ss:$108 sps:$4 sm:$0xff]  }
 0x2ef   : > { %v8958_v42 = vpop.f32.mrf.mxu1  ;;  %v9022_v44 = vpop.f32.mrf.mxu0  ;;  %v10417_v41 = vld [vmem:[%s10613_s19 + $0x644] ss:$108 sps:$4 sm:$0xff]  }
 0x2f0   : > { %v8959_v56 = vadd.f32 %v8958_v42, %v8957_v62  ;;  %v9023_v36 = vadd.f32 %v9022_v44, %v9021_v51 }
 0x2f1   : > { %v8960_v52 = vpop.f32.mrf.mxu1  ;;  %v9024_v47 = vpop.f32.mrf.mxu0 }
 0x2f2   : > { %v12337_v6 = vadd.f32 %v8959_v56, %v12187_v14  ;;  %v12340_v4 = vadd.f32 %v9023_v36, %v12190_v27 }
 0x2f3   : > { %v8961_v53 = vpop.f32.mrf.mxu1  ;;  %v9025_v8 = vpop.f32.mrf.mxu0 }
 0x2f4   : > { %v8962_v48 = vadd.f32 %v8961_v53, %v8960_v52  ;;  %v9026_v33 = vadd.f32 %v9025_v8, %v9024_v47 }
 0x2f5   : > { %v8963_v55 = vpop.f32.mrf.mxu1  ;;  %v9027_v11 = vpop.f32.mrf.mxu0  ;;  %6481 = vmatmul.mubr.bf16.gmra.mxu0 %v10397_v22  ;;  %6578 = vmatmul.mubr.bf16.gmra.mxu1 %v10400_v3 }
 0x2f6   : > { %v12345_v14 = vadd.f32 %v8962_v48, %v12195_v43  ;;  %v12348_v27 = vadd.f32 %v9026_v33, %v12198_v9  ;;  %6488 = vmatprep.mubr.bf16.mxu0 %v10405_v30  ;;  %6585 = vmatprep.mubr.bf16.mxu1 %v10408_v57  ;;  %v10414_v43 = vld [vmem:[%s10613_s19 + $0xcfc] ss:$108 sps:$4 sm:$0xff]   ;;  %v10412_v30 = vld [vmem:[%s10613_s19 + $0xcf8] ss:$108 sps:$4 sm:$0xff]   ;;  %v10415_v57 = vld [vmem:[%s10613_s19 + $0x640] ss:$108 sps:$4 sm:$0xff]  }
 0x2f7   : > { %v8964_v54 = vpop.f32.mrf.mxu1  ;;  %v9028_v17 = vpop.f32.mrf.mxu0  ;;  %v10423_v48 = vld [vmem:[%s10613_s19 + $0x64] ss:$108 sps:$4 sm:$0xff]  }
 0x2f8   : > { %v8965_v46 = vadd.f32 %v8964_v54, %v8963_v55  ;;  %v9029_v25 = vadd.f32 %v9028_v17, %v9027_v11 }
 0x2f9   : > { %v8966_v29 = vpop.f32.mrf.mxu1  ;;  %v9030_v1 = vpop.f32.mrf.mxu0 }
 0x2fa   : > { %v12353_v63 = vadd.f32 %v8965_v46, %v12203_v5  ;;  %v12356_v32 = vadd.f32 %v9029_v25, %v12206_v23 }
 0x2fb   : > { %v8967_v9 = vpop.f32.mrf.mxu1  ;;  %v9031_v31 = vpop.f32.mrf.mxu0 }
 0x2fc   : > { %v8968_v62 = vadd.f32 %v8967_v9, %v8966_v29  ;;  %v9032_v51 = vadd.f32 %v9031_v31, %v9030_v1 }
 0x2fd   : > { %v8969_v42 = vpop.f32.mrf.mxu1  ;;  %v9033_v44 = vpop.f32.mrf.mxu0  ;;  %6489 = vmatmul.mubr.bf16.gmra.mxu0 %v10403_v35  ;;  %6586 = vmatmul.mubr.bf16.gmra.mxu1 %v10406_v10 }
 0x2fe   : > { %v12361_v5 = vadd.f32 %v8968_v62, %v12211_v7  ;;  %v12364_v23 = vadd.f32 %v9032_v51, %v12214_v2  ;;  %6496 = vmatprep.mubr.bf16.mxu0 %v10414_v43  ;;  %6593 = vmatprep.mubr.bf16.mxu1 %v10417_v41  ;;  %v10420_v7 = vld [vmem:[%s10613_s19 + $0x71c] ss:$108 sps:$4 sm:$0xff]   ;;  %v10418_v43 = vld [vmem:[%s10613_s19 + $0x718] ss:$108 sps:$4 sm:$0xff]   ;;  %v10421_v41 = vld [vmem:[%s10613_s19 + $0x60] ss:$108 sps:$4 sm:$0xff]  }
 0x2ff   : > { %v8970_v56 = vpop.f32.mrf.mxu1  ;;  %v9034_v36 = vpop.f32.mrf.mxu0  ;;  %v10430_v62 = vld [vmem:[%s10613_s19 + $0x13c] ss:$108 sps:$4 sm:$0xff]  }
 0x300   : > { %v8971_v52 = vadd.f32 %v8970_v56, %v8969_v42  ;;  %v9035_v47 = vadd.f32 %v9034_v36, %v9033_v44 }
 0x301   : > { %v8972_v22 = vpop.f32.mrf.mxu1  ;;  %v9036_v3 = vpop.f32.mrf.mxu0 }
 0x302   : > { %v12369_v53 = vadd.f32 %v8971_v52, %v12219_v39  ;;  %v12372_v8 = vadd.f32 %v9035_v47, %v12222_v34 }
 0x303   : > { %v8973_v2 = vpop.f32.mrf.mxu1  ;;  %v9037_v33 = vpop.f32.mrf.mxu0 }
 0x304   : > { %v8974_v55 = vadd.f32 %v8973_v2, %v8972_v22  ;;  %v9038_v11 = vadd.f32 %v9037_v33, %v9036_v3 }
 0x305   : > { %v8975_v54 = vpop.f32.mrf.mxu1  ;;  %v9039_v17 = vpop.f32.mrf.mxu0  ;;  %6497 = vmatmul.mubr.bf16.gmra.mxu0 %v10412_v30  ;;  %6594 = vmatmul.mubr.bf16.gmra.mxu1 %v10415_v57 }
 0x306   : > { %v12377_v39 = vadd.f32 %v8974_v55, %v12227_v49  ;;  %v12380_v34 = vadd.f32 %v9038_v11, %v12230_v16  ;;  %6601 = vmatprep.mubr.bf16.mxu1 %v10420_v7  ;;  %6698 = vmatprep.mubr.bf16.mxu0 %v10423_v48  ;;  %v10427_v49 = vld [vmem:[%s10613_s19 + $0x7f4] ss:$108 sps:$4 sm:$0xff]   ;;  %v10425_v7 = vld [vmem:[%s10613_s19 + $0x7f0] ss:$108 sps:$4 sm:$0xff]   ;;  %v10428_v48 = vld [vmem:[%s10613_s19 + $0x138] ss:$108 sps:$4 sm:$0xff]  }
 0x307   : > { %v8976_v46 = vpop.f32.mrf.mxu1  ;;  %v9040_v25 = vpop.f32.mrf.mxu0  ;;  %v10436_v55 = vld [vmem:[%s10613_s19 + $0x214] ss:$108 sps:$4 sm:$0xff]  }
 0x308   : > { %v8977_v29 = vadd.f32 %v8976_v46, %v8975_v54  ;;  %v9041_v1 = vadd.f32 %v9040_v25, %v9039_v17 }
 0x309   : > { %v8978_v35 = vpop.f32.mrf.mxu1  ;;  %v9042_v10 = vpop.f32.mrf.mxu0 }
 0x30a   : > { %v12385_v9 = vadd.f32 %v8977_v29, %v12235_v19  ;;  %v12388_v31 = vadd.f32 %v9041_v1, %v12238_v0 }
 0x30b   : > { %v8979_v16 = vpop.f32.mrf.mxu1  ;;  %v9043_v51 = vpop.f32.mrf.mxu0 }
 0x30c   : > { %v8980_v42 = vadd.f32 %v8979_v16, %v8978_v35  ;;  %v9044_v44 = vadd.f32 %v9043_v51, %v9042_v10 }
 0x30d   : > { %v9045_v56 = vpop.f32.mrf.mxu0  ;;  %v9109_v36 = vpop.f32.mrf.mxu1  ;;  %6602 = vmatmul.mubr.bf16.gmra.mxu1 %v10418_v43  ;;  %6699 = vmatmul.mubr.bf16.vlgmr.msra.gmra.mxu0 %v10421_v41 }
 0x30e   : > { %v12393_v19 = vadd.f32 %v8980_v42, %v12246_v13  ;;  %v12396_v0 = vadd.f32 %v9044_v44, %v12249_v40  ;;  %6609 = vmatprep.mubr.bf16.mxu1 %v10427_v49  ;;  %6706 = vmatprep.mubr.bf16.mxu0 %v10430_v62  ;;  %v10433_v13 = vld [vmem:[%s10613_s19 + $0x8cc] ss:$108 sps:$4 sm:$0xff]   ;;  %v10431_v49 = vld [vmem:[%s10613_s19 + $0x8c8] ss:$108 sps:$4 sm:$0xff]   ;;  %v10434_v62 = vld [vmem:[%s10613_s19 + $0x210] ss:$108 sps:$4 sm:$0xff]  }
 0x30f   : > { %v9046_v52 = vpop.f32.mrf.mxu0  ;;  %v9110_v47 = vpop.f32.mrf.mxu1  ;;  %v10443_v42 = vld [vmem:[%s10613_s19 + $0x2ec] ss:$108 sps:$4 sm:$0xff]  }
 0x310   : > { %v9047_v22 = vadd.f32 %v9046_v52, %v9045_v56  ;;  %v9111_v3 = vadd.f32 %v9110_v47, %v9109_v36 }
 0x311   : > { %v9048_v30 = vpop.f32.mrf.mxu0  ;;  %v9112_v57 = vpop.f32.mrf.mxu1 }
 0x312   : > { %v12401_v2 = vadd.f32 %v9047_v22, %v12258_v37  ;;  %v12404_v33 = vadd.f32 %v9111_v3, %v12261_v15 }
 0x313   : > { %v9049_v40 = vpop.f32.mrf.mxu0  ;;  %v9113_v11 = vpop.f32.mrf.mxu1 }
 0x314   : > { %v9050_v54 = vadd.f32 %v9049_v40, %v9048_v30  ;;  %v9114_v17 = vadd.f32 %v9113_v11, %v9112_v57 }
 0x315   : > { %v9051_v46 = vpop.f32.mrf.mxu0  ;;  %v9115_v25 = vpop.f32.mrf.mxu1  ;;  %6610 = vmatmul.mubr.bf16.gmra.mxu1 %v10425_v7  ;;  %6707 = vmatmul.mubr.bf16.gmra.mxu0 %v10428_v48 }
 0x316   : > { %v12409_v37 = vadd.f32 %v9050_v54, %v12269_v50  ;;  %v12412_v15 = vadd.f32 %v9114_v17, %v12272_v59  ;;  %6617 = vmatprep.mubr.bf16.mxu1 %v10433_v13  ;;  %6714 = vmatprep.mubr.bf16.mxu0 %v10436_v55  ;;  %v10440_v50 = vld [vmem:[%s10613_s19 + $0x9a4] ss:$108 sps:$4 sm:$0xff]   ;;  %v10438_v13 = vld [vmem:[%s10613_s19 + $0x9a0] ss:$108 sps:$4 sm:$0xff]   ;;  %v10441_v55 = vld [vmem:[%s10613_s19 + $0x2e8] ss:$108 sps:$4 sm:$0xff]  }
 0x317   : > { %v9052_v29 = vpop.f32.mrf.mxu0  ;;  %v9116_v1 = vpop.f32.mrf.mxu1  ;;  %v10449_v54 = vld [vmem:[%s10613_s19 + $0x3c4] ss:$108 sps:$4 sm:$0xff]  }
 0x318   : > { %v9053_v35 = vadd.f32 %v9052_v29, %v9051_v46  ;;  %v9117_v10 = vadd.f32 %v9116_v1, %v9115_v25 }
 0x319   : > { %v9054_v43 = vpop.f32.mrf.mxu0  ;;  %v9118_v41 = vpop.f32.mrf.mxu1 }
 0x31a   : > { %v12417_v16 = vadd.f32 %v9053_v35, %v12280_v58  ;;  %v12420_v51 = vadd.f32 %v9117_v10, %v12283_v18 }
 0x31b   : > { %v9055_v59 = vpop.f32.mrf.mxu0  ;;  %v9119_v44 = vpop.f32.mrf.mxu1 }
 0x31c   : > { %v9056_v56 = vadd.f32 %v9055_v59, %v9054_v43  ;;  %v9120_v36 = vadd.f32 %v9119_v44, %v9118_v41 }
 0x31d   : > { %v9057_v52 = vpop.f32.mrf.mxu0  ;;  %v9121_v47 = vpop.f32.mrf.mxu1  ;;  %6618 = vmatmul.mubr.bf16.gmra.mxu1 %v10431_v49  ;;  %6715 = vmatmul.mubr.bf16.gmra.mxu0 %v10434_v62 }
 0x31e   : > { %v12425_v58 = vadd.f32 %v9056_v56, %v12291_v26  ;;  %v12428_v18 = vadd.f32 %v9120_v36, %v12294_v21  ;;  %6625 = vmatprep.mubr.bf16.mxu1 %v10440_v50  ;;  %6722 = vmatprep.mubr.bf16.mxu0 %v10443_v42  ;;  %v10446_v26 = vld [vmem:[%s10613_s19 + $0xa7c] ss:$108 sps:$4 sm:$0xff]   ;;  %v10444_v50 = vld [vmem:[%s10613_s19 + $0xa78] ss:$108 sps:$4 sm:$0xff]   ;;  %v10447_v42 = vld [vmem:[%s10613_s19 + $0x3c0] ss:$108 sps:$4 sm:$0xff]  }
 0x31f   : > { %v9058_v22 = vpop.f32.mrf.mxu0  ;;  %v9122_v3 = vpop.f32.mrf.mxu1  ;;  %v10456_v56 = vld [vmem:[%s10613_s19 + $0x49c] ss:$108 sps:$4 sm:$0xff]  }
 0x320   : > { %v9059_v30 = vadd.f32 %v9058_v22, %v9057_v52  ;;  %v9123_v57 = vadd.f32 %v9122_v3, %v9121_v47 }
 0x321   : > { %v9060_v7 = vpop.f32.mrf.mxu0  ;;  %v9124_v48 = vpop.f32.mrf.mxu1 }
 0x322   : > { %v12433_v40 = vadd.f32 %v9059_v30, %v12302_v60  ;;  %v12436_v11 = vadd.f32 %v9123_v57, %v12305_v45 }
 0x323   : > { %v9061_v21 = vpop.f32.mrf.mxu0  ;;  %v9125_v17 = vpop.f32.mrf.mxu1 }
 0x324   : > { %v9062_v46 = vadd.f32 %v9061_v21, %v9060_v7  ;;  %v9126_v25 = vadd.f32 %v9125_v17, %v9124_v48 }
 0x325   : > { %v9063_v29 = vpop.f32.mrf.mxu0  ;;  %v9127_v1 = vpop.f32.mrf.mxu1  ;;  %6626 = vmatmul.mubr.bf16.gmra.mxu1 %v10438_v13  ;;  %6723 = vmatmul.mubr.bf16.gmra.mxu0 %v10441_v55 }
 0x326   : > { %v12441_v60 = vadd.f32 %v9062_v46, %v12313_v61  ;;  %v12444_v45 = vadd.f32 %v9126_v25, %v12316_v38  ;;  %6633 = vmatprep.mubr.bf16.mxu1 %v10446_v26  ;;  %6730 = vmatprep.mubr.bf16.mxu0 %v10449_v54  ;;  %v10453_v61 = vld [vmem:[%s10613_s19 + $0xb54] ss:$108 sps:$4 sm:$0xff]   ;;  %v10451_v26 = vld [vmem:[%s10613_s19 + $0xb50] ss:$108 sps:$4 sm:$0xff]   ;;  %v10454_v54 = vld [vmem:[%s10613_s19 + $0x498] ss:$108 sps:$4 sm:$0xff]  }
 0x327   : > { %v9064_v35 = vpop.f32.mrf.mxu0  ;;  %v9128_v10 = vpop.f32.mrf.mxu1  ;;  %v10462_v46 = vld [vmem:[%s10613_s19 + $0x574] ss:$108 sps:$4 sm:$0xff]  }
 0x328   : > { %v9065_v43 = vadd.f32 %v9064_v35, %v9063_v29  ;;  %v9129_v41 = vadd.f32 %v9128_v10, %v9127_v1 }
 0x329   : > { %v9066_v49 = vpop.f32.mrf.mxu0  ;;  %v9130_v62 = vpop.f32.mrf.mxu1 }
 0x32a   : > { %v12449_v59 = vadd.f32 %v9065_v43, %v12321_v20  ;;  %v12452_v44 = vadd.f32 %v9129_v41, %v12324_v24 }
 0x32b   : > { %v9067_v38 = vpop.f32.mrf.mxu0  ;;  %v9131_v36 = vpop.f32.mrf.mxu1 }
 0x32c   : > { %v9068_v52 = vadd.f32 %v9067_v38, %v9066_v49  ;;  %v9132_v47 = vadd.f32 %v9131_v36, %v9130_v62 }
 0x32d   : > { %v9069_v22 = vpop.f32.mrf.mxu0  ;;  %v9133_v3 = vpop.f32.mrf.mxu1  ;;  %6634 = vmatmul.mubr.bf16.gmra.mxu1 %v10444_v50  ;;  %6731 = vmatmul.mubr.bf16.gmra.mxu0 %v10447_v42 }
 0x32e   : > { %v12457_v20 = vadd.f32 %v9068_v52, %v12329_v12  ;;  %v12460_v24 = vadd.f32 %v9132_v47, %v12332_v28  ;;  %6641 = vmatprep.mubr.bf16.mxu1 %v10453_v61  ;;  %6738 = vmatprep.mubr.bf16.mxu0 %v10456_v56  ;;  %v10459_v12 = vld [vmem:[%s10613_s19 + $0xc2c] ss:$108 sps:$4 sm:$0xff]   ;;  %v10457_v61 = vld [vmem:[%s10613_s19 + $0xc28] ss:$108 sps:$4 sm:$0xff]   ;;  %v10460_v56 = vld [vmem:[%s10613_s19 + $0x570] ss:$108 sps:$4 sm:$0xff]  }
 0x32f   : > { %v9070_v30 = vpop.f32.mrf.mxu0  ;;  %v9134_v57 = vpop.f32.mrf.mxu1  ;;  %v10469_v52 = vld [vmem:[%s10613_s19 + $0x64c] ss:$108 sps:$4 sm:$0xff]  }
 0x330   : > { %v9071_v7 = vadd.f32 %v9070_v30, %v9069_v22  ;;  %v9135_v48 = vadd.f32 %v9134_v57, %v9133_v3 }
 0x331   : > { %v9072_v13 = vpop.f32.mrf.mxu0  ;;  %v9136_v55 = vpop.f32.mrf.mxu1 }
 0x332   : > { %v12465_v21 = vadd.f32 %v9071_v7, %v12337_v6  ;;  %v12468_v17 = vadd.f32 %v9135_v48, %v12340_v4 }
 0x333   : > { %v9073_v28 = vpop.f32.mrf.mxu0  ;;  %v9137_v25 = vpop.f32.mrf.mxu1 }
 0x334   : > { %v9074_v29 = vadd.f32 %v9073_v28, %v9072_v13  ;;  %v9138_v1 = vadd.f32 %v9137_v25, %v9136_v55 }
 0x335   : > { %v9075_v35 = vpop.f32.mrf.mxu0  ;;  %v9139_v10 = vpop.f32.mrf.mxu1  ;;  %6642 = vmatmul.mubr.bf16.gmra.mxu1 %v10451_v26  ;;  %6739 = vmatmul.mubr.bf16.gmra.mxu0 %v10454_v54 }
 0x336   : > { %v12473_v6 = vadd.f32 %v9074_v29, %v12345_v14  ;;  %v12476_v4 = vadd.f32 %v9138_v1, %v12348_v27  ;;  %6649 = vmatprep.mubr.bf16.mxu1 %v10459_v12  ;;  %6746 = vmatprep.mubr.bf16.mxu0 %v10462_v46  ;;  %v10466_v14 = vld [vmem:[%s10613_s19 + $0xd04] ss:$108 sps:$4 sm:$0xff]   ;;  %v10464_v12 = vld [vmem:[%s10613_s19 + $0xd00] ss:$108 sps:$4 sm:$0xff]   ;;  %v10467_v46 = vld [vmem:[%s10613_s19 + $0x648] ss:$108 sps:$4 sm:$0xff]  }
 0x337   : > { %v9076_v43 = vpop.f32.mrf.mxu0  ;;  %v9140_v41 = vpop.f32.mrf.mxu1  ;;  %v10473_v29 = vld [vmem:[%s10613_s19 + $0x68] ss:$108 sps:$4 sm:$0xff]  }
 0x338   : > { %v9077_v49 = vadd.f32 %v9076_v43, %v9075_v35  ;;  %v9141_v62 = vadd.f32 %v9140_v41, %v9139_v10 }
 0x339   : > { %v9078_v50 = vpop.f32.mrf.mxu0  ;;  %v9142_v42 = vpop.f32.mrf.mxu1 }
 0x33a   : > { %v12481_v38 = vadd.f32 %v9077_v49, %v12353_v63  ;;  %v12484_v36 = vadd.f32 %v9141_v62, %v12356_v32 }
 0x33b   : > { %v9079_v27 = vpop.f32.mrf.mxu0  ;;  %v9143_v47 = vpop.f32.mrf.mxu1 }
 0x33c   : > { %v9080_v22 = vadd.f32 %v9079_v27, %v9078_v50  ;;  %v9144_v3 = vadd.f32 %v9143_v47, %v9142_v42 }
 0x33d   : > { %v9081_v30 = vpop.f32.mrf.mxu0  ;;  %v9145_v57 = vpop.f32.mrf.mxu1  ;;  %6650 = vmatmul.mubr.bf16.gmra.mxu1 %v10457_v61  ;;  %6747 = vmatmul.mubr.bf16.gmra.mxu0 %v10460_v56 }
 0x33e   : > { %v12489_v63 = vadd.f32 %v9080_v22, %v12361_v5  ;;  %v12492_v32 = vadd.f32 %v9144_v3, %v12364_v23  ;;  %6657 = vmatprep.mubr.bf16.mxu1 %v10466_v14  ;;  %6754 = vmatprep.mubr.bf16.mxu0 %v10469_v52  ;;  %v10472_v5 = vld [vmem:[%s10613_s19 + $0x724] ss:$108 sps:$4 sm:$0xff]   ;;  %v10470_v14 = vld [vmem:[%s10613_s19 + $0x720] ss:$108 sps:$4 sm:$0xff]  }
 0x33f   : > { %v9082_v7 = vpop.f32.mrf.mxu0  ;;  %v9146_v48 = vpop.f32.mrf.mxu1  ;;  %v10474_v52 = vld [vmem:[%s10613_s19 + $0x140] ss:$108 sps:$4 sm:$0xff]   ;;  %v10478_v22 = vld [vmem:[%s10613_s19 + $0x218] ss:$108 sps:$4 sm:$0xff]  }
 0x340   : > { %v9083_v13 = vadd.f32 %v9082_v7, %v9081_v30  ;;  %v9147_v55 = vadd.f32 %v9146_v48, %v9145_v57 }
 0x341   : > { %v9084_v26 = vpop.f32.mrf.mxu0  ;;  %v9148_v54 = vpop.f32.mrf.mxu1 }
 0x342   : > { %v12497_v28 = vadd.f32 %v9083_v13, %v12369_v53  ;;  %v12500_v25 = vadd.f32 %v9147_v55, %v12372_v8 }
 0x343   : > { %v9085_v23 = vpop.f32.mrf.mxu0  ;;  %v9149_v1 = vpop.f32.mrf.mxu1 }
 0x344   : > { %v9086_v35 = vadd.f32 %v9085_v23, %v9084_v26  ;;  %v9150_v10 = vadd.f32 %v9149_v1, %v9148_v54 }
 0x345   : > { %v9087_v43 = vpop.f32.mrf.mxu0  ;;  %v9151_v41 = vpop.f32.mrf.mxu1  ;;  %6658 = vmatmul.mubr.bf16.gmra.mxu1 %v10464_v12  ;;  %6755 = vmatmul.mubr.bf16.gmra.mxu0 %v10467_v46 }
 0x346   : > { %v12505_v53 = vadd.f32 %v9086_v35, %v12377_v39  ;;  %v12508_v8 = vadd.f32 %v9150_v10, %v12380_v34  ;;  %6762 = vmatprep.mubr.bf16.mxu0 %v10472_v5  ;;  %9581 = vmatprep.mubr.bf16.mxu1 %v10473_v29  ;;  %v10477_v39 = vld [vmem:[%s10613_s19 + $0x7fc] ss:$108 sps:$4 sm:$0xff]   ;;  %v10475_v5 = vld [vmem:[%s10613_s19 + $0x7f8] ss:$108 sps:$4 sm:$0xff]  }
 0x347   : > { %v9088_v49 = vpop.f32.mrf.mxu0  ;;  %v9152_v62 = vpop.f32.mrf.mxu1  ;;  %v10479_v29 = vld [vmem:[%s10613_s19 + $0x2f0] ss:$108 sps:$4 sm:$0xff]   ;;  %v10483_v35 = vld [vmem:[%s10613_s19 + $0x3c8] ss:$108 sps:$4 sm:$0xff]  }
 0x348   : > { %v9089_v50 = vadd.f32 %v9088_v49, %v9087_v43  ;;  %v9153_v42 = vadd.f32 %v9152_v62, %v9151_v41 }
 0x349   : > { %v9090_v61 = vpop.f32.mrf.mxu0  ;;  %v9154_v56 = vpop.f32.mrf.mxu1 }
 0x34a   : > { %v12513_v27 = vadd.f32 %v9089_v50, %v12385_v9  ;;  %v12516_v47 = vadd.f32 %v9153_v42, %v12388_v31 }
 0x34b   : > { %v9091_v34 = vpop.f32.mrf.mxu0  ;;  %v9155_v3 = vpop.f32.mrf.mxu1 }
 0x34c   : > { %v9092_v30 = vadd.f32 %v9091_v34, %v9090_v61  ;;  %v9156_v57 = vadd.f32 %v9155_v3, %v9154_v56 }
 0x34d   : > { %v9157_v7 = vpop.f32.mrf.mxu1  ;;  %v9221_v48 = vpop.f32.mrf.mxu0  ;;  %6763 = vmatmul.mubr.bf16.gmra.mxu0 %v10470_v14  ;;  %9582 = vmatmul.mubr.bf16.vlgmr.msra.gmra.mxu1 %v10474_v52 }
 0x34e   : > { %v12521_v9 = vadd.f32 %v9092_v30, %v12393_v19  ;;  %v12524_v31 = vadd.f32 %v9156_v57, %v12396_v0  ;;  %6770 = vmatprep.mubr.bf16.mxu0 %v10477_v39  ;;  %9585 = vmatprep.mubr.bf16.mxu1 %v10478_v22  ;;  %v10482_v19 = vld [vmem:[%s10613_s19 + $0x8d4] ss:$108 sps:$4 sm:$0xff]   ;;  %v10480_v39 = vld [vmem:[%s10613_s19 + $0x8d0] ss:$108 sps:$4 sm:$0xff]   ;;  %v10488_v30 = vld [vmem:[%s10613_s19 + $0x578] ss:$108 sps:$4 sm:$0xff]  }
 0x34f   : > { %v9158_v13 = vpop.f32.mrf.mxu1  ;;  %v9222_v55 = vpop.f32.mrf.mxu0  ;;  %v10484_v22 = vld [vmem:[%s10613_s19 + $0x4a0] ss:$108 sps:$4 sm:$0xff]  }
 0x350   : > { %v9159_v26 = vadd.f32 %v9158_v13, %v9157_v7  ;;  %v9223_v54 = vadd.f32 %v9222_v55, %v9221_v48 }
 0x351   : > { %v9160_v12 = vpop.f32.mrf.mxu1  ;;  %v9224_v46 = vpop.f32.mrf.mxu0 }
 0x352   : > { %v12529_v23 = vadd.f32 %v9159_v26, %v12401_v2  ;;  %v12532_v1 = vadd.f32 %v9223_v54, %v12404_v33 }
 0x353   : > { %v9161_v0 = vpop.f32.mrf.mxu1  ;;  %v9225_v10 = vpop.f32.mrf.mxu0 }
 0x354   : > { %v9162_v43 = vadd.f32 %v9161_v0, %v9160_v12  ;;  %v9226_v41 = vadd.f32 %v9225_v10, %v9224_v46 }
 0x355   : > { %v9163_v49 = vpop.f32.mrf.mxu1  ;;  %v9227_v62 = vpop.f32.mrf.mxu0  ;;  %6771 = vmatmul.mubr.bf16.gmra.mxu0 %v10475_v5  ;;  %9586 = vmatmul.mubr.bf16.gmra.mxu1 %v10479_v29 }
 0x356   : > { %v12537_v2 = vadd.f32 %v9162_v43, %v12409_v37  ;;  %v12540_v33 = vadd.f32 %v9226_v41, %v12412_v15  ;;  %6778 = vmatprep.mubr.bf16.mxu0 %v10482_v19  ;;  %9589 = vmatprep.mubr.bf16.mxu1 %v10483_v35  ;;  %v10487_v37 = vld [vmem:[%s10613_s19 + $0x9ac] ss:$108 sps:$4 sm:$0xff]   ;;  %v10485_v19 = vld [vmem:[%s10613_s19 + $0x9a8] ss:$108 sps:$4 sm:$0xff]   ;;  %v10489_v35 = vld [vmem:[%s10613_s19 + $0x650] ss:$108 sps:$4 sm:$0xff]  }
 0x357   : > { %v9164_v50 = vpop.f32.mrf.mxu1  ;;  %v9228_v42 = vpop.f32.mrf.mxu0  ;;  %v10493_v43 = vld [vmem:[%s10613_s19 + $0x728] ss:$108 sps:$4 sm:$0xff]  }
 0x358   : > { %v9165_v61 = vadd.f32 %v9164_v50, %v9163_v49  ;;  %v9229_v56 = vadd.f32 %v9228_v42, %v9227_v62 }
 0x359   : > { %v9166_v14 = vpop.f32.mrf.mxu1  ;;  %v9230_v52 = vpop.f32.mrf.mxu0 }
 0x35a   : > { %v12545_v34 = vadd.f32 %v9165_v61, %v12417_v16  ;;  %v12548_v3 = vadd.f32 %v9229_v56, %v12420_v51 }
 0x35b   : > { %v9167_v15 = vpop.f32.mrf.mxu1  ;;  %v9231_v57 = vpop.f32.mrf.mxu0 }
 0x35c   : > { %v9168_v7 = vadd.f32 %v9167_v15, %v9166_v14  ;;  %v9232_v48 = vadd.f32 %v9231_v57, %v9230_v52 }
 0x35d   : > { %v9169_v13 = vpop.f32.mrf.mxu1  ;;  %v9233_v55 = vpop.f32.mrf.mxu0  ;;  %6779 = vmatmul.mubr.bf16.gmra.mxu0 %v10480_v39  ;;  %9590 = vmatmul.mubr.bf16.gmra.mxu1 %v10484_v22 }
 0x35e   : > { %v12553_v16 = vadd.f32 %v9168_v7, %v12425_v58  ;;  %v12556_v51 = vadd.f32 %v9232_v48, %v12428_v18  ;;  %6786 = vmatprep.mubr.bf16.mxu0 %v10487_v37  ;;  %9593 = vmatprep.mubr.bf16.mxu1 %v10488_v30  ;;  %v10492_v58 = vld [vmem:[%s10613_s19 + $0xa84] ss:$108 sps:$4 sm:$0xff]   ;;  %v10490_v37 = vld [vmem:[%s10613_s19 + $0xa80] ss:$108 sps:$4 sm:$0xff]  }
 0x35f   : > { %v9170_v26 = vpop.f32.mrf.mxu1  ;;  %v9234_v54 = vpop.f32.mrf.mxu0  ;;  %v10494_v30 = vld [vmem:[%s10613_s19 + $0x800] ss:$108 sps:$4 sm:$0xff]   ;;  %v10498_v7 = vld [vmem:[%s10613_s19 + $0x8d8] ss:$108 sps:$4 sm:$0xff]  }
 0x360   : > { %v9171_v12 = vadd.f32 %v9170_v26, %v9169_v13  ;;  %v9235_v46 = vadd.f32 %v9234_v54, %v9233_v55 }
 0x361   : > { %v9172_v5 = vpop.f32.mrf.mxu1  ;;  %v9236_v29 = vpop.f32.mrf.mxu0 }
 0x362   : > { %v12561_v0 = vadd.f32 %v9171_v12, %v12433_v40  ;;  %v12564_v10 = vadd.f32 %v9235_v46, %v12436_v11 }
 0x363   : > { %v9173_v18 = vpop.f32.mrf.mxu1  ;;  %v9237_v41 = vpop.f32.mrf.mxu0 }
 0x364   : > { %v9174_v49 = vadd.f32 %v9173_v18, %v9172_v5  ;;  %v9238_v62 = vadd.f32 %v9237_v41, %v9236_v29 }
 0x365   : > { %v9175_v50 = vpop.f32.mrf.mxu1  ;;  %v9239_v42 = vpop.f32.mrf.mxu0  ;;  %6787 = vmatmul.mubr.bf16.gmra.mxu0 %v10485_v19  ;;  %9594 = vmatmul.mubr.bf16.gmra.mxu1 %v10489_v35 }
 0x366   : > { %v12569_v40 = vadd.f32 %v9174_v49, %v12441_v60  ;;  %v12572_v11 = vadd.f32 %v9238_v62, %v12444_v45  ;;  %6794 = vmatprep.mubr.bf16.mxu0 %v10492_v58  ;;  %9597 = vmatprep.mubr.bf16.mxu1 %v10493_v43  ;;  %v10497_v60 = vld [vmem:[%s10613_s19 + $0xb5c] ss:$108 sps:$4 sm:$0xff]   ;;  %v10495_v58 = vld [vmem:[%s10613_s19 + $0xb58] ss:$108 sps:$4 sm:$0xff]  }
 0x367   : > { %v9176_v61 = vpop.f32.mrf.mxu1  ;;  %v9240_v56 = vpop.f32.mrf.mxu0  ;;  %v10499_v43 = vld [vmem:[%s10613_s19 + $0x9b0] ss:$108 sps:$4 sm:$0xff]   ;;  %v10503_v49 = vld [vmem:[%s10613_s19 + $0xa88] ss:$108 sps:$4 sm:$0xff]  }
 0x368   : > { %v9177_v14 = vadd.f32 %v9176_v61, %v9175_v50  ;;  %v9241_v52 = vadd.f32 %v9240_v56, %v9239_v42 }
 0x369   : > { %v9178_v39 = vpop.f32.mrf.mxu1  ;;  %v9242_v22 = vpop.f32.mrf.mxu0 }
 0x36a   : > { %v12577_v15 = vadd.f32 %v9177_v14, %v12449_v59  ;;  %v12580_v57 = vadd.f32 %v9241_v52, %v12452_v44 }
 0x36b   : > { %v9179_v45 = vpop.f32.mrf.mxu1  ;;  %v9243_v48 = vpop.f32.mrf.mxu0 }
 0x36c   : > { %v9180_v13 = vadd.f32 %v9179_v45, %v9178_v39  ;;  %v9244_v55 = vadd.f32 %v9243_v48, %v9242_v22 }
 0x36d   : > { %v9181_v26 = vpop.f32.mrf.mxu1  ;;  %v9245_v54 = vpop.f32.mrf.mxu0  ;;  %6795 = vmatmul.mubr.bf16.gmra.mxu0 %v10490_v37  ;;  %9598 = vmatmul.mubr.bf16.gmra.mxu1 %v10494_v30 }
 0x36e   : > { %v12585_v59 = vadd.f32 %v9180_v13, %v12457_v20  ;;  %v12588_v44 = vadd.f32 %v9244_v55, %v12460_v24  ;;  %6802 = vmatprep.mubr.bf16.mxu0 %v10497_v60  ;;  %9601 = vmatprep.mubr.bf16.mxu1 %v10498_v7  ;;  %v10502_v20 = vld [vmem:[%s10613_s19 + $0xc34] ss:$108 sps:$4 sm:$0xff]   ;;  %v10500_v60 = vld [vmem:[%s10613_s19 + $0xc30] ss:$108 sps:$4 sm:$0xff]   ;;  %v10508_v13 = vld [vmem:[%s10613_s19 + $0xc38] ss:$108 sps:$4 sm:$0xff]  }
 0x36f   : > { %v9182_v12 = vpop.f32.mrf.mxu1  ;;  %v9246_v46 = vpop.f32.mrf.mxu0  ;;  %v10504_v7 = vld [vmem:[%s10613_s19 + $0xb60] ss:$108 sps:$4 sm:$0xff]  }
 0x370   : > { %v9183_v5 = vadd.f32 %v9182_v12, %v9181_v26  ;;  %v9247_v29 = vadd.f32 %v9246_v46, %v9245_v54 }
 0x371   : > { %v9184_v19 = vpop.f32.mrf.mxu1  ;;  %v9248_v35 = vpop.f32.mrf.mxu0 }
 0x372   : > { %v12593_v18 = vadd.f32 %v9183_v5, %v12465_v21  ;;  %v12596_v41 = vadd.f32 %v9247_v29, %v12468_v17 }
 0x373   : > { %v9185_v24 = vpop.f32.mrf.mxu1  ;;  %v9249_v62 = vpop.f32.mrf.mxu0 }
 0x374   : > { %v9186_v50 = vadd.f32 %v9185_v24, %v9184_v19  ;;  %v9250_v42 = vadd.f32 %v9249_v62, %v9248_v35 }
 0x375   : > { %v9187_v61 = vpop.f32.mrf.mxu1  ;;  %v9251_v56 = vpop.f32.mrf.mxu0  ;;  %6803 = vmatmul.mubr.bf16.gmra.mxu0 %v10495_v58  ;;  %9602 = vmatmul.mubr.bf16.gmra.mxu1 %v10499_v43 }
 0x376   : > { %v12601_v21 = vadd.f32 %v9186_v50, %v12473_v6  ;;  %v12604_v17 = vadd.f32 %v9250_v42, %v12476_v4  ;;  %6810 = vmatprep.mubr.bf16.mxu0 %v10502_v20  ;;  %9605 = vmatprep.mubr.bf16.mxu1 %v10503_v49  ;;  %v10507_v6 = vld [vmem:[%s10613_s19 + $0xd0c] ss:$108 sps:$4 sm:$0xff]   ;;  %v10505_v20 = vld [vmem:[%s10613_s19 + $0xd08] ss:$108 sps:$4 sm:$0xff]   ;;  %v10509_v49 = vld [vmem:[%s10613_s19 + $0xd10] ss:$108 sps:$4 sm:$0xff]  }
 0x377   : > { %v9188_v14 = vpop.f32.mrf.mxu1  ;;  %v9252_v52 = vpop.f32.mrf.mxu0  ;;  %s7432_s19 = sshll.u32 %s13075_s21, 3 }
 0x378   : > { %v9189_v39 = vadd.f32 %v9188_v14, %v9187_v61  ;;  %v9253_v22 = vadd.f32 %v9252_v52, %v9251_v56  ;;  %s12877_s12 = scalar_lea.vmem %s13048_s3, %s7432_s19 }
 0x379   : > { %v9190_v37 = vpop.f32.mrf.mxu1  ;;  %v9254_v30 = vpop.f32.mrf.mxu0 }
 0x37a   : > { %v12609_v45 = vadd.f32 %v9189_v39, %v12481_v38  ;;  %v12612_v48 = vadd.f32 %v9253_v22, %v12484_v36 }
 0x37b   : > { %v9191_v4 = vpop.f32.mrf.mxu1  ;;  %v9255_v55 = vpop.f32.mrf.mxu0 }
 0x37c   : > { %v9192_v26 = vadd.f32 %v9191_v4, %v9190_v37  ;;  %v9256_v54 = vadd.f32 %v9255_v55, %v9254_v30 }
 0x37d   : > { %v9193_v12 = vpop.f32.mrf.mxu1  ;;  %v9257_v46 = vpop.f32.mrf.mxu0  ;;  %6811 = vmatmul.mubr.bf16.gmra.mxu0 %v10500_v60  ;;  %9606 = vmatmul.mubr.bf16.gmra.mxu1 %v10504_v7 }
 0x37e   : > { %v12617_v5 = vadd.f32 %v9192_v26, %v12489_v63  ;;  %v12620_v38 = vadd.f32 %v9256_v54, %v12492_v32  ;;  %6818 = vmatprep.mubr.bf16.mxu0 %v10507_v6  ;;  %9609 = vmatprep.mubr.bf16.mxu1 %v10508_v13 }
 0x37f   : > { %v9194_v36 = vpop.f32.mrf.mxu1  ;;  %v9258_v29 = vpop.f32.mrf.mxu0 }
 0x380   : > { %v9195_v19 = vadd.f32 %v9194_v36, %v9193_v12  ;;  %v9259_v35 = vadd.f32 %v9258_v29, %v9257_v46 }
 0x381   : > { %v9196_v58 = vpop.f32.mrf.mxu1  ;;  %v9260_v43 = vpop.f32.mrf.mxu0 }
 0x382   : > { %v12625_v24 = vadd.f32 %v9195_v19, %v12497_v28  ;;  %v12628_v62 = vadd.f32 %v9259_v35, %v12500_v25 }
 0x383   : > { %v9197_v63 = vpop.f32.mrf.mxu1  ;;  %v9261_v50 = vpop.f32.mrf.mxu0 }
 0x384   : > { %v9198_v32 = vadd.f32 %v9197_v63, %v9196_v58  ;;  %v9262_v42 = vadd.f32 %v9261_v50, %v9260_v43 }
 0x385   : > { %v9199_v61 = vpop.f32.mrf.mxu1  ;;  %v9263_v56 = vpop.f32.mrf.mxu0  ;;  %6819 = vmatmul.mubr.bf16.gmra.mxu0 %v10505_v20  ;;  %9610 = vmatmul.mubr.bf16.gmra.mxu1 %v10509_v49 }
 0x386   : > { %v12631_v14 = vadd.f32 %v9198_v32, %v12505_v53  ;;  %v12634_v52 = vadd.f32 %v9262_v42, %v12508_v8 }
 0x387   : > { %v9200_v39 = vpop.f32.mrf.mxu1  ;;  %v9264_v28 = vpop.f32.mrf.mxu0 }
 0x388   : > { %v9201_v22 = vadd.f32 %v9200_v39, %v9199_v61  ;;  %v9265_v37 = vadd.f32 %v9264_v28, %v9263_v56 }
 0x389   : > { %v9202_v25 = vpop.f32.mrf.mxu1  ;;  %v9266_v30 = vpop.f32.mrf.mxu0 }
 0x38a   : > { %v12637_v60 = vadd.f32 %v9201_v22, %v12513_v27  ;;  %v12640_v7 = vadd.f32 %v9265_v37, %v12516_v47 }
 0x38b   : > { %v9203_v6 = vpop.f32.mrf.mxu1  ;;  %v9267_v13 = vpop.f32.mrf.mxu0 }
 0x38c   : > { %v9204_v4 = vadd.f32 %v9203_v6, %v9202_v25  ;;  %v9268_v53 = vadd.f32 %v9267_v13, %v9266_v30 }
 0x38d   : > { %v9269_v55 = vpop.f32.mrf.mxu0  ;;  %v9333_v26 = vpop.f32.mrf.mxu1 }
 0x38e   : > { %v12643_v8 = vadd.f32 %v9204_v4, %v12521_v9  ;;  %v12646_v54 = vadd.f32 %v9268_v53, %v12524_v31 }
 0x38f   : > { %v9270_v12 = vpop.f32.mrf.mxu0  ;;  %v9334_v46 = vpop.f32.mrf.mxu1 }
 0x390   : > { %v9271_v36 = vadd.f32 %v9270_v12, %v9269_v55  ;;  %v9335_v27 = vadd.f32 %v9334_v46, %v9333_v26 }
 0x391   : > { %v9272_v29 = vpop.f32.mrf.mxu0  ;;  %v9336_v19 = vpop.f32.mrf.mxu1 }
 0x392   : > { %v12649_v47 = vadd.f32 %v9271_v36, %v12529_v23  ;;  %v12652_v35 = vadd.f32 %v9335_v27, %v12532_v1 }
 0x393   : > { %v9273_v58 = vpop.f32.mrf.mxu0  ;;  %v9337_v43 = vpop.f32.mrf.mxu1 }
 0x394   : > { %v9274_v20 = vadd.f32 %v9273_v58, %v9272_v29  ;;  %v9338_v9 = vadd.f32 %v9337_v43, %v9336_v19 }
 0x395   : > { %v9275_v49 = vpop.f32.mrf.mxu0  ;;  %v9339_v63 = vpop.f32.mrf.mxu1 }
 0x396   : > { %v12655_v31 = vadd.f32 %v9274_v20, %v12537_v2  ;;  %v12658_v50 = vadd.f32 %v9338_v9, %v12540_v33 }
 0x397   : > { %v9276_v32 = vpop.f32.mrf.mxu0  ;;  %v9340_v42 = vpop.f32.mrf.mxu1 }
 0x398   : > { %v9277_v61 = vadd.f32 %v9276_v32, %v9275_v49  ;;  %v9341_v23 = vadd.f32 %v9340_v42, %v9339_v63 }
 0x399   : > { %v9278_v56 = vpop.f32.mrf.mxu0  ;;  %v9342_v39 = vpop.f32.mrf.mxu1 }
 0x39a   : > { %v12661_v1 = vadd.f32 %v9277_v61, %v12545_v34  ;;  %v12664_v28 = vadd.f32 %v9341_v23, %v12548_v3 }
 0x39b   : > { %v9279_v22 = vpop.f32.mrf.mxu0  ;;  %v9343_v37 = vpop.f32.mrf.mxu1 }
 0x39c   : > { %v9280_v25 = vadd.f32 %v9279_v22, %v9278_v56  ;;  %v9344_v2 = vadd.f32 %v9343_v37, %v9342_v39 }
 0x39d   : > { %v9281_v30 = vpop.f32.mrf.mxu0  ;;  %v9345_v6 = vpop.f32.mrf.mxu1 }
 0x39e   : > { %v12667_v33 = vadd.f32 %v9280_v25, %v12553_v16  ;;  %v12670_v13 = vadd.f32 %v9344_v2, %v12556_v51 }
 0x39f   : > { %v9282_v4 = vpop.f32.mrf.mxu0  ;;  %v9346_v53 = vpop.f32.mrf.mxu1 }
 0x3a0   : > { %v9283_v55 = vadd.f32 %v9282_v4, %v9281_v30  ;;  %v9347_v34 = vadd.f32 %v9346_v53, %v9345_v6 }
 0x3a1   : > { %v9284_v26 = vpop.f32.mrf.mxu0  ;;  %v9348_v12 = vpop.f32.mrf.mxu1 }
 0x3a2   : > { %v12673_v3 = vadd.f32 %v9283_v55, %v12561_v0  ;;  %v12676_v46 = vadd.f32 %v9347_v34, %v12564_v10 }
 0x3a3   : > { %v9285_v36 = vpop.f32.mrf.mxu0  ;;  %v9349_v27 = vpop.f32.mrf.mxu1 }
 0x3a4   : > { %v9286_v29 = vadd.f32 %v9285_v36, %v9284_v26  ;;  %v9350_v16 = vadd.f32 %v9349_v27, %v9348_v12 }
 0x3a5   : > { %v9287_v19 = vpop.f32.mrf.mxu0  ;;  %v9351_v58 = vpop.f32.mrf.mxu1 }
 0x3a6   : > { %v12679_v51 = vadd.f32 %v9286_v29, %v12569_v40  ;;  %v12682_v43 = vadd.f32 %v9350_v16, %v12572_v11 }
 0x3a7   : > { %v9288_v20 = vpop.f32.mrf.mxu0  ;;  %v9352_v9 = vpop.f32.mrf.mxu1 }
 0x3a8   : > { %v9289_v49 = vadd.f32 %v9288_v20, %v9287_v19  ;;  %v9353_v0 = vadd.f32 %v9352_v9, %v9351_v58 }
 0x3a9   : > { %v9290_v63 = vpop.f32.mrf.mxu0  ;;  %v9354_v32 = vpop.f32.mrf.mxu1 }
 0x3aa   : > { %v12685_v10 = vadd.f32 %v9289_v49, %v12577_v15  ;;  %v12688_v42 = vadd.f32 %v9353_v0, %v12580_v57 }
 0x3ab   : > { %v9291_v61 = vpop.f32.mrf.mxu0  ;;  %v9355_v23 = vpop.f32.mrf.mxu1 }
 0x3ac   : > { %v9292_v56 = vadd.f32 %v9291_v61, %v9290_v63  ;;  %v9356_v40 = vadd.f32 %v9355_v23, %v9354_v32 }
 0x3ad   : > { %v9293_v39 = vpop.f32.mrf.mxu0  ;;  %v9357_v22 = vpop.f32.mrf.mxu1 }
 0x3ae   : > { %v12691_v11 = vadd.f32 %v9292_v56, %v12585_v59  ;;  %v12694_v37 = vadd.f32 %v9356_v40, %v12588_v44 }
 0x3af   : > { %v9294_v25 = vpop.f32.mrf.mxu0  ;;  %v9358_v2 = vpop.f32.mrf.mxu1 }
 0x3b0   : > { %v9295_v30 = vadd.f32 %v9294_v25, %v9293_v39  ;;  %v9359_v15 = vadd.f32 %v9358_v2, %v9357_v22 }
 0x3b1   : > { %v9296_v6 = vpop.f32.mrf.mxu0  ;;  %v9360_v4 = vpop.f32.mrf.mxu1 }
 0x3b2   : > { %v12697_v57 = vadd.f32 %v9295_v30, %v12593_v18  ;;  %v12700_v53 = vadd.f32 %v9359_v15, %v12596_v41 }
 0x3b3   : > { %v9297_v55 = vpop.f32.mrf.mxu0  ;;  %v9361_v34 = vpop.f32.mrf.mxu1 }
 0x3b4   : > { %v9298_v26 = vadd.f32 %v9297_v55, %v9296_v6  ;;  %v9362_v59 = vadd.f32 %v9361_v34, %v9360_v4 }
 0x3b5   : > { %v9299_v12 = vpop.f32.mrf.mxu0  ;;  %v9363_v36 = vpop.f32.mrf.mxu1 }
 0x3b6   : > { %v12703_v44 = vadd.f32 %v9298_v26, %v12601_v21  ;;  %v12706_v27 = vadd.f32 %v9362_v59, %v12604_v17 }
 0x3b7   : > { %v9300_v29 = vpop.f32.mrf.mxu0  ;;  %v9364_v16 = vpop.f32.mrf.mxu1 }
 0x3b8   : > { %v9301_v19 = vadd.f32 %v9300_v29, %v9299_v12  ;;  %v9365_v18 = vadd.f32 %v9364_v16, %v9363_v36 }
 0x3b9   : > { %v9302_v58 = vpop.f32.mrf.mxu0  ;;  %v9366_v20 = vpop.f32.mrf.mxu1 }
 0x3ba   : > { %v12709_v41 = vadd.f32 %v9301_v19, %v12609_v45  ;;  %v12712_v9 = vadd.f32 %v9365_v18, %v12612_v48 }
 0x3bb   : > { %v9303_v49 = vpop.f32.mrf.mxu0  ;;  %v9367_v0 = vpop.f32.mrf.mxu1 }
 0x3bc   : > { %v9304_v63 = vadd.f32 %v9303_v49, %v9302_v58  ;;  %v9368_v21 = vadd.f32 %v9367_v0, %v9366_v20 }
 0x3bd   : > { %v9305_v32 = vpop.f32.mrf.mxu0  ;;  %v9369_v61 = vpop.f32.mrf.mxu1 }
 0x3be   : > { %v12715_v17 = vadd.f32 %v9304_v63, %v12617_v5  ;;  %v12718_v23 = vadd.f32 %v9368_v21, %v12620_v38 }
 0x3bf   : > { %v9306_v56 = vpop.f32.mrf.mxu0  ;;  %v9370_v40 = vpop.f32.mrf.mxu1 }
 0x3c0   : > { %v9307_v39 = vadd.f32 %v9306_v56, %v9305_v32  ;;  %v9371_v45 = vadd.f32 %v9370_v40, %v9369_v61 }
 0x3c1   : > { %v9308_v22 = vpop.f32.mrf.mxu0  ;;  %v9372_v25 = vpop.f32.mrf.mxu1 }
 0x3c2   : > { %v12721_v48 = vadd.f32 %v9307_v39, %v12625_v24  ;;  %v12724_v2 = vadd.f32 %v9371_v45, %v12628_v62 }
 0x3c3   : > { %v9309_v30 = vpop.f32.mrf.mxu0  ;;  %v9373_v15 = vpop.f32.mrf.mxu1 }
 0x3c4   : > { %v9310_v6 = vadd.f32 %v9309_v30, %v9308_v22  ;;  %v9374_v5 = vadd.f32 %v9373_v15, %v9372_v25 }
 0x3c5   : > { %v9311_v4 = vpop.f32.mrf.mxu0  ;;  %v9375_v55 = vpop.f32.mrf.mxu1 }
 0x3c6   : > { %v12727_v38 = vadd.f32 %v9310_v6, %v12631_v14  ;;  %v12730_v34 = vadd.f32 %v9374_v5, %v12634_v52 }
 0x3c7   : > { %v9312_v26 = vpop.f32.mrf.mxu0  ;;  %v9376_v59 = vpop.f32.mrf.mxu1 }
 0x3c8   : > { %v9313_v12 = vadd.f32 %v9312_v26, %v9311_v4  ;;  %v9377_v24 = vadd.f32 %v9376_v59, %v9375_v55 }
 0x3c9   : > { %v9314_v36 = vpop.f32.mrf.mxu0  ;;  %v9378_v29 = vpop.f32.mrf.mxu1 }
 0x3ca   : > { %v12733_v62 = vadd.f32 %v9313_v12, %v12637_v60  ;;  %v12736_v16 = vadd.f32 %v9377_v24, %v12640_v7 }
 0x3cb   : > { %v9315_v19 = vpop.f32.mrf.mxu0  ;;  %v9379_v18 = vpop.f32.mrf.mxu1 }
 0x3cc   : > { %v9316_v58 = vadd.f32 %v9315_v19, %v9314_v36  ;;  %v9380_v14 = vadd.f32 %v9379_v18, %v9378_v29 }
 0x3cd   : > { %v9381_v20 = vpop.f32.mrf.mxu1  ;;  %v12738_v49 = vpop.f32.mrf.mxu0 }
 0x3ce   : > { %v12741_v52 = vadd.f32 %v9316_v58, %v12643_v8  ;;  %v12744_v0 = vadd.f32 %v9380_v14, %v12646_v54 }
 0x3cf   : > { %v9382_v63 = vpop.f32.mrf.mxu1  ;;  %v12746_v21 = vpop.f32.mrf.mxu0 }
 0x3d0   : > { %v9383_v60 = vadd.f32 %v9382_v63, %v9381_v20 }
 0x3d1   : > { %v9384_v32 = vpop.f32.mrf.mxu1  ;;  %v12748_v7 = vpop.f32.mrf.mxu0 }
 0x3d2   : > { %v12751_v61 = vadd.f32 %v9383_v60, %v12649_v47 }
 0x3d3   : > { %v9385_v56 = vpop.f32.mrf.mxu1  ;;  %v12753_v40 = vpop.f32.mrf.mxu0 }
 0x3d4   : > { %v9386_v39 = vadd.f32 %v9385_v56, %v9384_v32 }
 0x3d5   : > { %v9387_v45 = vpop.f32.mrf.mxu1  ;;  %v12755_v8 = vpop.f32.mrf.mxu0 }
 0x3d6   : > { %v12758_v54 = vadd.f32 %v9386_v39, %v12655_v31 }
 0x3d7   : > { %v9388_v22 = vpop.f32.mrf.mxu1  ;;  %v12760_v25 = vpop.f32.mrf.mxu0 }
 0x3d8   : > { %13050 = vst [vmem:[#allocation3_spill] sm:$0xff] %v12758_v54  ;;  %v9389_v30 = vadd.f32 %v9388_v22, %v9387_v45 }
 0x3d9   : > { %v9390_v15 = vpop.f32.mrf.mxu1  ;;  %v12762_v6 = vpop.f32.mrf.mxu0 }
 0x3da   : > { %v12765_v47 = vadd.f32 %v9389_v30, %v12661_v1 }
 0x3db   : > { %v9391_v5 = vpop.f32.mrf.mxu1  ;;  %v12767_v4 = vpop.f32.mrf.mxu0 }
 0x3dc   : > { %v9392_v55 = vadd.f32 %v9391_v5, %v9390_v15 }
 0x3dd   : > { %v9393_v26 = vpop.f32.mrf.mxu1  ;;  %v12769_v59 = vpop.f32.mrf.mxu0 }
 0x3de   : > { %v12772_v31 = vadd.f32 %v9392_v55, %v12667_v33 }
 0x3df   : > { %v9394_v12 = vpop.f32.mrf.mxu1  ;;  %v12774_v24 = vpop.f32.mrf.mxu0 }
 0x3e0   : > { %v9395_v36 = vadd.f32 %v9394_v12, %v9393_v26 }
 0x3e1   : > { %v9396_v29 = vpop.f32.mrf.mxu1  ;;  %v12776_v19 = vpop.f32.mrf.mxu0 }
 0x3e2   : > { %v12779_v1 = vadd.f32 %v9395_v36, %v12673_v3 }
 0x3e3   : > { %v9397_v18 = vpop.f32.mrf.mxu1  ;;  %v12781_v58 = vpop.f32.mrf.mxu0 }
 0x3e4   : > { %13051 = vst [vmem:[#allocation4_spill] sm:$0xff] %v12779_v1  ;;  %v9398_v14 = vadd.f32 %v9397_v18, %v9396_v29 }
 0x3e5   : > { %v9399_v20 = vpop.f32.mrf.mxu1  ;;  %v12783_v63 = vpop.f32.mrf.mxu0 }
 0x3e6   : > { %v12786_v33 = vadd.f32 %v9398_v14, %v12679_v51 }
 0x3e7   : > { %v9400_v60 = vpop.f32.mrf.mxu1  ;;  %v12788_v32 = vpop.f32.mrf.mxu0 }
 0x3e8   : > { %13052 = vst [vmem:[#allocation5_spill] sm:$0xff] %v12786_v33  ;;  %v9401_v56 = vadd.f32 %v9400_v60, %v9399_v20 }
 0x3e9   : > { %v9402_v39 = vpop.f32.mrf.mxu1  ;;  %v12790_v45 = vpop.f32.mrf.mxu0 }
 0x3ea   : > { %v12793_v3 = vadd.f32 %v9401_v56, %v12685_v10 }
 0x3eb   : > { %v9403_v22 = vpop.f32.mrf.mxu1  ;;  %v12795_v30 = vpop.f32.mrf.mxu0 }
 0x3ec   : > { %13053 = vst [vmem:[#allocation6_spill] sm:$0xff] %v12793_v3  ;;  %v9404_v15 = vadd.f32 %v9403_v22, %v9402_v39 }
 0x3ed   : > { %v9405_v5 = vpop.f32.mrf.mxu1  ;;  %v12797_v55 = vpop.f32.mrf.mxu0 }
 0x3ee   : > { %v12800_v51 = vadd.f32 %v9404_v15, %v12691_v11 }
 0x3ef   : > { %v9406_v26 = vpop.f32.mrf.mxu1  ;;  %v12802_v12 = vpop.f32.mrf.mxu0 }
 0x3f0   : > { %13054 = vst [vmem:[#allocation7_spill] sm:$0xff] %v12800_v51  ;;  %v9407_v36 = vadd.f32 %v9406_v26, %v9405_v5 }
 0x3f1   : > { %v9408_v29 = vpop.f32.mrf.mxu1  ;;  %v12804_v18 = vpop.f32.mrf.mxu0 }
 0x3f2   : > { %v12807_v10 = vadd.f32 %v9407_v36, %v12697_v57 }
 0x3f3   : > { %v9409_v14 = vpop.f32.mrf.mxu1  ;;  %v12809_v20 = vpop.f32.mrf.mxu0 }
 0x3f4   : > { %13055 = vst [vmem:[#allocation8_spill] sm:$0xff] %v12807_v10  ;;  %v9410_v60 = vadd.f32 %v9409_v14, %v9408_v29 }
 0x3f5   : > { %v9411_v56 = vpop.f32.mrf.mxu1  ;;  %v12811_v39 = vpop.f32.mrf.mxu0 }
 0x3f6   : > { %v12814_v11 = vadd.f32 %v9410_v60, %v12703_v44 }
 0x3f7   : > { %v9412_v22 = vpop.f32.mrf.mxu1  ;;  %v12816_v15 = vpop.f32.mrf.mxu0 }
 0x3f8   : > { %13056 = vst [vmem:[#allocation9_spill] sm:$0xff] %v12814_v11  ;;  %v9413_v5 = vadd.f32 %v9412_v22, %v9411_v56 }
 0x3f9   : > { %v9414_v26 = vpop.f32.mrf.mxu1  ;;  %v12818_v33 = vpop.f32.mrf.mxu0 }
 0x3fa   : > { %v12821_v57 = vadd.f32 %v9413_v5, %v12709_v41 }
 0x3fb   : > { %v9415_v36 = vpop.f32.mrf.mxu1  ;;  %v12823_v10 = vpop.f32.mrf.mxu0 }
 0x3fc   : > { %13057 = vst [vmem:[#allocation10_spill] sm:$0xff] %v12821_v57  ;;  %v9416_v29 = vadd.f32 %v9415_v36, %v9414_v26 }
 0x3fd   : > { %v9417_v14 = vpop.f32.mrf.mxu1  ;;  %v12825_v51 = vpop.f32.mrf.mxu0 }
 0x3fe   : > { %v12828_v44 = vadd.f32 %v9416_v29, %v12715_v17 }
 0x3ff   : > { %v9418_v60 = vpop.f32.mrf.mxu1  ;;  %v12830_v11 = vpop.f32.mrf.mxu0 }
 0x400   : > { %13058 = vst [vmem:[#allocation11_spill] sm:$0xff] %v12828_v44  ;;  %v9419_v56 = vadd.f32 %v9418_v60, %v9417_v14  ;;  %v9453_v14 = vadd.f32 %v12760_v25, %v12755_v8 }
 0x401   : > { %v9420_v22 = vpop.f32.mrf.mxu1  ;;  %v12832_v1 = vpop.f32.mrf.mxu0 }
 0x402   : > { %v12835_v41 = vadd.f32 %v9419_v56, %v12721_v48  ;;  %v6709_v8 = vadd.f32 %v9453_v14, %v12664_v28 }
 0x403   : > { %v9421_v5 = vpop.f32.mrf.mxu1  ;;  %v12837_v57 = vpop.f32.mrf.mxu0 }
 0x404   : > { %13059 = vst [vmem:[#allocation12_spill] sm:$0xff] %v12835_v41  ;;  %v9422_v26 = vadd.f32 %v9421_v5, %v9420_v22  ;;  %v9447_v22 = vadd.f32 %v12746_v21, %v12738_v49  ;;  %v12866_v49 = vld [vmem:[%s13047_s2] ss:$0 sm:$0xff] }
 0x405   : > { %v9423_v36 = vpop.f32.mrf.mxu1  ;;  %v12839_v3 = vpop.f32.mrf.mxu0 }
 0x406   : > { %v12842_v17 = vadd.f32 %v9422_v26, %v12727_v38  ;;  %v9456_v38 = vadd.f32 %v12767_v4, %v12762_v6  ;;  %v6701_v6 = vadd.f32 %v9447_v22, %v12652_v35 }
 0x407   : > { %v9424_v29 = vpop.f32.mrf.mxu1  ;;  %v12844_v44 = vpop.f32.mrf.mxu0 }
 0x408   : > { %v9425_v60 = vadd.f32 %v9424_v29, %v9423_v36 }
 0x409   : > { %v9426_v48 = vpop.f32.mrf.mxu1  ;;  %v12848_v56 = vpop.f32.mrf.mxu0 }
 0x40a   : > { %v12853_v5 = vadd.f32 %v9425_v60, %v12733_v62  ;;  %v9450_v62 = vadd.f32 %v12753_v40, %v12748_v7  ;;  %v6712_v40 = vadd.f32 %v9456_v38, %v12670_v13 }
 0x40b   : > { %v9427_v41 = vpop.f32.mrf.mxu1  ;;  %v12855_v54 = vpop.f32.mrf.mxu0 }
 0x40c   : > { %v9428_v26 = vadd.f32 %v9427_v41, %v9426_v48  ;;  %v9465_v41 = vadd.f32 %v12788_v32, %v12783_v63  ;;  %v6704_v22 = vadd.f32 %v9450_v62, %v12658_v50  ;;  %v9468_v63 = vadd.f32 %v12795_v30, %v12790_v45 }
 0x40d   : > { %v12861_v25 = vpop.f32.mrf.mxu0  ;;  %v9583_v36 = vpop.f32.mrf.mxu1  ;;  %v9477_v45 = vadd.f32 %v12816_v15, %v12811_v39 }
 0x40e   : > { %v12871_v21 = vadd.f32 %v9428_v26, %v12741_v52  ;;  %v6870_v29 = vadd.f32 %v9583_v36, %v6709_v8  ;;  %v9459_v26 = vadd.f32 %v12774_v24, %v12769_v59  ;;  %v6725_v36 = vadd.f32 %v9465_v41, %v12688_v42 }
 0x40f   : > { %v12879_v28 = vpop.f32.mrf.mxu0  ;;  %v6861_v4 = vpop.f32.mrf.mxu1  ;;  %v9462_v24 = vadd.f32 %v12781_v58, %v12776_v19  ;;  %v6728_v42 = vadd.f32 %v9468_v63, %v12694_v37  ;;  %v9471_v19 = vadd.f32 %v12802_v12, %v12797_v55  ;;  %v9480_v37 = vadd.f32 %v12823_v10, %v12818_v33 }
 0x410   : > { %v7096_v7 = vadd.f32 %v12866_v49, %v6870_v29  ;;  %v6862_v52 = vadd.f32 %v6861_v4, %v6701_v6  ;;  %v6717_v62 = vadd.f32 %v9459_v26, %v12676_v46  ;;  %v6741_v12 = vadd.f32 %v9477_v45, %v12712_v9 }
 0x411   : > { %v12885_v14 = vpop.f32.mrf.mxu0  ;;  %v9584_v35 = vpop.f32.mrf.mxu1 }
 0x412   : > { %7128 = vst [vmem:[%s12877_s12 + $0x10] sm:$0xff] %v7096_v7  ;;  %v7094_v60 = vadd.f32 %v12866_v49, %v6862_v52  ;;  %v6873_v48 = vadd.f32 %v9584_v35, %v6712_v40  ;;  %v7197_v15 = vmul.f32 %v7096_v7, %v7096_v7 }
 0x413   : > { %v12894_v32 = vpop.f32.mrf.mxu0  ;;  %v6864_v8 = vpop.f32.mrf.mxu1 }
 0x414   : > { %7126 = vst [vmem:[%s12877_s12] sm:$0xff] %v7094_v60  ;;  %v7097_v13 = vadd.f32 %v12866_v49, %v6873_v48  ;;  %v6865_v38 = vadd.f32 %v6864_v8, %v6704_v22  ;;  %v7195_v41 = vmul.f32 %v7094_v60, %v7094_v60  ;;  %v6720_v8 = vadd.f32 %v9462_v24, %v12682_v43 }
 0x415   : > { %v12899_v29 = vpop.f32.mrf.mxu0  ;;  %v9587_v6 = vpop.f32.mrf.mxu1  ;;  %v6733_v43 = vadd.f32 %v9471_v19, %v12700_v53 }
 0x416   : > { %7129 = vst [vmem:[%s12877_s12 + $0x18] sm:$0xff] %v7097_v13  ;;  %v7095_v50 = vadd.f32 %v12866_v49, %v6865_v38  ;;  %v6886_v59 = vadd.f32 %v9587_v6, %v6725_v36  ;;  %v7198_v38 = vmul.f32 %v7097_v13, %v7097_v13 }
 0x417   : > { %v12907_v30 = vpop.f32.mrf.mxu0  ;;  %v6877_v4 = vpop.f32.mrf.mxu1 }
 0x418   : > { %7127 = vst [vmem:[%s12877_s12 + $0x8] sm:$0xff] %v7095_v50  ;;  %v7158_v52 = vadd.f32 %v7095_v50, %v7094_v60  ;;  %v7196_v40 = vmul.f32 %v7095_v50, %v7095_v50  ;;  %v7100_v35 = vadd.f32 %v12866_v49, %v6886_v59  ;;  %v6878_v58 = vadd.f32 %v6877_v4, %v6717_v62 }
 0x419   : > { %v12915_v48 = vpop.f32.mrf.mxu0  ;;  %v9588_v39 = vpop.f32.mrf.mxu1  ;;  %v9474_v50 = vadd.f32 %v12809_v20, %v12804_v18  ;;  %v6744_v18 = vadd.f32 %v9480_v37, %v12718_v23  ;;  %v9489_v20 = vadd.f32 %v12844_v44, %v12839_v3  ;;  %v9492_v44 = vadd.f32 %v12855_v54, %v12848_v56 }
 0x41a   : > { %v7159_v22 = vadd.f32 %v7158_v52, %v7096_v7  ;;  %v7227_v46 = vadd.f32 %v7196_v40, %v7195_v41  ;;  %7132 = vst [vmem:[%s12877_s12 + $0x30] sm:$0xff] %v7100_v35  ;;  %v6889_v26 = vadd.f32 %v9588_v39, %v6728_v42  ;;  %v7098_v60 = vadd.f32 %v12866_v49, %v6878_v58 }
 0x41b   : > { %v12921_v63 = vpop.f32.mrf.mxu0  ;;  %v6880_v55 = vpop.f32.mrf.mxu1  ;;  %v6736_v3 = vadd.f32 %v9474_v50, %v12706_v27  ;;  %v9486_v54 = vadd.f32 %v12837_v57, %v12832_v1 }
 0x41c   : > { %v7228_v36 = vadd.f32 %v7227_v46, %v7197_v15  ;;  %v7160_v6 = vadd.f32 %v7159_v22, %v7097_v13  ;;  %v7101_v7 = vadd.f32 %v12866_v49, %v6889_v26  ;;  %7130 = vst [vmem:[%s12877_s12 + $0x20] sm:$0xff] %v7098_v60  ;;  %v6881_v33 = vadd.f32 %v6880_v55, %v6720_v8 }
 0x41d   : > { %v12929_v10 = vpop.f32.mrf.mxu0  ;;  %v9591_v59 = vpop.f32.mrf.mxu1  ;;  %v7199_v62 = vmul.f32 %v7098_v60, %v7098_v60  ;;  %v9483_v15 = vadd.f32 %v12830_v11, %v12825_v51  ;;  %v7201_v46 = vmul.f32 %v7100_v35, %v7100_v35  ;;  %v6757_v11 = vadd.f32 %v9489_v20, %v12736_v16 }
 0x41e   : > { %v7161_v24 = vadd.f32 %v7160_v6, %v7098_v60  ;;  %v7229_v4 = vadd.f32 %v7228_v36, %v7198_v38  ;;  %7133 = vst [vmem:[%s12877_s12 + $0x38] sm:$0xff] %v7101_v7  ;;  %v6902_v9 = vadd.f32 %v9591_v59, %v6741_v12  ;;  %v7099_v13 = vadd.f32 %v12866_v49, %v6881_v33 }
 0x41f   : > { %v12934_v45 = vpop.f32.mrf.mxu0  ;;  %v6893_v42 = vpop.f32.mrf.mxu1  ;;  %v7202_v12 = vmul.f32 %v7101_v7, %v7101_v7  ;;  %v6749_v50 = vadd.f32 %v9483_v15, %v12724_v2 }
 0x420   : > { %v7230_v41 = vadd.f32 %v7229_v4, %v7199_v62  ;;  %v7104_v52 = vadd.f32 %v12866_v49, %v6902_v9  ;;  %v6894_v53 = vadd.f32 %v6893_v42, %v6733_v43  ;;  %7131 = vst [vmem:[%s12877_s12 + $0x28] sm:$0xff] %v7099_v13  ;;  %v7162_v40 = vadd.f32 %v7161_v24, %v7099_v13 }
 0x421   : > { %v7200_v19 = vmul.f32 %v7099_v13, %v7099_v13  ;;  %v12941_v58 = vpop.f32.mrf.mxu0  ;;  %v9592_v39 = vpop.f32.mrf.mxu1  ;;  %v6760_v62 = vadd.f32 %v9492_v44, %v12744_v0 }
 0x422   : > { %7136 = vst [vmem:[%s12877_s12 + $0x50] sm:$0xff] %v7104_v52  ;;  %v7102_v23 = vadd.f32 %v12866_v49, %v6894_v53  ;;  %v6905_v22 = vadd.f32 %v9592_v39, %v6744_v18  ;;  %v7163_v26 = vadd.f32 %v7162_v40, %v7100_v35  ;;  %v9495_v18 = vadd.f32 %v12879_v28, %v12861_v25 }
 0x423   : > { %v7231_v37 = vadd.f32 %v7230_v41, %v7200_v19  ;;  %v12950_v60 = vpop.f32.mrf.mxu0  ;;  %v6896_v8 = vpop.f32.mrf.mxu1  ;;  %v6752_v41 = vadd.f32 %v9486_v54, %v12730_v34 }
 0x424   : > { %7134 = vst [vmem:[%s12877_s12 + $0x40] sm:$0xff] %v7102_v23  ;;  %v7105_v55 = vadd.f32 %v12866_v49, %v6905_v22  ;;  %v6897_v51 = vadd.f32 %v6896_v8, %v6736_v3  ;;  %v7164_v27 = vadd.f32 %v7163_v26, %v7101_v7  ;;  %v7203_v59 = vmul.f32 %v7102_v23, %v7102_v23 }
 0x425   : > { %v7232_v38 = vadd.f32 %v7231_v37, %v7201_v46  ;;  %v9511_v36 = vpop.f32.mrf.mxu0  ;;  %v9595_v6 = vpop.f32.mrf.mxu1  ;;  %v9501_v7 = vadd.f32 %v12907_v30, %v12899_v29  ;;  %v9504_v29 = vadd.f32 %v12921_v63, %v12915_v48  ;;  %v7205_v30 = vmul.f32 %v7104_v52, %v7104_v52 }
 0x426   : > { %7137 = vst [vmem:[%s12877_s12 + $0x58] sm:$0xff] %v7105_v55  ;;  %v7103_v56 = vadd.f32 %v12866_v49, %v6897_v51  ;;  %v6918_v35 = vadd.f32 %v9595_v6, %v6757_v11  ;;  %v7165_v33 = vadd.f32 %v7164_v27, %v7102_v23  ;;  %v7206_v28 = vmul.f32 %v7105_v55, %v7105_v55 }
 0x427   : > { %v7233_v43 = vadd.f32 %v7232_v38, %v7202_v12  ;;  %v9512_v16 = vpop.f32.mrf.mxu0  ;;  %v6909_v24 = vpop.f32.mrf.mxu1  ;;  %v6773_v25 = vadd.f32 %v9501_v7, %v12765_v47  ;;  %v9498_v48 = vadd.f32 %v12894_v32, %v12885_v14  ;;  %v6765_v46 = vadd.f32 %v9495_v18, %v12751_v61 }
 0x428   : > { %7135 = vst [vmem:[%s12877_s12 + $0x48] sm:$0xff] %v7103_v56  ;;  %v7204_v4 = vmul.f32 %v7103_v56, %v7103_v56  ;;  %v7108_v1 = vadd.f32 %v12866_v49, %v6918_v35  ;;  %v6910_v57 = vadd.f32 %v6909_v24, %v6749_v50  ;;  %v7166_v13 = vadd.f32 %v7165_v33, %v7103_v56  ;;  %v13060_v50 = vld [vmem:[#allocation3_spill] sm:$0xff] }
 0x429   : > { %v7234_v9 = vadd.f32 %v7233_v43, %v7203_v59  ;;  %v9514_v2 = vpop.f32.mrf.mxu0  ;;  %v9596_v42 = vpop.f32.mrf.mxu1  ;;  %v6776_v11 = vadd.f32 %v9504_v29, %v12772_v31  ;;  %v9507_v61 = vadd.f32 %v12934_v45, %v12929_v10  ;;  %v6768_v31 = vadd.f32 %v9498_v48, %v13060_v50 }
 0x42a   : > { %7140 = vst [vmem:[%s12877_s12 + $0x70] sm:$0xff] %v7108_v1  ;;  %v7106_v20 = vadd.f32 %v12866_v49, %v6910_v57  ;;  %v6921_v0 = vadd.f32 %v9596_v42, %v6760_v62  ;;  %v7167_v53 = vadd.f32 %v7166_v13, %v7104_v52  ;;  %v9510_v18 = vadd.f32 %v12950_v60, %v12941_v58 }
 0x42b   : > { %v7235_v40 = vadd.f32 %v7234_v9, %v7204_v4  ;;  %v9515_v19 = vpop.f32.mrf.mxu0  ;;  %v6912_v39 = vpop.f32.mrf.mxu1  ;;  %v13061_v4 = vld [vmem:[#allocation6_spill] sm:$0xff] }
 0x42c   : > { %7138 = vst [vmem:[%s12877_s12 + $0x60] sm:$0xff] %v7106_v20  ;;  %v7109_v15 = vadd.f32 %v12866_v49, %v6921_v0  ;;  %v6913_v23 = vadd.f32 %v6912_v39, %v6752_v41  ;;  %v7168_v3 = vadd.f32 %v7167_v53, %v7105_v55  ;;  %v7207_v37 = vmul.f32 %v7106_v20, %v7106_v20 }
 0x42d   : > { %v7236_v22 = vadd.f32 %v7235_v40, %v7205_v30  ;;  %v9517_v34 = vpop.f32.mrf.mxu0  ;;  %v9599_v44 = vpop.f32.mrf.mxu1  ;;  %v9513_v55 = vadd.f32 %v9512_v16, %v9511_v36  ;;  %v7209_v36 = vmul.f32 %v7108_v1, %v7108_v1  ;;  %v9516_v33 = vadd.f32 %v9515_v19, %v9514_v2  ;;  %v13063_v19 = vld [vmem:[#allocation7_spill] sm:$0xff] }
 0x42e   : > { %7141 = vst [vmem:[%s12877_s12 + $0x78] sm:$0xff] %v7109_v15  ;;  %v7107_v63 = vadd.f32 %v12866_v49, %v6913_v23  ;;  %v6934_v52 = vadd.f32 %v9599_v44, %v6773_v25  ;;  %v7169_v26 = vadd.f32 %v7168_v3, %v7106_v20  ;;  %v7210_v10 = vmul.f32 %v7109_v15, %v7109_v15  ;;  %v13062_v20 = vld [vmem:[#allocation4_spill] sm:$0xff] }
 0x42f   : > { %v7237_v8 = vadd.f32 %v7236_v22, %v7206_v28  ;;  %v9518_v47 = vpop.f32.mrf.mxu0  ;;  %v6925_v51 = vpop.f32.mrf.mxu1  ;;  %v6789_v57 = vadd.f32 %v9513_v55, %v13061_v4  ;;  %v6781_v0 = vadd.f32 %v9507_v61, %v13062_v20  ;;  %v6792_v39 = vadd.f32 %v9516_v33, %v13063_v19 }
 0x430   : > { %7139 = vst [vmem:[%s12877_s12 + $0x68] sm:$0xff] %v7107_v63  ;;  %v7208_v12 = vmul.f32 %v7107_v63, %v7107_v63  ;;  %v7112_v38 = vadd.f32 %v12866_v49, %v6934_v52  ;;  %v6926_v14 = vadd.f32 %v6925_v51, %v6765_v46  ;;  %v7170_v27 = vadd.f32 %v7169_v26, %v7107_v63  ;;  %v13064_v52 = vld [vmem:[#allocation5_spill] sm:$0xff] }
 0x431   : > { %v7238_v32 = vadd.f32 %v7237_v8, %v7207_v37  ;;  %v9520_v6 = vpop.f32.mrf.mxu0  ;;  %v9600_v54 = vpop.f32.mrf.mxu1  ;;  %v9519_v44 = vadd.f32 %v9518_v47, %v9517_v34  ;;  %v6784_v46 = vadd.f32 %v9510_v18, %v13064_v52 }
 0x432   : > { %7144 = vst [vmem:[%s12877_s12 + $0x90] sm:$0xff] %v7112_v38  ;;  %v7110_v56 = vadd.f32 %v12866_v49, %v6926_v14  ;;  %v6937_v35 = vadd.f32 %v9600_v54, %v6776_v11  ;;  %v7171_v59 = vadd.f32 %v7170_v27, %v7108_v1  ;;  %v7213_v26 = vmul.f32 %v7112_v38, %v7112_v38 }
 0x433   : > { %v7239_v43 = vadd.f32 %v7238_v32, %v7208_v12  ;;  %v9521_v16 = vpop.f32.mrf.mxu0  ;;  %v6928_v24 = vpop.f32.mrf.mxu1  ;;  %v13065_v32 = vld [vmem:[#allocation10_spill] sm:$0xff] }
 0x434   : > { %7142 = vst [vmem:[%s12877_s12 + $0x80] sm:$0xff] %v7110_v56  ;;  %v7113_v62 = vadd.f32 %v12866_v49, %v6937_v35  ;;  %v6929_v7 = vadd.f32 %v6928_v24, %v6768_v31  ;;  %v7172_v9 = vadd.f32 %v7171_v59, %v7109_v15  ;;  %v7211_v29 = vmul.f32 %v7110_v56, %v7110_v56  ;;  %v13066_v31 = vld [vmem:[#allocation8_spill] sm:$0xff] }
 0x435   : > { %v7240_v45 = vadd.f32 %v7239_v43, %v7209_v36  ;;  %v9523_v13 = vpop.f32.mrf.mxu0  ;;  %v9603_v42 = vpop.f32.mrf.mxu1  ;;  %v9522_v35 = vadd.f32 %v9521_v16, %v9520_v6  ;;  %v6797_v36 = vadd.f32 %v9519_v44, %v13066_v31 }
 0x436   : > { %7145 = vst [vmem:[%s12877_s12 + $0x98] sm:$0xff] %v7113_v62  ;;  %v7111_v1 = vadd.f32 %v12866_v49, %v6929_v7  ;;  %v6950_v2 = vadd.f32 %v9603_v42, %v6789_v57  ;;  %v7173_v41 = vadd.f32 %v7172_v9, %v7110_v56  ;;  %v7214_v34 = vmul.f32 %v7113_v62, %v7113_v62 }
 0x437   : > { %v7241_v30 = vadd.f32 %v7240_v45, %v7210_v10  ;;  %v9524_v53 = vpop.f32.mrf.mxu0  ;;  %v6941_v40 = vpop.f32.mrf.mxu1  ;;  %v13067_v10 = vld [vmem:[#allocation11_spill] sm:$0xff] }
 0x438   : > { %7143 = vst [vmem:[%s12877_s12 + $0x88] sm:$0xff] %v7111_v1  ;;  %v7212_v15 = vmul.f32 %v7111_v1, %v7111_v1  ;;  %v7116_v23 = vadd.f32 %v12866_v49, %v6950_v2  ;;  %v9525_v25 = vadd.f32 %v9524_v53, %v9523_v13  ;;  %v6942_v58 = vadd.f32 %v6941_v40, %v6781_v0  ;;  %v13068_v2 = vld [vmem:[#allocation9_spill] sm:$0xff] }
 0x439   : > { %v7242_v60 = vadd.f32 %v7241_v30, %v7211_v29  ;;  %v7174_v28 = vadd.f32 %v7173_v41, %v7111_v1  ;;  %v9526_v22 = vpop.f32.mrf.mxu0  ;;  %v9604_v3 = vpop.f32.mrf.mxu1  ;;  %v6800_v20 = vadd.f32 %v9522_v35, %v13068_v2 }
 0x43a   : > { %7148 = vst [vmem:[%s12877_s12 + $0xb0] sm:$0xff] %v7116_v23  ;;  %v7114_v48 = vadd.f32 %v12866_v49, %v6942_v58  ;;  %v6953_v63 = vadd.f32 %v9604_v3, %v6792_v39  ;;  %v6805_v27 = vadd.f32 %v9525_v25, %v13065_v32  ;;  %v7217_v0 = vmul.f32 %v7116_v23, %v7116_v23  ;;  %v13069_v3 = vld [vmem:[#allocation12_spill] sm:$0xff] }
 0x43b   : > { %v7175_v37 = vadd.f32 %v7174_v28, %v7112_v38  ;;  %v7243_v8 = vadd.f32 %v7242_v60, %v7212_v15  ;;  %v9527_v51 = vpop.f32.mrf.mxu0  ;;  %v6944_v11 = vpop.f32.mrf.mxu1 }
 0x43c   : > { %7146 = vst [vmem:[%s12877_s12 + $0xa0] sm:$0xff] %v7114_v48  ;;  %v7117_v55 = vadd.f32 %v12866_v49, %v6953_v63  ;;  %v9528_v12 = vadd.f32 %v9527_v51, %v9526_v22  ;;  %v6945_v14 = vadd.f32 %v6944_v11, %v6784_v46  ;;  %v7215_v59 = vmul.f32 %v7114_v48, %v7114_v48 }
 0x43d   : > { %v7244_v47 = vadd.f32 %v7243_v8, %v7213_v26  ;;  %v7176_v54 = vadd.f32 %v7175_v37, %v7113_v62  ;;  %v9529_v61 = vpop.f32.mrf.mxu0  ;;  %v9607_v56 = vpop.f32.mrf.mxu1 }
 0x43e   : > { %7149 = vst [vmem:[%s12877_s12 + $0xb8] sm:$0xff] %v7117_v55  ;;  %v7115_v38 = vadd.f32 %v12866_v49, %v6945_v14  ;;  %v6966_v50 = vadd.f32 %v9607_v56, %v6805_v27  ;;  %v6808_v6 = vadd.f32 %v9528_v12, %v13067_v10  ;;  %v7218_v39 = vmul.f32 %v7117_v55, %v7117_v55 }
 0x43f   : > { %v7177_v33 = vadd.f32 %v7176_v54, %v7114_v48  ;;  %v7245_v43 = vadd.f32 %v7244_v47, %v7214_v34  ;;  %v9530_v24 = vpop.f32.mrf.mxu0  ;;  %v6957_v7 = vpop.f32.mrf.mxu1 }
 0x440   : > { %7147 = vst [vmem:[%s12877_s12 + $0xa8] sm:$0xff] %v7115_v38  ;;  %v7216_v4 = vmul.f32 %v7115_v38, %v7115_v38  ;;  %v7120_v57 = vadd.f32 %v12866_v49, %v6966_v50  ;;  %v6958_v62 = vadd.f32 %v6957_v7, %v6797_v36  ;;  %v9531_v42 = vadd.f32 %v9530_v24, %v9529_v61 }
 0x441   : > { %v7246_v16 = vadd.f32 %v7245_v43, %v7215_v59  ;;  %v7178_v45 = vadd.f32 %v7177_v33, %v7115_v38  ;;  %v9532_v9 = vpop.f32.mrf.mxu0  ;;  %v9608_v13 = vpop.f32.mrf.mxu1 }
 0x442   : > { %7152 = vst [vmem:[%s12877_s12 + $0xd0] sm:$0xff] %v7120_v57  ;;  %v7118_v18 = vadd.f32 %v12866_v49, %v6958_v62  ;;  %v6969_v1 = vadd.f32 %v9608_v13, %v6808_v6  ;;  %v6813_v44 = vadd.f32 %v9531_v42, %v13069_v3  ;;  %v7221_v34 = vmul.f32 %v7120_v57, %v7120_v57 }
 0x443   : > { %v7179_v41 = vadd.f32 %v7178_v45, %v7116_v23  ;;  %v7247_v29 = vadd.f32 %v7246_v16, %v7216_v4  ;;  %v9533_v30 = vpop.f32.mrf.mxu0  ;;  %v6960_v53 = vpop.f32.mrf.mxu1 }
 0x444   : > { %7150 = vst [vmem:[%s12877_s12 + $0xc0] sm:$0xff] %v7118_v18  ;;  %v7121_v40 = vadd.f32 %v12866_v49, %v6969_v1  ;;  %v6961_v19 = vadd.f32 %v6960_v53, %v6800_v20  ;;  %v9534_v28 = vadd.f32 %v9533_v30, %v9532_v9  ;;  %v7219_v48 = vmul.f32 %v7118_v18, %v7118_v18 }
 0x445   : > { %v7248_v15 = vadd.f32 %v7247_v29, %v7217_v0  ;;  %v7180_v25 = vadd.f32 %v7179_v41, %v7117_v55  ;;  %v9535_v58 = vpop.f32.mrf.mxu0  ;;  %v9611_v60 = vpop.f32.mrf.mxu1 }
 0x446   : > { %7153 = vst [vmem:[%s12877_s12 + $0xd8] sm:$0xff] %v7121_v40  ;;  %v7119_v22 = vadd.f32 %v12866_v49, %v6961_v19  ;;  %v6816_v27 = vadd.f32 %v9534_v28, %v12842_v17  ;;  %v7222_v31 = vmul.f32 %v7121_v40, %v7121_v40 }
 0x447   : > { %v7181_v23 = vadd.f32 %v7180_v25, %v7118_v18  ;;  %v7249_v63 = vadd.f32 %v7248_v15, %v7218_v39  ;;  %v9536_v52 = vpop.f32.mrf.mxu0  ;;  %v6973_v46 = vpop.f32.mrf.mxu1 }
 0x448   : > { %7151 = vst [vmem:[%s12877_s12 + $0xc8] sm:$0xff] %v7119_v22  ;;  %v7220_v26 = vmul.f32 %v7119_v22, %v7119_v22  ;;  %v9537_v37 = vadd.f32 %v9536_v52, %v9535_v58  ;;  %v6974_v8 = vadd.f32 %v6973_v46, %v6813_v44 }
 0x449   : > { %v7250_v51 = vadd.f32 %v7249_v63, %v7219_v48  ;;  %v7182_v11 = vadd.f32 %v7181_v23, %v7119_v22  ;;  %v9538_v55 = vpop.f32.mrf.mxu0  ;;  %v9612_v12 = vpop.f32.mrf.mxu1 }
 0x44a   : > { %v6821_v14 = vadd.f32 %v9537_v37, %v12853_v5  ;;  %v7122_v32 = vadd.f32 %v12866_v49, %v6974_v8 }
 0x44b   : > { %v7183_v47 = vadd.f32 %v7182_v11, %v7120_v57  ;;  %v7251_v54 = vadd.f32 %v7250_v51, %v7220_v26  ;;  %v9539_v61 = vpop.f32.mrf.mxu0  ;;  %v6976_v56 = vpop.f32.mrf.mxu1 }
 0x44c   : > { %v6982_v35 = vadd.f32 %v9611_v60, %v6821_v14  ;;  %7154 = vst [vmem:[%s12877_s12 + $0xe0] sm:$0xff] %v7122_v32  ;;  %v9540_v38 = vadd.f32 %v9539_v61, %v9538_v55  ;;  %v6977_v50 = vadd.f32 %v6976_v56, %v6816_v27  ;;  %v7223_v24 = vmul.f32 %v7122_v32, %v7122_v32 }
 0x44d   : > { %v7252_v36 = vadd.f32 %v7251_v54, %v7221_v34  ;;  %v7184_v33 = vadd.f32 %v7183_v47, %v7121_v40 }
 0x44e   : > { %v7124_v5 = vadd.f32 %v12866_v49, %v6982_v35  ;;  %v6824_v59 = vadd.f32 %v9540_v38, %v12871_v21  ;;  %v7123_v17 = vadd.f32 %v12866_v49, %v6977_v50 }
 0x44f   : > { %v7185_v43 = vadd.f32 %v7184_v33, %v7122_v32  ;;  %v7253_v7 = vadd.f32 %v7252_v36, %v7222_v31 }
 0x450   : > { %7156 = vst [vmem:[%s12877_s12 + $0xf0] sm:$0xff] %v7124_v5  ;;  %v6985_v4 = vadd.f32 %v9612_v12, %v6824_v59  ;;  %7155 = vst [vmem:[%s12877_s12 + $0xe8] sm:$0xff] %v7123_v17  ;;  %v7224_v57 = vmul.f32 %v7123_v17, %v7123_v17  ;;  %v7225_v16 = vmul.f32 %v7124_v5, %v7124_v5 }
 0x451   : > { %v7254_v62 = vadd.f32 %v7253_v7, %v7223_v24  ;;  %v7186_v10 = vadd.f32 %v7185_v43, %v7123_v17 }
 0x452   : > { %v7125_v6 = vadd.f32 %v12866_v49, %v6985_v4 }
 0x453   : > { %v7187_v45 = vadd.f32 %v7186_v10, %v7124_v5  ;;  %v7255_v9 = vadd.f32 %v7254_v62, %v7224_v57 }
 0x454   : > { %7157 = vst [vmem:[%s12877_s12 + $0xf8] sm:$0xff] %v7125_v6  ;;  %v7226_v21 = vmul.f32 %v7125_v6, %v7125_v6 }
 0x455   : > { %v7188_v13 = vadd.f32 %v7187_v45, %v7125_v6  ;;  %v7256_v42 = vadd.f32 %v7255_v9, %v7225_v16 }
 0x457   : > { %v7189_v18 = vrot.slane %v7188_v13, 4  ;;  %v7257_v1 = vadd.f32 %v7256_v42, %v7226_v21 }
 0x459   : > { %v7190_v2 = vadd.f32 %v7189_v18, %v7188_v13  ;;  %v7258_v20 = vrot.slane %v7257_v1, 4 }
 0x45b   : > { %v7191_v0 = vrot.slane %v7190_v2, 2  ;;  %v7259_v41 = vadd.f32 %v7258_v20, %v7257_v1 }
 0x45d   : > { %v7192_v29 = vadd.f32 %v7191_v0, %v7190_v2  ;;  %v7260_v30 = vrot.slane %v7259_v41, 2 }
 0x45f   : > { %v7193_v53 = vrot.slane %v7192_v29, 1  ;;  %v7261_v40 = vadd.f32 %v7260_v30, %v7259_v41 }
 0x461   : > { %v7262_v49 = vrot.slane %v7261_v40, 1  ;;  %v7194_v19 = vadd.f32 %v7193_v53, %v7192_v29 }
 0x463   : > { %v7263_v39 = vadd.f32 %v7262_v49, %v7261_v40 }
 0x465   : > { %v7265_v15 = vsel %vm7264_vm0, %v7194_v19, %v7263_v39 }
 0x466   : > { %7266 = vst [vmem:[%s312_s22] sm:$0x3] %v7265_v15 }
 0x467 PF: > { %s15_s17 = sadd.s32 1, %s10532_s17   ;;  %s13070_s15 = smov %s10528_s16 }
 0x468   : > { %p12_p6 = scmp.ge.s32.totalorder %s15_s17, 4   ;;  %s13071_s16 = smov %s13073_s18 }
 0x46a   :  { %14 = sbr.rel (!%p12_p6) target bundleno = 2 (0x2), region = 88 }

</bundles_post_ra>
